<compile_context>
chip_gen: v5e
topology: v5e:2x2
jax: 0.10.0
libtpu: 0.0.40
codegen_flags: <defaults>
</compile_context>

<pallas_src>
import math

import jax
import jax.numpy as jnp
from jax import lax
from jax.experimental import pallas as pl
from jax.experimental.pallas import tpu as pltpu


# ---------------------------------------------------------------------------
# In-kernel helpers (operate on VMEM-resident values)
# ---------------------------------------------------------------------------
def _pad1_hw(x):
    """Zero-pad a [H, W, C] tile by 1 on each spatial side, inside the kernel."""
    H, W, C = x.shape
    zc = jnp.zeros((H, 1, C), x.dtype)
    x = jnp.concatenate([zc, x, zc], axis=1)           # [H, W+2, C]
    zr = jnp.zeros((1, W + 2, C), x.dtype)
    return jnp.concatenate([zr, x, zr], axis=0)        # [H+2, W+2, C]


def _im2col(x_bf16):
    """SAME-3x3 im2col of a [H, W, C] bf16 tile -> [H*W, 9*C] (rows (ky,kx,ci))."""
    H, W, C = x_bf16.shape
    xp = _pad1_hw(x_bf16)
    cols = [xp[ky:ky + H, kx:kx + W, :] for ky in range(3) for kx in range(3)]
    return jnp.concatenate(cols, axis=-1).reshape(H * W, 9 * C)


# ---------------------------------------------------------------------------
# Fused forward kernel: one grid step == one batch element, all layers in VMEM
# ---------------------------------------------------------------------------
def _sar_fused_kernel(x_ref,
                      we_ref, be_ref, wd_ref, bd_ref,
                      w1_ref, b1_ref, w2_ref, b2_ref,
                      wo_ref, bo_ref,
                      o_ref):
    x = x_ref[...]                                     # [H, W, 7] bf16
    H, W, C = x.shape
    HW = H * W

    # Pad the full 7-channel tile once; reuse the 9 shifted windows both for
    # the autodespeckler input (channels 0:2) and the classifier's static
    # channels (2:).  The PyTorch concat never materializes.
    xp = _pad1_hw(x)                                   # [H+2, W+2, 7]
    sar_cols, rest_cols = [], []
    for ky in range(3):
        for kx in range(3):
            win = xp[ky:ky + H, kx:kx + W, :]
            sar_cols.append(win[:, :, :2])
            rest_cols.append(win[:, :, 2:])
    sar_patches = jnp.concatenate(sar_cols, axis=-1).reshape(HW, 9 * 2)
    rest_patches = jnp.concatenate(rest_cols, axis=-1).reshape(HW, 9 * (C - 2))

    # --- autodespeckler: encoder 3x3 + ReLU, decoder 3x3 -------------------
    h = jnp.dot(sar_patches, we_ref[...], preferred_element_type=jnp.float32)
    h = jnp.maximum(h + be_ref[...], 0.0)              # [HW, 8] f32
    d_patches = _im2col(h.reshape(H, W, -1).astype(jnp.bfloat16))
    despeckled = jnp.dot(d_patches, wd_ref[...],
                         preferred_element_type=jnp.float32) + bd_ref[...]  # [HW, 2]

    # --- classifier conv1 on cat([despeckled, x[:, 2:]]) --------------------
    # patches = [despeckled-shifts | static-shifts]; w1 rows reordered in wrapper.
    dsp_patches = _im2col(despeckled.reshape(H, W, 2).astype(jnp.bfloat16))  # [HW, 18]
    c1_patches = jnp.concatenate([dsp_patches, rest_patches], axis=-1)       # [HW, 63]
    h1 = jnp.dot(c1_patches, w1_ref[...], preferred_element_type=jnp.float32)
    h1 = jnp.maximum(h1 + b1_ref[...], 0.0)            # [HW, 16]

    # --- classifier conv2 + ReLU --------------------------------------------
    c2_patches = _im2col(h1.reshape(H, W, -1).astype(jnp.bfloat16))          # [HW, 144]
    h2 = jnp.dot(c2_patches, w2_ref[...], preferred_element_type=jnp.float32)
    h2 = jnp.maximum(h2 + b2_ref[...], 0.0)            # [HW, 16]

    # --- 1x1 logit head fused as epilogue; lane-dense [1, HW] row -----------
    logits = lax.dot_general(
        wo_ref[...], h2.astype(jnp.bfloat16),          # (1,16) x (HW,16)^T
        dimension_numbers=(((1,), (1,)), ((), ())),
        preferred_element_type=jnp.float32) + bo_ref[...]
    o_ref[...] = logits                                # [1, HW]


def sar_classifier_forward(params, x_nchw):
    N, C, H, W = x_nchw.shape
    HW = H * W

    # NCHW (PyTorch) -> NHWC bf16 so channels ride the lane axis and the input
    # DMA moves half the bytes (reference also feeds every conv bf16 inputs).
    x = jnp.transpose(x_nchw, (0, 2, 3, 1)).astype(jnp.bfloat16)

    def wflat(w):  # (3, 3, Cin, Cout) -> (9*Cin, Cout) bf16, rows (ky, kx, ci)
        KH, KW, Cin, Cout = w.shape
        return w.reshape(KH * KW * Cin, Cout).astype(jnp.bfloat16)

    def brow(b):
        return b.reshape(1, -1).astype(jnp.float32)

    we, be = params["ad_enc"]
    wd, bd = params["ad_dec"]
    w1, b1 = params["cls_c1"]
    w2, b2 = params["cls_c2"]
    wo, bo = params["cls_out"]

    # Reorder conv1 weight rows to the kernel's [despeckled-shifts | static-
    # shifts] patch layout (removes the in-kernel 2+5 channel concat).
    w1_d = w1[:, :, :2, :].reshape(9 * 2, -1)
    w1_r = w1[:, :, 2:, :].reshape(9 * (C - 2), -1)
    w1_flat = jnp.concatenate([w1_d, w1_r], axis=0).astype(jnp.bfloat16)

    wo_row = wo.reshape(wo.shape[2], wo.shape[3]).T.astype(jnp.bfloat16)  # (1, 16)

    operands = (x,
                wflat(we), brow(be), wflat(wd), brow(bd),
                w1_flat, brow(b1), wflat(w2), brow(b2),
                wo_row, bo.reshape(1, 1).astype(jnp.float32))

    const2d = lambda n: (0, 0)
    in_specs = [pl.BlockSpec((pl.Squeezed(), H, W, C), lambda n: (n, 0, 0, 0))]
    for op in operands[1:]:
        in_specs.append(pl.BlockSpec(op.shape, const2d))

    out = pl.pallas_call(
        _sar_fused_kernel,
        out_shape=jax.ShapeDtypeStruct((N, 1, HW), jnp.float32),
        grid=(N,),
        in_specs=in_specs,
        out_specs=pl.BlockSpec((pl.Squeezed(), 1, HW), lambda n: (n, 0, 0)),
        compiler_params=pltpu.CompilerParams(
            dimension_semantics=("parallel",),
            vmem_limit_bytes=32 * 1024 * 1024),
    )(*operands)

    # lane-dense [N, 1, HW] slab -> NCHW logit map
    return out.reshape(N, 1, H, W)


# ---------------------------------------------------------------------------
# Parameter init (deterministic, shapes implied by the module structure)
# ---------------------------------------------------------------------------
def _init_conv(key, KH, KW, Cin, Cout):
    kw, kb = jax.random.split(key)
    fan_in = KH * KW * Cin
    w = jax.random.normal(kw, (KH, KW, Cin, Cout), jnp.float32) / math.sqrt(fan_in)
    b = 0.01 * jax.random.normal(kb, (Cout,), jnp.float32)
    return w, b


def init_params(key, n_channels=7, hidden=16, ad_hidden=8):
    keys = jax.random.split(key, 5)
    return {
        # autodespeckler (ConvAutoencoder, simplified): operates on 2 SAR channels
        "ad_enc": _init_conv(keys[0], 3, 3, 2, ad_hidden),
        "ad_dec": _init_conv(keys[1], 3, 3, ad_hidden, 2),
        # classifier (UNet, simplified conv head): n_channels -> 1 logit map
        "cls_c1": _init_conv(keys[2], 3, 3, n_channels, hidden),
        "cls_c2": _init_conv(keys[3], 3, 3, hidden, hidden),
        "cls_out": _init_conv(keys[4], 1, 1, hidden, 1),
    }


# ---------------------------------------------------------------------------
# Pure-JAX reference (same bf16-operand / f32-accumulate math as the kernel)
# ---------------------------------------------------------------------------
def _conv2d_ref(x, w, b, *, relu=False):
    out = lax.conv_general_dilated(
        x.astype(jnp.bfloat16), w.astype(jnp.bfloat16),
        window_strides=(1, 1), padding="SAME",
        dimension_numbers=("NHWC", "HWIO", "NHWC"),
        preferred_element_type=jnp.float32)
    out = out + b.reshape(1, 1, 1, -1)
    return jnp.maximum(out, 0.0) if relu else out


def sar_classifier_ref(params, x_nchw):
    x = jnp.transpose(x_nchw, (0, 2, 3, 1)).astype(jnp.float32)
    sar = x[..., :2]
    h = _conv2d_ref(sar, *params["ad_enc"], relu=True)
    despeckled = _conv2d_ref(h, *params["ad_dec"], relu=False)
    cat = jnp.concatenate([despeckled, x[..., 2:]], axis=-1)
    h = _conv2d_ref(cat, *params["cls_c1"], relu=True)
    h = _conv2d_ref(h, *params["cls_c2"], relu=True)
    out = _conv2d_ref(h, *params["cls_out"], relu=False)
    return jnp.transpose(out, (0, 3, 1, 2))


if __name__ == "__main__":
    key = jax.random.PRNGKey(0)
    pkey, xkey = jax.random.split(key)

    N, C, H, W = 2, 7, 16, 16
    params = init_params(pkey, n_channels=C)
    x = jax.random.normal(xkey, (N, C, H, W), jnp.float32)

    out = jax.block_until_ready(jax.jit(sar_classifier_forward)(params, x))
    assert out.shape == (N, 1, H, W), out.shape

    ref = jax.block_until_ready(sar_classifier_ref(params, x))
    max_err = float(jnp.max(jnp.abs(out - ref)))
    assert jnp.allclose(out, ref, atol=2e-3, rtol=2e-3), max_err

    print("KERNEL_OK")
</pallas_src>

<mosaic_0001>
module attributes {stable_mosaic.version = 11 : i64} {
  func.func @_sar_fused_kernel(%arg0: i32, %arg1: memref<1x16x16x7xbf16, #tpu.memory_space<vmem>>, %arg2: memref<18x8xbf16, #tpu.memory_space<vmem>>, %arg3: memref<1x8xf32, #tpu.memory_space<vmem>>, %arg4: memref<72x2xbf16, #tpu.memory_space<vmem>>, %arg5: memref<1x2xf32, #tpu.memory_space<vmem>>, %arg6: memref<63x16xbf16, #tpu.memory_space<vmem>>, %arg7: memref<1x16xf32, #tpu.memory_space<vmem>>, %arg8: memref<144x16xbf16, #tpu.memory_space<vmem>>, %arg9: memref<1x16xf32, #tpu.memory_space<vmem>>, %arg10: memref<1x16xbf16, #tpu.memory_space<vmem>>, %arg11: memref<1x1xf32, #tpu.memory_space<vmem>>, %arg12: memref<1x1x256xf32, #tpu.memory_space<vmem>>) attributes {dimension_semantics = [#tpu.dimension_semantics<parallel>], iteration_bounds = array<i64: 2>, scalar_prefetch = 0 : i64, scratch_operands = 0 : i64, tpu.core_type = #tpu.core_type<tc>, window_params = [{transform_indices = @transform_0, window_bounds = array<i64: 1, 16, 16, 7>}, {pipeline_mode = #tpu.pipeline_mode<synchronous>, transform_indices = @transform_1, window_bounds = array<i64: 18, 8>}, {pipeline_mode = #tpu.pipeline_mode<synchronous>, transform_indices = @transform_2, window_bounds = array<i64: 1, 8>}, {pipeline_mode = #tpu.pipeline_mode<synchronous>, transform_indices = @transform_3, window_bounds = array<i64: 72, 2>}, {pipeline_mode = #tpu.pipeline_mode<synchronous>, transform_indices = @transform_4, window_bounds = array<i64: 1, 2>}, {pipeline_mode = #tpu.pipeline_mode<synchronous>, transform_indices = @transform_5, window_bounds = array<i64: 63, 16>}, {pipeline_mode = #tpu.pipeline_mode<synchronous>, transform_indices = @transform_6, window_bounds = array<i64: 1, 16>}, {pipeline_mode = #tpu.pipeline_mode<synchronous>, transform_indices = @transform_7, window_bounds = array<i64: 144, 16>}, {pipeline_mode = #tpu.pipeline_mode<synchronous>, transform_indices = @transform_8, window_bounds = array<i64: 1, 16>}, {pipeline_mode = #tpu.pipeline_mode<synchronous>, transform_indices = @transform_9, window_bounds = array<i64: 1, 16>}, {pipeline_mode = #tpu.pipeline_mode<synchronous>, transform_indices = @transform_10, window_bounds = array<i64: 1, 1>}, {transform_indices = @transform_11, window_bounds = array<i64: 1, 1, 256>}]} {
    %c0 = arith.constant 0 : index
    %c0_0 = arith.constant 0 : index
    %c0_1 = arith.constant 0 : index
    %c0_2 = arith.constant 0 : index
    %0 = vector.load %arg1[%c0, %c0_0, %c0_1, %c0_2] : memref<1x16x16x7xbf16, #tpu.memory_space<vmem>>, vector<1x16x16x7xbf16>
    %1 = vector.shape_cast %0 : vector<1x16x16x7xbf16> to vector<16x16x7xbf16>
    %cst = arith.constant 0.000000e+00 : bf16
    %2 = vector.broadcast %cst : bf16 to vector<16x1x7xbf16>
    %3 = tpu.concatenate %2, %1, %2 in 1 : vector<16x1x7xbf16>, vector<16x16x7xbf16>, vector<16x1x7xbf16> -> vector<16x18x7xbf16>
    %cst_3 = arith.constant 0.000000e+00 : bf16
    %4 = vector.broadcast %cst_3 : bf16 to vector<1x18x7xbf16>
    %5 = tpu.concatenate %4, %3, %4 in 0 : vector<1x18x7xbf16>, vector<16x18x7xbf16>, vector<1x18x7xbf16> -> vector<18x18x7xbf16>
    %6 = vector.extract_strided_slice %5 {offsets = [0, 0, 0], sizes = [16, 16, 7], strides = [1, 1, 1]} : vector<18x18x7xbf16> to vector<16x16x7xbf16>
    %7 = vector.extract_strided_slice %6 {offsets = [0, 0, 0], sizes = [16, 16, 2], strides = [1, 1, 1]} : vector<16x16x7xbf16> to vector<16x16x2xbf16>
    %8 = vector.extract_strided_slice %6 {offsets = [0, 0, 2], sizes = [16, 16, 5], strides = [1, 1, 1]} : vector<16x16x7xbf16> to vector<16x16x5xbf16>
    %9 = vector.extract_strided_slice %5 {offsets = [0, 1, 0], sizes = [16, 16, 7], strides = [1, 1, 1]} : vector<18x18x7xbf16> to vector<16x16x7xbf16>
    %10 = vector.extract_strided_slice %9 {offsets = [0, 0, 0], sizes = [16, 16, 2], strides = [1, 1, 1]} : vector<16x16x7xbf16> to vector<16x16x2xbf16>
    %11 = vector.extract_strided_slice %9 {offsets = [0, 0, 2], sizes = [16, 16, 5], strides = [1, 1, 1]} : vector<16x16x7xbf16> to vector<16x16x5xbf16>
    %12 = vector.extract_strided_slice %5 {offsets = [0, 2, 0], sizes = [16, 16, 7], strides = [1, 1, 1]} : vector<18x18x7xbf16> to vector<16x16x7xbf16>
    %13 = vector.extract_strided_slice %12 {offsets = [0, 0, 0], sizes = [16, 16, 2], strides = [1, 1, 1]} : vector<16x16x7xbf16> to vector<16x16x2xbf16>
    %14 = vector.extract_strided_slice %12 {offsets = [0, 0, 2], sizes = [16, 16, 5], strides = [1, 1, 1]} : vector<16x16x7xbf16> to vector<16x16x5xbf16>
    %15 = vector.extract_strided_slice %5 {offsets = [1, 0, 0], sizes = [16, 16, 7], strides = [1, 1, 1]} : vector<18x18x7xbf16> to vector<16x16x7xbf16>
    %16 = vector.extract_strided_slice %15 {offsets = [0, 0, 0], sizes = [16, 16, 2], strides = [1, 1, 1]} : vector<16x16x7xbf16> to vector<16x16x2xbf16>
    %17 = vector.extract_strided_slice %15 {offsets = [0, 0, 2], sizes = [16, 16, 5], strides = [1, 1, 1]} : vector<16x16x7xbf16> to vector<16x16x5xbf16>
    %18 = vector.extract_strided_slice %5 {offsets = [1, 1, 0], sizes = [16, 16, 7], strides = [1, 1, 1]} : vector<18x18x7xbf16> to vector<16x16x7xbf16>
    %19 = vector.extract_strided_slice %18 {offsets = [0, 0, 0], sizes = [16, 16, 2], strides = [1, 1, 1]} : vector<16x16x7xbf16> to vector<16x16x2xbf16>
    %20 = vector.extract_strided_slice %18 {offsets = [0, 0, 2], sizes = [16, 16, 5], strides = [1, 1, 1]} : vector<16x16x7xbf16> to vector<16x16x5xbf16>
    %21 = vector.extract_strided_slice %5 {offsets = [1, 2, 0], sizes = [16, 16, 7], strides = [1, 1, 1]} : vector<18x18x7xbf16> to vector<16x16x7xbf16>
    %22 = vector.extract_strided_slice %21 {offsets = [0, 0, 0], sizes = [16, 16, 2], strides = [1, 1, 1]} : vector<16x16x7xbf16> to vector<16x16x2xbf16>
    %23 = vector.extract_strided_slice %21 {offsets = [0, 0, 2], sizes = [16, 16, 5], strides = [1, 1, 1]} : vector<16x16x7xbf16> to vector<16x16x5xbf16>
    %24 = vector.extract_strided_slice %5 {offsets = [2, 0, 0], sizes = [16, 16, 7], strides = [1, 1, 1]} : vector<18x18x7xbf16> to vector<16x16x7xbf16>
    %25 = vector.extract_strided_slice %24 {offsets = [0, 0, 0], sizes = [16, 16, 2], strides = [1, 1, 1]} : vector<16x16x7xbf16> to vector<16x16x2xbf16>
    %26 = vector.extract_strided_slice %24 {offsets = [0, 0, 2], sizes = [16, 16, 5], strides = [1, 1, 1]} : vector<16x16x7xbf16> to vector<16x16x5xbf16>
    %27 = vector.extract_strided_slice %5 {offsets = [2, 1, 0], sizes = [16, 16, 7], strides = [1, 1, 1]} : vector<18x18x7xbf16> to vector<16x16x7xbf16>
    %28 = vector.extract_strided_slice %27 {offsets = [0, 0, 0], sizes = [16, 16, 2], strides = [1, 1, 1]} : vector<16x16x7xbf16> to vector<16x16x2xbf16>
    %29 = vector.extract_strided_slice %27 {offsets = [0, 0, 2], sizes = [16, 16, 5], strides = [1, 1, 1]} : vector<16x16x7xbf16> to vector<16x16x5xbf16>
    %30 = vector.extract_strided_slice %5 {offsets = [2, 2, 0], sizes = [16, 16, 7], strides = [1, 1, 1]} : vector<18x18x7xbf16> to vector<16x16x7xbf16>
    %31 = vector.extract_strided_slice %30 {offsets = [0, 0, 0], sizes = [16, 16, 2], strides = [1, 1, 1]} : vector<16x16x7xbf16> to vector<16x16x2xbf16>
    %32 = vector.extract_strided_slice %30 {offsets = [0, 0, 2], sizes = [16, 16, 5], strides = [1, 1, 1]} : vector<16x16x7xbf16> to vector<16x16x5xbf16>
    %33 = tpu.concatenate %7, %10, %13, %16, %19, %22, %25, %28, %31 in 2 : vector<16x16x2xbf16>, vector<16x16x2xbf16>, vector<16x16x2xbf16>, vector<16x16x2xbf16>, vector<16x16x2xbf16>, vector<16x16x2xbf16>, vector<16x16x2xbf16>, vector<16x16x2xbf16>, vector<16x16x2xbf16> -> vector<16x16x18xbf16>
    %34 = vector.shape_cast %33 : vector<16x16x18xbf16> to vector<256x18xbf16>
    %35 = tpu.concatenate %8, %11, %14, %17, %20, %23, %26, %29, %32 in 2 : vector<16x16x5xbf16>, vector<16x16x5xbf16>, vector<16x16x5xbf16>, vector<16x16x5xbf16>, vector<16x16x5xbf16>, vector<16x16x5xbf16>, vector<16x16x5xbf16>, vector<16x16x5xbf16>, vector<16x16x5xbf16> -> vector<16x16x45xbf16>
    %36 = vector.shape_cast %35 : vector<16x16x45xbf16> to vector<256x45xbf16>
    %c0_4 = arith.constant 0 : index
    %c0_5 = arith.constant 0 : index
    %37 = vector.load %arg2[%c0_4, %c0_5] : memref<18x8xbf16, #tpu.memory_space<vmem>>, vector<18x8xbf16>
    %cst_6 = arith.constant dense<0.000000e+00> : vector<256x8xf32>
    %38 = tpu.matmul %34, %37, %cst_6 {dimension_numbers = #tpu.dot_dimension_numbers<[1], [0], [0], [1], [0, 0, 1, 1], [], []>} : vector<256x18xbf16>, vector<18x8xbf16>, vector<256x8xf32> -> vector<256x8xf32>
    %c0_7 = arith.constant 0 : index
    %c0_8 = arith.constant 0 : index
    %39 = vector.load %arg3[%c0_7, %c0_8] : memref<1x8xf32, #tpu.memory_space<vmem>>, vector<1x8xf32>
    %40 = vector.broadcast %39 : vector<1x8xf32> to vector<256x8xf32>
    %41 = arith.addf %38, %40 : vector<256x8xf32>
    %cst_9 = arith.constant 0.000000e+00 : f32
    %42 = vector.broadcast %cst_9 : f32 to vector<256x8xf32>
    %43 = arith.maximumf %41, %42 : vector<256x8xf32>
    %44 = vector.shape_cast %43 : vector<256x8xf32> to vector<16x16x8xf32>
    %45 = arith.truncf %44 : vector<16x16x8xf32> to vector<16x16x8xbf16>
    %cst_10 = arith.constant 0.000000e+00 : bf16
    %46 = vector.broadcast %cst_10 : bf16 to vector<16x1x8xbf16>
    %47 = tpu.concatenate %46, %45, %46 in 1 : vector<16x1x8xbf16>, vector<16x16x8xbf16>, vector<16x1x8xbf16> -> vector<16x18x8xbf16>
    %cst_11 = arith.constant 0.000000e+00 : bf16
    %48 = vector.broadcast %cst_11 : bf16 to vector<1x18x8xbf16>
    %49 = tpu.concatenate %48, %47, %48 in 0 : vector<1x18x8xbf16>, vector<16x18x8xbf16>, vector<1x18x8xbf16> -> vector<18x18x8xbf16>
    %50 = vector.extract_strided_slice %49 {offsets = [0, 0, 0], sizes = [16, 16, 8], strides = [1, 1, 1]} : vector<18x18x8xbf16> to vector<16x16x8xbf16>
    %51 = vector.extract_strided_slice %49 {offsets = [0, 1, 0], sizes = [16, 16, 8], strides = [1, 1, 1]} : vector<18x18x8xbf16> to vector<16x16x8xbf16>
    %52 = vector.extract_strided_slice %49 {offsets = [0, 2, 0], sizes = [16, 16, 8], strides = [1, 1, 1]} : vector<18x18x8xbf16> to vector<16x16x8xbf16>
    %53 = vector.extract_strided_slice %49 {offsets = [1, 0, 0], sizes = [16, 16, 8], strides = [1, 1, 1]} : vector<18x18x8xbf16> to vector<16x16x8xbf16>
    %54 = vector.extract_strided_slice %49 {offsets = [1, 1, 0], sizes = [16, 16, 8], strides = [1, 1, 1]} : vector<18x18x8xbf16> to vector<16x16x8xbf16>
    %55 = vector.extract_strided_slice %49 {offsets = [1, 2, 0], sizes = [16, 16, 8], strides = [1, 1, 1]} : vector<18x18x8xbf16> to vector<16x16x8xbf16>
    %56 = vector.extract_strided_slice %49 {offsets = [2, 0, 0], sizes = [16, 16, 8], strides = [1, 1, 1]} : vector<18x18x8xbf16> to vector<16x16x8xbf16>
    %57 = vector.extract_strided_slice %49 {offsets = [2, 1, 0], sizes = [16, 16, 8], strides = [1, 1, 1]} : vector<18x18x8xbf16> to vector<16x16x8xbf16>
    %58 = vector.extract_strided_slice %49 {offsets = [2, 2, 0], sizes = [16, 16, 8], strides = [1, 1, 1]} : vector<18x18x8xbf16> to vector<16x16x8xbf16>
    %59 = tpu.concatenate %50, %51, %52, %53, %54, %55, %56, %57, %58 in 2 : vector<16x16x8xbf16>, vector<16x16x8xbf16>, vector<16x16x8xbf16>, vector<16x16x8xbf16>, vector<16x16x8xbf16>, vector<16x16x8xbf16>, vector<16x16x8xbf16>, vector<16x16x8xbf16>, vector<16x16x8xbf16> -> vector<16x16x72xbf16>
    %60 = vector.shape_cast %59 : vector<16x16x72xbf16> to vector<256x72xbf16>
    %c0_12 = arith.constant 0 : index
    %c0_13 = arith.constant 0 : index
    %61 = vector.load %arg4[%c0_12, %c0_13] : memref<72x2xbf16, #tpu.memory_space<vmem>>, vector<72x2xbf16>
    %cst_14 = arith.constant dense<0.000000e+00> : vector<256x2xf32>
    %62 = tpu.matmul %60, %61, %cst_14 {dimension_numbers = #tpu.dot_dimension_numbers<[1], [0], [0], [1], [0, 0, 1, 1], [], []>} : vector<256x72xbf16>, vector<72x2xbf16>, vector<256x2xf32> -> vector<256x2xf32>
    %c0_15 = arith.constant 0 : index
    %c0_16 = arith.constant 0 : index
    %63 = vector.load %arg5[%c0_15, %c0_16] : memref<1x2xf32, #tpu.memory_space<vmem>>, vector<1x2xf32>
    %64 = vector.broadcast %63 : vector<1x2xf32> to vector<256x2xf32>
    %65 = arith.addf %62, %64 : vector<256x2xf32>
    %66 = vector.shape_cast %65 : vector<256x2xf32> to vector<16x16x2xf32>
    %67 = arith.truncf %66 : vector<16x16x2xf32> to vector<16x16x2xbf16>
    %cst_17 = arith.constant 0.000000e+00 : bf16
    %68 = vector.broadcast %cst_17 : bf16 to vector<16x1x2xbf16>
    %69 = tpu.concatenate %68, %67, %68 in 1 : vector<16x1x2xbf16>, vector<16x16x2xbf16>, vector<16x1x2xbf16> -> vector<16x18x2xbf16>
    %cst_18 = arith.constant 0.000000e+00 : bf16
    %70 = vector.broadcast %cst_18 : bf16 to vector<1x18x2xbf16>
    %71 = tpu.concatenate %70, %69, %70 in 0 : vector<1x18x2xbf16>, vector<16x18x2xbf16>, vector<1x18x2xbf16> -> vector<18x18x2xbf16>
    %72 = vector.extract_strided_slice %71 {offsets = [0, 0, 0], sizes = [16, 16, 2], strides = [1, 1, 1]} : vector<18x18x2xbf16> to vector<16x16x2xbf16>
    %73 = vector.extract_strided_slice %71 {offsets = [0, 1, 0], sizes = [16, 16, 2], strides = [1, 1, 1]} : vector<18x18x2xbf16> to vector<16x16x2xbf16>
    %74 = vector.extract_strided_slice %71 {offsets = [0, 2, 0], sizes = [16, 16, 2], strides = [1, 1, 1]} : vector<18x18x2xbf16> to vector<16x16x2xbf16>
    %75 = vector.extract_strided_slice %71 {offsets = [1, 0, 0], sizes = [16, 16, 2], strides = [1, 1, 1]} : vector<18x18x2xbf16> to vector<16x16x2xbf16>
    %76 = vector.extract_strided_slice %71 {offsets = [1, 1, 0], sizes = [16, 16, 2], strides = [1, 1, 1]} : vector<18x18x2xbf16> to vector<16x16x2xbf16>
    %77 = vector.extract_strided_slice %71 {offsets = [1, 2, 0], sizes = [16, 16, 2], strides = [1, 1, 1]} : vector<18x18x2xbf16> to vector<16x16x2xbf16>
    %78 = vector.extract_strided_slice %71 {offsets = [2, 0, 0], sizes = [16, 16, 2], strides = [1, 1, 1]} : vector<18x18x2xbf16> to vector<16x16x2xbf16>
    %79 = vector.extract_strided_slice %71 {offsets = [2, 1, 0], sizes = [16, 16, 2], strides = [1, 1, 1]} : vector<18x18x2xbf16> to vector<16x16x2xbf16>
    %80 = vector.extract_strided_slice %71 {offsets = [2, 2, 0], sizes = [16, 16, 2], strides = [1, 1, 1]} : vector<18x18x2xbf16> to vector<16x16x2xbf16>
    %81 = tpu.concatenate %72, %73, %74, %75, %76, %77, %78, %79, %80 in 2 : vector<16x16x2xbf16>, vector<16x16x2xbf16>, vector<16x16x2xbf16>, vector<16x16x2xbf16>, vector<16x16x2xbf16>, vector<16x16x2xbf16>, vector<16x16x2xbf16>, vector<16x16x2xbf16>, vector<16x16x2xbf16> -> vector<16x16x18xbf16>
    %82 = vector.shape_cast %81 : vector<16x16x18xbf16> to vector<256x18xbf16>
    %83 = tpu.concatenate %82, %36 in 1 : vector<256x18xbf16>, vector<256x45xbf16> -> vector<256x63xbf16>
    %c0_19 = arith.constant 0 : index
    %c0_20 = arith.constant 0 : index
    %84 = vector.load %arg6[%c0_19, %c0_20] : memref<63x16xbf16, #tpu.memory_space<vmem>>, vector<63x16xbf16>
    %cst_21 = arith.constant dense<0.000000e+00> : vector<256x16xf32>
    %85 = tpu.matmul %83, %84, %cst_21 {dimension_numbers = #tpu.dot_dimension_numbers<[1], [0], [0], [1], [0, 0, 1, 1], [], []>} : vector<256x63xbf16>, vector<63x16xbf16>, vector<256x16xf32> -> vector<256x16xf32>
    %c0_22 = arith.constant 0 : index
    %c0_23 = arith.constant 0 : index
    %86 = vector.load %arg7[%c0_22, %c0_23] : memref<1x16xf32, #tpu.memory_space<vmem>>, vector<1x16xf32>
    %87 = vector.broadcast %86 : vector<1x16xf32> to vector<256x16xf32>
    %88 = arith.addf %85, %87 : vector<256x16xf32>
    %cst_24 = arith.constant 0.000000e+00 : f32
    %89 = vector.broadcast %cst_24 : f32 to vector<256x16xf32>
    %90 = arith.maximumf %88, %89 : vector<256x16xf32>
    %91 = vector.shape_cast %90 : vector<256x16xf32> to vector<16x16x16xf32>
    %92 = arith.truncf %91 : vector<16x16x16xf32> to vector<16x16x16xbf16>
    %cst_25 = arith.constant 0.000000e+00 : bf16
    %93 = vector.broadcast %cst_25 : bf16 to vector<16x1x16xbf16>
    %94 = tpu.concatenate %93, %92, %93 in 1 : vector<16x1x16xbf16>, vector<16x16x16xbf16>, vector<16x1x16xbf16> -> vector<16x18x16xbf16>
    %cst_26 = arith.constant 0.000000e+00 : bf16
    %95 = vector.broadcast %cst_26 : bf16 to vector<1x18x16xbf16>
    %96 = tpu.concatenate %95, %94, %95 in 0 : vector<1x18x16xbf16>, vector<16x18x16xbf16>, vector<1x18x16xbf16> -> vector<18x18x16xbf16>
    %97 = vector.extract_strided_slice %96 {offsets = [0, 0, 0], sizes = [16, 16, 16], strides = [1, 1, 1]} : vector<18x18x16xbf16> to vector<16x16x16xbf16>
    %98 = vector.extract_strided_slice %96 {offsets = [0, 1, 0], sizes = [16, 16, 16], strides = [1, 1, 1]} : vector<18x18x16xbf16> to vector<16x16x16xbf16>
    %99 = vector.extract_strided_slice %96 {offsets = [0, 2, 0], sizes = [16, 16, 16], strides = [1, 1, 1]} : vector<18x18x16xbf16> to vector<16x16x16xbf16>
    %100 = vector.extract_strided_slice %96 {offsets = [1, 0, 0], sizes = [16, 16, 16], strides = [1, 1, 1]} : vector<18x18x16xbf16> to vector<16x16x16xbf16>
    %101 = vector.extract_strided_slice %96 {offsets = [1, 1, 0], sizes = [16, 16, 16], strides = [1, 1, 1]} : vector<18x18x16xbf16> to vector<16x16x16xbf16>
    %102 = vector.extract_strided_slice %96 {offsets = [1, 2, 0], sizes = [16, 16, 16], strides = [1, 1, 1]} : vector<18x18x16xbf16> to vector<16x16x16xbf16>
    %103 = vector.extract_strided_slice %96 {offsets = [2, 0, 0], sizes = [16, 16, 16], strides = [1, 1, 1]} : vector<18x18x16xbf16> to vector<16x16x16xbf16>
    %104 = vector.extract_strided_slice %96 {offsets = [2, 1, 0], sizes = [16, 16, 16], strides = [1, 1, 1]} : vector<18x18x16xbf16> to vector<16x16x16xbf16>
    %105 = vector.extract_strided_slice %96 {offsets = [2, 2, 0], sizes = [16, 16, 16], strides = [1, 1, 1]} : vector<18x18x16xbf16> to vector<16x16x16xbf16>
    %106 = tpu.concatenate %97, %98, %99, %100, %101, %102, %103, %104, %105 in 2 : vector<16x16x16xbf16>, vector<16x16x16xbf16>, vector<16x16x16xbf16>, vector<16x16x16xbf16>, vector<16x16x16xbf16>, vector<16x16x16xbf16>, vector<16x16x16xbf16>, vector<16x16x16xbf16>, vector<16x16x16xbf16> -> vector<16x16x144xbf16>
    %107 = vector.shape_cast %106 : vector<16x16x144xbf16> to vector<256x144xbf16>
    %c0_27 = arith.constant 0 : index
    %c0_28 = arith.constant 0 : index
    %108 = vector.load %arg8[%c0_27, %c0_28] : memref<144x16xbf16, #tpu.memory_space<vmem>>, vector<144x16xbf16>
    %cst_29 = arith.constant dense<0.000000e+00> : vector<256x16xf32>
    %109 = tpu.matmul %107, %108, %cst_29 {dimension_numbers = #tpu.dot_dimension_numbers<[1], [0], [0], [1], [0, 0, 1, 1], [], []>} : vector<256x144xbf16>, vector<144x16xbf16>, vector<256x16xf32> -> vector<256x16xf32>
    %c0_30 = arith.constant 0 : index
    %c0_31 = arith.constant 0 : index
    %110 = vector.load %arg9[%c0_30, %c0_31] : memref<1x16xf32, #tpu.memory_space<vmem>>, vector<1x16xf32>
    %111 = vector.broadcast %110 : vector<1x16xf32> to vector<256x16xf32>
    %112 = arith.addf %109, %111 : vector<256x16xf32>
    %cst_32 = arith.constant 0.000000e+00 : f32
    %113 = vector.broadcast %cst_32 : f32 to vector<256x16xf32>
    %114 = arith.maximumf %112, %113 : vector<256x16xf32>
    %c0_33 = arith.constant 0 : index
    %c0_34 = arith.constant 0 : index
    %115 = vector.load %arg10[%c0_33, %c0_34] : memref<1x16xbf16, #tpu.memory_space<vmem>>, vector<1x16xbf16>
    %116 = arith.truncf %114 : vector<256x16xf32> to vector<256x16xbf16>
    %cst_35 = arith.constant dense<0.000000e+00> : vector<1x256xf32>
    %117 = tpu.matmul %115, %116, %cst_35 {dimension_numbers = #tpu.dot_dimension_numbers<[1], [1], [0], [0], [0, 0, 1, 0], [], []>} : vector<1x16xbf16>, vector<256x16xbf16>, vector<1x256xf32> -> vector<1x256xf32>
    %c0_36 = arith.constant 0 : index
    %c0_37 = arith.constant 0 : index
    %118 = vector.load %arg11[%c0_36, %c0_37] : memref<1x1xf32, #tpu.memory_space<vmem>>, vector<1x1xf32>
    %119 = vector.broadcast %118 : vector<1x1xf32> to vector<1x256xf32>
    %120 = arith.addf %117, %119 : vector<1x256xf32>
    %c0_38 = arith.constant 0 : index
    %c0_39 = arith.constant 0 : index
    %c0_40 = arith.constant 0 : index
    %121 = vector.load %arg12[%c0_38, %c0_39, %c0_40] : memref<1x1x256xf32, #tpu.memory_space<vmem>>, vector<1x1x256xf32>
    %122 = vector.shape_cast %121 : vector<1x1x256xf32> to vector<1x256xf32>
    %123 = vector.shape_cast %120 : vector<1x256xf32> to vector<1x1x256xf32>
    tpu.vector_store %arg12[%c0_38, %c0_39, %c0_40], %123 {strides = array<i32>} : memref<1x1x256xf32, #tpu.memory_space<vmem>>, vector<1x1x256xf32>,
    return
  }
  func.func @transform_0(%arg0: i32) -> (i32, i32, i32, i32) {
    %c0_i32 = arith.constant 0 : i32
    %c0_i32_0 = arith.constant 0 : i32
    %c0_i32_1 = arith.constant 0 : i32
    %c0_i32_2 = arith.constant 0 : i32
    return %arg0, %c0_i32, %c0_i32_0, %c0_i32_1 : i32, i32, i32, i32
  }
  func.func @transform_1(%arg0: i32) -> (i32, i32) {
    %c0_i32 = arith.constant 0 : i32
    %c0_i32_0 = arith.constant 0 : i32
    %c0_i32_1 = arith.constant 0 : i32
    return %c0_i32, %c0_i32_0 : i32, i32
  }
  func.func @transform_2(%arg0: i32) -> (i32, i32) {
    %c0_i32 = arith.constant 0 : i32
    %c0_i32_0 = arith.constant 0 : i32
    %c0_i32_1 = arith.constant 0 : i32
    return %c0_i32, %c0_i32_0 : i32, i32
  }
  func.func @transform_3(%arg0: i32) -> (i32, i32) {
    %c0_i32 = arith.constant 0 : i32
    %c0_i32_0 = arith.constant 0 : i32
    %c0_i32_1 = arith.constant 0 : i32
    return %c0_i32, %c0_i32_0 : i32, i32
  }
  func.func @transform_4(%arg0: i32) -> (i32, i32) {
    %c0_i32 = arith.constant 0 : i32
    %c0_i32_0 = arith.constant 0 : i32
    %c0_i32_1 = arith.constant 0 : i32
    return %c0_i32, %c0_i32_0 : i32, i32
  }
  func.func @transform_5(%arg0: i32) -> (i32, i32) {
    %c0_i32 = arith.constant 0 : i32
    %c0_i32_0 = arith.constant 0 : i32
    %c0_i32_1 = arith.constant 0 : i32
    return %c0_i32, %c0_i32_0 : i32, i32
  }
  func.func @transform_6(%arg0: i32) -> (i32, i32) {
    %c0_i32 = arith.constant 0 : i32
    %c0_i32_0 = arith.constant 0 : i32
    %c0_i32_1 = arith.constant 0 : i32
    return %c0_i32, %c0_i32_0 : i32, i32
  }
  func.func @transform_7(%arg0: i32) -> (i32, i32) {
    %c0_i32 = arith.constant 0 : i32
    %c0_i32_0 = arith.constant 0 : i32
    %c0_i32_1 = arith.constant 0 : i32
    return %c0_i32, %c0_i32_0 : i32, i32
  }
  func.func @transform_8(%arg0: i32) -> (i32, i32) {
    %c0_i32 = arith.constant 0 : i32
    %c0_i32_0 = arith.constant 0 : i32
    %c0_i32_1 = arith.constant 0 : i32
    return %c0_i32, %c0_i32_0 : i32, i32
  }
  func.func @transform_9(%arg0: i32) -> (i32, i32) {
    %c0_i32 = arith.constant 0 : i32
    %c0_i32_0 = arith.constant 0 : i32
    %c0_i32_1 = arith.constant 0 : i32
    return %c0_i32, %c0_i32_0 : i32, i32
  }
  func.func @transform_10(%arg0: i32) -> (i32, i32) {
    %c0_i32 = arith.constant 0 : i32
    %c0_i32_0 = arith.constant 0 : i32
    %c0_i32_1 = arith.constant 0 : i32
    return %c0_i32, %c0_i32_0 : i32, i32
  }
  func.func @transform_11(%arg0: i32) -> (i32, i32, i32) {
    %c0_i32 = arith.constant 0 : i32
    %c0_i32_0 = arith.constant 0 : i32
    %c0_i32_1 = arith.constant 0 : i32
    return %arg0, %c0_i32, %c0_i32_0 : i32, i32, i32
  }
}

</mosaic_0001>

<bundles_post_ra>
// kernel: sar_classifier_forward.1
= control target key start
LH: loop header
LB: loop body
LE: loop exit
PB: predicated region body
PF: predicated region fallthrough
CT: control target
= control target key end

     0   :  { %s6721_s19 = smov 0   ;;  %s11305_s0 = inlined_call_operand.vmem [shape: bf16[2,16,16,7], index: 0, kind: input, shape index: {}]   ;;  %s11306_s1 = inlined_call_operand.vmem [shape: bf16[18,8], index: 1, kind: input, shape index: {}]   ;;  %s11307_s2 = inlined_call_operand.vmem [shape: f32[1,8], index: 2, kind: input, shape index: {}]   ;;  %s11308_s3 = inlined_call_operand.vmem [shape: bf16[72,2], index: 3, kind: input, shape index: {}]   ;;  %s11309_s4 = inlined_call_operand.vmem [shape: f32[1,2], index: 4, kind: input, shape index: {}]   ;;  %s11310_s5 = inlined_call_operand.vmem [shape: bf16[63,16], index: 5, kind: input, shape index: {}]   ;;  %s11311_s6 = inlined_call_operand.vmem [shape: f32[1,16], index: 6, kind: input, shape index: {}]   ;;  %s11312_s7 = inlined_call_operand.vmem [shape: bf16[144,16], index: 7, kind: input, shape index: {}]   ;;  %s11313_s8 = inlined_call_operand.vmem [shape: f32[1,16], index: 8, kind: input, shape index: {}]   ;;  %s11314_s9 = inlined_call_operand.vmem [shape: bf16[1,16], index: 9, kind: input, shape index: {}]   ;;  %s11315_s10 = inlined_call_operand.<no memory space> [shape: f32[1,1], index: 10, kind: input, shape index: {}]   ;;  %s11316_s11 = inlined_call_operand.vmem [shape: f32[2,1,256], index: 11, kind: output, shape index: {}]  }
   0x1   :  { %v16_v0 = vstv %s11315_s10 }
   0x2   :  { %17 = vst [vmem:[#allocation2] sm:$0x1] %v16_v0 }
   0x3 LB: > { %s6321_s20 = sadd.s32 4294967295, %s6629_s19   ;;  %p6325_p0 = scmp.ge.s32.totalorder %s6629_s19, 1  ;;  %s6629_s19 = sphi %s6721_s19, %s23_s19  }
   0x4   : > { %p339_p1 = scmp.lt.s32.totalorder %s6629_s19, 3 }
   0x6   : > { %p340_p2 = pnand %p6325_p0, %p339_p1 }
   0x8   : > { %343 = sbr.rel (%p340_p2) target bundleno = 2313 (0x909), region = 64 }
   0xd   : > { %p378_p3 = scmp.lt.s32.totalorder %s6321_s20, 1  ;;  %v11317_v1 = vmov 0   ;;  %s6632_s10 = smov 2   ;;  %vm11403_vm0 = vcmask 1040384   ;;  %vm645_vm1 = vsmask.f32 256 }
   0xe   : > { %v6730_v2 = vrot.slane %v11317_v1, 1  ;;  %6614 = vset.pattern.permute.xlu1 %v11317_v1  ;;  %6615 = vset.pattern.permute.xlu0 %v11317_v1  ;;  %vm679_vm2 = vsmask.f32 7424  ;;  %vm6754_vm3 = vmand %vm11403_vm0, %vm645_vm1  ;;  %v11429_v21 = vmov 0  ;;  %vm931_vm4 = vcmask 1046528   ;;  %s11417_s25 = smov 4  }
   0xf   : > { %s11979_s20 = smov (!%p378_p3, %s6321_s20), 1  ;;  %v11430_v21 = vsel %vm6754_vm3, 4294967295, %v11429_v21  ;;  %s6634_s26 = smov 6   ;;  %vm11405_vm5 = vcmask 15360   ;;  %vm11404_vm6 = vcmask 31744   ;;  %vm11421_vm7 = vcmask 48128  }
  0x10   : > { %11428 = vst [vmem:[#allocation3_spill] sm:$0xff] %v6730_v2  ;;  %868 = vrot.lane.b32.xlu0 %v6730_v2, %s6632_s10  ;;  %s6533_s21 = sshll.u32 %s11979_s20, 7  ;;  %s6635_s27 = smov 8   ;;  %vm1319_vm8 = vcmask 64512   ;;  %vm11426_vm9 = vcmask 80896   ;;  %vm11420_vm10 = vcmask 97280  }
  0x11   : > { %s6742_s24 = scalar_lea.vmem %s11305_s0, %s6533_s21  ;;  %11431 = vst [vmem:[#allocation4_spill] sm:$0xff] %v11430_v21  ;;  %s6636_s28 = smov 10   ;;  %vm11419_vm11 = vcmask 113664   ;;  %vm11416_vm12 = vcmask 146432   ;;  %vm1451_vm13 = vcmask 130048   ;;  %vm11427_vm14 = vcmask 39936  }
  0x12   : > { %v6537_v3 = vld [vmem:[%s6742_s24 + $0x18] sm:$0xff]  ;;  %v6535_v4 = vld [vmem:[%s6742_s24 + $0x8] sm:$0xff]  ;;  %v6534_v5 = vld [vmem:[%s6742_s24] sm:$0xff]  ;;  %s6637_s29 = smov 12   ;;  %s6638_s30 = smov 14   ;;  %vm1886_vm15 = vcmask 162816  }
  0x13   : > { %v6538_v6 = vld [vmem:[%s6742_s24 + $0x20] sm:$0xff]  ;;  %v6536_v7 = vld [vmem:[%s6742_s24 + $0x10] sm:$0xff]  ;;  %v6750_v8 = vld [vmem:[%s6742_s24 + $0x28] sm:$0xff]  ;;  %v522_v9 = vshrl.u32 %v6537_v3, 16  ;;  %v525_v10 = vshll.u32 %v6537_v3, 16  ;;  %v508_v11 = vshrl.u32 %v6535_v4, 16 }
  0x14   : > { %v511_v12 = vshll.u32 %v6535_v4, 16  ;;  %v501_v13 = vshrl.u32 %v6534_v5, 16  ;;  %v504_v14 = vshll.u32 %v6534_v5, 16  ;;  %v529_v15 = vshrl.u32 %v6538_v6, 16  ;;  %v6541_v46 = vld [vmem:[%s6742_s24 + $0x38] sm:$0xff]  ;;  %s6639_s12 = smov 16  }
  0x15   : > { %v532_v16 = vshll.u32 %v6538_v6, 16  ;;  %v524_v17 = vrot.slane %v522_v9, 7  ;;  %v510_v18 = vrot.slane %v508_v11, 7  ;;  %v515_v19 = vshrl.u32 %v6536_v7, 16  ;;  %v6540_v9 = vld [vmem:[%s6742_s24 + $0x30] sm:$0xff]  ;;  %s6640_s13 = smov 126  }
  0x16   : > { %v518_v20 = vshll.u32 %v6536_v7, 16  ;;  %v503_v22 = vrot.slane %v501_v13, 7  ;;  %v531_v23 = vrot.slane %v529_v15, 7  ;;  %v536_v24 = vshrl.u32 %v6750_v8, 16  ;;  %s6641_s18 = smov 3   ;;  %s6642_s21 = smov 13  }
  0x17   : > { %v539_v25 = vshll.u32 %v6750_v8, 16  ;;  %v527_v26 = vor.u32 %v525_v10, %v524_v17  ;;  %v6762_v27 = vsel %vm6754_vm3, %v524_v17, 0  ;;  %v513_v28 = vor.u32 %v511_v12, %v510_v18  ;;  %s6643_s22 = smov 18   ;;  %s6644_s23 = smov 23  }
  0x18   : > { %v6766_v29 = vsel %vm6754_vm3, %v510_v18, 0  ;;  %v732_v30 = vshll.u32 %v6762_v27, 16  ;;  %v506_v32 = vor.u32 %v504_v14, %v503_v22  ;;  %v6772_v33 = vsel %vm6754_vm3, %v503_v22, 0  ;;  %v6542_v14 = vld [vmem:[%s6742_s24 + $0x40] sm:$0xff]  ;;  %s6647_s16 = smov 38   ;;  %s6648_s17 = smov 24  }
  0x19   : > { %v708_v31 = vshll.u32 %v6766_v29, 16  ;;  %v6776_v34 = vsel %vm6754_vm3, 0, %v527_v26  ;;  %v6780_v35 = vsel %vm6754_vm3, 0, %v513_v28  ;;  %v696_v36 = vshll.u32 %v6772_v33, 16  ;;  %s6657_s14 = smov 112  }
  0x1a   : > { %11432 = vst [vmem:[#allocation5_spill] sm:$0xff] %v6776_v34  ;;  %v534_v37 = vor.u32 %v532_v16, %v531_v23  ;;  %v725_v38 = vshrl.u32 %v6776_v34, 16  ;;  %v727_v39 = vshll.u32 %v6776_v34, 16  ;;  %v734_v40 = vrot.slane %v732_v30, 1 }
  0x1b   : > { %v701_v41 = vshrl.u32 %v6780_v35, 16  ;;  %v703_v42 = vshll.u32 %v6780_v35, 16  ;;  %v710_v43 = vrot.slane %v708_v31, 1  ;;  %v6789_v44 = vsel %vm6754_vm3, 0, %v506_v32 }
  0x1c   : > { %v698_v45 = vrot.slane %v696_v36, 1  ;;  %v729_v47 = vrot.slane %v727_v39, 1  ;;  %v689_v48 = vshrl.u32 %v6789_v44, 16  ;;  %v691_v49 = vshll.u32 %v6789_v44, 16 }
  0x1d   : > { %v6796_v50 = vsel %vm6754_vm3, 0, %v534_v37  ;;  %v705_v51 = vrot.slane %v703_v42, 1  ;;  %v6800_v52 = vsel %vm6754_vm3, %v531_v23, 0  ;;  %v517_v58 = vrot.slane %v515_v19, 7 }
  0x1e   : > { %v737_v53 = vshrl.u32 %v6796_v50, 16  ;;  %v739_v54 = vshll.u32 %v6796_v50, 16  ;;  %v730_v55 = vor.u32 %v729_v47, %v725_v38  ;;  %v693_v56 = vrot.slane %v691_v49, 1 }
  0x1f   : > { %v744_v57 = vshll.u32 %v6800_v52, 16  ;;  %v706_v59 = vor.u32 %v705_v51, %v701_v41  ;;  %v538_v61 = vrot.slane %v536_v24, 7  ;;  %v550_v62 = vshrl.u32 %v6541_v46, 16  ;;  %v6544_v51 = vld [vmem:[%s6742_s24 + $0x50] sm:$0xff] }
  0x20   : > { %v741_v60 = vrot.slane %v739_v54, 1  ;;  %v6806_v63 = vsel %vm679_vm2, %v730_v55, %v734_v40  ;;  %v694_v0 = vor.u32 %v693_v56, %v689_v48  ;;  %v520_v4 = vor.u32 %v518_v20, %v517_v58 }
  0x21   : > { %v746_v3 = vrot.slane %v744_v57, 1  ;;  %876 = vrot.lane.b32.xlu2 %v6806_v63, %s6632_s10  ;;  %v6811_v5 = vsel %vm679_vm2, %v706_v59, %v710_v43  ;;  %v6815_v7 = vsel %vm6754_vm3, %v517_v58, 0  ;;  %v541_v8 = vor.u32 %v539_v25, %v538_v61 }
  0x22   : > { %11433 = vst [vmem:[#allocation6_spill] sm:$0xff] %v6811_v5  ;;  %v742_v6 = vor.u32 %v741_v60, %v737_v53  ;;  %872 = vrot.lane.b32.xlu1 %v6811_v5, %s6632_s10  ;;  %v6821_v10 = vsel %vm679_vm2, %v694_v0, %v698_v45  ;;  %v6825_v11 = vsel %vm6754_vm3, 0, %v520_v4  ;;  %v720_v12 = vshll.u32 %v6815_v7, 16 }
  0x23   : > { %11434 = vst [vmem:[#allocation7_spill] sm:$0xff] %v6821_v10  ;;  %v6830_v13 = vsel %vm6754_vm3, %v538_v61, 0  ;;  %870 = vrot.lane.b32.xlu0 %v6821_v10, %s6632_s10  ;;  %v713_v16 = vshrl.u32 %v6825_v11, 16  ;;  %v715_v17 = vshll.u32 %v6825_v11, 16  ;;  %v6842_v18 = vsel %vm6754_vm3, 0, %v541_v8  ;;  %v6543_v61 = vld [vmem:[%s6742_s24 + $0x48] sm:$0xff] }
  0x24   : > { %11435 = vst [vmem:[#allocation8_spill] sm:$0xff] %v6825_v11  ;;  %v6836_v15 = vsel %vm679_vm2, %v742_v6, %v746_v3  ;;  %v722_v19 = vrot.slane %v720_v12, 1  ;;  %v749_v20 = vshrl.u32 %v6842_v18, 16  ;;  %v751_v22 = vshll.u32 %v6842_v18, 16  ;;  %v6545_v6 = vld [vmem:[%s6742_s24 + $0x58] sm:$0xff] }
  0x25   : > { %11436 = vst [vmem:[#allocation9_spill] sm:$0xff] %v6836_v15  ;;  %v756_v23 = vshll.u32 %v6830_v13, 16  ;;  %v717_v24 = vrot.slane %v715_v17, 1  ;;  %v552_v25 = vrot.slane %v550_v62, 7  ;;  %v553_v26 = vshll.u32 %v6541_v46, 16 }
  0x26   : > { %v543_v28 = vshrl.u32 %v6540_v9, 16  ;;  %v753_v30 = vrot.slane %v751_v22, 1  ;;  %v546_v32 = vshll.u32 %v6540_v9, 16  ;;  %v557_v36 = vshrl.u32 %v6542_v14, 16 }
  0x27   : > { %v758_v31 = vrot.slane %v756_v23, 1  ;;  %v718_v37 = vor.u32 %v717_v24, %v713_v16  ;;  %v555_v38 = vor.u32 %v553_v26, %v552_v25  ;;  %v6849_v39 = vsel %vm6754_vm3, %v552_v25, 0  ;;  %v6547_v26 = vld [vmem:[%s6742_s24 + $0x68] sm:$0xff] }
  0x28   : > { %v545_v40 = vrot.slane %v543_v28, 7  ;;  %v754_v41 = vor.u32 %v753_v30, %v749_v20  ;;  %v780_v42 = vshll.u32 %v6849_v39, 16  ;;  %v559_v43 = vrot.slane %v557_v36, 7 }
  0x29   : > { %v560_v45 = vshll.u32 %v6542_v14, 16  ;;  %878 = vrot.lane.b32.xlu2 %v6836_v15, %s6632_s10  ;;  %v6855_v46 = vsel %vm679_vm2, %v718_v37, %v722_v19  ;;  %v6859_v47 = vsel %vm6754_vm3, 0, %v555_v38  ;;  %v571_v12 = vshrl.u32 %v6544_v51, 16 }
  0x2a   : > { %11437 = vst [vmem:[#allocation10_spill] sm:$0xff] %v6855_v46  ;;  %v548_v48 = vor.u32 %v546_v32, %v545_v40  ;;  %v6863_v49 = vsel %vm6754_vm3, %v545_v40, 0  ;;  %874 = vrot.lane.b32.xlu1 %v6855_v46, %s6632_s10  ;;  %v6869_v53 = vsel %vm679_vm2, %v754_v41, %v758_v31  ;;  %v773_v54 = vshrl.u32 %v6859_v47, 16 }
  0x2b   : > { %11438 = vst [vmem:[#allocation11_spill] sm:$0xff] %v6869_v53  ;;  %v775_v55 = vshll.u32 %v6859_v47, 16  ;;  %v782_v56 = vrot.slane %v780_v42, 1  ;;  %880 = vrot.lane.b32.xlu0 %v6869_v53, %s6632_s10  ;;  %v768_v58 = vshll.u32 %v6863_v49, 16  ;;  %v562_v59 = vor.u32 %v560_v45, %v559_v43 }
  0x2c   : > { %v6877_v57 = vsel %vm6754_vm3, 0, %v548_v48  ;;  %v6882_v60 = vsel %vm6754_vm3, %v559_v43, 0  ;;  %v574_v14 = vshll.u32 %v6544_v51, 16  ;;  %v573_v23 = vrot.slane %v571_v12, 7 }
  0x2d   : > { %v777_v62 = vrot.slane %v775_v55, 1  ;;  %v761_v0 = vshrl.u32 %v6877_v57, 16  ;;  %v763_v3 = vshll.u32 %v6877_v57, 16  ;;  %v792_v4 = vshll.u32 %v6882_v60, 16 }
  0x2e   : > { %v770_v8 = vrot.slane %v768_v58, 1  ;;  %v6891_v9 = vsel %vm6754_vm3, 0, %v562_v59  ;;  %v564_v24 = vshrl.u32 %v6543_v61, 16  ;;  %v567_v25 = vshll.u32 %v6543_v61, 16 }
  0x2f   : > { %v778_v16 = vor.u32 %v777_v62, %v773_v54  ;;  %v765_v17 = vrot.slane %v763_v3, 1  ;;  %v785_v19 = vshrl.u32 %v6891_v9, 16  ;;  %v787_v20 = vshll.u32 %v6891_v9, 16 }
  0x30   : > { %v794_v22 = vrot.slane %v792_v4, 1  ;;  %v578_v32 = vshrl.u32 %v6545_v6, 16  ;;  %v576_v36 = vor.u32 %v574_v14, %v573_v23  ;;  %v6903_v37 = vsel %vm6754_vm3, %v573_v23, 0  ;;  %v6548_v23 = vld [vmem:[%s6742_s24 + $0x70] sm:$0xff] }
  0x31   : > { %v6897_v28 = vsel %vm679_vm2, %v778_v16, %v782_v56  ;;  %v766_v30 = vor.u32 %v765_v17, %v761_v0  ;;  %v789_v31 = vrot.slane %v787_v20, 1  ;;  %v566_v38 = vrot.slane %v564_v24, 7 }
  0x32   : > { %884 = vrot.lane.b32.xlu2 %v6897_v28, %s6632_s10  ;;  %v581_v40 = vshll.u32 %v6545_v6, 16  ;;  %v816_v43 = vshll.u32 %v6903_v37, 16  ;;  %v580_v45 = vrot.slane %v578_v32, 7  ;;  %v6913_v48 = vsel %vm6754_vm3, 0, %v576_v36  ;;  %v6546_v6 = vld [vmem:[%s6742_s24 + $0x60] sm:$0xff] }
  0x33   : > { %v6906_v41 = vsel %vm679_vm2, %v766_v30, %v770_v8  ;;  %v790_v42 = vor.u32 %v789_v31, %v785_v19  ;;  %v569_v51 = vor.u32 %v567_v25, %v566_v38  ;;  %v6917_v54 = vsel %vm6754_vm3, %v566_v38, 0 }
  0x34   : > { %11439 = vst [vmem:[#allocation12_spill] sm:$0xff] %v6906_v41  ;;  %882 = vrot.lane.b32.xlu1 %v6906_v41, %s6632_s10  ;;  %v592_v55 = vshrl.u32 %v6547_v26, 16  ;;  %v809_v58 = vshrl.u32 %v6913_v48, 16  ;;  %v811_v59 = vshll.u32 %v6913_v48, 16  ;;  %v818_v61 = vrot.slane %v816_v43, 1 }
  0x35   : > { %v6920_v56 = vsel %vm679_vm2, %v790_v42, %v794_v22  ;;  %v6928_v62 = vsel %vm6754_vm3, 0, %v569_v51  ;;  %v804_v0 = vshll.u32 %v6917_v54, 16  ;;  %v583_v3 = vor.u32 %v581_v40, %v580_v45 }
  0x36   : > { %11440 = vst [vmem:[#allocation13_spill] sm:$0xff] %v6920_v56  ;;  %886 = vrot.lane.b32.xlu0 %v6920_v56, %s6632_s10  ;;  %v6933_v4 = vsel %vm6754_vm3, %v580_v45, 0  ;;  %v813_v8 = vrot.slane %v811_v59, 1  ;;  %v797_v12 = vshrl.u32 %v6928_v62, 16  ;;  %v799_v14 = vshll.u32 %v6928_v62, 16 }
  0x37   : > { %v828_v16 = vshll.u32 %v6933_v4, 16  ;;  %v806_v17 = vrot.slane %v804_v0, 1  ;;  %v6941_v19 = vsel %vm6754_vm3, 0, %v583_v3  ;;  %v594_v20 = vrot.slane %v592_v55, 7 }
  0x38   : > { %v595_v22 = vshll.u32 %v6547_v26, 16  ;;  %v814_v24 = vor.u32 %v813_v8, %v809_v58  ;;  %v801_v25 = vrot.slane %v799_v14, 1  ;;  %v821_v30 = vshrl.u32 %v6941_v19, 16 }
  0x39   : > { %v823_v31 = vshll.u32 %v6941_v19, 16  ;;  %v830_v32 = vrot.slane %v828_v16, 1  ;;  %v6948_v38 = vsel %vm6754_vm3, %v594_v20, 0  ;;  %v585_v40 = vshrl.u32 %v6546_v6, 16 }
  0x3a   : > { %v597_v36 = vor.u32 %v595_v22, %v594_v20  ;;  %v6951_v42 = vsel %vm679_vm2, %v814_v24, %v818_v61  ;;  %v802_v43 = vor.u32 %v801_v25, %v797_v12  ;;  %v852_v26 = vshll.u32 %v6948_v38, 16 }
  0x3b   : > { %11441 = vst [vmem:[#allocation14_spill] sm:$0xff] %v6951_v42  ;;  %v825_v45 = vrot.slane %v823_v31, 1  ;;  %890 = vrot.lane.b32.xlu2 %v6951_v42, %s6632_s10  ;;  %v587_v55 = vrot.slane %v585_v40, 7  ;;  %v588_v58 = vshll.u32 %v6546_v6, 16  ;;  %v599_v59 = vshrl.u32 %v6548_v23, 16 }
  0x3c   : > { %v6958_v51 = vsel %vm6754_vm3, 0, %v597_v36  ;;  %v6961_v0 = vsel %vm679_vm2, %v802_v43, %v806_v17  ;;  %v854_v12 = vrot.slane %v852_v26, 1  ;;  %v602_v24 = vshll.u32 %v6548_v23, 16 }
  0x3d   : > { %11442 = vst [vmem:[#allocation15_spill] sm:$0xff] %v6958_v51  ;;  %v826_v3 = vor.u32 %v825_v45, %v821_v30  ;;  %v845_v61 = vshrl.u32 %v6958_v51, 16  ;;  %v847_v8 = vshll.u32 %v6958_v51, 16  ;;  %888 = vrot.lane.b32.xlu1 %v6961_v0, %s6632_s10  ;;  %v590_v14 = vor.u32 %v588_v58, %v587_v55 }
  0x3e   : > { %11443 = vst [vmem:[#allocation16_spill] sm:$0xff] %v6961_v0  ;;  %v6969_v16 = vsel %vm6754_vm3, %v587_v55, 0  ;;  %v601_v20 = vrot.slane %v599_v59, 7  ;;  %v934_v58 = vrot.slane %v6789_v44, 1  ;;  %vm11425_vm1 = vcmask 121856  }
  0x3f   : > { %v6972_v6 = vsel %vm679_vm2, %v826_v3, %v830_v32  ;;  %v849_v17 = vrot.slane %v847_v8, 1  ;;  %v840_v22 = vshll.u32 %v6969_v16, 16  ;;  %v6979_v25 = vsel %vm6754_vm3, 0, %v590_v14 }
  0x40   : > { %11444 = vst [vmem:[#allocation17_spill] sm:$0xff] %v6972_v6  ;;  %892 = vrot.lane.b32.xlu0 %v6972_v6, %s6632_s10  ;;  %v6983_v30 = vsel %vm6754_vm3, %v601_v20, 0  ;;  %v833_v36 = vshrl.u32 %v6979_v25, 16  ;;  %v835_v32 = vshll.u32 %v6979_v25, 16  ;;  %v604_v40 = vor.u32 %v602_v24, %v601_v20 }
  0x41   : > { %11445 = vst [vmem:[#allocation18_spill] sm:$0xff] %v6979_v25  ;;  %v850_v31 = vor.u32 %v849_v17, %v845_v61  ;;  %v842_v45 = vrot.slane %v840_v22, 1  ;;  %v864_v26 = vshll.u32 %v6983_v30, 16  ;;  %v935_v8 = vrot.slane %v6772_v33, 1 }
  0x42   : > { %v837_v23 = vrot.slane %v835_v32, 1  ;;  %v6995_v55 = vsel %vm6754_vm3, 0, %v604_v40  ;;  %v937_v33 = vrot.slane %v6780_v35, 1  ;;  %v944_v32 = vrot.slane %v6762_v27, 1 }
  0x43   : > { %v6988_v43 = vsel %vm679_vm2, %v850_v31, %v854_v12  ;;  %11447 = vst [vmem:[#allocation20_spill] sm:$0xff] %v6995_v55  ;;  %v857_v3 = vshrl.u32 %v6995_v55, 16  ;;  %v859_v61 = vshll.u32 %v6995_v55, 16  ;;  %v866_v20 = vrot.slane %v864_v26, 1 }
  0x44   : > { %11446 = vst [vmem:[#allocation19_spill] sm:$0xff] %v6988_v43  ;;  %896 = vrot.lane.b32.xlu2 %v6988_v43, %s6632_s10  ;;  %v838_v59 = vor.u32 %v837_v23, %v833_v36  ;;  %v7007_v22 = vsel %vm931_vm4, %v934_v58, %v935_v8  ;;  %v938_v31 = vrot.slane %v6766_v29, 1  ;;  %v943_v36 = vrot.slane %v6776_v34, 1 }
  0x45   : > { %v861_v14 = vrot.slane %v859_v61, 1  ;;  %11449 = vst [vmem:[#allocation22_spill] sm:$0xff] %v7007_v22  ;;  %v940_v40 = vrot.slane %v6825_v11, 1  ;;  %v941_v23 = vrot.slane %v6815_v7, 1  ;;  %v946_v27 = vrot.slane %v6796_v50, 1 }
  0x46   : > { %v7002_v12 = vsel %vm679_vm2, %v838_v59, %v842_v45  ;;  %v7025_v45 = vsel %vm931_vm4, %v937_v33, %v938_v31  ;;  %v7028_v26 = vsel %vm931_vm4, %v943_v36, %v944_v32  ;;  %v947_v58 = vrot.slane %v6800_v52, 1 }
  0x47   : > { %11448 = vst [vmem:[#allocation21_spill] sm:$0xff] %v7002_v12  ;;  %894 = vrot.lane.b32.xlu1 %v7002_v12, %s6632_s10  ;;  %v862_v17 = vor.u32 %v861_v14, %v857_v3  ;;  %v7033_v29 = vsel %vm931_vm4, %v940_v40, %v941_v23  ;;  %v952_v7 = vrot.slane %v6877_v57, 1  ;;  %v953_v59 = vrot.slane %v6863_v49, 1 }
  0x48   : > { %11451 = vst [vmem:[#allocation24_spill] sm:$0xff] %v7025_v45  ;;  %v7044_v3 = vsel %vm931_vm4, %v946_v27, %v947_v58  ;;  %v949_v61 = vrot.slane %v6842_v18, 1  ;;  %v950_v8 = vrot.slane %v6830_v13, 1  ;;  %v955_v52 = vrot.slane %v6859_v47, 1 }
  0x49   : > { %v7010_v24 = vsel %vm679_vm2, %v862_v17, %v866_v20  ;;  %11452 = vst [vmem:[#allocation25_spill] sm:$0xff] %v7028_v26  ;;  %v7049_v14 = vsel %vm931_vm4, %v952_v7, %v953_v59  ;;  %v956_v20 = vrot.slane %v6849_v39, 1  ;;  %v961_v17 = vrot.slane %v6928_v62, 1 }
  0x4a   : > { %11450 = vst [vmem:[#allocation23_spill] sm:$0xff] %v7010_v24  ;;  %898 = vrot.lane.b32.xlu0 %v7010_v24, %s6632_s10  ;;  %v7057_v49 = vsel %vm931_vm4, %v949_v61, %v950_v8  ;;  %v962_v13 = vrot.slane %v6917_v54, 1  ;;  %v958_v33 = vrot.slane %v6891_v9, 1  ;;  %v959_v31 = vrot.slane %v6882_v60, 1 }
  0x4b   : > { %11453 = vst [vmem:[#allocation26_spill] sm:$0xff] %v7033_v29  ;;  %v7067_v36 = vsel %vm931_vm4, %v955_v52, %v956_v20  ;;  %v964_v54 = vrot.slane %v6913_v48, 1  ;;  %v965_v40 = vrot.slane %v6903_v37, 1  ;;  %v970_v60 = vrot.slane %v6979_v25, 1 }
  0x4c   : > { %981 = vrot.lane.b32.xlu2 %v7007_v22, %s11417_s25  ;;  %11454 = vst [vmem:[#allocation27_spill] sm:$0xff] %v7044_v3  ;;  %v7070_v32 = vsel %vm931_vm4, %v961_v17, %v962_v13  ;;  %v7075_v39 = vsel %vm931_vm4, %v958_v33, %v959_v31  ;;  %v971_v23 = vrot.slane %v6969_v16, 1  ;;  %v967_v58 = vrot.slane %v6941_v19, 1  ;;  %v6549_v17 = vld [vmem:[%s6742_s24 + $0x78] sm:$0xff]  ;;  %s6645_s24 = smov 28  }
  0x4d   : > { %11455 = vst [vmem:[#allocation28_spill] sm:$0xff] %v7049_v14  ;;  %v7086_v27 = vsel %vm931_vm4, %v964_v54, %v965_v40  ;;  %v968_v7 = vrot.slane %v6933_v4, 1  ;;  %v973_v16 = vrot.slane %v6958_v51, 1  ;;  %v974_v61 = vrot.slane %v6948_v38, 1 }
  0x4e   : > { %11456 = vst [vmem:[#allocation29_spill] sm:$0xff] %v7057_v49  ;;  %v7091_v59 = vsel %vm931_vm4, %v970_v60, %v971_v23  ;;  %v976_v8 = vrot.slane %v6995_v55, 1  ;;  %v977_v52 = vrot.slane %v6983_v30, 1  ;;  %v606_v31 = vshrl.u32 %v6549_v17, 16 }
  0x4f   : > { %979 = vrot.lane.b32.xlu1 %v6730_v2, %s11417_s25  ;;  %11457 = vst [vmem:[#allocation30_spill] sm:$0xff] %v7067_v36  ;;  %v7098_v37 = vsel %vm931_vm4, %v967_v58, %v968_v7  ;;  %v7105_v4 = vsel %vm931_vm4, %v973_v16, %v974_v61  ;;  %v609_v40 = vshll.u32 %v6549_v17, 16 }
  0x50   : > { %11458 = vst [vmem:[#allocation31_spill] sm:$0xff] %v7070_v32  ;;  %v7114_v38 = vsel %vm931_vm4, %v976_v8, %v977_v52  ;;  %v608_v54 = vrot.slane %v606_v31, 7 }
  0x51   : > { %11459 = vst [vmem:[#allocation32_spill] sm:$0xff] %v7075_v39 }
  0x52   : > { %983 = vrot.lane.b32.xlu0 %v7025_v45, %s11417_s25  ;;  %11460 = vst [vmem:[#allocation33_spill] sm:$0xff] %v7086_v27  ;;  %v611_v23 = vor.u32 %v609_v40, %v608_v54 }
  0x53   : > { %11461 = vst [vmem:[#allocation34_spill] sm:$0xff] %v7091_v59 }
  0x54   : > { %987 = vrot.lane.b32.xlu2 %v7028_v26, %s11417_s25  ;;  %11462 = vst [vmem:[#allocation35_spill] sm:$0xff] %v7098_v37  ;;  %v7159_v16 = vsel %vm6754_vm3, 0, %v611_v23 }
  0x55   : > { %11463 = vst [vmem:[#allocation36_spill] sm:$0xff] %v7105_v4 }
  0x56   : > { %11464 = vst [vmem:[#allocation37_spill] sm:$0xff] %v7114_v38 }
  0x57   : > { %985 = vrot.lane.b32.xlu1 %v7033_v29, %s11417_s25  ;;  %11470 = vst [vmem:[#allocation43_spill] sm:$0xff] %v7159_v16 }
  0x5a   : > { %989 = vrot.lane.b32.xlu0 %v7044_v3, %s11417_s25 }
  0x5c   : > { %993 = vrot.lane.b32.xlu2 %v7049_v14, %s11417_s25 }
  0x5f   : > { %991 = vrot.lane.b32.xlu1 %v7057_v49, %s11417_s25 }
  0x62   : > { %995 = vrot.lane.b32.xlu0 %v7067_v36, %s11417_s25 }
  0x64   : > { %999 = vrot.lane.b32.xlu2 %v7070_v32, %s11417_s25 }
  0x67   : > { %997 = vrot.lane.b32.xlu1 %v7075_v39, %s11417_s25 }
  0x6a   : > { %1001 = vrot.lane.b32.xlu0 %v7086_v27, %s11417_s25 }
  0x6c   : > { %1005 = vrot.lane.b32.xlu2 %v7091_v59, %s11417_s25 }
  0x6f   : > { %1003 = vrot.lane.b32.xlu1 %v7098_v37, %s11417_s25 }
  0x72   : > { %1007 = vrot.lane.b32.xlu0 %v7105_v4, %s11417_s25 }
  0x74   : > { %1012 = vrot.lane.b32.xlu2 %v6789_v44, %s6634_s26 }
  0x77   : > { %1009 = vrot.lane.b32.xlu1 %v7114_v38, %s11417_s25  ;;  %s11825_s25 = smov 4  }
  0x7a   : > { %1014 = vrot.lane.b32.xlu0 %v6780_v35, %s6634_s26 }
  0x7b   : > { %v7122_v30 = vpop.permute.xlu2 %876 }
  0x7c   : > { %1018 = vrot.lane.b32.xlu2 %v6776_v34, %s6634_s26  ;;  %11465 = vst [vmem:[#allocation38_spill] sm:$0xff] %v7122_v30 }
  0x7f   : > { %1016 = vrot.lane.b32.xlu1 %v6825_v11, %s6634_s26 }
  0x82   : > { %1020 = vrot.lane.b32.xlu0 %v6796_v50, %s6634_s26  ;;  %v7139_v13 = vpop.permute.xlu0 %868 }
  0x83   : > { %v7130_v20 = vpop.permute.xlu2 %878 }
  0x84   : > { %1024 = vrot.lane.b32.xlu2 %v6877_v57, %s6634_s26 }
  0x87   : > { %1022 = vrot.lane.b32.xlu1 %v6842_v18, %s6634_s26 }
  0x8a   : > { %1026 = vrot.lane.b32.xlu0 %v6859_v47, %s6634_s26 }
  0x8c   : > { %1030 = vrot.lane.b32.xlu2 %v6928_v62, %s6634_s26  ;;  %v7141_v33 = vpop.permute.xlu2 %884 }
  0x8d   : > { %11466 = vst [vmem:[#allocation39_spill] sm:$0xff] %v7141_v33 }
  0x8f   : > { %1028 = vrot.lane.b32.xlu1 %v6891_v9, %s6634_s26 }
  0x92   : > { %1032 = vrot.lane.b32.xlu0 %v6913_v48, %s6634_s26 }
  0x94   : > { %1036 = vrot.lane.b32.xlu2 %v6979_v25, %s6634_s26  ;;  %v7149_v60 = vpop.permute.xlu1 %872 }
  0x95   : > { %11467 = vst [vmem:[#allocation40_spill] sm:$0xff] %v7149_v60  ;;  %v7151_v58 = vpop.permute.xlu2 %890  ;;  %v7153_v7 = vpop.permute.xlu0 %870 }
  0x96   : > { %11468 = vst [vmem:[#allocation41_spill] sm:$0xff] %v7151_v58 }
  0x97   : > { %11469 = vst [vmem:[#allocation42_spill] sm:$0xff] %v7153_v7  ;;  %1034 = vrot.lane.b32.xlu1 %v6941_v19, %s6634_s26 }
  0x9a   : > { %1038 = vrot.lane.b32.xlu0 %v6958_v51, %s6634_s26 }
  0x9c   : > { %1042 = vrot.lane.b32.xlu2 %v7159_v16, %s6634_s26  ;;  %v7165_v61 = vpop.permute.xlu1 %874 }
  0x9d   : > { %11471 = vst [vmem:[#allocation44_spill] sm:$0xff] %v7165_v61  ;;  %v7171_v52 = vpop.permute.xlu0 %880 }
  0x9e   : > { %v7167_v8 = vpop.permute.xlu2 %896  ;;  %11473 = vst [vmem:[#allocation46_spill] sm:$0xff] %v7171_v52 }
  0x9f   : > { %11472 = vst [vmem:[#allocation45_spill] sm:$0xff] %v7167_v8  ;;  %1040 = vrot.lane.b32.xlu1 %v6995_v55, %s6634_s26 }
  0xa2   : > { %1056 = vrot.lane.b32.xlu0 %v6821_v10, %s6635_s27 }
  0xa4   : > { %1060 = vrot.lane.b32.xlu2 %v6855_v46, %s6635_s27 }
  0xa6   : > { %v7177_v17 = vpop.permute.xlu1 %882  ;;  %v7179_v31 = vpop.permute.xlu2 %981 }
  0xa7   : > { %11474 = vst [vmem:[#allocation47_spill] sm:$0xff] %v7179_v31  ;;  %1058 = vrot.lane.b32.xlu1 %v6811_v5, %s6635_s27 }
  0xa8   : > { %v7183_v40 = vpop.permute.xlu0 %886 }
  0xa9   : > { %11475 = vst [vmem:[#allocation48_spill] sm:$0xff] %v7183_v40  ;;  %v678_v40 = vsel %vm6754_vm3, %v608_v54, 0 }
  0xaa   : > { %1062 = vrot.lane.b32.xlu0 %v6806_v63, %s6635_s27  ;;  %v1052_v52 = vshll.u32 %v678_v40, 16 }
  0xac   : > { %1066 = vrot.lane.b32.xlu2 %v6869_v53, %s6635_s27 }
  0xae   : > { %v7189_v23 = vpop.permute.xlu2 %987 }
  0xaf   : > { %11476 = vst [vmem:[#allocation49_spill] sm:$0xff] %v7189_v23  ;;  %1064 = vrot.lane.b32.xlu1 %v6836_v15, %s6635_s27  ;;  %v7193_v1 = vpop.permute.xlu1 %888  ;;  %v1047_v23 = vshll.u32 %v7159_v16, 16 }
  0xb0   : > { %11477 = vst [vmem:[#allocation50_spill] sm:$0xff] %v7193_v1 }
  0xb1   : > { %v1049_v60 = vrot.slane %v1047_v23, 1 }
  0xb2   : > { %1068 = vrot.lane.b32.xlu0 %v6906_v41, %s6635_s27  ;;  %v7197_v8 = vpop.permute.xlu0 %892 }
  0xb3   : > { %11478 = vst [vmem:[#allocation51_spill] sm:$0xff] %v7197_v8 }
  0xb4   : > { %1072 = vrot.lane.b32.xlu2 %v6920_v56, %s6635_s27 }
  0xb6   : > { %v7201_v30 = vpop.permute.xlu2 %993 }
  0xb7   : > { %1070 = vrot.lane.b32.xlu1 %v6897_v28, %s6635_s27 }
  0xb9   : > { %v7205_v61 = vpop.permute.xlu1 %894 }
  0xba   : > { %11479 = vst [vmem:[#allocation52_spill] sm:$0xff] %v7205_v61  ;;  %1074 = vrot.lane.b32.xlu0 %v6961_v0, %s6635_s27  ;;  %v1045_v61 = vshrl.u32 %v7159_v16, 16 }
  0xbc   : > { %1078 = vrot.lane.b32.xlu2 %v6972_v6, %s6635_s27  ;;  %v7212_v1 = vpop.permute.xlu0 %898 }
  0xbd   : > { %11480 = vst [vmem:[#allocation53_spill] sm:$0xff] %v7212_v1  ;;  %v1050_v1 = vor.u32 %v1049_v60, %v1045_v61 }
  0xbe   : > { %v7214_v8 = vpop.permute.xlu2 %999 }
  0xbf   : > { %11481 = vst [vmem:[#allocation54_spill] sm:$0xff] %v7214_v8  ;;  %1076 = vrot.lane.b32.xlu1 %v6951_v42, %s6635_s27  ;;  %v1054_v8 = vrot.slane %v1052_v52, 1 }
  0xc1   : > { %v7221_v58 = vpop.permute.xlu1 %979  ;;  %v7234_v23 = vsel %vm679_vm2, %v1050_v1, %v1054_v8 }
  0xc2   : > { %1080 = vrot.lane.b32.xlu0 %v7002_v12, %s6635_s27  ;;  %11484 = vst [vmem:[#allocation57_spill] sm:$0xff] %v7234_v23 }
  0xc4   : > { %1084 = vrot.lane.b32.xlu2 %v7010_v24, %s6635_s27  ;;  %v7227_v33 = vpop.permute.xlu0 %983 }
  0xc5   : > { %11482 = vst [vmem:[#allocation55_spill] sm:$0xff] %v7227_v33 }
  0xc6   : > { %v7229_v54 = vpop.permute.xlu2 %1005 }
  0xc7   : > { %11483 = vst [vmem:[#allocation56_spill] sm:$0xff] %v7229_v54  ;;  %1082 = vrot.lane.b32.xlu1 %v6988_v43, %s6635_s27 }
  0xc9   : > { %v7236_v21 = vpop.permute.xlu1 %985 }
  0xca   : > { %11485 = vst [vmem:[#allocation58_spill] sm:$0xff] %v7236_v21  ;;  %1086 = vrot.lane.b32.xlu0 %v7234_v23, %s6635_s27 }
  0xcc   : > { %1094 = vrot.lane.b32.xlu2 %v7025_v45, %s6636_s28  ;;  %v7242_v60 = vpop.permute.xlu0 %989 }
  0xcd   : > { %11486 = vst [vmem:[#allocation59_spill] sm:$0xff] %v7242_v60 }
  0xce   : > { %v7244_v61 = vpop.permute.xlu2 %1012 }
  0xcf   : > { %1092 = vrot.lane.b32.xlu1 %v7007_v22, %s6636_s28 }
  0xd1   : > { %v7248_v52 = vpop.permute.xlu1 %991 }
  0xd2   : > { %11487 = vst [vmem:[#allocation60_spill] sm:$0xff] %v7248_v52  ;;  %1096 = vrot.lane.b32.xlu0 %v7033_v29, %s6636_s28 }
  0xd4   : > { %1100 = vrot.lane.b32.xlu2 %v7044_v3, %s6636_s28  ;;  %v7254_v1 = vpop.permute.xlu0 %995 }
  0xd5   : > { %11488 = vst [vmem:[#allocation61_spill] sm:$0xff] %v7254_v1 }
  0xd6   : > { %v7256_v8 = vpop.permute.xlu2 %1018 }
  0xd7   : > { %11489 = vst [vmem:[#allocation62_spill] sm:$0xff] %v7256_v8  ;;  %1098 = vrot.lane.b32.xlu1 %v7028_v26, %s6636_s28 }
  0xd9   : > { %v7260_v54 = vpop.permute.xlu1 %997 }
  0xda   : > { %11490 = vst [vmem:[#allocation63_spill] sm:$0xff] %v7260_v54  ;;  %1102 = vrot.lane.b32.xlu0 %v7057_v49, %s6636_s28 }
  0xdc   : > { %1106 = vrot.lane.b32.xlu2 %v7067_v36, %s6636_s28  ;;  %v7266_v21 = vpop.permute.xlu0 %1001 }
  0xdd   : > { %11491 = vst [vmem:[#allocation64_spill] sm:$0xff] %v7266_v21 }
  0xde   : > { %v7268_v33 = vpop.permute.xlu2 %1024 }
  0xdf   : > { %11492 = vst [vmem:[#allocation65_spill] sm:$0xff] %v7268_v33  ;;  %1104 = vrot.lane.b32.xlu1 %v7049_v14, %s6636_s28 }
  0xe1   : > { %v7272_v52 = vpop.permute.xlu1 %1003 }
  0xe2   : > { %11493 = vst [vmem:[#allocation66_spill] sm:$0xff] %v7272_v52  ;;  %1108 = vrot.lane.b32.xlu0 %v7075_v39, %s6636_s28 }
  0xe4   : > { %1112 = vrot.lane.b32.xlu2 %v7086_v27, %s6636_s28  ;;  %v7278_v8 = vpop.permute.xlu0 %1007 }
  0xe5   : > { %11494 = vst [vmem:[#allocation67_spill] sm:$0xff] %v7278_v8  ;;  %v1089_v8 = vrot.slane %v7159_v16, 1 }
  0xe6   : > { %v7280_v54 = vpop.permute.xlu2 %1030 }
  0xe7   : > { %11495 = vst [vmem:[#allocation68_spill] sm:$0xff] %v7280_v54  ;;  %1110 = vrot.lane.b32.xlu1 %v7070_v32, %s6636_s28  ;;  %v1090_v54 = vrot.slane %v678_v40, 1 }
  0xe9   : > { %v7284_v21 = vpop.permute.xlu1 %1009 }
  0xea   : > { %11496 = vst [vmem:[#allocation69_spill] sm:$0xff] %v7284_v21  ;;  %1114 = vrot.lane.b32.xlu0 %v7098_v37, %s6636_s28  ;;  %v7304_v21 = vsel %vm931_vm4, %v1089_v8, %v1090_v54 }
  0xeb   : > { %11500 = vst [vmem:[#allocation73_spill] sm:$0xff] %v7304_v21 }
  0xec   : > { %1118 = vrot.lane.b32.xlu2 %v7105_v4, %s6636_s28  ;;  %v7290_v52 = vpop.permute.xlu0 %1014 }
  0xed   : > { %11497 = vst [vmem:[#allocation70_spill] sm:$0xff] %v7290_v52 }
  0xee   : > { %v7292_v33 = vpop.permute.xlu2 %1036 }
  0xef   : > { %11498 = vst [vmem:[#allocation71_spill] sm:$0xff] %v7292_v33  ;;  %1116 = vrot.lane.b32.xlu1 %v7091_v59, %s6636_s28 }
  0xf1   : > { %v7297_v1 = vpop.permute.xlu1 %1016 }
  0xf2   : > { %11499 = vst [vmem:[#allocation72_spill] sm:$0xff] %v7297_v1  ;;  %1120 = vrot.lane.b32.xlu0 %v7114_v38, %s6636_s28 }
  0xf4   : > { %1124 = vrot.lane.b32.xlu2 %v6780_v35, %s6637_s29  ;;  %v7306_v52 = vpop.permute.xlu0 %1020 }
  0xf5   : > { %11501 = vst [vmem:[#allocation74_spill] sm:$0xff] %v7306_v52 }
  0xf6   : > { %v7308_v33 = vpop.permute.xlu2 %1042 }
  0xf7   : > { %11502 = vst [vmem:[#allocation75_spill] sm:$0xff] %v7308_v33  ;;  %1122 = vrot.lane.b32.xlu1 %v7304_v21, %s6636_s28 }
  0xf9   : > { %v7312_v40 = vpop.permute.xlu1 %1022 }
  0xfa   : > { %11503 = vst [vmem:[#allocation76_spill] sm:$0xff] %v7312_v40  ;;  %1126 = vrot.lane.b32.xlu0 %v6825_v11, %s6637_s29 }
  0xfc   : > { %1130 = vrot.lane.b32.xlu2 %v6796_v50, %s6637_s29  ;;  %v7318_v1 = vpop.permute.xlu0 %1026 }
  0xfe   : > { %v7320_v22 = vpop.permute.xlu2 %1060 }
  0xff   : > { %11504 = vst [vmem:[#allocation77_spill] sm:$0xff] %v7320_v22  ;;  %1128 = vrot.lane.b32.xlu1 %v6776_v34, %s6637_s29 }
 0x101   : > { %v7324_v54 = vpop.permute.xlu1 %1028 }
 0x102   : > { %11505 = vst [vmem:[#allocation78_spill] sm:$0xff] %v7324_v54  ;;  %1132 = vrot.lane.b32.xlu0 %v6842_v18, %s6637_s29 }
 0x104   : > { %1136 = vrot.lane.b32.xlu2 %v6859_v47, %s6637_s29  ;;  %v7330_v8 = vpop.permute.xlu0 %1032 }
 0x105   : > { %11506 = vst [vmem:[#allocation79_spill] sm:$0xff] %v7330_v8 }
 0x106   : > { %v7332_v33 = vpop.permute.xlu2 %1066 }
 0x107   : > { %11507 = vst [vmem:[#allocation80_spill] sm:$0xff] %v7332_v33  ;;  %1134 = vrot.lane.b32.xlu1 %v6877_v57, %s6637_s29 }
 0x109   : > { %v7336_v52 = vpop.permute.xlu1 %1034 }
 0x10a   : > { %11508 = vst [vmem:[#allocation81_spill] sm:$0xff] %v7336_v52  ;;  %1138 = vrot.lane.b32.xlu0 %v6891_v9, %s6637_s29 }
 0x10c   : > { %1142 = vrot.lane.b32.xlu2 %v6913_v48, %s6637_s29  ;;  %v7342_v22 = vpop.permute.xlu0 %1038 }
 0x10d   : > { %11509 = vst [vmem:[#allocation82_spill] sm:$0xff] %v7342_v22 }
 0x10e   : > { %v7344_v54 = vpop.permute.xlu2 %1072 }
 0x10f   : > { %11510 = vst [vmem:[#allocation83_spill] sm:$0xff] %v7344_v54  ;;  %1140 = vrot.lane.b32.xlu1 %v6928_v62, %s6637_s29 }
 0x111   : > { %v7348_v8 = vpop.permute.xlu1 %1040 }
 0x112   : > { %11511 = vst [vmem:[#allocation84_spill] sm:$0xff] %v7348_v8  ;;  %1144 = vrot.lane.b32.xlu0 %v6941_v19, %s6637_s29  ;;  %v11514_v8 = vmov 0  }
 0x114   : > { %1148 = vrot.lane.b32.xlu2 %v6958_v51, %s6637_s29  ;;  %v7354_v52 = vpop.permute.xlu0 %1056 }
 0x116   : > { %v7356_v31 = vpop.permute.xlu2 %1078 }
 0x117   : > { %11512 = vst [vmem:[#allocation85_spill] sm:$0xff] %v7356_v31  ;;  %1146 = vrot.lane.b32.xlu1 %v6979_v25, %s6637_s29 }
 0x119   : > { %v7360_v22 = vpop.permute.xlu1 %1058 }
 0x11a   : > { %11513 = vst [vmem:[#allocation86_spill] sm:$0xff] %v7360_v22  ;;  %1150 = vrot.lane.b32.xlu0 %v6995_v55, %s6637_s29 }
 0x11c   : > { %1154 = vrot.lane.b32.xlu2 %v11514_v8, %s6637_s29  ;;  %v7366_v54 = vpop.permute.xlu0 %1062 }
 0x11d   : > { %11515 = vst [vmem:[#allocation87_spill] sm:$0xff] %v7366_v54 }
 0x11e   : > { %v7368_v7 = vpop.permute.xlu2 %1084 }
 0x11f   : > { %11516 = vst [vmem:[#allocation88_spill] sm:$0xff] %v7368_v7  ;;  %1152 = vrot.lane.b32.xlu1 %v7159_v16, %s6637_s29 }
 0x121   : > { %v7372_v33 = vpop.permute.xlu1 %1064 }
 0x122   : > { %11517 = vst [vmem:[#allocation89_spill] sm:$0xff] %v7372_v33  ;;  %1156 = vrot.lane.b32.xlu0 %v6811_v5, %s6638_s30 }
 0x124   : > { %1160 = vrot.lane.b32.xlu2 %v6806_v63, %s6638_s30  ;;  %v7378_v31 = vpop.permute.xlu0 %1068 }
 0x125   : > { %11518 = vst [vmem:[#allocation90_spill] sm:$0xff] %v7378_v31 }
 0x126   : > { %v7380_v22 = vpop.permute.xlu2 %1094 }
 0x127   : > { %11519 = vst [vmem:[#allocation91_spill] sm:$0xff] %v7380_v22  ;;  %1158 = vrot.lane.b32.xlu1 %v6855_v46, %s6638_s30 }
 0x129   : > { %v7384_v7 = vpop.permute.xlu1 %1070 }
 0x12a   : > { %1162 = vrot.lane.b32.xlu0 %v6836_v15, %s6638_s30 }
 0x12c   : > { %1166 = vrot.lane.b32.xlu2 %v6906_v41, %s6638_s30  ;;  %v7390_v16 = vpop.permute.xlu0 %1074 }
 0x12d   : > { %11520 = vst [vmem:[#allocation92_spill] sm:$0xff] %v7390_v16 }
 0x12e   : > { %v7392_v33 = vpop.permute.xlu2 %1100 }
 0x12f   : > { %11521 = vst [vmem:[#allocation93_spill] sm:$0xff] %v7392_v33  ;;  %1164 = vrot.lane.b32.xlu1 %v6869_v53, %s6638_s30 }
 0x131   : > { %v7396_v54 = vpop.permute.xlu1 %1076 }
 0x132   : > { %11522 = vst [vmem:[#allocation94_spill] sm:$0xff] %v7396_v54  ;;  %1168 = vrot.lane.b32.xlu0 %v6897_v28, %s6638_s30 }
 0x134   : > { %1172 = vrot.lane.b32.xlu2 %v6961_v0, %s6638_s30  ;;  %v7402_v31 = vpop.permute.xlu0 %1080 }
 0x135   : > { %11523 = vst [vmem:[#allocation95_spill] sm:$0xff] %v7402_v31 }
 0x136   : > { %v7404_v22 = vpop.permute.xlu2 %1106 }
 0x137   : > { %1170 = vrot.lane.b32.xlu1 %v6920_v56, %s6638_s30 }
 0x139   : > { %v7408_v16 = vpop.permute.xlu1 %1082 }
 0x13a   : > { %11524 = vst [vmem:[#allocation96_spill] sm:$0xff] %v7408_v16  ;;  %1174 = vrot.lane.b32.xlu0 %v6951_v42, %s6638_s30 }
 0x13c   : > { %1178 = vrot.lane.b32.xlu2 %v7002_v12, %s6638_s30  ;;  %v7414_v33 = vpop.permute.xlu0 %1086 }
 0x13d   : > { %11525 = vst [vmem:[#allocation97_spill] sm:$0xff] %v7414_v33 }
 0x13e   : > { %v7416_v54 = vpop.permute.xlu2 %1112 }
 0x13f   : > { %11526 = vst [vmem:[#allocation98_spill] sm:$0xff] %v7416_v54  ;;  %1176 = vrot.lane.b32.xlu1 %v6972_v6, %s6638_s30 }
 0x141   : > { %v7420_v31 = vpop.permute.xlu1 %1092 }
 0x142   : > { %1180 = vrot.lane.b32.xlu0 %v6988_v43, %s6638_s30 }
 0x144   : > { %1184 = vrot.lane.b32.xlu2 %v7234_v23, %s6638_s30  ;;  %v7426_v16 = vpop.permute.xlu0 %1096 }
 0x145   : > { %11527 = vst [vmem:[#allocation99_spill] sm:$0xff] %v7426_v16 }
 0x146   : > { %v7428_v40 = vpop.permute.xlu2 %1118 }
 0x147   : > { %11528 = vst [vmem:[#allocation100_spill] sm:$0xff] %v7428_v40  ;;  %1182 = vrot.lane.b32.xlu1 %v7010_v24, %s6638_s30 }
 0x149   : > { %v7432_v33 = vpop.permute.xlu1 %1098 }
 0x14a   : > { %11529 = vst [vmem:[#allocation101_spill] sm:$0xff] %v7432_v33  ;;  %1186 = vrot.lane.b32.xlu0 %v6730_v2, %s6638_s30 }
 0x14c   : > { %1190 = vrot.lane.b32.xlu2 %v7033_v29, %s6639_s12  ;;  %v7438_v54 = vpop.permute.xlu0 %1102 }
 0x14e   : > { %v7440_v60 = vpop.permute.xlu2 %1124 }
 0x14f   : > { %1188 = vrot.lane.b32.xlu1 %v7025_v45, %s6639_s12 }
 0x151   : > { %v7444_v23 = vpop.permute.xlu1 %1104 }
 0x152   : > { %11530 = vst [vmem:[#allocation102_spill] sm:$0xff] %v7444_v23  ;;  %1192 = vrot.lane.b32.xlu0 %v7028_v26, %s6639_s12 }
 0x154   : > { %1196 = vrot.lane.b32.xlu2 %v7057_v49, %s6639_s12  ;;  %v7450_v40 = vpop.permute.xlu0 %1108 }
 0x156   : > { %v7452_v33 = vpop.permute.xlu2 %1130 }
 0x157   : > { %11531 = vst [vmem:[#allocation103_spill] sm:$0xff] %v7452_v33  ;;  %1194 = vrot.lane.b32.xlu1 %v7044_v3, %s6639_s12 }
 0x159   : > { %v7456_v16 = vpop.permute.xlu1 %1110 }
 0x15a   : > { %11532 = vst [vmem:[#allocation104_spill] sm:$0xff] %v7456_v16  ;;  %1198 = vrot.lane.b32.xlu0 %v7049_v14, %s6639_s12 }
 0x15c   : > { %1202 = vrot.lane.b32.xlu2 %v7075_v39, %s6639_s12  ;;  %v7462_v23 = vpop.permute.xlu0 %1114 }
 0x15e   : > { %v7464_v29 = vpop.permute.xlu2 %1136 }
 0x15f   : > { %1200 = vrot.lane.b32.xlu1 %v7067_v36, %s6639_s12 }
 0x161   : > { %v7468_v49 = vpop.permute.xlu1 %1116 }
 0x162   : > { %11533 = vst [vmem:[#allocation105_spill] sm:$0xff] %v7468_v49  ;;  %1204 = vrot.lane.b32.xlu0 %v7070_v32, %s6639_s12 }
 0x164   : > { %1208 = vrot.lane.b32.xlu2 %v7098_v37, %s6639_s12  ;;  %v7474_v33 = vpop.permute.xlu0 %1120 }
 0x165   : > { %11534 = vst [vmem:[#allocation106_spill] sm:$0xff] %v7474_v33 }
 0x166   : > { %v7476_v16 = vpop.permute.xlu2 %1142 }
 0x167   : > { %11535 = vst [vmem:[#allocation107_spill] sm:$0xff] %v7476_v16  ;;  %1206 = vrot.lane.b32.xlu1 %v7086_v27, %s6639_s12  ;;  %v2053_v27 = vld [vmem:[%s11306_s1 + $0x8] sm:$0x1] }
 0x169   : > { %v7480_v39 = vpop.permute.xlu1 %1122 }
 0x16a   : > { %11536 = vst [vmem:[#allocation108_spill] sm:$0xff] %v7480_v39  ;;  %1210 = vrot.lane.b32.xlu0 %v7091_v59, %s6639_s12 }
 0x16c   : > { %1214 = vrot.lane.b32.xlu2 %v7114_v38, %s6639_s12  ;;  %v7486_v49 = vpop.permute.xlu0 %1126 }
 0x16e   : > { %v7488_v32 = vpop.permute.xlu2 %1148 }
 0x16f   : > { %11537 = vst [vmem:[#allocation109_spill] sm:$0xff] %v7488_v32  ;;  %1212 = vrot.lane.b32.xlu1 %v7105_v4, %s6639_s12 }
 0x171   : > { %v7492_v33 = vpop.permute.xlu1 %1128 }
 0x172   : > { %1216 = vrot.lane.b32.xlu0 %v7304_v21, %s6639_s12 }
 0x174   : > { %1484 = vrot.lane.b32.xlu2 %v11514_v8, %s6640_s13  ;;  %v7498_v39 = vpop.permute.xlu0 %1132 }
 0x175   : > { %11538 = vst [vmem:[#allocation110_spill] sm:$0xff] %v7498_v39 }
 0x176   : > { %v7500_v37 = vpop.permute.xlu2 %1154 }
 0x177   : > { %11539 = vst [vmem:[#allocation111_spill] sm:$0xff] %v7500_v37  ;;  %1218 = vrot.lane.b32.xlu1 %v6730_v2, %s6639_s12 }
 0x179   : > { %v7504_v38 = vpop.permute.xlu1 %1134 }
 0x17a   : > { %1486 = vrot.lane.b32.xlu0 %v6789_v44, %s6640_s13 }
 0x17c   : > { %1490 = vrot.lane.b32.xlu2 %v6825_v11, %s6640_s13  ;;  %v7510_v21 = vpop.permute.xlu0 %1138  ;;  %v2063_v11 = vunpack.c.l.b16 %v2053_v27  ;;  %v6550_v27 = vld [vmem:[%s11306_s1] sm:$0xff] }
 0x17e   : > { %v7512_v4 = vpop.permute.xlu2 %1160  ;;  %v2065_v36 = vpack.c.b16 %v2063_v11, %v2063_v11 }
 0x17f   : > { %11540 = vst [vmem:[#allocation112_spill] sm:$0xff] %v7512_v4  ;;  %1488 = vrot.lane.b32.xlu1 %v6780_v35, %s6640_s13 }
 0x181   : > { %v7516_v8 = vpop.permute.xlu1 %1140 }
 0x182   : > { %1492 = vrot.lane.b32.xlu0 %v6776_v34, %s6640_s13 }
 0x184   : > { %1496 = vrot.lane.b32.xlu2 %v6842_v18, %s6640_s13  ;;  %v7522_v37 = vpop.permute.xlu0 %1144 }
 0x185   : > { %11541 = vst [vmem:[#allocation113_spill] sm:$0xff] %v7522_v37 }
 0x186   : > { %v7524_v39 = vpop.permute.xlu2 %1166 }
 0x187   : > { %1494 = vrot.lane.b32.xlu1 %v6796_v50, %s6640_s13 }
 0x189   : > { %v7528_v59 = vpop.permute.xlu1 %1146 }
 0x18a   : > { %1498 = vrot.lane.b32.xlu0 %v6877_v57, %s6640_s13 }
 0x18c   : > { %1502 = vrot.lane.b32.xlu2 %v6891_v9, %s6640_s13  ;;  %v7534_v32 = vpop.permute.xlu0 %1150 }
 0x18d   : > { %11542 = vst [vmem:[#allocation114_spill] sm:$0xff] %v7534_v32 }
 0x18e   : > { %v7536_v34 = vpop.permute.xlu2 %1172 }
 0x18f   : > { %1500 = vrot.lane.b32.xlu1 %v6859_v47, %s6640_s13 }
 0x191   : > { %v7540_v37 = vpop.permute.xlu1 %1152 }
 0x192   : > { %11543 = vst [vmem:[#allocation115_spill] sm:$0xff] %v7540_v37  ;;  %1504 = vrot.lane.b32.xlu0 %v6928_v62, %s6640_s13  ;;  %v2102_v37 = vsel %vm11403_vm0, %v2065_v36, 0  ;;  %vm11424_vm0 = vcmask 203776  }
 0x193   : > { %6569 = vmatpush.bf16.msra.mxu2 %v2102_v37  ;;  %2110 = vmatpush.bf16.msra.mxu0 %v2102_v37 }
 0x194   : > { %1508 = vrot.lane.b32.xlu2 %v6941_v19, %s6640_s13  ;;  %v7549_v16 = vpop.permute.xlu0 %1156  ;;  %6568 = vmatpush.bf16.msra.mxu1 %v2102_v37 }
 0x195   : > { %6570 = vmatpush.bf16.msra.mxu3 %v2102_v37 }
 0x196   : > { %v7551_v32 = vpop.permute.xlu2 %1178 }
 0x197   : > { %1506 = vrot.lane.b32.xlu1 %v6913_v48, %s6640_s13  ;;  %6572 = vmatpush.bf16.msra.mxu2 %v6550_v27 }
 0x198   : > { %2111 = vmatpush.bf16.msra.mxu0 %v6550_v27  ;;  %6571 = vmatpush.bf16.msra.mxu1 %v6550_v27 }
 0x199   : > { %v7556_v4 = vpop.permute.xlu1 %1158  ;;  %6573 = vmatpush.bf16.msra.mxu3 %v6550_v27 }
 0x19a   : > { %1510 = vrot.lane.b32.xlu0 %v6979_v25, %s6640_s13 }
 0x19c   : > { %1514 = vrot.lane.b32.xlu2 %v6995_v55, %s6640_s13  ;;  %v7565_v11 = vpop.permute.xlu0 %1162 }
 0x19e   : > { %v7567_v36 = vpop.permute.xlu2 %1184 }
 0x19f   : > { %11544 = vst [vmem:[#allocation116_spill] sm:$0xff] %v7567_v36  ;;  %1512 = vrot.lane.b32.xlu1 %v6958_v51, %s6640_s13  ;;  %s6646_s13 = smov 33  }
 0x1a1   : > { %v7571_v37 = vpop.permute.xlu1 %1164 }
 0x1a2   : > { %1516 = vrot.lane.b32.xlu0 %v6730_v2, %s6641_s18 }
 0x1a4   : > { %1520 = vrot.lane.b32.xlu2 %v6811_v5, %s6641_s18  ;;  %v7577_v55 = vpop.permute.xlu0 %1168  ;;  %v1236_v5 = vsel %vm11405_vm5, %v6877_v57, %v7177_v17 }
 0x1a6   : > { %v7579_v25 = vpop.permute.xlu2 %1190 }
 0x1a7   : > { %1518 = vrot.lane.b32.xlu1 %v6821_v10, %s6641_s18  ;;  %v1269_v10 = vsel %vm11404_vm6, %v1236_v5, %v7201_v30 }
 0x1a9   : > { %v1171_v27 = vpop.permute.xlu1 %1170 }
 0x1aa   : > { %1522 = vrot.lane.b32.xlu0 %v6855_v46, %s6641_s18 }
 0x1ac   : > { %1526 = vrot.lane.b32.xlu2 %v6836_v15, %s6641_s18  ;;  %v7587_v36 = vpop.permute.xlu0 %1174  ;;  %v1302_v15 = vsel %vm11421_vm7, %v1269_v10, %v7318_v1 }
 0x1ae   : > { %v7589_v51 = vpop.permute.xlu2 %1196 }
 0x1af   : > { %11545 = vst [vmem:[#allocation117_spill] sm:$0xff] %v7589_v51  ;;  %1524 = vrot.lane.b32.xlu1 %v6806_v63, %s6641_s18  ;;  %v1335_v51 = vsel %vm1319_vm8, %v1302_v15, %v7384_v7 }
 0x1b0   : > { %v1368_v17 = vsel %vm11426_vm9, %v1335_v51, %v7404_v22 }
 0x1b1   : > { %v7600_v46 = vpop.permute.xlu1 %1176  ;;  %v1401_v5 = vsel %vm11420_vm10, %v1368_v17, %v7510_v21  ;;  %v1222_v21 = vsel %vm11405_vm5, 0, %v7139_v13 }
 0x1b2   : > { %1528 = vrot.lane.b32.xlu0 %v6869_v53, %s6641_s18  ;;  %v1434_v10 = vsel %vm11419_vm11, %v1401_v5, %v1171_v27  ;;  %v7629_v7 = vsel %vm11404_vm6, %v1222_v21, %v7221_v58  ;;  %v11549_v21 = vld [vmem:[#allocation76_spill] sm:$0xff] }
 0x1b3   : > { %11546 = vst [vmem:[#allocation118_spill] sm:$0xff] %v7629_v7  ;;  %v1288_v1 = vsel %vm11421_vm7, %v7629_v7, %v7244_v61  ;;  %v11556_v7 = vld [vmem:[#allocation86_spill] sm:$0xff] }
 0x1b4   : > { %1532 = vrot.lane.b32.xlu2 %v6897_v28, %s6641_s18  ;;  %v7613_v30 = vpop.permute.xlu0 %1180  ;;  %v1321_v13 = vsel %vm1319_vm8, %v1288_v1, %v7354_v52 }
 0x1b5   : > { %v1354_v5 = vsel %vm11426_vm9, %v1321_v13, %v7420_v31 }
 0x1b6   : > { %v1203_v15 = vpop.permute.xlu2 %1202  ;;  %v1387_v58 = vsel %vm11420_vm10, %v1354_v5, %v7440_v60  ;;  %v1232_v60 = vsel %vm11405_vm5, %v6796_v50, %v7130_v20  ;;  %v11550_v5 = vld [vmem:[#allocation80_spill] sm:$0xff] }
 0x1b7   : > { %v1467_v51 = vsel %vm1451_vm13, %v1434_v10, %v1203_v15  ;;  %1530 = vrot.lane.b32.xlu1 %v6906_v41, %s6641_s18  ;;  %v1420_v10 = vsel %vm11419_vm11, %v1387_v58, %v7549_v16  ;;  %v11548_v16 = vld [vmem:[#allocation59_spill] sm:$0xff] }
 0x1b8   : > { %6404 = vmatmul.msk.bf16.vlgmr.msra.gmra.mxu2 %vm11416_vm12, %v1467_v51  ;;  %v1265_v51 = vsel %vm11404_vm6, %v1232_v60, %v11548_v16  ;;  %v11552_v60 = vld [vmem:[#allocation47_spill] sm:$0xff] }
 0x1b9   : > { %v7619_v22 = vpop.permute.xlu1 %1182  ;;  %v1298_v1 = vsel %vm11421_vm7, %v1265_v51, %v11549_v21  ;;  %v11553_v21 = vld [vmem:[#allocation22_spill] sm:$0xff] }
 0x1ba   : > { %1534 = vrot.lane.b32.xlu0 %v6920_v56, %s6641_s18  ;;  %v1331_v58 = vsel %vm1319_vm8, %v1298_v1, %v11550_v5  ;;  %v11554_v1 = vld [vmem:[#allocation70_spill] sm:$0xff] }
 0x1bb   : > { %v1364_v20 = vsel %vm11426_vm9, %v1331_v58, %v7438_v54 }
 0x1bc   : > { %1538 = vrot.lane.b32.xlu2 %v6951_v42, %s6641_s18  ;;  %v7634_v27 = vpop.permute.xlu0 %1186  ;;  %v1397_v51 = vsel %vm11420_vm10, %v1364_v20, %v7504_v38  ;;  %v11558_v20 = vld [vmem:[#allocation91_spill] sm:$0xff] }
 0x1bd   : > { %11547 = vst [vmem:[#allocation119_spill] sm:$0xff] %v7634_v27  ;;  %v1430_v54 = vsel %vm11419_vm11, %v1397_v51, %v7524_v39  ;;  %v11559_v39 = vld [vmem:[#allocation61_spill] sm:$0xff] }
 0x1be   : > { %v7636_v17 = vpop.permute.xlu2 %1208 }
 0x1bf   : > { %1536 = vrot.lane.b32.xlu1 %v6961_v0, %s6641_s18 }
 0x1c1   : > { %v1189_v61 = vpop.permute.xlu1 %1188 }
 0x1c2   : > { %v1453_v15 = vsel %vm1451_vm13, %v1420_v10, %v1189_v61  ;;  %1540 = vrot.lane.b32.xlu0 %v6972_v6, %s6641_s18  ;;  %v11551_v10 = vld [vmem:[#allocation42_spill] sm:$0xff] }
 0x1c3   : > { %6397 = vmatmul.msk.bf16.vlgmr.msra.gmra.mxu0 %vm11416_vm12, %v1453_v15  ;;  %v1224_v61 = vsel %vm11405_vm5, %v6789_v44, %v11551_v10  ;;  %v6609_v15 = vpack.i.bf16 %v6730_v2, %v6730_v2 }
 0x1c4   : > { %1544 = vrot.lane.b32.xlu2 %v6988_v43, %s6641_s18  ;;  %v7654_v31 = vpop.permute.xlu0 %1192  ;;  %v1257_v16 = vsel %vm11404_vm6, %v1224_v61, %v11552_v60  ;;  %v11557_v60 = vld [vmem:[#allocation39_spill] sm:$0xff] }
 0x1c5   : > { %v1290_v5 = vsel %vm11421_vm7, %v1257_v16, %v11554_v1  ;;  %v1238_v38 = vsel %vm11405_vm5, %v6859_v47, %v11557_v60 }
 0x1c6   : > { %v7656_v52 = vpop.permute.xlu2 %1214  ;;  %v1323_v2 = vsel %vm1319_vm8, %v1290_v5, %v11556_v7  ;;  %v1271_v16 = vsel %vm11404_vm6, %v1238_v38, %v11559_v39  ;;  %v11560_v7 = vld [vmem:[#allocation78_spill] sm:$0xff] }
 0x1c7   : > { %1542 = vrot.lane.b32.xlu1 %v7002_v12, %s6641_s18  ;;  %v1304_v1 = vsel %vm11421_vm7, %v1271_v16, %v11560_v7  ;;  %v11565_v16 = vld [vmem:[#allocation60_spill] sm:$0xff] }
 0x1c9   : > { %v7667_v13 = vpop.permute.xlu1 %1194 }
 0x1ca   : > { %1546 = vrot.lane.b32.xlu0 %v7010_v24, %s6641_s18  ;;  %s6649_s18 = smov 40  }
 0x1cc   : > { %1550 = vrot.lane.b32.xlu2 %v11553_v21, %s6635_s27  ;;  %v1199_v58 = vpop.permute.xlu0 %1198  ;;  %v1356_v21 = vsel %vm11426_vm9, %v1323_v2, %v11558_v20  ;;  %v11563_v20 = vld [vmem:[#allocation46_spill] sm:$0xff] }
 0x1cd   : > { %v1463_v61 = vsel %vm1451_vm13, %v1430_v54, %v1199_v58  ;;  %v1389_v51 = vsel %vm11420_vm10, %v1356_v21, %v7486_v49  ;;  %v11561_v58 = vld [vmem:[#allocation83_spill] sm:$0xff]  ;;  %v1234_v39 = vsel %vm11405_vm5, %v6842_v18, %v11563_v20  ;;  %v11572_v20 = vld [vmem:[#allocation102_spill] sm:$0xff] }
 0x1ce   : > { %v7690_v10 = vpop.permute.xlu2 %1484  ;;  %6402 = vmatmul.msk.bf16.vlgmr.msra.gmra.mxu1 %vm11416_vm12, %v1463_v61  ;;  %v1422_v5 = vsel %vm11419_vm11, %v1389_v51, %v7556_v4  ;;  %v1337_v2 = vsel %vm1319_vm8, %v1304_v1, %v11561_v58  ;;  %v11566_v51 = vld [vmem:[#allocation64_spill] sm:$0xff]  ;;  %v11567_v1 = vld [vmem:[#allocation65_spill] sm:$0xff] }
 0x1cf   : > { %11555 = vst [vmem:[#allocation59_spill] sm:$0xff] %v7690_v10  ;;  %6610 = vrot.lane.b32.xlu1 %v6609_v15, %s6635_s27  ;;  %v1455_v61 = vsel %vm1451_vm13, %v1422_v5, %v7579_v25  ;;  %v1370_v15 = vsel %vm11426_vm9, %v1337_v2, %v7450_v40  ;;  %v11562_v40 = vld [vmem:[#allocation41_spill] sm:$0xff] }
 0x1d0   : > { %v1403_v49 = vsel %vm11420_vm10, %v1370_v15, %v7516_v8  ;;  %v1244_v38 = vsel %vm11405_vm5, %v6913_v48, %v11562_v40  ;;  %v11564_v8 = vld [vmem:[#allocation26_spill] sm:$0xff]  ;;  %v11568_v58 = vld [vmem:[#allocation81_spill] sm:$0xff] }
 0x1d1   : > { %v1201_v54 = vpop.permute.xlu1 %1200  ;;  %v1436_v4 = vsel %vm11419_vm11, %v1403_v49, %v7536_v34  ;;  %v1267_v34 = vsel %vm11404_vm6, %v1234_v39, %v11565_v16  ;;  %v1277_v7 = vsel %vm11404_vm6, %v1244_v38, %v11566_v51  ;;  %v11569_v15 = vld [vmem:[#allocation85_spill] sm:$0xff]  ;;  %v11573_v16 = vld [vmem:[#allocation55_spill] sm:$0xff] }
 0x1d2   : > { %1552 = vrot.lane.b32.xlu0 %v7025_v45, %s6635_s27  ;;  %v1300_v5 = vsel %vm11421_vm7, %v1267_v34, %v11567_v1  ;;  %v1310_v2 = vsel %vm11421_vm7, %v1277_v7, %v11568_v58  ;;  %v11574_v1 = vld [vmem:[#allocation72_spill] sm:$0xff] }
 0x1d3   : > { %6398 = vmatmul.msk.bf16.gmra.mxu0 %vm11416_vm12, %v1455_v61  ;;  %v1343_v49 = vsel %vm1319_vm8, %v1310_v2, %v11569_v15 }
 0x1d4   : > { %1556 = vrot.lane.b32.xlu2 %v7028_v26, %s6635_s27  ;;  %v1205_v21 = vpop.permute.xlu0 %1204  ;;  %v1376_v39 = vsel %vm11426_vm9, %v1343_v49, %v7462_v23  ;;  %v11575_v49 = vld [vmem:[#allocation77_spill] sm:$0xff] }
 0x1d5   : > { %v1469_v25 = vsel %vm1451_vm13, %v1436_v4, %v1205_v21  ;;  %v11570_v4 = vld [vmem:[#allocation90_spill] sm:$0xff]  ;;  %v1409_v7 = vsel %vm11420_vm10, %v1376_v39, %v7528_v59  ;;  %v11580_v39 = vld [vmem:[#allocation68_spill] sm:$0xff] }
 0x1d6   : > { %v7725_v60 = vpop.permute.xlu2 %1490  ;;  %6405 = vmatmul.msk.bf16.gmra.mxu2 %vm11416_vm12, %v1469_v25  ;;  %v1333_v21 = vsel %vm1319_vm8, %v1300_v5, %v11570_v4  ;;  %v11571_v25 = vld [vmem:[#allocation40_spill] sm:$0xff]  ;;  %v1442_v23 = vsel %vm11419_vm11, %v1409_v7, %v7551_v32 }
 0x1d7   : > { %1554 = vrot.lane.b32.xlu1 %v11564_v8, %s6635_s27  ;;  %v1226_v40 = vsel %vm11405_vm5, %v6780_v35, %v11571_v25  ;;  %v1366_v38 = vsel %vm11426_vm9, %v1333_v21, %v11572_v20  ;;  %v11576_v21 = vld [vmem:[#allocation48_spill] sm:$0xff] }
 0x1d8   : > { %v1259_v34 = vsel %vm11404_vm6, %v1226_v40, %v11573_v16  ;;  %v1399_v51 = vsel %vm11420_vm10, %v1366_v38, %v7464_v29  ;;  %v1240_v25 = vsel %vm11405_vm5, %v6891_v9, %v11576_v21  ;;  %v11577_v40 = vld [vmem:[#allocation99_spill] sm:$0xff] }
 0x1d9   : > { %v1207_v61 = vpop.permute.xlu1 %1206  ;;  %v1292_v5 = vsel %vm11421_vm7, %v1259_v34, %v11574_v1  ;;  %v1432_v58 = vsel %vm11419_vm11, %v1399_v51, %v7577_v55  ;;  %v11578_v55 = vld [vmem:[#allocation63_spill] sm:$0xff]  ;;  %v11581_v34 = vld [vmem:[#allocation112_spill] sm:$0xff] }
 0x1da   : > { %1558 = vrot.lane.b32.xlu0 %v7044_v3, %s6635_s27  ;;  %v1325_v29 = vsel %vm1319_vm8, %v1292_v5, %v11575_v49  ;;  %v1465_v59 = vsel %vm1451_vm13, %v1432_v58, %v1201_v54  ;;  %v1273_v20 = vsel %vm11404_vm6, %v1240_v25, %v11578_v55  ;;  %v11579_v54 = vld [vmem:[#allocation29_spill] sm:$0xff]  ;;  %v11582_v1 = vld [vmem:[#allocation92_spill] sm:$0xff]  ;;  %v11585_v49 = vld [vmem:[#allocation107_spill] sm:$0xff] }
 0x1db   : > { %v1358_v32 = vsel %vm11426_vm9, %v1325_v29, %v11577_v40  ;;  %v1306_v16 = vsel %vm11421_vm7, %v1273_v20, %v11580_v39  ;;  %v11583_v58 = vld [vmem:[#allocation104_spill] sm:$0xff]  ;;  %v11588_v40 = vld [vmem:[#allocation51_spill] sm:$0xff]  ;;  %v11589_v55 = vld [vmem:[#allocation66_spill] sm:$0xff] }
 0x1dc   : > { %1562 = vrot.lane.b32.xlu2 %v7049_v14, %s6635_s27  ;;  %v1211_v2 = vpop.permute.xlu0 %1210  ;;  %v1391_v38 = vsel %vm11420_vm10, %v1358_v32, %v7492_v33  ;;  %v1339_v5 = vsel %vm1319_vm8, %v1306_v16, %v11582_v1  ;;  %v11584_v33 = vld [vmem:[#allocation30_spill] sm:$0xff]  ;;  %v1246_v32 = vsel %vm11405_vm5, %v6941_v19, %v11588_v40  ;;  %v11591_v39 = vld [vmem:[#allocation71_spill] sm:$0xff]  ;;  %v11595_v1 = vld [vmem:[#allocation8_spill] sm:$0xff] }
 0x1dd   : > { %v1475_v4 = vsel %vm1451_vm13, %v1442_v23, %v1211_v2  ;;  %v1424_v51 = vsel %vm11419_vm11, %v1391_v38, %v11581_v34  ;;  %v1372_v2 = vsel %vm11426_vm9, %v1339_v5, %v11583_v58  ;;  %v1279_v20 = vsel %vm11404_vm6, %v1246_v32, %v11589_v55  ;;  %v11590_v38 = vld [vmem:[#allocation32_spill] sm:$0xff]  ;;  %v11593_v34 = vld [vmem:[#allocation95_spill] sm:$0xff]  ;;  %v11600_v40 = vld [vmem:[#allocation34_spill] sm:$0xff] }
 0x1de   : > { %v7772_v15 = vpop.permute.xlu2 %1496  ;;  %6403 = vmatmul.msk.bf16.gmra.mxu1 %vm11416_vm12, %v1465_v59  ;;  %6408 = vmatmul.msk.bf16.vlgmr.msra.gmra.mxu3 %vm11416_vm12, %v1475_v4  ;;  %v1457_v23 = vsel %vm1451_vm13, %v1424_v51, %v7654_v31  ;;  %v1405_v29 = vsel %vm11420_vm10, %v1372_v2, %v11585_v49  ;;  %v11586_v59 = vld [vmem:[#allocation31_spill] sm:$0xff]  ;;  %v11594_v51 = vld [vmem:[#allocation44_spill] sm:$0xff]  ;;  %v11597_v2 = vld [vmem:[#allocation33_spill] sm:$0xff] }
 0x1df   : > { %1560 = vrot.lane.b32.xlu1 %v11579_v54, %s6635_s27  ;;  %v1438_v4 = vsel %vm11419_vm11, %v1405_v29, %v7587_v36  ;;  %v1312_v36 = vsel %vm11421_vm7, %v1279_v20, %v11591_v39  ;;  %v1228_v5 = vsel %vm11405_vm5, %v11595_v1, %v11594_v51  ;;  %v11598_v49 = vld [vmem:[#allocation58_spill] sm:$0xff] }
 0x1e0   : > { %v1471_v25 = vsel %vm1451_vm13, %v1438_v4, %v1207_v61  ;;  %v1345_v61 = vsel %vm1319_vm8, %v1312_v36, %v11593_v34  ;;  %v1261_v29 = vsel %vm11404_vm6, %v1228_v5, %v11598_v49  ;;  %v11599_v4 = vld [vmem:[#allocation109_spill] sm:$0xff]  ;;  %v11601_v32 = vld [vmem:[#allocation62_spill] sm:$0xff]  ;;  %v11604_v34 = vld [vmem:[#allocation87_spill] sm:$0xff] }
 0x1e1   : > { %v1213_v7 = vpop.permute.xlu1 %1212  ;;  %v1294_v55 = vsel %vm11421_vm7, %v1261_v29, %v11601_v32  ;;  %v11605_v5 = vld [vmem:[#allocation50_spill] sm:$0xff]  ;;  %v11609_v32 = vld [vmem:[#allocation35_spill] sm:$0xff] }
 0x1e2   : > { %1564 = vrot.lane.b32.xlu0 %v11584_v33, %s6635_s27  ;;  %v11607_v29 = vld [vmem:[#allocation54_spill] sm:$0xff] }
 0x1e3   : > { %6399 = vmatmul.msk.bf16.gmra.mxu0 %vm11416_vm12, %v1457_v23  ;;  %v11596_v23 = vld [vmem:[#allocation105_spill] sm:$0xff] }
 0x1e4   : > { %1568 = vrot.lane.b32.xlu2 %v11586_v59, %s6635_s27  ;;  %v7810_v21 = vpop.permute.xlu0 %1216  ;;  %v1378_v58 = vsel %vm11426_vm9, %v1345_v61, %v11596_v23  ;;  %v1327_v61 = vsel %vm1319_vm8, %v1294_v55, %v11604_v34  ;;  %v1242_v23 = vsel %vm11405_vm5, %v6928_v62, %v11605_v5  ;;  %v11610_v55 = vld [vmem:[#allocation79_spill] sm:$0xff] }
 0x1e6   : > { %v7812_v31 = vpop.permute.xlu2 %1502  ;;  %6406 = vmatmul.msk.bf16.gmra.mxu2 %vm11416_vm12, %v1471_v25  ;;  %v1411_v25 = vsel %vm11420_vm10, %v1378_v58, %v11599_v4  ;;  %v11606_v58 = vld [vmem:[#allocation101_spill] sm:$0xff]  ;;  %v11608_v4 = vld [vmem:[#allocation103_spill] sm:$0xff] }
 0x1e7   : > { %11587 = vst [vmem:[#allocation76_spill] sm:$0xff] %v7812_v31  ;;  %1566 = vrot.lane.b32.xlu1 %v11590_v38, %s6635_s27  ;;  %v1444_v20 = vsel %vm11419_vm11, %v1411_v25, %v7613_v30  ;;  %v1360_v49 = vsel %vm11426_vm9, %v1327_v61, %v11606_v58  ;;  %v1275_v30 = vsel %vm11404_vm6, %v1242_v23, %v11607_v29  ;;  %v11611_v61 = vld [vmem:[#allocation94_spill] sm:$0xff]  ;;  %v11614_v29 = vld [vmem:[#allocation113_spill] sm:$0xff]  ;;  %v11650_v31 = vld [vmem:[#allocation108_spill] sm:$0xff] }
 0x1e8   : > { %v1477_v51 = vsel %vm1451_vm13, %v1444_v20, %v1213_v7  ;;  %v1393_v25 = vsel %vm11420_vm10, %v1360_v49, %v11608_v4  ;;  %v1308_v7 = vsel %vm11421_vm7, %v1275_v30, %v11610_v55  ;;  %v11612_v23 = vld [vmem:[#allocation98_spill] sm:$0xff]  ;;  %v11613_v49 = vld [vmem:[#allocation36_spill] sm:$0xff] }
 0x1e9   : > { %v7825_v16 = vpop.permute.xlu1 %1218  ;;  %v1426_v20 = vsel %vm11419_vm11, %v1393_v25, %v7565_v11  ;;  %v11616_v55 = vld [vmem:[#allocation52_spill] sm:$0xff] }
 0x1ea   : > { %11592 = vst [vmem:[#allocation80_spill] sm:$0xff] %v7825_v16  ;;  %1570 = vrot.lane.b32.xlu0 %v11597_v2, %s6635_s27  ;;  %v1459_v5 = vsel %vm1451_vm13, %v1426_v20, %v7667_v13 }
 0x1ec   : > { %1574 = vrot.lane.b32.xlu2 %v11600_v40, %s6635_s27  ;;  %v7846_v39 = vpop.permute.xlu0 %1486 }
 0x1ed   : > { %11602 = vst [vmem:[#allocation42_spill] sm:$0xff] %v7846_v39  ;;  %v11626_v39 = vld [vmem:[#allocation114_spill] sm:$0xff] }
 0x1ee   : > { %v7848_v36 = vpop.permute.xlu2 %1508  ;;  %6409 = vmatmul.msk.bf16.gmra.mxu3 %vm11416_vm12, %v1477_v51  ;;  %v1341_v51 = vsel %vm1319_vm8, %v1308_v7, %v11611_v61  ;;  %v11617_v7 = vld [vmem:[#allocation18_spill] sm:$0xff]  ;;  %v11618_v61 = vld [vmem:[#allocation56_spill] sm:$0xff] }
 0x1ef   : > { %11603 = vst [vmem:[#allocation47_spill] sm:$0xff] %v7848_v36  ;;  %1572 = vrot.lane.b32.xlu1 %v11609_v32, %s6635_s27  ;;  %v1374_v58 = vsel %vm11426_vm9, %v1341_v51, %v11612_v23  ;;  %v1248_v20 = vsel %vm11405_vm5, %v11617_v7, %v11616_v55  ;;  %v11624_v55 = vld [vmem:[#allocation100_spill] sm:$0xff] }
 0x1f0   : > { %v1407_v30 = vsel %vm11420_vm10, %v1374_v58, %v11614_v29  ;;  %v1281_v51 = vsel %vm11404_vm6, %v1248_v20, %v11618_v61  ;;  %v11621_v58 = vld [vmem:[#allocation96_spill] sm:$0xff]  ;;  %v11622_v29 = vld [vmem:[#allocation38_spill] sm:$0xff]  ;;  %v11625_v20 = vld [vmem:[#allocation49_spill] sm:$0xff] }
 0x1f1   : > { %v7869_v34 = vpop.permute.xlu1 %1488  ;;  %v1440_v11 = vsel %vm11419_vm11, %v1407_v30, %v7600_v46  ;;  %v11620_v46 = vld [vmem:[#allocation82_spill] sm:$0xff]  ;;  %v11623_v30 = vld [vmem:[#allocation5_spill] sm:$0xff] }
 0x1f2   : > { %1576 = vrot.lane.b32.xlu0 %v11613_v49, %s6635_s27  ;;  %v1473_v25 = vsel %vm1451_vm13, %v1440_v11, %v7636_v17  ;;  %v1230_v11 = vsel %vm11405_vm5, %v11623_v30, %v11622_v29 }
 0x1f3   : > { %6400 = vmatmul.msk.bf16.gmra.mxu0 %vm11416_vm12, %v1459_v5  ;;  %v1314_v5 = vsel %vm11421_vm7, %v1281_v51, %v11620_v46  ;;  %v1263_v61 = vsel %vm11404_vm6, %v1230_v11, %v11625_v20  ;;  %v11627_v46 = vld [vmem:[#allocation74_spill] sm:$0xff] }
 0x1f4   : > { %1580 = vrot.lane.b32.xlu2 %v6789_v44, %s6642_s21  ;;  %v7886_v4 = vpop.permute.xlu0 %1492  ;;  %v11619_v44 = vld [vmem:[#allocation37_spill] sm:$0xff]  ;;  %v1347_v17 = vsel %vm1319_vm8, %v1314_v5, %v11621_v58  ;;  %v1296_v5 = vsel %vm11421_vm7, %v1263_v61, %v11627_v46  ;;  %v11631_v20 = vld [vmem:[#allocation110_spill] sm:$0xff] }
 0x1f5   : > { %v11632_v46 = vld [vmem:[#allocation117_spill] sm:$0xff] }
 0x1f6   : > { %v7888_v13 = vpop.permute.xlu2 %1514  ;;  %6407 = vmatmul.msk.bf16.gmra.mxu2 %vm11416_vm12, %v1473_v25  ;;  %v1380_v25 = vsel %vm11426_vm9, %v1347_v17, %v11624_v55  ;;  %v11629_v55 = vld [vmem:[#allocation89_spill] sm:$0xff] }
 0x1f7   : > { %11615 = vst [vmem:[#allocation70_spill] sm:$0xff] %v7888_v13  ;;  %1578 = vrot.lane.b32.xlu1 %v11619_v44, %s6635_s27  ;;  %v1413_v51 = vsel %vm11420_vm10, %v1380_v25, %v11626_v39  ;;  %v1329_v10 = vsel %vm1319_vm8, %v1296_v5, %v11629_v55  ;;  %v11630_v39 = vld [vmem:[#allocation93_spill] sm:$0xff]  ;;  %v11635_v55 = vld [vmem:[#allocation15_spill] sm:$0xff] }
 0x1f8   : > { %v1446_v58 = vsel %vm11419_vm11, %v1413_v51, %v7619_v22  ;;  %v1362_v25 = vsel %vm11426_vm9, %v1329_v10, %v11630_v39 }
 0x1f9   : > { %v7902_v23 = vpop.permute.xlu1 %1494  ;;  %v1479_v11 = vsel %vm1451_vm13, %v1446_v58, %v7656_v52  ;;  %v1395_v61 = vsel %vm11420_vm10, %v1362_v25, %v11631_v20  ;;  %v11634_v58 = vld [vmem:[#allocation45_spill] sm:$0xff]  ;;  %v11637_v25 = vld [vmem:[#allocation84_spill] sm:$0xff] }
 0x1fa   : > { %1582 = vrot.lane.b32.xlu0 %v6780_v35, %s6642_s21  ;;  %v1428_v22 = vsel %vm11419_vm11, %v1395_v61, %v7571_v37  ;;  %v1250_v37 = vsel %vm11405_vm5, %v11635_v55, %v11634_v58  ;;  %v11640_v58 = vld [vmem:[#allocation115_spill] sm:$0xff] }
 0x1fb   : > { %v1461_v5 = vsel %vm1451_vm13, %v1428_v22, %v11632_v46  ;;  %v11638_v22 = vld [vmem:[#allocation88_spill] sm:$0xff] }
 0x1fc   : > { %1586 = vrot.lane.b32.xlu2 %v11623_v30, %s6642_s21  ;;  %v7923_v29 = vpop.permute.xlu0 %1498 }
 0x1fd   : > { %11628 = vst [vmem:[#allocation86_spill] sm:$0xff] %v7923_v29 }
 0x1fe   : > { %v7925_v17 = vpop.permute.xlu2 %1520  ;;  %6410 = vmatmul.msk.bf16.gmra.mxu3 %vm11416_vm12, %v1479_v11  ;;  %v11636_v11 = vld [vmem:[#allocation67_spill] sm:$0xff] }
 0x1ff   : > { %1584 = vrot.lane.b32.xlu1 %v11595_v1, %s6642_s21  ;;  %v1283_v39 = vsel %vm11404_vm6, %v1250_v37, %v11636_v11  ;;  %v11641_v11 = vld [vmem:[#allocation116_spill] sm:$0xff] }
 0x200   : > { %v1316_v20 = vsel %vm11421_vm7, %v1283_v39, %v11637_v25 }
 0x201   : > { %v7940_v51 = vpop.permute.xlu1 %1500  ;;  %v1349_v46 = vsel %vm1319_vm8, %v1316_v20, %v11638_v22 }
 0x202   : > { %1588 = vrot.lane.b32.xlu0 %v6796_v50, %s6642_s21 }
 0x203   : > { %6401 = vmatmul.msk.bf16.gmra.mxu0 %vm11416_vm12, %v1461_v5  ;;  %v11639_v5 = vld [vmem:[#allocation106_spill] sm:$0xff] }
 0x204   : > { %1592 = vrot.lane.b32.xlu2 %v6877_v57, %s6642_s21  ;;  %v7949_v52 = vpop.permute.xlu0 %1504  ;;  %v1382_v13 = vsel %vm11426_vm9, %v1349_v46, %v11639_v5  ;;  %v11644_v5 = vld [vmem:[#allocation53_spill] sm:$0xff] }
 0x205   : > { %11633 = vst [vmem:[#allocation39_spill] sm:$0xff] %v7949_v52  ;;  %v1415_v37 = vsel %vm11420_vm10, %v1382_v13, %v11640_v58  ;;  %v11645_v58 = vld [vmem:[#allocation20_spill] sm:$0xff]  ;;  %v11649_v52 = vld [vmem:[#allocation97_spill] sm:$0xff] }
 0x206   : > { %v7951_v10 = vpop.permute.xlu2 %1526  ;;  %v1448_v39 = vsel %vm11419_vm11, %v1415_v37, %v11641_v11  ;;  %v11646_v37 = vld [vmem:[#allocation69_spill] sm:$0xff] }
 0x207   : > { %1590 = vrot.lane.b32.xlu1 %v6842_v18, %s6642_s21  ;;  %v1481_v20 = vsel %vm1451_vm13, %v1448_v39, %v7810_v21  ;;  %v1252_v21 = vsel %vm11405_vm5, %v11645_v58, %v11644_v5  ;;  %v11647_v39 = vld [vmem:[#allocation75_spill] sm:$0xff]  ;;  %vm11423_vm5 = vcmask 244736  }
 0x208   : > { %v1285_v11 = vsel %vm11404_vm6, %v1252_v21, %v11646_v37  ;;  %v11651_v5 = vld [vmem:[#allocation111_spill] sm:$0xff]  ;;  %vm11422_vm6 = vcmask 285696  }
 0x209   : > { %v7962_v61 = vpop.permute.xlu1 %1506  ;;  %v11652_v37 = vld [vmem:[#allocation43_spill] sm:$0xff] }
 0x20a   : > { %1594 = vrot.lane.b32.xlu0 %v6859_v47, %s6642_s21 }
 0x20c   : > { %1598 = vrot.lane.b32.xlu2 %v6928_v62, %s6642_s21  ;;  %v7976_v25 = vpop.permute.xlu0 %1510 }
 0x20d   : > { %11642 = vst [vmem:[#allocation91_spill] sm:$0xff] %v7976_v25 }
 0x20e   : > { %v7978_v36 = vpop.permute.xlu2 %1532  ;;  %6411 = vmatmul.msk.bf16.gmra.mxu3 %vm11416_vm12, %v1481_v20  ;;  %v1318_v20 = vsel %vm11421_vm7, %v1285_v11, %v11647_v39  ;;  %vm3200_vm7 = vcmask 392192  }
 0x20f   : > { %1596 = vrot.lane.b32.xlu1 %v6891_v9, %s6642_s21 }
 0x211   : > { %v7985_v22 = vpop.permute.xlu1 %1512 }
 0x212   : > { %1600 = vrot.lane.b32.xlu0 %v6913_v48, %s6642_s21 }
 0x214   : > { %1604 = vrot.lane.b32.xlu2 %v11617_v7, %s6642_s21  ;;  %v7991_v13 = vpop.permute.xlu0 %1516 }
 0x215   : > { %11643 = vst [vmem:[#allocation61_spill] sm:$0xff] %v7991_v13  ;;  %v1351_v13 = vsel %vm1319_vm8, %v1318_v20, %v11649_v52 }
 0x216   : > { %v7993_v46 = vpop.permute.xlu2 %1538  ;;  %v1384_v29 = vsel %vm11426_vm9, %v1351_v13, %v11650_v31  ;;  %v11654_v13 = vld [vmem:[#allocation10_spill] sm:$0xff] }
 0x217   : > { %1602 = vrot.lane.b32.xlu1 %v6941_v19, %s6642_s21  ;;  %v1417_v21 = vsel %vm11420_vm10, %v1384_v29, %v11651_v5  ;;  %v11653_v29 = vld [vmem:[#allocation7_spill] sm:$0xff]  ;;  %vm2018_vm10 = vcmask 326656  }
 0x218   : > { %v1450_v11 = vsel %vm11419_vm11, %v1417_v21, %v7634_v27  ;;  %vm3135_vm11 = vcmask 261120  }
 0x219   : > { %v8004_v25 = vpop.permute.xlu1 %1518  ;;  %v1483_v52 = vsel %vm1451_vm13, %v1450_v11, %v7825_v16  ;;  %v11656_v11 = vld [vmem:[#allocation6_spill] sm:$0xff] }
 0x21a   : > { %11648 = vst [vmem:[#allocation78_spill] sm:$0xff] %v8004_v25  ;;  %1606 = vrot.lane.b32.xlu0 %v11635_v55, %s6642_s21  ;;  %v11658_v25 = vld [vmem:[#allocation9_spill] sm:$0xff] }
 0x21c   : > { %1610 = vrot.lane.b32.xlu2 %v11652_v37, %s6642_s21  ;;  %v8018_v39 = vpop.permute.xlu0 %1522 }
 0x21e   : > { %v8022_v20 = vpop.permute.xlu2 %1544  ;;  %6412 = vmatmul.msk.bf16.gmra.mxu3 %vm11416_vm12, %v1483_v52  ;;  %vm3372_vm12 = vcmask 1043456  }
 0x21f   : > { %1608 = vrot.lane.b32.xlu1 %v11645_v58, %s6642_s21  ;;  %s6650_s21 = smov 32  }
 0x221   : > { %v8027_v31 = vpop.permute.xlu1 %1524 }
 0x222   : > { %1612 = vrot.lane.b32.xlu0 %v11653_v29, %s6643_s22 }
 0x224   : > { %1616 = vrot.lane.b32.xlu2 %v11654_v13, %s6643_s22  ;;  %v8033_v21 = vpop.permute.xlu0 %1528 }
 0x226   : > { %v8035_v27 = vpop.permute.xlu2 %1550 }
 0x227   : > { %11655 = vst [vmem:[#allocation83_spill] sm:$0xff] %v8035_v27  ;;  %1614 = vrot.lane.b32.xlu1 %v11656_v11, %s6643_s22 }
 0x229   : > { %v8039_v52 = vpop.permute.xlu1 %1530 }
 0x22a   : > { %11657 = vst [vmem:[#allocation41_spill] sm:$0xff] %v8039_v52  ;;  %1618 = vrot.lane.b32.xlu0 %v6806_v63, %s6643_s22 }
 0x22c   : > { %1622 = vrot.lane.b32.xlu2 %v6869_v53, %s6643_s22  ;;  %v8045_v5 = vpop.permute.xlu0 %1534 }
 0x22e   : > { %v8047_v29 = vpop.permute.xlu2 %1556 }
 0x22f   : > { %1620 = vrot.lane.b32.xlu1 %v11658_v25, %s6643_s22 }
 0x231   : > { %v8051_v16 = vpop.permute.xlu1 %1536 }
 0x232   : > { %11659 = vst [vmem:[#allocation46_spill] sm:$0xff] %v8051_v16  ;;  %1624 = vrot.lane.b32.xlu0 %v6906_v41, %s6643_s22 }
 0x234   : > { %1628 = vrot.lane.b32.xlu2 %v6920_v56, %s6643_s22  ;;  %v8057_v27 = vpop.permute.xlu0 %1540 }
 0x236   : > { %v8059_v52 = vpop.permute.xlu2 %1562 }
 0x237   : > { %1626 = vrot.lane.b32.xlu1 %v6897_v28, %s6643_s22 }
 0x239   : > { %v8063_v53 = vpop.permute.xlu1 %1542 }
 0x23a   : > { %11660 = vst [vmem:[#allocation60_spill] sm:$0xff] %v8063_v53  ;;  %1630 = vrot.lane.b32.xlu0 %v6961_v0, %s6643_s22 }
 0x23c   : > { %1634 = vrot.lane.b32.xlu2 %v6972_v6, %s6643_s22  ;;  %v8069_v16 = vpop.permute.xlu0 %1546 }
 0x23d   : > { %11661 = vst [vmem:[#allocation64_spill] sm:$0xff] %v8069_v16  ;;  %v11663_v16 = vld [vmem:[#allocation57_spill] sm:$0xff] }
 0x23e   : > { %v8071_v41 = vpop.permute.xlu2 %1568 }
 0x23f   : > { %1632 = vrot.lane.b32.xlu1 %v6951_v42, %s6643_s22 }
 0x241   : > { %v8075_v56 = vpop.permute.xlu1 %6610 }
 0x242   : > { %11662 = vst [vmem:[#allocation65_spill] sm:$0xff] %v8075_v56  ;;  %1636 = vrot.lane.b32.xlu0 %v7002_v12, %s6643_s22 }
 0x244   : > { %1640 = vrot.lane.b32.xlu2 %v7010_v24, %s6643_s22  ;;  %v1553_v53 = vpop.permute.xlu0 %1552  ;;  %v11665_v24 = vld [vmem:[#allocation22_spill] sm:$0xff] }
 0x246   : > { %v8081_v0 = vpop.permute.xlu2 %1574 }
 0x247   : > { %1638 = vrot.lane.b32.xlu1 %v6988_v43, %s6643_s22 }
 0x249   : > { %v8085_v6 = vpop.permute.xlu1 %1554 }
 0x24a   : > { %1642 = vrot.lane.b32.xlu0 %v11663_v16, %s6643_s22 }
 0x24c   : > { %1646 = vrot.lane.b32.xlu2 %v7025_v45, %s6644_s23  ;;  %v1559_v56 = vpop.permute.xlu0 %1558 }
 0x24e   : > { %v8091_v12 = vpop.permute.xlu2 %1580 }
 0x24f   : > { %11664 = vst [vmem:[#allocation81_spill] sm:$0xff] %v8091_v12  ;;  %1644 = vrot.lane.b32.xlu1 %v11665_v24, %s6644_s23 }
 0x251   : > { %v8095_v42 = vpop.permute.xlu1 %1560 }
 0x252   : > { %1648 = vrot.lane.b32.xlu0 %v11564_v8, %s6644_s23 }
 0x254   : > { %1652 = vrot.lane.b32.xlu2 %v7044_v3, %s6644_s23  ;;  %v1565_v43 = vpop.permute.xlu0 %1564 }
 0x256   : > { %v8101_v16 = vpop.permute.xlu2 %1586 }
 0x257   : > { %1650 = vrot.lane.b32.xlu1 %v7028_v26, %s6644_s23 }
 0x259   : > { %v8105_v45 = vpop.permute.xlu1 %1566 }
 0x25a   : > { %1654 = vrot.lane.b32.xlu0 %v11579_v54, %s6644_s23 }
 0x25c   : > { %1658 = vrot.lane.b32.xlu2 %v11584_v33, %s6644_s23  ;;  %v8111_v24 = vpop.permute.xlu0 %1570 }
 0x25e   : > { %v8113_v12 = vpop.permute.xlu2 %1592 }
 0x25f   : > { %1656 = vrot.lane.b32.xlu1 %v7049_v14, %s6644_s23 }
 0x261   : > { %v8119_v3 = vpop.permute.xlu1 %1572 }
 0x262   : > { %1660 = vrot.lane.b32.xlu0 %v11590_v38, %s6644_s23 }
 0x264   : > { %1664 = vrot.lane.b32.xlu2 %v11597_v2, %s6644_s23  ;;  %v8123_v26 = vpop.permute.xlu0 %1576 }
 0x266   : > { %v8125_v54 = vpop.permute.xlu2 %1598 }
 0x267   : > { %1662 = vrot.lane.b32.xlu1 %v11586_v59, %s6644_s23  ;;  %v8147_v59 = vpop.f32.mrf.mxu0 }
 0x269   : > { %v8131_v33 = vpop.permute.xlu1 %1578 }
 0x26a   : > { %1666 = vrot.lane.b32.xlu0 %v11609_v32, %s6644_s23  ;;  %11666 = vst [vmem:[#allocation85_spill] sm:$0xff] %v8131_v33 }
 0x26c   : > { %1670 = vrot.lane.b32.xlu2 %v11613_v49, %s6644_s23  ;;  %v8135_v38 = vpop.permute.xlu0 %1582 }
 0x26d   : > { %11667 = vst [vmem:[#allocation90_spill] sm:$0xff] %v8135_v38  ;;  %v11669_v38 = vld [vmem:[#allocation73_spill] sm:$0xff] }
 0x26e   : > { %v8137_v14 = vpop.permute.xlu2 %1604 }
 0x26f   : > { %1668 = vrot.lane.b32.xlu1 %v11600_v40, %s6644_s23 }
 0x271   : > { %v1585_v2 = vpop.permute.xlu1 %1584 }
 0x272   : > { %1672 = vrot.lane.b32.xlu0 %v11619_v44, %s6644_s23  ;;  %v1781_v44 = vsel %vm11427_vm14, %v7869_v34, %v7925_v17 }
 0x274   : > { %1676 = vrot.lane.b32.xlu2 %v6780_v35, %s6645_s24  ;;  %v8145_v32 = vpop.permute.xlu0 %1588  ;;  %v1826_v35 = vsel %vm11426_vm9, %v1781_v44, %v1553_v53  ;;  %v1790_v53 = vsel %vm11427_vm14, %v7902_v23, %v7951_v10 }
 0x276   : > { %v8149_v49 = vpop.permute.xlu2 %1610 }
 0x277   : > { %11668 = vst [vmem:[#allocation40_spill] sm:$0xff] %v8149_v49  ;;  %1674 = vrot.lane.b32.xlu1 %v11669_v38, %s6644_s23  ;;  %v1859_v38 = vsel %vm11425_vm1, %v1826_v35, %v1585_v2  ;;  %v1832_v2 = vsel %vm11426_vm9, %v1790_v53, %v1559_v56  ;;  %s6651_s23 = smov 48  }
 0x279   : > { %v1591_v40 = vpop.permute.xlu1 %1590 }
 0x27a   : > { %1678 = vrot.lane.b32.xlu0 %v11595_v1, %s6645_s24  ;;  %v8167_v1 = vpop.f32.mrf.mxu0  ;;  %v1865_v34 = vsel %vm11425_vm1, %v1832_v2, %v1591_v40  ;;  %v1793_v2 = vsel %vm11427_vm14, %v7772_v15, %v8033_v21 }
 0x27c   : > { %1682 = vrot.lane.b32.xlu2 %v6796_v50, %s6645_s24  ;;  %v8161_v8 = vpop.permute.xlu0 %1594 }
 0x27e   : > { %v1617_v49 = vpop.permute.xlu2 %1616 }
 0x27f   : > { %v8165_v33 = vsel %vm1886_vm15, %v1859_v38, %v1617_v49  ;;  %1680 = vrot.lane.b32.xlu1 %v11623_v30, %s6645_s24 }
 0x281   : > { %v1597_v50 = vpop.permute.xlu1 %1596 }
 0x282   : > { %1684 = vrot.lane.b32.xlu0 %v6842_v18, %s6645_s24  ;;  %v8187_v18 = vpop.f32.mrf.mxu0 }
 0x284   : > { %1688 = vrot.lane.b32.xlu2 %v6859_v47, %s6645_s24  ;;  %v8179_v38 = vpop.permute.xlu0 %1600  ;;  %v1799_v47 = vsel %vm11427_vm14, %v7940_v51, %v7978_v36 }
 0x285   : > { %v1838_v56 = vsel %vm11426_vm9, %v1799_v47, %v1565_v43 }
 0x286   : > { %v1623_v49 = vpop.permute.xlu2 %1622  ;;  %v1871_v30 = vsel %vm11425_vm1, %v1838_v56, %v1597_v50  ;;  %v11672_v50 = vmov 0  }
 0x287   : > { %v8183_v44 = vsel %vm1886_vm15, %v1865_v34, %v1623_v49  ;;  %1686 = vrot.lane.b32.xlu1 %v6877_v57, %s6645_s24 }
 0x289   : > { %v1603_v23 = vpop.permute.xlu1 %1602 }
 0x28a   : > { %1690 = vrot.lane.b32.xlu0 %v6891_v9, %s6645_s24  ;;  %v8210_v43 = vpop.f32.mrf.mxu0 }
 0x28c   : > { %1694 = vrot.lane.b32.xlu2 %v6913_v48, %s6645_s24  ;;  %v8197_v40 = vpop.permute.xlu0 %1606  ;;  %v1808_v48 = vsel %vm11427_vm14, %v7962_v61, %v7993_v46  ;;  %v1784_v61 = vsel %vm11427_vm14, %v7725_v60, %v8018_v39  ;;  %v1817_v46 = vsel %vm11427_vm14, %v7985_v22, %v8022_v20 }
 0x28d   : > { %v1844_v36 = vsel %vm11426_vm9, %v1808_v48, %v8111_v24  ;;  %v2148_v24 = vpop.f32.mrf.mxu2  ;;  %v1828_v35 = vsel %vm11426_vm9, %v1784_v61, %v8085_v6  ;;  %v1850_v60 = vsel %vm11426_vm9, %v1817_v46, %v8123_v26 }
 0x28e   : > { %v1629_v57 = vpop.permute.xlu2 %1628 }
 0x28f   : > { %v8201_v17 = vsel %vm1886_vm15, %v1871_v30, %v1629_v57  ;;  %1692 = vrot.lane.b32.xlu1 %v6928_v62, %s6645_s24  ;;  %v1877_v62 = vsel %vm11425_vm1, %v1844_v36, %v1603_v23  ;;  %v11677_v57 = vld [vmem:[#allocation76_spill] sm:$0xff]  ;;  %v2138_v36 = vpop.f32.mrf.mxu1 }
 0x291   : > { %v1609_v9 = vpop.permute.xlu1 %1608 }
 0x292   : > { %1696 = vrot.lane.b32.xlu0 %v6941_v19, %s6645_s24  ;;  %v8242_v39 = vpop.f32.mrf.mxu0  ;;  %v1883_v53 = vsel %vm11425_vm1, %v1850_v60, %v1609_v9  ;;  %v1802_v9 = vsel %vm11427_vm14, %v11677_v57, %v8045_v5  ;;  %v11681_v60 = vld [vmem:[#allocation11_spill] sm:$0xff] }
 0x294   : > { %1700 = vrot.lane.b32.xlu2 %v11635_v55, %s6645_s24  ;;  %v8216_v51 = vpop.permute.xlu0 %1612 }
 0x295   : > { %11670 = vst [vmem:[#allocation102_spill] sm:$0xff] %v8216_v51  ;;  %v2150_v21 = vpop.f32.mrf.mxu2 }
 0x296   : > { %v1635_v10 = vpop.permute.xlu2 %1634 }
 0x297   : > { %v8220_v19 = vsel %vm1886_vm15, %v1877_v62, %v1635_v10  ;;  %1698 = vrot.lane.b32.xlu1 %v11617_v7, %s6645_s24  ;;  %v1861_v7 = vsel %vm11425_vm1, %v1828_v35, %v8101_v16  ;;  %v1787_v16 = vsel %vm11427_vm14, %v7886_v4, %v8027_v31  ;;  %v11679_v10 = vld [vmem:[#allocation12_spill] sm:$0xff] }
 0x298   : > { %v1830_v26 = vsel %vm11426_vm9, %v1787_v16, %v8047_v29 }
 0x299   : > { %v8229_v55 = vpop.permute.xlu1 %1614  ;;  %v1863_v34 = vsel %vm11425_vm1, %v1830_v26, %v8145_v32 }
 0x29a   : > { %1702 = vrot.lane.b32.xlu0 %v11645_v58, %s6645_s24  ;;  %11671 = vst [vmem:[#allocation55_spill] sm:$0xff] %v8229_v55  ;;  %v8286_v23 = vpop.f32.mrf.mxu0 }
 0x29c   : > { %1706 = vrot.lane.b32.xlu2 %v11672_v50, %s6645_s24  ;;  %v1619_v58 = vpop.permute.xlu0 %1618 }
 0x29d   : > { %v8246_v22 = vsel %vm1886_vm15, %v1861_v7, %v1619_v58  ;;  %v8315_v46 = vpop.f32.mrf.mxu2  ;;  %v11682_v58 = vld [vmem:[#allocation46_spill] sm:$0xff] }
 0x29e   : > { %v1641_v20 = vpop.permute.xlu2 %1640 }
 0x29f   : > { %v8249_v6 = vsel %vm1886_vm15, %v1883_v53, %v1641_v20  ;;  %1704 = vrot.lane.b32.xlu1 %v11652_v37, %s6645_s24  ;;  %v1834_v37 = vsel %vm11426_vm9, %v1793_v2, %v8095_v42  ;;  %v8282_v42 = vld [vmem:[%s11307_s2] ss:$0 sm:$0xff]  ;;  %v11683_v53 = vld [vmem:[#allocation39_spill] sm:$0xff]  ;;  %s6652_s24 = smov 64  }
 0x2a0   : > { %v1867_v15 = vsel %vm11425_vm1, %v1834_v37, %v8113_v12  ;;  %v11676_v12 = vld [vmem:[#allocation86_spill] sm:$0xff]  ;;  %v2116_v56 = vadd.f32 %v8282_v42, %v8167_v1  ;;  %v2114_v48 = vadd.f32 %v8282_v42, %v8147_v59  ;;  %v1840_v1 = vsel %vm11426_vm9, %v1802_v9, %v8105_v45 }
 0x2a1   : > { %v1621_v49 = vpop.permute.xlu1 %1620  ;;  %v1873_v59 = vsel %vm11425_vm1, %v1840_v1, %v8125_v54  ;;  %v2151_v45 = vadd.f32 %v8282_v42, %v2150_v21  ;;  %v2149_v7 = vadd.f32 %v8282_v42, %v2148_v24  ;;  %v1805_v54 = vsel %vm11427_vm14, %v11683_v53, %v11682_v58  ;;  %v11690_v1 = vld [vmem:[#allocation60_spill] sm:$0xff] }
 0x2a2   : > { %1708 = vrot.lane.b32.xlu0 %v11656_v11, %s6646_s13  ;;  %v8268_v4 = vsel %vm1886_vm15, %v1863_v34, %v1621_v49  ;;  %v8284_v11 = vpop.f32.mrf.mxu3  ;;  %v2194_v5 = vmax.f32 %v2116_v56, 0.0  ;;  %v2193_v35 = vmax.f32 %v2114_v48, 0.0  ;;  %v1842_v26 = vsel %vm11426_vm9, %v1805_v54, %v8071_v41  ;;  %v8333_v2 = vpop.f32.mrf.mxu0  ;;  %v11684_v34 = vld [vmem:[#allocation47_spill] sm:$0xff] }
 0x2a3   : > { %v1811_v49 = vsel %vm11427_vm14, %v11684_v34, %v8057_v27  ;;  %v2208_v37 = vmax.f32 %v2151_v45, 0.0  ;;  %v2207_v21 = vmax.f32 %v2149_v7, 0.0  ;;  %v11695_v34 = vld [vmem:[#allocation85_spill] sm:$0xff] }
 0x2a4   : > { %1712 = vrot.lane.b32.xlu2 %v6806_v63, %s6646_s13  ;;  %v1625_v31 = vpop.permute.xlu0 %1624  ;;  %v11675_v63 = vld [vmem:[#allocation41_spill] sm:$0xff]  ;;  %v2226_v20 = vpack.c.bf16 %v2194_v5, %v2194_v5  ;;  %v2225_v24 = vpack.c.bf16 %v2193_v35, %v2193_v35  ;;  %v11693_v35 = vld [vmem:[#allocation70_spill] sm:$0xff] }
 0x2a5   : > { %v8275_v32 = vsel %vm1886_vm15, %v1867_v15, %v1625_v31  ;;  %v1796_v47 = vsel %vm11427_vm14, %v11676_v12, %v11675_v63  ;;  %v1875_v15 = vsel %vm11425_vm1, %v1842_v26, %v8179_v38  ;;  %v1846_v63 = vsel %vm11426_vm9, %v1811_v49, %v8119_v3  ;;  %v11686_v12 = vld [vmem:[#allocation16_spill] sm:$0xff] }
 0x2a6   : > { %11673 = vst [vmem:[#allocation72_spill] sm:$0xff] %v8275_v32  ;;  %v8277_v29 = vpop.permute.xlu2 %1646  ;;  %v1836_v30 = vsel %vm11426_vm9, %v1796_v47, %v8059_v52  ;;  %v2290_v27 = vunpack.c.l.b16 %v2226_v20  ;;  %v2140_v47 = vpop.f32.mrf.mxu1  ;;  %v1879_v56 = vsel %vm11425_vm1, %v1846_v63, %v8137_v14  ;;  %v2289_v57 = vunpack.c.l.b16 %v2225_v24  ;;  %v11694_v20 = vld [vmem:[#allocation14_spill] sm:$0xff] }
 0x2a7   : > { %11674 = vst [vmem:[#allocation77_spill] sm:$0xff] %v8277_v29  ;;  %1710 = vrot.lane.b32.xlu1 %v11654_v13, %s6646_s13  ;;  %v1869_v13 = vsel %vm11425_vm1, %v1836_v30, %v8161_v8  ;;  %v2240_v9 = vpack.c.bf16 %v2208_v37, %v2208_v37  ;;  %v2121_v3 = vadd.f32 %v8282_v42, %v8210_v43  ;;  %v11697_v37 = vld [vmem:[#allocation21_spill] sm:$0xff] }
 0x2a8   : > { %v2239_v48 = vpack.c.bf16 %v2207_v21, %v2207_v21  ;;  %v2321_v5 = vpack.c.b16 %v2290_v27, %v2289_v57 }
 0x2a9   : > { %v1627_v62 = vpop.permute.xlu1 %1626  ;;  %v2304_v7 = vunpack.c.l.b16 %v2240_v9  ;;  %v2196_v58 = vmax.f32 %v2121_v3, 0.0  ;;  %v11701_v3 = vld [vmem:[#allocation17_spill] sm:$0xff] }
 0x2aa   : > { %1714 = vrot.lane.b32.xlu0 %v11658_v25, %s6646_s13  ;;  %v8309_v52 = vsel %vm1886_vm15, %v1869_v13, %v1627_v62  ;;  %v8329_v16 = vpop.f32.mrf.mxu3  ;;  %v2155_v13 = vpop.f32.mrf.mxu2  ;;  %v11689_v62 = vld [vmem:[#allocation13_spill] sm:$0xff]  ;;  %v2303_v26 = vunpack.c.l.b16 %v2239_v48 }
 0x2ab   : > { %11678 = vst [vmem:[#allocation48_spill] sm:$0xff] %v8309_v52  ;;  %v2130_v24 = vpop.f32.mrf.mxu0  ;;  %v2228_v57 = vpack.c.bf16 %v2196_v58, %v2196_v58 }
 0x2ac   : > { %1718 = vrot.lane.b32.xlu2 %v11679_v10, %s6646_s13  ;;  %v1631_v61 = vpop.permute.xlu0 %1630  ;;  %v11691_v10 = vld [vmem:[#allocation91_spill] sm:$0xff] }
 0x2ad   : > { %v8318_v8 = vsel %vm1886_vm15, %v1873_v59, %v1631_v61  ;;  %v1814_v14 = vsel %vm11427_vm14, %v11691_v10, %v11690_v1  ;;  %v2119_v59 = vadd.f32 %v8282_v42, %v8187_v18  ;;  %v11692_v61 = vld [vmem:[#allocation64_spill] sm:$0xff] }
 0x2ae   : > { %11680 = vst [vmem:[#allocation99_spill] sm:$0xff] %v8318_v8  ;;  %v8320_v25 = vpop.permute.xlu2 %1652  ;;  %v1820_v45 = vsel %vm11427_vm14, %v11693_v35, %v11692_v61  ;;  %v1848_v43 = vsel %vm11426_vm9, %v1814_v14, %v8081_v0  ;;  %v2143_v9 = vpop.f32.mrf.mxu1  ;;  %v2341_v14 = vshll.u32 %v2321_v5, 16  ;;  %v2292_v61 = vunpack.c.l.b16 %v2228_v57  ;;  %v11702_v35 = vld [vmem:[#allocation19_spill] sm:$0xff] }
 0x2af   : > { %1716 = vrot.lane.b32.xlu1 %v11681_v60, %s6646_s13  ;;  %v2141_v60 = vadd.f32 %v8282_v42, %v2140_v47  ;;  %v1881_v54 = vsel %vm11425_vm1, %v1848_v43, %v8197_v40  ;;  %v1852_v49 = vsel %vm11426_vm9, %v1820_v45, %v11695_v34  ;;  %v2195_v21 = vmax.f32 %v2119_v59, 0.0  ;;  %v11698_v40 = vld [vmem:[#allocation40_spill] sm:$0xff]  ;;  %v11704_v43 = vld [vmem:[#allocation57_spill] sm:$0xff] }
 0x2b0   : > { %v1885_v63 = vsel %vm11425_vm1, %v1852_v49, %v11698_v40  ;;  %v2124_v57 = vadd.f32 %v8282_v42, %v8242_v39  ;;  %v11709_v39 = vld [vmem:[#allocation26_spill] sm:$0xff] }
 0x2b1   : > { %v1633_v31 = vpop.permute.xlu1 %1632 }
 0x2b2   : > { %1720 = vrot.lane.b32.xlu0 %v6897_v28, %s6646_s13  ;;  %v8345_v41 = vsel %vm1886_vm15, %v1875_v15, %v1633_v31  ;;  %v8371_v53 = vpop.f32.mrf.mxu3  ;;  %v2338_v15 = vshrl.u32 %v2321_v5, 16  ;;  %v2139_v31 = vadd.f32 %v8282_v42, %v2138_v36  ;;  %v2227_v36 = vpack.c.bf16 %v2195_v21, %v2195_v21  ;;  %v8394_v1 = vpop.f32.mrf.mxu2 }
 0x2b3   : > { %11685 = vst [vmem:[#allocation63_spill] sm:$0xff] %v8345_v41 }
 0x2b4   : > { %1724 = vrot.lane.b32.xlu2 %v11686_v12, %s6646_s13  ;;  %v1637_v38 = vpop.permute.xlu0 %1636  ;;  %v2340_v48 = vrot.slane %v2338_v15, 7  ;;  %v2291_v58 = vunpack.c.l.b16 %v2227_v36  ;;  %v11706_v15 = vld [vmem:[#allocation23_spill] sm:$0xff] }
 0x2b5   : > { %v8352_v30 = vsel %vm1886_vm15, %v1879_v56, %v1637_v38  ;;  %v2328_v56 = vpack.c.b16 %v2304_v7, %v2303_v26  ;;  %v2204_v38 = vmax.f32 %v2141_v60, 0.0 }
 0x2b6   : > { %11687 = vst [vmem:[#allocation68_spill] sm:$0xff] %v8352_v30  ;;  %v8354_v28 = vpop.permute.xlu2 %1658  ;;  %v2343_v7 = vor.u32 %v2341_v14, %v2340_v48  ;;  %v2322_v49 = vpack.c.b16 %v2292_v61, %v2291_v58  ;;  %v2129_v58 = vadd.f32 %v8282_v42, %v8333_v2 }
 0x2b7   : > { %11688 = vst [vmem:[#allocation112_spill] sm:$0xff] %v8354_v28  ;;  %1722 = vrot.lane.b32.xlu1 %v11689_v62, %s6646_s13  ;;  %v2203_v62 = vmax.f32 %v2139_v31, 0.0  ;;  %v2387_v10 = vshrl.u32 %v2328_v56, 16  ;;  %v2236_v59 = vpack.c.bf16 %v2204_v38, %v2204_v38  ;;  %v2390_v31 = vshll.u32 %v2328_v56, 16  ;;  %v11708_v56 = vld [vmem:[#allocation3_spill] sm:$0xff] }
 0x2b8   : > { %v8418_v40 = vsel %vm6754_vm3, 0, %v2343_v7  ;;  %v2156_v38 = vadd.f32 %v8282_v42, %v2155_v13  ;;  %v2345_v36 = vshrl.u32 %v2322_v49, 16  ;;  %v2131_v13 = vadd.f32 %v8282_v42, %v2130_v24 }
 0x2b9   : > { %v1639_v18 = vpop.permute.xlu1 %1638  ;;  %v2235_v60 = vpack.c.bf16 %v2203_v62, %v2203_v62  ;;  %v8410_v26 = vrot.slane %v2387_v10, 7  ;;  %v2300_v34 = vunpack.c.l.b16 %v2236_v59  ;;  %v8444_v24 = vsel %vm6754_vm3, %v2340_v48, 0 }
 0x2ba   : > { %1726 = vrot.lane.b32.xlu0 %v11694_v20, %s6646_s13  ;;  %v8380_v0 = vsel %vm1886_vm15, %v1881_v54, %v1639_v18  ;;  %v8402_v54 = vpop.f32.mrf.mxu3  ;;  %v8406_v18 = vpop.f32.mrf.mxu0  ;;  %v2210_v7 = vmax.f32 %v2156_v38, 0.0  ;;  %v2348_v48 = vshll.u32 %v2322_v49, 16  ;;  %v2521_v55 = vshll.u32 %v8444_v24, 16 }
 0x2bb   : > { %11696 = vst [vmem:[#allocation92_spill] sm:$0xff] %v8380_v0  ;;  %v2160_v61 = vpop.f32.mrf.mxu2 }
 0x2bc   : > { %1730 = vrot.lane.b32.xlu2 %v11697_v37, %s6646_s13  ;;  %v1643_v12 = vpop.permute.xlu0 %1642  ;;  %v2126_v37 = vadd.f32 %v8282_v42, %v8286_v23  ;;  %v2154_v23 = vadd.f32 %v8282_v42, %v8315_v46  ;;  %v2144_v46 = vadd.f32 %v8282_v42, %v2143_v9  ;;  %v8450_v9 = vrot.slane %v2345_v36, 7 }
 0x2bd   : > { %v8388_v27 = vsel %vm1886_vm15, %v1885_v63, %v1643_v12  ;;  %v2299_v63 = vunpack.c.l.b16 %v2235_v60  ;;  %v2145_v12 = vpop.f32.mrf.mxu1  ;;  %v2197_v60 = vmax.f32 %v2124_v57, 0.0  ;;  %v2200_v57 = vmax.f32 %v2131_v13, 0.0 }
 0x2be   : > { %11699 = vst [vmem:[#allocation104_spill] sm:$0xff] %v8388_v27  ;;  %v8390_v47 = vpop.permute.xlu2 %1664  ;;  %v2146_v14 = vadd.f32 %v8282_v42, %v2145_v12  ;;  %v2198_v59 = vmax.f32 %v2126_v37, 0.0  ;;  %v2205_v29 = vmax.f32 %v2144_v46, 0.0  ;;  %v2350_v13 = vor.u32 %v2348_v48, %v8450_v9 }
 0x2bf   : > { %11700 = vst [vmem:[#allocation107_spill] sm:$0xff] %v8390_v47  ;;  %1728 = vrot.lane.b32.xlu1 %v11701_v3, %s6646_s13  ;;  %v2392_v3 = vor.u32 %v2390_v31, %v8410_v26  ;;  %v2326_v62 = vpack.c.b16 %v2300_v34, %v2299_v63  ;;  %v2209_v31 = vmax.f32 %v2154_v23, 0.0  ;;  %v2242_v23 = vpack.c.bf16 %v2210_v7, %v2210_v7  ;;  %v11714_v7 = vld [vmem:[#allocation29_spill] sm:$0xff]  ;;  %v11721_v47 = vld [vmem:[#allocation30_spill] sm:$0xff] }
 0x2c0   : > { %v2206_v12 = vmax.f32 %v2146_v14, 0.0  ;;  %v2230_v38 = vpack.c.bf16 %v2198_v59, %v2198_v59  ;;  %v2229_v36 = vpack.c.bf16 %v2197_v60, %v2197_v60  ;;  %v2237_v27 = vpack.c.bf16 %v2205_v29, %v2205_v29 }
 0x2c1   : > { %v8398_v45 = vpop.permute.xlu1 %1644  ;;  %v8448_v37 = vsel %vm6754_vm3, 0, %v2392_v3  ;;  %v2169_v3 = vadd.f32 %v8282_v42, %v8284_v11  ;;  %v2241_v59 = vpack.c.bf16 %v2209_v31, %v2209_v31  ;;  %v2134_v31 = vadd.f32 %v8282_v42, %v8406_v18 }
 0x2c2   : > { %1732 = vrot.lane.b32.xlu0 %v11702_v35, %s6646_s13  ;;  %11703 = vst [vmem:[#allocation51_spill] sm:$0xff] %v8398_v45  ;;  %v2516_v35 = vshll.u32 %v8418_v40, 16  ;;  %v8452_v63 = vpop.f32.mrf.mxu3  ;;  %v2135_v2 = vpop.f32.mrf.mxu0  ;;  %v2514_v45 = vshrl.u32 %v8418_v40, 16  ;;  %v2238_v46 = vpack.c.bf16 %v2206_v12, %v2206_v12  ;;  %v2294_v11 = vunpack.c.l.b16 %v2230_v38 }
 0x2c3   : > { %v2136_v51 = vadd.f32 %v8282_v42, %v2135_v2  ;;  %v2306_v2 = vunpack.c.l.b16 %v2242_v23  ;;  %v2293_v0 = vunpack.c.l.b16 %v2229_v36  ;;  %v8474_v38 = vpop.f32.mrf.mxu2  ;;  %v8480_v29 = vsel %vm6754_vm3, 0, %v2350_v13  ;;  %v11715_v36 = vld [vmem:[#allocation27_spill] sm:$0xff] }
 0x2c4   : > { %1736 = vrot.lane.b32.xlu2 %v11704_v43, %s6646_s13  ;;  %v8404_v20 = vpop.permute.xlu0 %1648  ;;  %v2518_v50 = vrot.slane %v2516_v35, 1  ;;  %v11712_v35 = vld [vmem:[#allocation25_spill] sm:$0xff]  ;;  %v2302_v18 = vunpack.c.l.b16 %v2238_v46  ;;  %v2159_v13 = vadd.f32 %v8282_v42, %v8394_v1 }
 0x2c6   : > { %v8408_v5 = vpop.permute.xlu2 %1670  ;;  %v2519_v60 = vor.u32 %v2518_v50, %v2514_v45  ;;  %v2305_v50 = vunpack.c.l.b16 %v2241_v59  ;;  %v2202_v45 = vmax.f32 %v2136_v51, 0.0  ;;  %v2523_v59 = vrot.slane %v2521_v55, 1 }
 0x2c7   : > { %11705 = vst [vmem:[#allocation66_spill] sm:$0xff] %v8408_v5  ;;  %1734 = vrot.lane.b32.xlu1 %v11706_v15, %s6646_s13  ;;  %v2373_v15 = vshrl.u32 %v2326_v62, 16  ;;  %v2201_v5 = vmax.f32 %v2134_v31, 0.0  ;;  %v2528_v55 = vshll.u32 %v8480_v29, 16 }
 0x2c9   : > { %v8428_v10 = vpop.permute.xlu1 %1650  ;;  %v2375_v14 = vrot.slane %v2373_v15, 7  ;;  %v2215_v15 = vmax.f32 %v2169_v3, 0.0  ;;  %v2161_v3 = vadd.f32 %v8282_v42, %v2160_v61  ;;  %v2234_v61 = vpack.c.bf16 %v2202_v45, %v2202_v45 }
 0x2ca   : > { %1738 = vrot.lane.b32.xlu0 %v11708_v56, %s6646_s13  ;;  %v8487_v30 = vpop.f32.mrf.mxu3  ;;  %s6653_s13 = smov 56  }
 0x2cb   : > { %v2212_v1 = vmax.f32 %v2161_v3, 0.0  ;;  %v8516_v45 = vsel %vm6754_vm3, %v2375_v14, 0 }
 0x2cc   : > { %1742 = vrot.lane.b32.xlu2 %v11709_v39, %s6647_s16  ;;  %v8436_v43 = vpop.permute.xlu0 %1654  ;;  %v11711_v39 = vld [vmem:[#allocation24_spill] sm:$0xff] }
 0x2ce   : > { %v8440_v34 = vpop.permute.xlu2 %1676 }
 0x2cf   : > { %11710 = vst [vmem:[#allocation71_spill] sm:$0xff] %v8440_v34  ;;  %1740 = vrot.lane.b32.xlu1 %v11711_v39, %s6647_s16  ;;  %v2199_v34 = vmax.f32 %v2129_v58, 0.0  ;;  %v2232_v39 = vpack.c.bf16 %v2200_v57, %v2200_v57  ;;  %v2376_v58 = vshll.u32 %v2326_v62, 16  ;;  %v2323_v62 = vpack.c.b16 %v2294_v11, %v2293_v0  ;;  %v11716_v11 = vld [vmem:[#allocation28_spill] sm:$0xff] }
 0x2d1   : > { %v8464_v49 = vpop.permute.xlu1 %1656  ;;  %v2231_v12 = vpack.c.bf16 %v2199_v34, %v2199_v34  ;;  %v2296_v23 = vunpack.c.l.b16 %v2232_v39  ;;  %v8485_v34 = vpack.c.bf16 %v2215_v15, %v2215_v15  ;;  %v8500_v39 = vsel %vm679_vm2, %v2519_v60, %v2523_v59 }
 0x2d2   : > { %1744 = vrot.lane.b32.xlu0 %v11712_v35, %s6647_s16  ;;  %11713 = vst [vmem:[#allocation95_spill] sm:$0xff] %v8464_v49  ;;  %v2171_v35 = vadd.f32 %v8282_v42, %v8329_v16  ;;  %v2301_v16 = vunpack.c.l.b16 %v2237_v27  ;;  %v2352_v31 = vshrl.u32 %v2323_v62, 16  ;;  %v8512_v60 = vsel %vm6754_vm3, %v8450_v9, 0 }
 0x2d3   : > { %v2295_v46 = vunpack.c.l.b16 %v2231_v12  ;;  %11718 = vst [vmem:[#allocation8_spill] sm:$0xff] %v8500_v39  ;;  %v2176_v12 = vadd.f32 %v8282_v42, %v8402_v54  ;;  %v2311_v3 = vunpack.c.l.b16 %v8485_v34  ;;  %v2174_v54 = vadd.f32 %v8282_v42, %v8371_v53 }
 0x2d4   : > { %1748 = vrot.lane.b32.xlu2 %v11714_v7, %s6647_s16  ;;  %v8470_v48 = vpop.permute.xlu0 %1660  ;;  %v2378_v7 = vor.u32 %v2376_v58, %v2375_v14  ;;  %v2329_v58 = vpack.c.b16 %v2306_v2, %v2305_v50  ;;  %v2216_v51 = vmax.f32 %v2171_v35, 0.0  ;;  %v2327_v15 = vpack.c.b16 %v2302_v18, %v2301_v16  ;;  %v11719_v35 = vld [vmem:[#allocation32_spill] sm:$0xff]  ;;  %v2165_v14 = vpop.f32.mrf.mxu2 }
 0x2d5   : > { %v2324_v2 = vpack.c.b16 %v2296_v23, %v2295_v46  ;;  %v2211_v23 = vmax.f32 %v2159_v13, 0.0  ;;  %v2526_v59 = vshrl.u32 %v8480_v29, 16  ;;  %v2530_v46 = vrot.slane %v2528_v55, 1 }
 0x2d6   : > { %v8476_v57 = vpop.permute.xlu2 %1682  ;;  %v8493_v0 = vsel %vm6754_vm3, 0, %v2378_v7  ;;  %v2233_v7 = vpack.c.bf16 %v2201_v5, %v2201_v5  ;;  %v2394_v18 = vshrl.u32 %v2329_v58, 16  ;;  %v2298_v5 = vunpack.c.l.b16 %v2234_v61 }
 0x2d7   : > { %1746 = vrot.lane.b32.xlu1 %v11715_v36, %s6647_s16  ;;  %v2248_v36 = vpack.c.bf16 %v2216_v51, %v2216_v51  ;;  %v2380_v9 = vshrl.u32 %v2327_v15, 16  ;;  %v2359_v41 = vshrl.u32 %v2324_v2, 16  ;;  %v2397_v34 = vshll.u32 %v2329_v58, 16 }
 0x2d8   : > { %v2218_v13 = vmax.f32 %v2176_v12, 0.0  ;;  %v2297_v51 = vunpack.c.l.b16 %v2233_v7  ;;  %v2533_v8 = vshll.u32 %v8512_v60, 16  ;;  %v2243_v53 = vpack.c.bf16 %v2211_v23, %v2211_v23  ;;  %v11724_v23 = vld [vmem:[#allocation35_spill] sm:$0xff] }
 0x2d9   : > { %v8497_v27 = vpop.permute.xlu1 %1662  ;;  %v2312_v61 = vunpack.c.l.b16 %v2248_v36  ;;  %v2355_v52 = vshll.u32 %v2323_v62, 16  ;;  %v2217_v28 = vmax.f32 %v2174_v54, 0.0  ;;  %v2166_v55 = vadd.f32 %v8282_v42, %v2165_v14 }
 0x2da   : > { %1750 = vrot.lane.b32.xlu0 %v11716_v11, %s6647_s16  ;;  %11717 = vst [vmem:[#allocation44_spill] sm:$0xff] %v8497_v27  ;;  %v2354_v11 = vrot.slane %v2352_v31, 7  ;;  %v8527_v27 = vrot.slane %v2394_v18, 7  ;;  %v2325_v31 = vpack.c.b16 %v2298_v5, %v2297_v51  ;;  %v2531_v58 = vor.u32 %v2530_v46, %v2526_v59 }
 0x2db   : > { %v2382_v12 = vrot.slane %v2380_v9, 7  ;;  %v8536_v18 = vrot.slane %v2359_v41, 7  ;;  %v2383_v62 = vshll.u32 %v2327_v15, 16  ;;  %v2164_v36 = vadd.f32 %v8282_v42, %v8474_v38 }
 0x2dc   : > { %1754 = vrot.lane.b32.xlu2 %v11719_v35, %s6647_s16  ;;  %v8507_v50 = vpop.permute.xlu0 %1666  ;;  %v2244_v35 = vpack.c.bf16 %v2212_v1, %v2212_v1  ;;  %v8530_v1 = vpop.f32.mrf.mxu3  ;;  %v2357_v7 = vor.u32 %v2355_v52, %v2354_v11  ;;  %v2250_v54 = vpack.c.bf16 %v2218_v13, %v2218_v13  ;;  %v2535_v14 = vrot.slane %v2533_v8, 1 }
 0x2dd   : > { %v2307_v51 = vunpack.c.l.b16 %v2243_v53  ;;  %v8545_v59 = vpack.c.b16 %v2312_v61, %v2311_v3  ;;  %v2362_v52 = vshll.u32 %v2324_v2, 16  ;;  %v2249_v41 = vpack.c.bf16 %v2217_v28, %v2217_v28  ;;  %v11728_v3 = vld [vmem:[#allocation33_spill] sm:$0xff] }
 0x2de   : > { %v8519_v16 = vpop.permute.xlu2 %1688  ;;  %v2308_v32 = vunpack.c.l.b16 %v2244_v35  ;;  %v2214_v9 = vmax.f32 %v2166_v55, 0.0  ;;  %v2366_v35 = vshrl.u32 %v2325_v31, 16  ;;  %v8550_v15 = vsel %vm679_vm2, %v2531_v58, %v2535_v14 }
 0x2df   : > { %11720 = vst [vmem:[#allocation105_spill] sm:$0xff] %v8519_v16  ;;  %1752 = vrot.lane.b32.xlu1 %v11721_v47, %s6647_s16  ;;  %v11722_v16 = vld [vmem:[#allocation31_spill] sm:$0xff]  ;;  %v8554_v38 = vsel %vm6754_vm3, 0, %v2357_v7  ;;  %v2213_v2 = vmax.f32 %v2164_v36, 0.0  ;;  %v2314_v13 = vunpack.c.l.b16 %v2250_v54  ;;  %v2415_v55 = vshrl.u32 %v8545_v59, 16  ;;  %v11730_v54 = vld [vmem:[#allocation34_spill] sm:$0xff] }
 0x2e0   : > { %11726 = vst [vmem:[#allocation62_spill] sm:$0xff] %v8550_v15  ;;  %v2330_v8 = vpack.c.b16 %v2308_v32, %v2307_v51  ;;  %v2181_v32 = vadd.f32 %v8282_v42, %v8487_v30  ;;  %v8570_v58 = vsel %vm6754_vm3, %v2354_v11, 0  ;;  %v2313_v7 = vunpack.c.l.b16 %v2249_v41  ;;  %v11732_v41 = vld [vmem:[#allocation37_spill] sm:$0xff] }
 0x2e1   : > { %v8534_v47 = vpop.permute.xlu1 %1668  ;;  %11727 = vst [vmem:[#allocation87_spill] sm:$0xff] %v8554_v38  ;;  %v8572_v36 = vrot.slane %v2366_v35, 7  ;;  %v2245_v35 = vpack.c.bf16 %v2213_v2, %v2213_v2 }
 0x2e2   : > { %1756 = vrot.lane.b32.xlu0 %v11722_v16, %s6647_s16  ;;  %11723 = vst [vmem:[#allocation58_spill] sm:$0xff] %v8534_v47  ;;  %v2399_v16 = vor.u32 %v2397_v34, %v8527_v27  ;;  %v2364_v34 = vor.u32 %v2362_v52, %v8536_v18  ;;  %v2401_v30 = vshrl.u32 %v2330_v8, 16  ;;  %v2179_v52 = vadd.f32 %v8282_v42, %v8452_v63 }
 0x2e3   : > { %11729 = vst [vmem:[#allocation50_spill] sm:$0xff] %v8570_v58  ;;  %v8601_v63 = vsel %vm6754_vm3, %v2382_v12, 0 }
 0x2e4   : > { %1760 = vrot.lane.b32.xlu2 %v11724_v23, %s6647_s16  ;;  %v8542_v5 = vpop.permute.xlu0 %1672  ;;  %v2385_v23 = vor.u32 %v2383_v62, %v2382_v12  ;;  %v8563_v61 = vsel %vm6754_vm3, 0, %v2399_v16  ;;  %v2246_v62 = vpack.c.bf16 %v2214_v9, %v2214_v9  ;;  %v2540_v16 = vshll.u32 %v8554_v38, 16  ;;  %v2185_v28 = vpop.f32.mrf.mxu3  ;;  %11735 = vst [vmem:[#allocation79_spill] sm:$0xff] %v8601_v63 }
 0x2e5   : > { %v8585_v11 = vsel %vm6754_vm3, 0, %v2364_v34  ;;  %v2545_v34 = vshll.u32 %v8570_v58, 16 }
 0x2e6   : > { %v8547_v46 = vpop.permute.xlu2 %1694  ;;  %v8581_v51 = vsel %vm6754_vm3, 0, %v2385_v23  ;;  %v8594_v23 = vrot.slane %v2415_v55, 7  ;;  %v2552_v2 = vshll.u32 %v8585_v11, 16  ;;  %v2186_v55 = vadd.f32 %v8282_v42, %v2185_v28 }
 0x2e7   : > { %11725 = vst [vmem:[#allocation109_spill] sm:$0xff] %v8547_v46  ;;  %1758 = vrot.lane.b32.xlu1 %v11728_v3, %s6647_s16  ;;  %v2333_v3 = vpack.c.b16 %v2314_v13, %v2313_v7  ;;  %v8605_v13 = vrot.slane %v2401_v30, 7  ;;  %v2219_v7 = vmax.f32 %v2179_v52, 0.0  ;;  %v2309_v46 = vunpack.c.l.b16 %v2245_v35 }
 0x2e8   : > { %v2547_v28 = vrot.slane %v2545_v34, 1 }
 0x2e9   : > { %v8576_v14 = vpop.permute.xlu1 %1674  ;;  %v2422_v12 = vshrl.u32 %v2333_v3, 16 }
 0x2ea   : > { %1762 = vrot.lane.b32.xlu0 %v11730_v54, %s6647_s16  ;;  %11731 = vst [vmem:[#allocation101_spill] sm:$0xff] %v8576_v14  ;;  %v2369_v54 = vshll.u32 %v2325_v31, 16  ;;  %v2220_v14 = vmax.f32 %v2181_v32, 0.0  ;;  %v2542_v31 = vrot.slane %v2540_v16, 1  ;;  %v11736_v32 = vld [vmem:[#allocation36_spill] sm:$0xff]  ;;  %v8617_v16 = vsel %vm6754_vm3, %v8536_v18, 0 }
 0x2eb   : > { %v2593_v18 = vshll.u32 %v8601_v63, 16 }
 0x2ec   : > { %1766 = vrot.lane.b32.xlu2 %v11732_v41, %s6647_s16  ;;  %v8592_v53 = vpop.permute.xlu0 %1678  ;;  %v2310_v41 = vunpack.c.l.b16 %v2246_v62  ;;  %v2371_v9 = vor.u32 %v2369_v54, %v8572_v36  ;;  %v2588_v62 = vshll.u32 %v8581_v51, 16  ;;  %v2252_v58 = vpack.c.bf16 %v2220_v14, %v2220_v14 }
 0x2ed   : > { %11733 = vst [vmem:[#allocation54_spill] sm:$0xff] %v8592_v53  ;;  %v2538_v53 = vshrl.u32 %v8554_v38, 16  ;;  %v2184_v54 = vadd.f32 %v8282_v42, %v8530_v1  ;;  %v2251_v42 = vpack.c.bf16 %v2219_v7, %v2219_v7  ;;  %v2222_v1 = vmax.f32 %v2186_v55, 0.0 }
 0x2ee   : > { %v8596_v47 = vpop.permute.xlu2 %1700  ;;  %v2331_v30 = vpack.c.b16 %v2310_v41, %v2309_v46  ;;  %v8621_v52 = vsel %vm6754_vm3, 0, %v2371_v9  ;;  %v8629_v46 = vrot.slane %v2422_v12, 7  ;;  %v2550_v9 = vshrl.u32 %v8585_v11, 16 }
 0x2ef   : > { %11734 = vst [vmem:[#allocation103_spill] sm:$0xff] %v8596_v47  ;;  %1764 = vrot.lane.b32.xlu1 %v11736_v32, %s6647_s16  ;;  %v2404_v47 = vshll.u32 %v2330_v8, 16  ;;  %v11737_v8 = vld [vmem:[#allocation73_spill] sm:$0xff]  ;;  %v2554_v32 = vrot.slane %v2552_v2, 1  ;;  %v2543_v14 = vor.u32 %v2542_v31, %v2538_v53  ;;  %v2557_v41 = vshll.u32 %v8617_v16, 16 }
 0x2f0   : > { %v2316_v2 = vunpack.c.l.b16 %v2252_v58  ;;  %v2221_v53 = vmax.f32 %v2184_v54, 0.0  ;;  %v2586_v7 = vshrl.u32 %v8581_v51, 16  ;;  %v2425_v55 = vshll.u32 %v2333_v3, 16 }
 0x2f1   : > { %v1681_v35 = vpop.permute.xlu1 %1680  ;;  %v2406_v49 = vor.u32 %v2404_v47, %v8605_v13  ;;  %v2564_v47 = vshll.u32 %v8621_v52, 16  ;;  %v2555_v63 = vor.u32 %v2554_v32, %v2550_v9  ;;  %v8640_v12 = vsel %vm679_vm2, %v2543_v14, %v2547_v28 }
 0x2f2   : > { %1768 = vrot.lane.b32.xlu0 %v11737_v8, %s6647_s16  ;;  %v2590_v8 = vrot.slane %v2588_v62, 1  ;;  %v2254_v62 = vpack.c.bf16 %v2222_v1, %v2222_v1  ;;  %v2595_v58 = vrot.slane %v2593_v18, 1  ;;  %v2427_v54 = vor.u32 %v2425_v55, %v8629_v46 }
 0x2f3   : > { %v8644_v38 = vsel %vm6754_vm3, 0, %v2406_v49  ;;  %v8652_v3 = vsel %vm6754_vm3, %v8572_v36, 0  ;;  %v2253_v14 = vpack.c.bf16 %v2221_v53, %v2221_v53  ;;  %v2566_v9 = vrot.slane %v2564_v47, 1 }
 0x2f4   : > { %2695 = vrot.lane.b32.xlu2 %v8500_v39, %s6635_s27  ;;  %v8631_v34 = vpop.permute.xlu0 %1684  ;;  %v2408_v39 = vshrl.u32 %v2331_v30, 16  ;;  %v2591_v28 = vor.u32 %v2590_v8, %v2586_v7  ;;  %v11740_v49 = vshll.u32 %v8493_v0, 16  ;;  %v2581_v36 = vshll.u32 %v8516_v45, 16 }
 0x2f5   : > { %11738 = vst [vmem:[#allocation94_spill] sm:$0xff] %v8631_v34  ;;  %v2315_v34 = vunpack.c.l.b16 %v2251_v42  ;;  %v2318_v55 = vunpack.c.l.b16 %v2254_v62  ;;  %v2569_v8 = vshll.u32 %v8652_v3, 16  ;;  %v2317_v47 = vunpack.c.l.b16 %v2253_v14 }
 0x2f6   : > { %v8635_v31 = vpop.permute.xlu2 %1706  ;;  %v2578_v42 = vrot.slane %v11740_v49, 1  ;;  %v8656_v1 = vrot.slane %v2408_v39, 7  ;;  %v2411_v39 = vshll.u32 %v2331_v30, 16  ;;  %v11743_v30 = vshll.u32 %v8545_v59, 16 }
 0x2f7   : > { %11739 = vst [vmem:[#allocation98_spill] sm:$0xff] %v8635_v31  ;;  %1770 = vrot.lane.b32.xlu1 %v11708_v56, %s6647_s16  ;;  %v2559_v31 = vrot.slane %v2557_v41, 1  ;;  %v2334_v32 = vpack.c.b16 %v2316_v2, %v2315_v34  ;;  %v2562_v34 = vshrl.u32 %v8621_v52, 16  ;;  %v1925_v2 = vsel %vm11424_vm0, %v8165_v33, %v8404_v20  ;;  %s6656_s16 = smov 96  }
 0x2f8   : > { %v1958_v7 = vsel %vm11423_vm5, %v1925_v2, %v1681_v35  ;;  %v2413_v56 = vor.u32 %v2411_v39, %v8656_v1  ;;  %v8682_v33 = vsel %vm6754_vm3, %v8410_v26, 0  ;;  %v2624_v20 = vshll.u32 %v8644_v38, 16 }
 0x2f9   : > { %v1687_v18 = vpop.permute.xlu1 %1686  ;;  %v8661_v41 = vsel %vm679_vm2, %v2555_v63, %v2559_v31  ;;  %v2600_v63 = vshll.u32 %v8448_v37, 16  ;;  %v2429_v31 = vshrl.u32 %v2334_v32, 16  ;;  %v2567_v62 = vor.u32 %v2566_v9, %v2562_v34 }
 0x2fa   : > { %2697 = vrot.lane.b32.xlu0 %v8550_v15, %s6635_s27  ;;  %11741 = vst [vmem:[#allocation113_spill] sm:$0xff] %v8661_v41  ;;  %v2420_v14 = vor.u32 %v11743_v30, %v8594_v23  ;;  %v2335_v15 = vpack.c.b16 %v2318_v55, %v2317_v47  ;;  %v2571_v35 = vrot.slane %v2569_v8, 1  ;;  %v11744_v9 = vshrl.u32 %v8493_v0, 16 }
 0x2fb   : > { %v8694_v39 = vsel %vm6754_vm3, 0, %v2427_v54  ;;  %v8697_v26 = vsel %vm679_vm2, %v2591_v28, %v2595_v58  ;;  %v2583_v2 = vrot.slane %v2581_v36, 1  ;;  %v2605_v55 = vshll.u32 %v8682_v33, 16 }
 0x2fc   : > { %2701 = vrot.lane.b32.xlu2 %v8661_v41, %s6635_s27  ;;  %v8671_v53 = vpop.permute.xlu0 %1690  ;;  %v2579_v34 = vor.u32 %v2578_v42, %v11744_v9  ;;  %11745 = vst [vmem:[#allocation18_spill] sm:$0xff] %v8694_v39  ;;  %v8702_v59 = vsel %vm679_vm2, %v2567_v62, %v2571_v35  ;;  %v8708_v42 = vsel %vm6754_vm3, %v8605_v13, 0  ;;  %v8712_v54 = vsel %vm6754_vm3, 0, %v2413_v56 }
 0x2fd   : > { %11746 = vst [vmem:[#allocation56_spill] sm:$0xff] %v8697_v26  ;;  %v2598_v28 = vshrl.u32 %v8448_v37, 16  ;;  %v2626_v36 = vrot.slane %v2624_v20, 1  ;;  %v2612_v8 = vshll.u32 %v8563_v61, 16  ;;  %v8726_v56 = vsel %vm6754_vm3, %v8527_v27, 0 }
 0x2fe   : > { %v1713_v49 = vpop.permute.xlu2 %1712  ;;  %v8721_v13 = vsel %vm679_vm2, %v2579_v34, %v2583_v2  ;;  %v1931_v47 = vsel %vm11424_vm0, %v8183_v44, %v8436_v43  ;;  %v2629_v30 = vshll.u32 %v8708_v42, 16  ;;  %v2607_v34 = vrot.slane %v2605_v55, 1 }
 0x2ff   : > { %v8677_v41 = vsel %vm11422_vm6, %v1958_v7, %v1713_v49  ;;  %2699 = vrot.lane.b32.xlu1 %v8640_v12, %s6635_s27  ;;  %v2602_v7 = vrot.slane %v2600_v63, 1  ;;  %v8699_v49 = vrot.slane %v2429_v31, 7  ;;  %v2432_v63 = vshll.u32 %v2334_v32, 16 }
 0x300   : > { %11742 = vst [vmem:[#allocation52_spill] sm:$0xff] %v8677_v41  ;;  %v2436_v31 = vshrl.u32 %v2335_v15, 16  ;;  %v2622_v32 = vshrl.u32 %v8644_v38, 16  ;;  %v1964_v9 = vsel %vm11423_vm5, %v1931_v47, %v1687_v18  ;;  %v2636_v27 = vshll.u32 %v8712_v54, 16 }
 0x301   : > { %v1693_v58 = vpop.permute.xlu1 %1692  ;;  %v2603_v20 = vor.u32 %v2602_v7, %v2598_v28  ;;  %v2434_v35 = vor.u32 %v2432_v63, %v8699_v49  ;;  %v2614_v44 = vrot.slane %v2612_v8, 1  ;;  %v2660_v43 = vshll.u32 %v8694_v39, 16 }
 0x302   : > { %2703 = vrot.lane.b32.xlu0 %v8702_v59, %s6635_s27  ;;  %v8744_v7 = vsel %vm6754_vm3, 0, %v2420_v14  ;;  %v2438_v28 = vrot.slane %v2436_v31, 7  ;;  %v2610_v18 = vshrl.u32 %v8563_v61, 16  ;;  %v2631_v63 = vrot.slane %v2629_v30, 1 }
 0x303   : > { %v8750_v55 = vsel %vm679_vm2, %v2603_v20, %v2607_v34  ;;  %v2617_v47 = vshll.u32 %v8726_v56, 16  ;;  %v8760_v14 = vsel %vm6754_vm3, 0, %v2434_v35  ;;  %v2439_v8 = vshll.u32 %v2335_v15, 16 }
 0x304   : > { %2707 = vrot.lane.b32.xlu2 %v8697_v26, %s6635_s27  ;;  %v8731_v62 = vpop.permute.xlu0 %1696  ;;  %v2627_v26 = vor.u32 %v2626_v36, %v2622_v32  ;;  %v8756_v36 = vsel %vm6754_vm3, %v8656_v1, 0  ;;  %v2638_v31 = vrot.slane %v2636_v27, 1  ;;  %v8765_v32 = vsel %vm6754_vm3, %v8629_v46, 0 }
 0x305   : > { %11748 = vst [vmem:[#allocation96_spill] sm:$0xff] %v8756_v36  ;;  %v2615_v1 = vor.u32 %v2614_v44, %v2610_v18  ;;  %v2648_v34 = vshll.u32 %v8744_v7, 16  ;;  %v2441_v35 = vor.u32 %v2439_v8, %v2438_v28  ;;  %v2634_v15 = vshrl.u32 %v8712_v54, 16 }
 0x306   : > { %v1719_v2 = vpop.permute.xlu2 %1718  ;;  %v8770_v30 = vsel %vm679_vm2, %v2627_v26, %v2631_v63  ;;  %v2641_v46 = vshll.u32 %v8756_v36, 16  ;;  %v2619_v26 = vrot.slane %v2617_v47, 1  ;;  %v2658_v44 = vshrl.u32 %v8694_v39, 16 }
 0x307   : > { %v8739_v41 = vsel %vm11422_vm6, %v1964_v9, %v1719_v2  ;;  %2705 = vrot.lane.b32.xlu1 %v8721_v13, %s6635_s27  ;;  %v2662_v9 = vrot.slane %v2660_v43, 1  ;;  %v1937_v2 = vsel %vm11424_vm0, %v8201_v17, %v8470_v48  ;;  %v2665_v43 = vshll.u32 %v8765_v32, 16 }
 0x308   : > { %11747 = vst [vmem:[#allocation82_spill] sm:$0xff] %v8739_v41  ;;  %v1970_v18 = vsel %vm11423_vm5, %v1937_v2, %v1693_v58  ;;  %v2639_v63 = vor.u32 %v2638_v31, %v2634_v15  ;;  %v8788_v41 = vsel %vm6754_vm3, %v8594_v23, 0  ;;  %v2672_v36 = vshll.u32 %v8760_v14, 16 }
 0x309   : > { %v1699_v20 = vpop.permute.xlu1 %1698  ;;  %v8792_v17 = vsel %vm679_vm2, %v2615_v1, %v2619_v26  ;;  %v2663_v47 = vor.u32 %v2662_v9, %v2658_v44  ;;  %v2650_v39 = vrot.slane %v2648_v34, 1  ;;  %v8799_v58 = vsel %vm6754_vm3, 0, %v2441_v35 }
 0x30a   : > { %2709 = vrot.lane.b32.xlu0 %v8750_v55, %s6635_s27  ;;  %v2643_v31 = vrot.slane %v2641_v46, 1  ;;  %v2667_v23 = vrot.slane %v2665_v43, 1  ;;  %v2646_v15 = vshrl.u32 %v8744_v7, 16  ;;  %v2653_v2 = vshll.u32 %v8788_v41, 16 }
 0x30b   : > { %v8808_v1 = vsel %vm6754_vm3, %v8699_v49, 0  ;;  %v2674_v34 = vrot.slane %v2672_v36, 1  ;;  %v2684_v44 = vshll.u32 %v8799_v58, 16  ;;  %v2670_v49 = vshrl.u32 %v8760_v14, 16 }
 0x30c   : > { %2713 = vrot.lane.b32.xlu2 %v8770_v30, %s6635_s27  ;;  %v8780_v27 = vpop.permute.xlu0 %1702  ;;  %v8811_v9 = vsel %vm679_vm2, %v2639_v63, %v2643_v31  ;;  %v8816_v46 = vsel %vm679_vm2, %v2663_v47, %v2667_v23  ;;  %v2651_v26 = vor.u32 %v2650_v39, %v2646_v15  ;;  %v2677_v43 = vshll.u32 %v8808_v1, 16 }
 0x30d   : > { %v1943_v36 = vsel %vm11424_vm0, %v8220_v19, %v8507_v50  ;;  %v2655_v63 = vrot.slane %v2653_v2, 1  ;;  %v2675_v47 = vor.u32 %v2674_v34, %v2670_v49  ;;  %v8831_v31 = vsel %vm6754_vm3, %v2438_v28, 0 }
 0x30e   : > { %v1725_v8 = vpop.permute.xlu2 %1724  ;;  %v2686_v19 = vrot.slane %v2684_v44, 1  ;;  %v2679_v50 = vrot.slane %v2677_v43, 1  ;;  %v2682_v2 = vshrl.u32 %v8799_v58, 16  ;;  %v2689_v28 = vshll.u32 %v8831_v31, 16 }
 0x30f   : > { %v8795_v48 = vsel %vm11422_vm6, %v1970_v18, %v1725_v8  ;;  %2711 = vrot.lane.b32.xlu1 %v8792_v17, %s6635_s27  ;;  %v1976_v8 = vsel %vm11423_vm5, %v1943_v36, %v1699_v20  ;;  %v8834_v23 = vsel %vm679_vm2, %v2651_v26, %v2655_v63  ;;  %v2756_v20 = vrot.slane %v8444_v24, 1 }
 0x310   : > { %11749 = vst [vmem:[#allocation38_spill] sm:$0xff] %v8795_v48  ;;  %v2755_v48 = vrot.slane %v8418_v40, 1  ;;  %v8846_v34 = vsel %vm679_vm2, %v2675_v47, %v2679_v50  ;;  %v2687_v49 = vor.u32 %v2686_v19, %v2682_v2  ;;  %v1927_v24 = vsel %vm11424_vm0, %v8246_v22, %v8428_v10 }
 0x311   : > { %v1705_v35 = vpop.permute.xlu1 %1704  ;;  %v1960_v43 = vsel %vm11423_vm5, %v1927_v24, %v8476_v57  ;;  %v1949_v36 = vsel %vm11424_vm0, %v8249_v6, %v8542_v5  ;;  %v2764_v57 = vrot.slane %v8585_v11, 1  ;;  %v2759_v6 = vrot.slane %v8512_v60, 1  ;;  %v11756_v60 = vld [vmem:[#allocation87_spill] sm:$0xff] }
 0x312   : > { %2715 = vrot.lane.b32.xlu0 %v8811_v9, %s6635_s27  ;;  %v8853_v44 = vsel %vm931_vm4, %v2755_v48, %v2756_v20  ;;  %v1982_v48 = vsel %vm11423_vm5, %v1949_v36, %v1705_v35  ;;  %v2765_v5 = vrot.slane %v8617_v16, 1  ;;  %v1929_v35 = vsel %vm11424_vm0, %v8268_v4, %v8320_v25  ;;  %v11755_v20 = vld [vmem:[#allocation94_spill] sm:$0xff]  ;;  %v11757_v16 = vld [vmem:[#allocation95_spill] sm:$0xff]  ;;  %v11760_v25 = vld [vmem:[#allocation105_spill] sm:$0xff] }
 0x313   : > { %v1962_v2 = vsel %vm11423_vm5, %v1929_v35, %v11755_v20  ;;  %v2761_v24 = vrot.slane %v11756_v60, 1  ;;  %v2773_v35 = vrot.slane %v8581_v51, 1  ;;  %v2768_v20 = vrot.slane %v8652_v3, 1 }
 0x314   : > { %2719 = vrot.lane.b32.xlu2 %v8816_v46, %s6635_s27  ;;  %v8826_v18 = vpop.permute.xlu0 %1708  ;;  %v2770_v3 = vrot.slane %v8493_v0, 1 }
 0x315   : > { %11750 = vst [vmem:[#allocation5_spill] sm:$0xff] %v8826_v18 }
 0x316   : > { %v1731_v39 = vpop.permute.xlu2 %1730 }
 0x317   : > { %v8837_v15 = vsel %vm11422_vm6, %v1976_v8, %v1731_v39  ;;  %2717 = vrot.lane.b32.xlu1 %v8834_v23, %s6635_s27  ;;  %v2691_v8 = vrot.slane %v2689_v28, 1  ;;  %v2758_v39 = vrot.slane %v8480_v29, 1 }
 0x318   : > { %11751 = vst [vmem:[#allocation100_spill] sm:$0xff] %v8837_v15 }
 0x319   : > { %v8850_v26 = vpop.permute.xlu1 %1710  ;;  %v8871_v10 = vsel %vm679_vm2, %v2687_v49, %v2691_v8  ;;  %v8885_v50 = vsel %vm931_vm4, %v2758_v39, %v2759_v6  ;;  %v8892_v49 = vsel %vm931_vm4, %v2764_v57, %v2765_v5  ;;  %v2767_v57 = vrot.slane %v8621_v52, 1 }
 0x31a   : > { %2721 = vrot.lane.b32.xlu0 %v8846_v34, %s6635_s27  ;;  %11752 = vst [vmem:[#allocation49_spill] sm:$0xff] %v8850_v26  ;;  %v11810_v26 = vld [vmem:[#allocation80_spill] sm:$0xff] }
 0x31c   : > { %2800 = vrot.lane.b32.xlu2 %v8853_v44, %s6639_s12  ;;  %v1715_v63 = vpop.permute.xlu0 %1714 }
 0x31d   : > { %v8867_v47 = vsel %vm11422_vm6, %v1960_v43, %v1715_v63  ;;  %v11758_v43 = vld [vmem:[#allocation72_spill] sm:$0xff] }
 0x31e   : > { %11753 = vst [vmem:[#allocation114_spill] sm:$0xff] %v8867_v47  ;;  %v1737_v22 = vpop.permute.xlu2 %1736  ;;  %v1933_v36 = vsel %vm11424_vm0, %v11758_v43, %v11757_v16  ;;  %v11765_v16 = vld [vmem:[#allocation112_spill] sm:$0xff] }
 0x31f   : > { %v8874_v19 = vsel %vm11422_vm6, %v1982_v48, %v1737_v22  ;;  %2723 = vrot.lane.b32.xlu1 %v8871_v10, %s6635_s27  ;;  %v1966_v63 = vsel %vm11423_vm5, %v1933_v36, %v11760_v25  ;;  %v11761_v48 = vld [vmem:[#allocation50_spill] sm:$0xff]  ;;  %v11766_v43 = vld [vmem:[#allocation48_spill] sm:$0xff]  ;;  %v8924_v25 = vsel %vm931_vm4, %v2767_v57, %v2768_v20 }
 0x320   : > { %11754 = vst [vmem:[#allocation74_spill] sm:$0xff] %v8874_v19  ;;  %v2762_v39 = vrot.slane %v11761_v48, 1  ;;  %v1935_v36 = vsel %vm11424_vm0, %v11766_v43, %v11765_v16  ;;  %v11767_v48 = vld [vmem:[#allocation44_spill] sm:$0xff]  ;;  %v2771_v43 = vrot.slane %v8516_v45, 1  ;;  %v11773_v45 = vld [vmem:[#allocation107_spill] sm:$0xff] }
 0x321   : > { %v1717_v28 = vpop.permute.xlu1 %1716  ;;  %v11776_v19 = vld [vmem:[#allocation68_spill] sm:$0xff] }
 0x322   : > { %2802 = vrot.lane.b32.xlu0 %v8885_v50, %s6639_s12  ;;  %v8899_v4 = vsel %vm11422_vm6, %v1962_v2, %v1717_v28  ;;  %v8913_v5 = vsel %vm931_vm4, %v2761_v24, %v2762_v39  ;;  %v11764_v2 = vld [vmem:[#allocation79_spill] sm:$0xff]  ;;  %v1968_v24 = vsel %vm11423_vm5, %v1935_v36, %v8671_v53  ;;  %v11770_v53 = vld [vmem:[#allocation109_spill] sm:$0xff] }
 0x323   : > { %11759 = vst [vmem:[#allocation89_spill] sm:$0xff] %v8899_v4  ;;  %v2774_v28 = vrot.slane %v11764_v2, 1  ;;  %v11768_v39 = vld [vmem:[#allocation99_spill] sm:$0xff]  ;;  %v6554_v4 = vld [vmem:[%s11308_s3 + $0x18] sm:$0xff] }
 0x324   : > { %2806 = vrot.lane.b32.xlu2 %v8892_v49, %s6639_s12  ;;  %v1721_v8 = vpop.permute.xlu0 %1720  ;;  %v1939_v2 = vsel %vm11424_vm0, %v11768_v39, %v11767_v48  ;;  %v8952_v48 = vsel %vm931_vm4, %v2770_v3, %v2771_v43  ;;  %v2783_v39 = vrot.slane %v8708_v42, 1  ;;  %v11775_v42 = vld [vmem:[#allocation58_spill] sm:$0xff] }
 0x325   : > { %v8907_v22 = vsel %vm11422_vm6, %v1966_v63, %v1721_v8  ;;  %v8931_v8 = vsel %vm931_vm4, %v2773_v35, %v2774_v28  ;;  %v1972_v57 = vsel %vm11423_vm5, %v1939_v2, %v11770_v53  ;;  %v2776_v28 = vrot.slane %v8448_v37, 1  ;;  %v11774_v2 = vld [vmem:[#allocation63_spill] sm:$0xff] }
 0x326   : > { %11762 = vst [vmem:[#allocation93_spill] sm:$0xff] %v8907_v22  ;;  %v8910_v6 = vpop.permute.xlu2 %1742  ;;  %v1941_v53 = vsel %vm11424_vm0, %v11774_v2, %v11773_v45  ;;  %v1945_v15 = vsel %vm11424_vm0, %v11776_v19, %v11775_v42  ;;  %v2780_v2 = vrot.slane %v8726_v56, 1  ;;  %v11781_v19 = vld [vmem:[#allocation66_spill] sm:$0xff]  ;;  %v11783_v42 = vld [vmem:[#allocation101_spill] sm:$0xff] }
 0x327   : > { %11763 = vst [vmem:[#allocation110_spill] sm:$0xff] %v8910_v6  ;;  %2804 = vrot.lane.b32.xlu1 %v8913_v5, %s6639_s12  ;;  %v1974_v3 = vsel %vm11423_vm5, %v1941_v53, %v8731_v62  ;;  %v11778_v62 = vld [vmem:[#allocation103_spill] sm:$0xff] }
 0x329   : > { %v1723_v63 = vpop.permute.xlu1 %1722 }
 0x32a   : > { %2808 = vrot.lane.b32.xlu0 %v8924_v25, %s6639_s12  ;;  %v8938_v16 = vsel %vm11422_vm6, %v1968_v24, %v1723_v63  ;;  %v2782_v24 = vrot.slane %v8644_v38, 1  ;;  %v2777_v63 = vrot.slane %v8682_v33, 1  ;;  %v2779_v33 = vrot.slane %v8563_v61, 1 }
 0x32b   : > { %11769 = vst [vmem:[#allocation117_spill] sm:$0xff] %v8938_v16 }
 0x32c   : > { %2812 = vrot.lane.b32.xlu2 %v8931_v8, %s6639_s12  ;;  %v1727_v20 = vpop.permute.xlu0 %1726  ;;  %v8970_v43 = vsel %vm931_vm4, %v2782_v24, %v2783_v39  ;;  %v8990_v53 = vsel %vm931_vm4, %v2779_v33, %v2780_v2 }
 0x32d   : > { %v8946_v35 = vsel %vm11422_vm6, %v1972_v57, %v1727_v20  ;;  %v8963_v57 = vsel %vm931_vm4, %v2776_v28, %v2777_v63  ;;  %v1978_v28 = vsel %vm11423_vm5, %v1945_v15, %v11778_v62  ;;  %v11784_v62 = vld [vmem:[#allocation104_spill] sm:$0xff] }
 0x32e   : > { %11771 = vst [vmem:[#allocation45_spill] sm:$0xff] %v8946_v35  ;;  %v8949_v36 = vpop.permute.xlu2 %1748  ;;  %v1951_v33 = vsel %vm11424_vm0, %v11784_v62, %v11783_v42  ;;  %v11793_v42 = vld [vmem:[#allocation62_spill] sm:$0xff] }
 0x32f   : > { %11772 = vst [vmem:[#allocation15_spill] sm:$0xff] %v8949_v36  ;;  %2810 = vrot.lane.b32.xlu1 %v8952_v48, %s6639_s12  ;;  %v6551_v36 = vld [vmem:[%s11308_s3] sm:$0xff] }
 0x331   : > { %v1729_v20 = vpop.permute.xlu1 %1728 }
 0x332   : > { %2814 = vrot.lane.b32.xlu0 %v8963_v57, %s6639_s12  ;;  %v8977_v45 = vsel %vm11422_vm6, %v1974_v3, %v1729_v20  ;;  %v11782_v3 = vld [vmem:[#allocation92_spill] sm:$0xff] }
 0x333   : > { %11777 = vst [vmem:[#allocation67_spill] sm:$0xff] %v8977_v45  ;;  %v1947_v20 = vsel %vm11424_vm0, %v11782_v3, %v11781_v19  ;;  %vm3339_vm0 = vcmask 588800  }
 0x334   : > { %2818 = vrot.lane.b32.xlu2 %v8970_v43, %s6639_s12  ;;  %v1733_v63 = vpop.permute.xlu0 %1732  ;;  %v1980_v15 = vsel %vm11423_vm5, %v1947_v20, %v8780_v27  ;;  %v11789_v20 = vld [vmem:[#allocation8_spill] sm:$0xff] }
 0x335   : > { %v8985_v24 = vsel %vm11422_vm6, %v1978_v28, %v1733_v63  ;;  %v11786_v63 = vld [vmem:[#allocation98_spill] sm:$0xff] }
 0x336   : > { %11779 = vst [vmem:[#allocation84_spill] sm:$0xff] %v8985_v24  ;;  %v8987_v39 = vpop.permute.xlu2 %1754  ;;  %v1984_v2 = vsel %vm11423_vm5, %v1951_v33, %v11786_v63  ;;  %vm3266_vm5 = vcmask 523264  }
 0x337   : > { %11780 = vst [vmem:[#allocation88_spill] sm:$0xff] %v8987_v39  ;;  %2816 = vrot.lane.b32.xlu1 %v8990_v53, %s6639_s12 }
 0x339   : > { %v1735_v56 = vpop.permute.xlu1 %1734 }
 0x33a   : > { %2831 = vrot.lane.b32.xlu0 %v8418_v40, %s6648_s17  ;;  %v9005_v28 = vsel %vm11422_vm6, %v1980_v15, %v1735_v56 }
 0x33b   : > { %11785 = vst [vmem:[#allocation106_spill] sm:$0xff] %v9005_v28 }
 0x33c   : > { %2911 = vrot.lane.b32.xlu2 %v8853_v44, %s6649_s18  ;;  %v1739_v27 = vpop.permute.xlu0 %1738 }
 0x33d   : > { %v9012_v19 = vsel %vm11422_vm6, %v1984_v2, %v1739_v27  ;;  %vm3233_vm6 = vcmask 457728  }
 0x33e   : > { %11787 = vst [vmem:[#allocation115_spill] sm:$0xff] %v9012_v19  ;;  %v9014_v3 = vpop.permute.xlu2 %1760 }
 0x33f   : > { %11788 = vst [vmem:[#allocation116_spill] sm:$0xff] %v9014_v3  ;;  %2875 = vrot.lane.b32.xlu1 %v11789_v20, %s6650_s21 }
 0x341   : > { %v9020_v15 = vpop.permute.xlu1 %1740 }
 0x342   : > { %2943 = vrot.lane.b32.xlu0 %v8480_v29, %s6651_s23  ;;  %11790 = vst [vmem:[#allocation53_spill] sm:$0xff] %v9020_v15 }
 0x344   : > { %3007 = vrot.lane.b32.xlu2 %v8885_v50, %s6652_s24  ;;  %v9024_v44 = vpop.permute.xlu0 %1744 }
 0x345   : > { %11791 = vst [vmem:[#allocation20_spill] sm:$0xff] %v9024_v44 }
 0x346   : > { %v9026_v56 = vpop.permute.xlu2 %1766 }
 0x347   : > { %11792 = vst [vmem:[#allocation69_spill] sm:$0xff] %v9026_v56  ;;  %2975 = vrot.lane.b32.xlu1 %v11793_v42, %s6653_s13 }
 0x349   : > { %v9032_v62 = vpop.permute.xlu1 %1746 }
 0x34a   : > { %2833 = vrot.lane.b32.xlu0 %v8480_v29, %s6648_s17  ;;  %11794 = vst [vmem:[#allocation75_spill] sm:$0xff] %v9032_v62 }
 0x34c   : > { %2913 = vrot.lane.b32.xlu2 %v8885_v50, %s6649_s18  ;;  %v9036_v33 = vpop.permute.xlu0 %1750 }
 0x34d   : > { %11795 = vst [vmem:[#allocation97_spill] sm:$0xff] %v9036_v33 }
 0x34e   : > { %v9038_v63 = vpop.permute.xlu2 %2695 }
 0x34f   : > { %2877 = vrot.lane.b32.xlu1 %v11793_v42, %s6650_s21 }
 0x351   : > { %v9044_v2 = vpop.permute.xlu1 %1752 }
 0x352   : > { %2945 = vrot.lane.b32.xlu0 %v11756_v60, %s6651_s23  ;;  %11796 = vst [vmem:[#allocation108_spill] sm:$0xff] %v9044_v2 }
 0x354   : > { %3009 = vrot.lane.b32.xlu2 %v8913_v5, %s6652_s24  ;;  %v9048_v27 = vpop.permute.xlu0 %1756 }
 0x355   : > { %11797 = vst [vmem:[#allocation43_spill] sm:$0xff] %v9048_v27 }
 0x356   : > { %v9050_v20 = vpop.permute.xlu2 %2701 }
 0x357   : > { %2977 = vrot.lane.b32.xlu1 %v8640_v12, %s6653_s13 }
 0x359   : > { %v9056_v50 = vpop.permute.xlu1 %1758 }
 0x35a   : > { %2835 = vrot.lane.b32.xlu0 %v11756_v60, %s6648_s17  ;;  %11798 = vst [vmem:[#allocation7_spill] sm:$0xff] %v9056_v50 }
 0x35c   : > { %2915 = vrot.lane.b32.xlu2 %v8913_v5, %s6649_s18  ;;  %v9060_v42 = vpop.permute.xlu0 %1762  ;;  %v11802_v5 = vld [vmem:[#allocation113_spill] sm:$0xff] }
 0x35d   : > { %11799 = vst [vmem:[#allocation10_spill] sm:$0xff] %v9060_v42 }
 0x35e   : > { %v9062_v19 = vpop.permute.xlu2 %2707 }
 0x35f   : > { %2879 = vrot.lane.b32.xlu1 %v8640_v12, %s6650_s21 }
 0x361   : > { %v9068_v28 = vpop.permute.xlu1 %1764 }
 0x362   : > { %2947 = vrot.lane.b32.xlu0 %v8585_v11, %s6651_s23  ;;  %11800 = vst [vmem:[#allocation6_spill] sm:$0xff] %v9068_v28 }
 0x364   : > { %3011 = vrot.lane.b32.xlu2 %v8892_v49, %s6652_s24  ;;  %v9072_v56 = vpop.permute.xlu0 %1768 }
 0x365   : > { %11801 = vst [vmem:[#allocation9_spill] sm:$0xff] %v9072_v56 }
 0x366   : > { %v9074_v24 = vpop.permute.xlu2 %2713 }
 0x367   : > { %2979 = vrot.lane.b32.xlu1 %v11802_v5, %s6653_s13 }
 0x369   : > { %v9080_v42 = vpop.permute.xlu1 %1770 }
 0x36a   : > { %2837 = vrot.lane.b32.xlu0 %v8585_v11, %s6648_s17  ;;  %11803 = vst [vmem:[#allocation22_spill] sm:$0xff] %v9080_v42 }
 0x36c   : > { %2917 = vrot.lane.b32.xlu2 %v8892_v49, %s6649_s18  ;;  %v9084_v12 = vpop.permute.xlu0 %2697 }
 0x36e   : > { %v9086_v28 = vpop.permute.xlu2 %2719 }
 0x36f   : > { %11804 = vst [vmem:[#allocation41_spill] sm:$0xff] %v9086_v28  ;;  %2881 = vrot.lane.b32.xlu1 %v11802_v5, %s6650_s21 }
 0x371   : > { %v9092_v56 = vpop.permute.xlu1 %2699 }
 0x372   : > { %2949 = vrot.lane.b32.xlu0 %v8621_v52, %s6651_s23 }
 0x374   : > { %3013 = vrot.lane.b32.xlu2 %v8924_v25, %s6652_s24  ;;  %v9096_v45 = vpop.permute.xlu0 %2703 }
 0x376   : > { %v9098_v42 = vpop.permute.xlu2 %2800 }
 0x377   : > { %2981 = vrot.lane.b32.xlu1 %v8702_v59, %s6653_s13 }
 0x379   : > { %v9104_v49 = vpop.permute.xlu1 %2705 }
 0x37a   : > { %2839 = vrot.lane.b32.xlu0 %v8621_v52, %s6648_s17 }
 0x37c   : > { %2919 = vrot.lane.b32.xlu2 %v8924_v25, %s6649_s18  ;;  %v9108_v5 = vpop.permute.xlu0 %2709 }
 0x37e   : > { %v9110_v3 = vpop.permute.xlu2 %2806 }
 0x37f   : > { %2883 = vrot.lane.b32.xlu1 %v8702_v59, %s6650_s21  ;;  %v3307_v59 = vld [vmem:[%s11308_s3 + $0x20] sm:$0xf] }
 0x380   : > { %v3329_v16 = vunpack.c.l.b16 %v3307_v59 }
 0x381   : > { %v9116_v35 = vpop.permute.xlu1 %2711 }
 0x382   : > { %2951 = vrot.lane.b32.xlu0 %v8493_v0, %s6651_s23  ;;  %v3334_v2 = vpack.c.b16 %v3329_v16, %v3329_v16 }
 0x384   : > { %3015 = vrot.lane.b32.xlu2 %v8952_v48, %s6652_s24  ;;  %v9120_v50 = vpop.permute.xlu0 %2715  ;;  %v3374_v33 = vsel %vm3372_vm12, %v3334_v2, 0  ;;  %v6552_v2 = vld [vmem:[%s11308_s3 + $0x8] sm:$0xff]  ;;  %vm3102_vm12 = vcmask 195584  }
 0x385   : > { %3379 = vmatpush.bf16.msrb.mxu1 %v3374_v33  ;;  %v11808_v33 = vld [vmem:[#allocation56_spill] sm:$0xff] }
 0x386   : > { %v9122_v27 = vpop.permute.xlu2 %2812 }
 0x387   : > { %2983 = vrot.lane.b32.xlu1 %v8721_v13, %s6653_s13 }
 0x389   : > { %v9128_v25 = vpop.permute.xlu1 %2717  ;;  %3380 = vmatpush.bf16.msrb.mxu1 %v6554_v4 }
 0x38a   : > { %2841 = vrot.lane.b32.xlu0 %v8493_v0, %s6648_s17  ;;  %11805 = vst [vmem:[#allocation86_spill] sm:$0xff] %v9128_v25 }
 0x38c   : > { %2921 = vrot.lane.b32.xlu2 %v8952_v48, %s6649_s18  ;;  %v9135_v39 = vpop.permute.xlu0 %2721 }
 0x38d   : > { %11806 = vst [vmem:[#allocation76_spill] sm:$0xff] %v9135_v39 }
 0x38e   : > { %v9137_v22 = vpop.permute.xlu2 %2818 }
 0x38f   : > { %2885 = vrot.lane.b32.xlu1 %v8721_v13, %s6650_s21  ;;  %v6553_v13 = vld [vmem:[%s11308_s3 + $0x10] sm:$0xff] }
 0x390   : > { %3381 = vmatpush.bf16.msrb.mxu1 %v6553_v13 }
 0x391   : > { %v9146_v48 = vpop.permute.xlu1 %2723 }
 0x392   : > { %2953 = vrot.lane.b32.xlu0 %v8581_v51, %s6651_s23  ;;  %11807 = vst [vmem:[#allocation12_spill] sm:$0xff] %v9146_v48 }
 0x394   : > { %3017 = vrot.lane.b32.xlu2 %v8931_v8, %s6652_s24  ;;  %v9150_v59 = vpop.permute.xlu0 %2802  ;;  %3382 = vmatpush.bf16.msrb.mxu1 %v6552_v2 }
 0x396   : > { %v2912_v16 = vpop.permute.xlu2 %2911 }
 0x397   : > { %2985 = vrot.lane.b32.xlu1 %v11808_v33, %s6653_s13 }
 0x398   : > { %3383 = vmatpush.bf16.msrb.mxu1 %v6551_v36  ;;  %v11809_v36 = vld [vmem:[#allocation65_spill] sm:$0xff] }
 0x399   : > { %v9162_v48 = vpop.permute.xlu1 %2804 }
 0x39a   : > { %2843 = vrot.lane.b32.xlu0 %v8581_v51, %s6648_s17 }
 0x39c   : > { %2923 = vrot.lane.b32.xlu2 %v8931_v8, %s6649_s18  ;;  %v9166_v4 = vpop.permute.xlu0 %2808 }
 0x39e   : > { %v3008_v13 = vpop.permute.xlu2 %3007 }
 0x39f   : > { %2887 = vrot.lane.b32.xlu1 %v11808_v33, %s6650_s21  ;;  %v6613_v33 = vunpack.i.h.bf16 %v11809_v36 }
 0x3a1   : > { %v9175_v39 = vpop.permute.xlu1 %2810  ;;  %v3040_v6 = vsel %vm1319_vm8, 0, %v6613_v33 }
 0x3a2   : > { %2955 = vrot.lane.b32.xlu0 %v8448_v37, %s6651_s23  ;;  %v3071_v28 = vsel %vm1451_vm13, %v3040_v6, %v11810_v26 }
 0x3a4   : > { %3019 = vrot.lane.b32.xlu2 %v8963_v57, %s6652_s24  ;;  %v9179_v8 = vpop.permute.xlu0 %2814 }
 0x3a6   : > { %v2914_v2 = vpop.permute.xlu2 %2913 }
 0x3a7   : > { %2987 = vrot.lane.b32.xlu1 %v8750_v55, %s6653_s13 }
 0x3a9   : > { %v9185_v47 = vpop.permute.xlu1 %2816 }
 0x3aa   : > { %2845 = vrot.lane.b32.xlu0 %v8448_v37, %s6648_s17 }
 0x3ac   : > { %2925 = vrot.lane.b32.xlu2 %v8963_v57, %s6649_s18  ;;  %v2832_v62 = vpop.permute.xlu0 %2831 }
 0x3ad   : > { %v3104_v15 = vsel %vm3102_vm12, %v3071_v28, %v2832_v62 }
 0x3ae   : > { %v3010_v44 = vpop.permute.xlu2 %3009 }
 0x3af   : > { %2889 = vrot.lane.b32.xlu1 %v8750_v55, %s6650_s21 }
 0x3b1   : > { %v2876_v25 = vpop.permute.xlu1 %2875 }
 0x3b2   : > { %2957 = vrot.lane.b32.xlu0 %v8563_v61, %s6651_s23  ;;  %v3137_v57 = vsel %vm3135_vm11, %v3104_v15, %v2876_v25 }
 0x3b3   : > { %v3169_v55 = vsel %vm2018_vm10, %v3137_v57, %v2912_v16  ;;  %v3042_v57 = vsel %vm1319_vm8, %v8418_v40, %v9038_v63 }
 0x3b4   : > { %3021 = vrot.lane.b32.xlu2 %v8990_v53, %s6652_s24  ;;  %v2944_v33 = vpop.permute.xlu0 %2943 }
 0x3b5   : > { %v3202_v6 = vsel %vm3200_vm7, %v3169_v55, %v2944_v33  ;;  %v3073_v33 = vsel %vm1451_vm13, %v3042_v57, %v9098_v42  ;;  %v11811_v57 = vld [vmem:[#allocation96_spill] sm:$0xff] }
 0x3b6   : > { %v2916_v18 = vpop.permute.xlu2 %2915 }
 0x3b7   : > { %2989 = vrot.lane.b32.xlu1 %v8792_v17, %s6653_s13 }
 0x3b9   : > { %v2976_v28 = vpop.permute.xlu1 %2975 }
 0x3ba   : > { %2847 = vrot.lane.b32.xlu0 %v8563_v61, %s6648_s17  ;;  %v3235_v15 = vsel %vm3233_vm6, %v3202_v6, %v2976_v28 }
 0x3bb   : > { %v3268_v25 = vsel %vm3266_vm5, %v3235_v15, %v3008_v13 }
 0x3bc   : > { %2927 = vrot.lane.b32.xlu2 %v8990_v53, %s6649_s18  ;;  %v2834_v62 = vpop.permute.xlu0 %2833  ;;  %6429 = vmatmul.msk.bf16.vlgmr.msrb.gmra.mxu1 %vm3339_vm0, %v3268_v25  ;;  %v2785_v25 = vrot.slane %v8712_v54, 1 }
 0x3bd   : > { %v3106_v55 = vsel %vm3102_vm12, %v3073_v33, %v2834_v62  ;;  %v2786_v33 = vrot.slane %v11811_v57, 1 }
 0x3be   : > { %v3012_v16 = vpop.permute.xlu2 %3011 }
 0x3bf   : > { %2891 = vrot.lane.b32.xlu1 %v8792_v17, %s6650_s21 }
 0x3c1   : > { %v2878_v53 = vpop.permute.xlu1 %2877 }
 0x3c2   : > { %2959 = vrot.lane.b32.xlu0 %v8644_v38, %s6651_s23  ;;  %v3139_v13 = vsel %vm3135_vm11, %v3106_v55, %v2878_v53  ;;  %v3044_v53 = vsel %vm1319_vm8, %v8480_v29, %v9084_v12  ;;  %v2787_v55 = vsel %vm931_vm4, %v2785_v25, %v2786_v33  ;;  %v3046_v25 = vsel %vm1319_vm8, %v11756_v60, %v9092_v56 }
 0x3c3   : > { %v3171_v28 = vsel %vm2018_vm10, %v3139_v13, %v2914_v2  ;;  %v3077_v57 = vsel %vm1451_vm13, %v3046_v25, %v9162_v48 }
 0x3c4   : > { %3023 = vrot.lane.b32.xlu2 %v8970_v43, %s6652_s24  ;;  %v2946_v6 = vpop.permute.xlu0 %2945 }
 0x3c5   : > { %v3204_v40 = vsel %vm3200_vm7, %v3171_v28, %v2946_v6 }
 0x3c6   : > { %v2918_v17 = vpop.permute.xlu2 %2917 }
 0x3c7   : > { %2991 = vrot.lane.b32.xlu1 %v8770_v30, %s6653_s13 }
 0x3c9   : > { %v2978_v63 = vpop.permute.xlu1 %2977 }
 0x3ca   : > { %2849 = vrot.lane.b32.xlu0 %v8644_v38, %s6648_s17  ;;  %v3237_v42 = vsel %vm3233_vm6, %v3204_v40, %v2978_v63 }
 0x3cb   : > { %v3270_v62 = vsel %vm3266_vm5, %v3237_v42, %v3010_v44 }
 0x3cc   : > { %2929 = vrot.lane.b32.xlu2 %v8970_v43, %s6649_s18  ;;  %v2836_v15 = vpop.permute.xlu0 %2835  ;;  %6430 = vmatmul.msk.bf16.gmra.mxu1 %vm3339_vm0, %v3270_v62  ;;  %v3075_v43 = vsel %vm1451_vm13, %v3044_v53, %v9150_v59  ;;  %v2789_v62 = vrot.slane %v8788_v41, 1 }
 0x3cd   : > { %v3108_v13 = vsel %vm3102_vm12, %v3075_v43, %v2836_v15 }
 0x3ce   : > { %v3014_v2 = vpop.permute.xlu2 %3013 }
 0x3cf   : > { %2893 = vrot.lane.b32.xlu1 %v8770_v30, %s6650_s21 }
 0x3d1   : > { %v2880_v44 = vpop.permute.xlu1 %2879 }
 0x3d2   : > { %2961 = vrot.lane.b32.xlu0 %v8712_v54, %s6651_s23  ;;  %v3141_v30 = vsel %vm3135_vm11, %v3108_v13, %v2880_v44 }
 0x3d3   : > { %v3173_v40 = vsel %vm2018_vm10, %v3141_v30, %v2916_v18  ;;  %v2788_v18 = vrot.slane %v8744_v7, 1 }
 0x3d4   : > { %3025 = vrot.lane.b32.xlu2 %v2787_v55, %s6652_s24  ;;  %v2948_v6 = vpop.permute.xlu0 %2947 }
 0x3d5   : > { %v3206_v29 = vsel %vm3200_vm7, %v3173_v40, %v2948_v6  ;;  %v2790_v33 = vsel %vm931_vm4, %v2788_v18, %v2789_v62 }
 0x3d6   : > { %v2920_v28 = vpop.permute.xlu2 %2919 }
 0x3d7   : > { %2993 = vrot.lane.b32.xlu1 %v8811_v9, %s6653_s13 }
 0x3d9   : > { %v2980_v12 = vpop.permute.xlu1 %2979 }
 0x3da   : > { %2851 = vrot.lane.b32.xlu0 %v8712_v54, %s6648_s17  ;;  %v3239_v59 = vsel %vm3233_vm6, %v3206_v29, %v2980_v12  ;;  %v11812_v12 = vld [vmem:[#allocation18_spill] sm:$0xff] }
 0x3db   : > { %v3272_v42 = vsel %vm3266_vm5, %v3239_v59, %v3012_v16  ;;  %v2791_v59 = vrot.slane %v11812_v12, 1 }
 0x3dc   : > { %2931 = vrot.lane.b32.xlu2 %v2787_v55, %s6649_s18  ;;  %v2838_v63 = vpop.permute.xlu0 %2837  ;;  %6431 = vmatmul.msk.bf16.gmra.mxu1 %vm3339_vm0, %v3272_v42 }
 0x3dd   : > { %v3110_v53 = vsel %vm3102_vm12, %v3077_v57, %v2838_v63 }
 0x3de   : > { %v3016_v15 = vpop.permute.xlu2 %3015 }
 0x3df   : > { %2895 = vrot.lane.b32.xlu1 %v8811_v9, %s6650_s21 }
 0x3e1   : > { %v2882_v16 = vpop.permute.xlu1 %2881 }
 0x3e2   : > { %2963 = vrot.lane.b32.xlu0 %v8744_v7, %s6651_s23  ;;  %v3143_v9 = vsel %vm3135_vm11, %v3110_v53, %v2882_v16 }
 0x3e3   : > { %v3175_v44 = vsel %vm2018_vm10, %v3143_v9, %v2918_v17  ;;  %v3048_v17 = vsel %vm1319_vm8, %v8585_v11, %v9050_v20  ;;  %v2792_v11 = vrot.slane %v8765_v32, 1  ;;  %v3050_v32 = vsel %vm1319_vm8, %v8621_v52, %v9096_v45 }
 0x3e4   : > { %3027 = vrot.lane.b32.xlu2 %v2790_v33, %s6652_s24  ;;  %v2950_v41 = vpop.permute.xlu0 %2949  ;;  %v3081_v16 = vsel %vm1451_vm13, %v3050_v32, %v9166_v4  ;;  %v2794_v4 = vrot.slane %v8760_v14, 1 }
 0x3e5   : > { %v3208_v60 = vsel %vm3200_vm7, %v3175_v44, %v2950_v41 }
 0x3e6   : > { %v2922_v43 = vpop.permute.xlu2 %2921 }
 0x3e7   : > { %2995 = vrot.lane.b32.xlu1 %v8834_v23, %s6653_s13 }
 0x3e9   : > { %v2982_v56 = vpop.permute.xlu1 %2981 }
 0x3ea   : > { %2820 = vrot.lane.b32.xlu0 %v2787_v55, %s6639_s12  ;;  %v3241_v48 = vsel %vm3233_vm6, %v3208_v60, %v2982_v56  ;;  %v3079_v55 = vsel %vm1451_vm13, %v3048_v17, %v9110_v3  ;;  %v2793_v3 = vsel %vm931_vm4, %v2791_v59, %v2792_v11 }
 0x3eb   : > { %v3274_v30 = vsel %vm3266_vm5, %v3241_v48, %v3014_v2 }
 0x3ec   : > { %2897 = vrot.lane.b32.xlu2 %v8834_v23, %s6650_s21  ;;  %v2840_v13 = vpop.permute.xlu0 %2839  ;;  %6432 = vmatmul.msk.bf16.gmra.mxu1 %vm3339_vm0, %v3274_v30 }
 0x3ed   : > { %v3112_v23 = vsel %vm3102_vm12, %v3079_v55, %v2840_v13  ;;  %v3052_v13 = vsel %vm1319_vm8, %v8493_v0, %v9104_v49 }
 0x3ee   : > { %v3018_v6 = vpop.permute.xlu2 %3017  ;;  %v3083_v17 = vsel %vm1451_vm13, %v3052_v13, %v9175_v39  ;;  %v2798_v39 = vrot.slane %v8831_v31, 1  ;;  %v3054_v31 = vsel %vm1319_vm8, %v8581_v51, %v9062_v19  ;;  %v3058_v13 = vsel %vm1319_vm8, %v8563_v61, %v9116_v35 }
 0x3ef   : > { %2853 = vrot.lane.b32.xlu1 %v8744_v7, %s6648_s17  ;;  %v3085_v11 = vsel %vm1451_vm13, %v3054_v31, %v9122_v27  ;;  %v3056_v27 = vsel %vm1319_vm8, %v8448_v37, %v9108_v5  ;;  %v9393_v37 = vld [vmem:[%s11309_s4] ss:$0 sm:$0xff] }
 0x3f1   : > { %v2884_v40 = vpop.permute.xlu1 %2883 }
 0x3f2   : > { %2933 = vrot.lane.b32.xlu0 %v2790_v33, %s6649_s18  ;;  %v3145_v2 = vsel %vm3135_vm11, %v3112_v23, %v2884_v40  ;;  %v2797_v23 = vrot.slane %v8799_v58, 1 }
 0x3f3   : > { %v3177_v42 = vsel %vm2018_vm10, %v3145_v2, %v2920_v28 }
 0x3f4   : > { %2997 = vrot.lane.b32.xlu2 %v8816_v46, %s6653_s13  ;;  %v2952_v29 = vpop.permute.xlu0 %2951 }
 0x3f5   : > { %v3210_v20 = vsel %vm3200_vm7, %v3177_v42, %v2952_v29  ;;  %v9359_v29 = vsel %vm931_vm4, %v2797_v23, %v2798_v39 }
 0x3f6   : > { %v2924_v63 = vpop.permute.xlu2 %2923 }
 0x3f7   : > { %2965 = vrot.lane.b32.xlu1 %v11812_v12, %s6651_s23 }
 0x3f9   : > { %v2984_v18 = vpop.permute.xlu1 %2983 }
 0x3fa   : > { %3029 = vrot.lane.b32.xlu0 %v2793_v3, %s6652_s24  ;;  %v3243_v62 = vsel %vm3233_vm6, %v3210_v20, %v2984_v18 }
 0x3fb   : > { %v3276_v28 = vsel %vm3266_vm5, %v3243_v62, %v3016_v15 }
 0x3fc   : > { %2855 = vrot.lane.b32.xlu2 %v11812_v12, %s6648_s17  ;;  %v2842_v25 = vpop.permute.xlu0 %2841  ;;  %6433 = vmatmul.msk.bf16.gmra.mxu1 %vm3339_vm0, %v3276_v28 }
 0x3fd   : > { %v3114_v9 = vsel %vm3102_vm12, %v3081_v16, %v2842_v25 }
 0x3fe   : > { %v3020_v57 = vpop.permute.xlu2 %3019 }
 0x3ff   : > { %2822 = vrot.lane.b32.xlu1 %v2790_v33, %s6639_s12 }
 0x401   : > { %v2886_v53 = vpop.permute.xlu1 %2885 }
 0x402   : > { %2899 = vrot.lane.b32.xlu0 %v8816_v46, %s6650_s21  ;;  %v3147_v15 = vsel %vm3135_vm11, %v3114_v9, %v2886_v53  ;;  %v3087_v9 = vsel %vm1451_vm13, %v3056_v27, %v9179_v8 }
 0x403   : > { %v3179_v33 = vsel %vm2018_vm10, %v3147_v15, %v2922_v43  ;;  %v2795_v43 = vrot.slane %v8808_v1, 1 }
 0x404   : > { %2967 = vrot.lane.b32.xlu2 %v8760_v14, %s6651_s23  ;;  %v2954_v41 = vpop.permute.xlu0 %2953 }
 0x405   : > { %v3212_v45 = vsel %vm3200_vm7, %v3179_v33, %v2954_v41  ;;  %v9335_v48 = vsel %vm931_vm4, %v2794_v4, %v2795_v43 }
 0x406   : > { %v2926_v52 = vpop.permute.xlu2 %2925 }
 0x407   : > { %2935 = vrot.lane.b32.xlu1 %v2793_v3, %s6649_s18 }
 0x409   : > { %v2986_v46 = vpop.permute.xlu1 %2985 }
 0x40a   : > { %2999 = vrot.lane.b32.xlu0 %v8846_v34, %s6653_s13  ;;  %v3245_v44 = vsel %vm3233_vm6, %v3212_v45, %v2986_v46 }
 0x40b   : > { %v3278_v56 = vsel %vm3266_vm5, %v3245_v44, %v3018_v6 }
 0x40c   : > { %2824 = vrot.lane.b32.xlu2 %v2793_v3, %s6639_s12  ;;  %v2844_v60 = vpop.permute.xlu0 %2843  ;;  %6434 = vmatmul.msk.bf16.gmra.mxu1 %vm3339_vm0, %v3278_v56 }
 0x40d   : > { %v3116_v6 = vsel %vm3102_vm12, %v3083_v17, %v2844_v60 }
 0x40e   : > { %v3022_v30 = vpop.permute.xlu2 %3021 }
 0x40f   : > { %3031 = vrot.lane.b32.xlu1 %v9335_v48, %s6652_s24 }
 0x411   : > { %v2888_v1 = vpop.permute.xlu1 %2887 }
 0x412   : > { %2857 = vrot.lane.b32.xlu0 %v8760_v14, %s6648_s17  ;;  %v3149_v55 = vsel %vm3135_vm11, %v3116_v6, %v2888_v1 }
 0x413   : > { %v3181_v0 = vsel %vm2018_vm10, %v3149_v55, %v2924_v63 }
 0x414   : > { %2937 = vrot.lane.b32.xlu2 %v9335_v48, %s6649_s18  ;;  %v2956_v40 = vpop.permute.xlu0 %2955 }
 0x415   : > { %v3214_v49 = vsel %vm3200_vm7, %v3181_v0, %v2956_v40  ;;  %v2188_v0 = vpop.f32.mrf.mxu3 }
 0x416   : > { %v2928_v59 = vpop.permute.xlu2 %2927 }
 0x417   : > { %2901 = vrot.lane.b32.xlu1 %v8846_v34, %s6650_s21 }
 0x419   : > { %v2988_v2 = vpop.permute.xlu1 %2987 }
 0x41a   : > { %2969 = vrot.lane.b32.xlu0 %v8799_v58, %s6651_s23  ;;  %v3247_v42 = vsel %vm3233_vm6, %v3214_v49, %v2988_v2 }
 0x41b   : > { %v3280_v34 = vsel %vm3266_vm5, %v3247_v42, %v3020_v57 }
 0x41c   : > { %3033 = vrot.lane.b32.xlu2 %v9359_v29, %s6652_s24  ;;  %v2846_v63 = vpop.permute.xlu0 %2845  ;;  %6435 = vmatmul.msk.bf16.gmra.mxu1 %vm3339_vm0, %v3280_v34 }
 0x41d   : > { %v3118_v20 = vsel %vm3102_vm12, %v3085_v11, %v2846_v63 }
 0x41e   : > { %v3024_v25 = vpop.permute.xlu2 %3023 }
 0x41f   : > { %3001 = vrot.lane.b32.xlu1 %v8871_v10, %s6653_s13 }
 0x421   : > { %v2890_v3 = vpop.permute.xlu1 %2889 }
 0x422   : > { %v3151_v18 = vsel %vm3135_vm11, %v3118_v20, %v2890_v3 }
 0x423   : > { %v3183_v28 = vsel %vm2018_vm10, %v3151_v18, %v2926_v52 }
 0x424   : > { %v2958_v62 = vpop.permute.xlu0 %2957 }
 0x425   : > { %v3216_v57 = vsel %vm3200_vm7, %v3183_v28, %v2958_v62  ;;  %v2190_v28 = vpop.f32.mrf.mxu3 }
 0x426   : > { %v2930_v19 = vpop.permute.xlu2 %2929 }
 0x429   : > { %v2990_v32 = vpop.permute.xlu1 %2989 }
 0x42a   : > { %v3249_v16 = vsel %vm3233_vm6, %v3216_v57, %v2990_v32 }
 0x42b   : > { %v3282_v51 = vsel %vm3266_vm5, %v3249_v16, %v3022_v30  ;;  %v3089_v30 = vsel %vm1451_vm13, %v3058_v13, %v9185_v47 }
 0x42c   : > { %v2848_v53 = vpop.permute.xlu0 %2847  ;;  %6436 = vmatmul.msk.bf16.gmra.mxu1 %vm3339_vm0, %v3282_v51  ;;  %v6620_v51 = vld [vmem:[%s11307_s2] ss:$0 sm:$0xff] }
 0x42d   : > { %v3120_v41 = vsel %vm3102_vm12, %v3087_v9, %v2848_v53  ;;  %v3060_v53 = vsel %vm1319_vm8, %v8644_v38, %v9074_v24 }
 0x42e   : > { %v3026_v46 = vpop.permute.xlu2 %3025  ;;  %v3091_v27 = vsel %vm1451_vm13, %v3060_v53, %v9137_v22 }
 0x431   : > { %v2892_v15 = vpop.permute.xlu1 %2891 }
 0x432   : > { %v3153_v33 = vsel %vm3135_vm11, %v3120_v41, %v2892_v15 }
 0x433   : > { %v3185_v45 = vsel %vm2018_vm10, %v3153_v33, %v2928_v59 }
 0x434   : > { %v2960_v52 = vpop.permute.xlu0 %2959 }
 0x435   : > { %v3218_v4 = vsel %vm3200_vm7, %v3185_v45, %v2960_v52  ;;  %v2189_v45 = vadd.f32 %v6620_v51, %v2188_v0 }
 0x436   : > { %v2932_v6 = vpop.permute.xlu2 %2931 }
 0x439   : > { %v2992_v44 = vpop.permute.xlu1 %2991  ;;  %v3385_v60 = vpop.f32.mrf.mxu1 }
 0x43a   : > { %v3251_v56 = vsel %vm3233_vm6, %v3218_v4, %v2992_v44  ;;  %v3386_v43 = vadd.f32 %v9393_v37, %v3385_v60 }
 0x43b   : > { %v3284_v8 = vsel %vm3266_vm5, %v3251_v56, %v3024_v25 }
 0x43c   : > { %v2850_v5 = vpop.permute.xlu0 %2849  ;;  %6437 = vmatmul.msk.bf16.gmra.mxu1 %vm3339_vm0, %v3284_v8  ;;  %v3465_v55 = vpack.c.bf16 %v3386_v43, %v3386_v43 }
 0x43d   : > { %v3122_v40 = vsel %vm3102_vm12, %v3089_v30, %v2850_v5 }
 0x43e   : > { %v3529_v59 = vunpack.c.l.b16 %v3465_v55  ;;  %v3028_v18 = vpop.permute.xlu2 %3027 }
 0x441   : > { %v2894_v17 = vpop.permute.xlu1 %2893  ;;  %v3387_v1 = vpop.f32.mrf.mxu1 }
 0x442   : > { %v3388_v23 = vadd.f32 %v9393_v37, %v3387_v1  ;;  %v3155_v39 = vsel %vm3135_vm11, %v3122_v40, %v2894_v17  ;;  %v2223_v1 = vmax.f32 %v2189_v45, 0.0 }
 0x443   : > { %v3187_v61 = vsel %vm2018_vm10, %v3155_v39, %v2930_v19  ;;  %v2191_v19 = vadd.f32 %v6620_v51, %v2190_v28 }
 0x444   : > { %v2962_v49 = vpop.permute.xlu0 %2961  ;;  %v3466_v2 = vpack.c.bf16 %v3388_v23, %v3388_v23 }
 0x445   : > { %v3220_v47 = vsel %vm3200_vm7, %v3187_v61, %v2962_v49  ;;  %v2224_v43 = vmax.f32 %v2191_v19, 0.0 }
 0x446   : > { %v3530_v42 = vunpack.c.l.b16 %v3466_v2  ;;  %v2898_v55 = vpop.permute.xlu2 %2897 }
 0x447   : > { %v2256_v49 = vpack.c.bf16 %v2224_v43, %v2224_v43 }
 0x448   : > { %v3561_v35 = vpack.c.b16 %v3530_v42, %v3529_v59 }
 0x449   : > { %v2994_v63 = vpop.permute.xlu1 %2993  ;;  %v3390_v34 = vpop.f32.mrf.mxu1 }
 0x44a   : > { %v3578_v31 = vshrl.u32 %v3561_v35, 16  ;;  %v3253_v11 = vsel %vm3233_vm6, %v3220_v47, %v2994_v63  ;;  %v3581_v25 = vshll.u32 %v3561_v35, 16  ;;  %v3391_v57 = vadd.f32 %v9393_v37, %v3390_v34 }
 0x44b   : > { %v3286_v20 = vsel %vm3266_vm5, %v3253_v11, %v3026_v46  ;;  %v2255_v35 = vpack.c.bf16 %v2223_v1, %v2223_v1  ;;  %v2320_v11 = vunpack.c.l.b16 %v2256_v49 }
 0x44c   : > { %v2852_v3 = vpop.permute.xlu0 %2851  ;;  %v3580_v62 = vrot.slane %v3578_v31, 7  ;;  %6438 = vmatmul.msk.bf16.gmra.mxu1 %vm3339_vm0, %v3286_v20  ;;  %v3467_v46 = vpack.c.bf16 %v3391_v57, %v3391_v57  ;;  %v11813_v57 = vld [vmem:[#allocation61_spill] sm:$0xff] }
 0x44d   : > { %v3124_v4 = vsel %vm3102_vm12, %v3091_v27, %v2852_v3 }
 0x44e   : > { %v3583_v32 = vor.u32 %v3581_v25, %v3580_v62  ;;  %v3737_v16 = vsel %vm6754_vm3, %v3580_v62, 0  ;;  %v3531_v40 = vunpack.c.l.b16 %v3467_v46  ;;  %v2319_v62 = vunpack.c.l.b16 %v2255_v35 }
 0x44f   : > { %v3994_v38 = vrot.slane %v3737_v16, 1  ;;  %v3761_v52 = vshll.u32 %v3737_v16, 16 }
 0x450   : > { %v9424_v9 = vsel %vm6754_vm3, 0, %v3583_v32  ;;  %v11814_v32 = vld [vmem:[#allocation59_spill] sm:$0xff]  ;;  %v2336_v51 = vpack.c.b16 %v2320_v11, %v2319_v62 }
 0x451   : > { %v2896_v15 = vpop.permute.xlu1 %2895  ;;  %4069 = vrot.lane.b32.xlu0 %v9424_v9, %s6634_s26  ;;  %v3392_v41 = vpop.f32.mrf.mxu1  ;;  %v3993_v33 = vrot.slane %v9424_v9, 1  ;;  %v3756_v24 = vshll.u32 %v9424_v9, 16  ;;  %v3754_v5 = vshrl.u32 %v9424_v9, 16  ;;  %v3763_v17 = vrot.slane %v3761_v52, 1  ;;  %v11815_v52 = vld [vmem:[#allocation81_spill] sm:$0xff] }
 0x452   : > { %v3393_v22 = vadd.f32 %v9393_v37, %v3392_v41  ;;  %v3157_v44 = vsel %vm3135_vm11, %v3124_v4, %v2896_v15  ;;  %v1775_v16 = vsel %vm11427_vm14, %v11814_v32, %v11813_v57  ;;  %vm11822_vm14 = vcmask 285696  }
 0x453   : > { %v9434_v56 = vsel %vm931_vm4, %v3993_v33, %v3994_v38  ;;  %v3758_v8 = vrot.slane %v3756_v24, 1  ;;  %v3189_v0 = vsel %vm2018_vm10, %v3157_v44, %v2932_v6  ;;  %v6612_v6 = vunpack.i.l.bf16 %v11809_v36 }
 0x454   : > { %v2964_v60 = vpop.permute.xlu0 %2963  ;;  %v3468_v13 = vpack.c.bf16 %v3393_v22, %v3393_v22  ;;  %4149 = vrot.lane.b32.xlu2 %v9434_v56, %s6636_s28  ;;  %v3062_v36 = vsel %vm1319_vm8, %v8712_v54, %v9120_v50 }
 0x455   : > { %v3759_v30 = vor.u32 %v3758_v8, %v3754_v5  ;;  %v3222_v59 = vsel %vm3200_vm7, %v3189_v0, %v2964_v60  ;;  %v1822_v53 = vsel %vm11426_vm9, %v1775_v16, %v6612_v6  ;;  %v11816_v8 = vld [vmem:[#allocation102_spill] sm:$0xff]  ;;  %v11819_v0 = vld [vmem:[#allocation71_spill] sm:$0xff]  ;;  %vm11820_vm9 = vcmask 244736  }
 0x456   : > { %v3532_v23 = vunpack.c.l.b16 %v3468_v13  ;;  %v1855_v45 = vsel %vm11425_vm1, %v1822_v53, %v11815_v52  ;;  %v2443_v13 = vshrl.u32 %v2336_v51, 16  ;;  %vm11818_vm1 = vcmask 203776  }
 0x457   : > { %v9441_v39 = vsel %vm679_vm2, %v3759_v30, %v3763_v17  ;;  %v1888_v43 = vsel %vm1886_vm15, %v1855_v45, %v11816_v8  ;;  %v11817_v17 = vld [vmem:[#allocation51_spill] sm:$0xff] }
 0x458   : > { %v3562_v2 = vpack.c.b16 %v3532_v23, %v3531_v40  ;;  %4113 = vrot.lane.b32.xlu1 %v9441_v39, %s6635_s27  ;;  %v1921_v1 = vsel %vm11818_vm1, %v1888_v43, %v11817_v17  ;;  %vm11833_vm1 = vcmask 121856  }
 0x459   : > { %v2996_v42 = vpop.permute.xlu1 %2995  ;;  %v3395_v61 = vpop.f32.mrf.mxu1  ;;  %v1954_v49 = vsel %vm11820_vm9, %v1921_v1, %v11819_v0  ;;  %vm11829_vm9 = vcmask 39936  }
 0x45a   : > { %v3585_v47 = vshrl.u32 %v3562_v2, 16  ;;  %v3255_v63 = vsel %vm3233_vm6, %v3222_v59, %v2996_v42  ;;  %v3588_v20 = vshll.u32 %v3562_v2, 16  ;;  %v3396_v54 = vadd.f32 %v9393_v37, %v3395_v61  ;;  %v11821_v42 = vld [vmem:[#allocation5_spill] sm:$0xff] }
 0x45b   : > { %v3288_v31 = vsel %vm3266_vm5, %v3255_v63, %v3028_v18  ;;  %v2998_v18 = vpop.permute.xlu2 %2997  ;;  %v1987_v61 = vsel %vm11822_vm14, %v1954_v49, %v11821_v42  ;;  %v11823_v63 = vld [vmem:[#allocation53_spill] sm:$0xff]  ;;  %vm11831_vm14 = vcmask 80896  }
 0x45c   : > { %v2821_v34 = vpop.permute.xlu0 %2820  ;;  %v3587_v3 = vrot.slane %v3585_v47, 7  ;;  %6439 = vmatmul.msk.bf16.gmra.mxu1 %vm3339_vm0, %v3288_v31  ;;  %v3469_v2 = vpack.c.bf16 %v3396_v54, %v3396_v54  ;;  %v2445_v47 = vrot.slane %v2443_v13, 7 }
 0x45d   : > { %v3093_v50 = vsel %vm1451_vm13, %v3062_v36, %v2821_v34  ;;  %v2020_v34 = vsel %vm2018_vm10, %v1987_v61, %v11823_v63 }
 0x45e   : > { %v3590_v25 = vor.u32 %v3588_v20, %v3587_v3  ;;  %v3738_v28 = vsel %vm6754_vm3, %v3587_v3, 0  ;;  %v3533_v20 = vunpack.c.l.b16 %v3469_v2  ;;  %v2512_v52 = vsel %vm6754_vm3, %v2445_v47, 0 }
 0x45f   : > { %v3997_v33 = vrot.slane %v3738_v28, 1  ;;  %v3773_v24 = vshll.u32 %v3738_v28, 16  ;;  %v2909_v17 = vrot.slane %v2512_v52, 1 }
 0x460   : > { %v9461_v19 = vsel %vm6754_vm3, 0, %v3590_v25 }
 0x461   : > { %v2854_v27 = vpop.permute.xlu1 %2853  ;;  %4181 = vrot.lane.b32.xlu0 %v9461_v19, %s6637_s29  ;;  %v3397_v15 = vpop.f32.mrf.mxu1  ;;  %v3996_v41 = vrot.slane %v9461_v19, 1  ;;  %v3768_v38 = vshll.u32 %v9461_v19, 16  ;;  %v3766_v60 = vshrl.u32 %v9461_v19, 16  ;;  %v3775_v23 = vrot.slane %v3773_v24, 1 }
 0x462   : > { %v3398_v46 = vadd.f32 %v9393_v37, %v3397_v15  ;;  %v3126_v4 = vsel %vm3102_vm12, %v3093_v50, %v2854_v27 }
 0x463   : > { %v9474_v44 = vsel %vm931_vm4, %v3996_v41, %v3997_v33  ;;  %v3770_v5 = vrot.slane %v3768_v38, 1  ;;  %v3159_v59 = vsel %vm3135_vm11, %v3126_v4, %v2898_v55  ;;  %v2446_v55 = vshll.u32 %v2336_v51, 16  ;;  %v2856_v3 = vpop.permute.xlu2 %2855 }
 0x464   : > { %v2934_v22 = vpop.permute.xlu0 %2933  ;;  %v3470_v30 = vpack.c.bf16 %v3398_v46, %v3398_v46  ;;  %4241 = vrot.lane.b32.xlu2 %v9474_v44, %s6639_s12  ;;  %v2871_v46 = vshll.u32 %v2512_v52, 16 }
 0x465   : > { %v3771_v40 = vor.u32 %v3770_v5, %v3766_v60  ;;  %v3191_v6 = vsel %vm2018_vm10, %v3159_v59, %v2934_v22  ;;  %v2448_v16 = vor.u32 %v2446_v55, %v2445_v47 }
 0x466   : > { %v3534_v31 = vunpack.c.l.b16 %v3470_v30  ;;  %v2873_v13 = vrot.slane %v2871_v46, 1  ;;  %v11834_v46 = vld [vmem:[#allocation55_spill] sm:$0xff] }
 0x467   : > { %v9489_v35 = vsel %vm679_vm2, %v3771_v40, %v3775_v23  ;;  %v9507_v51 = vsel %vm6754_vm3, 0, %v2448_v16 }
 0x468   : > { %4211 = vrot.lane.b32.xlu1 %v9489_v35, %s6638_s30  ;;  %v3563_v57 = vpack.c.b16 %v3534_v31, %v3533_v20  ;;  %v2866_v41 = vshll.u32 %v9507_v51, 16  ;;  %v2864_v50 = vshrl.u32 %v9507_v51, 16  ;;  %v2908_v43 = vrot.slane %v9507_v51, 1  ;;  %v11826_v31 = vld [vmem:[#allocation41_spill] sm:$0xff] }
 0x469   : > { %v2966_v11 = vpop.permute.xlu1 %2965  ;;  %4536 = vrot.lane.b32.xlu0 %v2020_v34, %s6643_s22  ;;  %v3400_v23 = vpop.f32.mrf.mxu1 }
 0x46a   : > { %v3224_v62 = vsel %vm3200_vm7, %v3191_v6, %v2966_v11  ;;  %v3592_v53 = vshrl.u32 %v3563_v57, 16  ;;  %v2868_v45 = vrot.slane %v2866_v41, 1  ;;  %v2910_v0 = vsel %vm931_vm4, %v2908_v43, %v2909_v17  ;;  %v11839_v17 = vld [vmem:[#allocation49_spill] sm:$0xff] }
 0x46b   : > { %v3257_v25 = vsel %vm3233_vm6, %v3224_v62, %v2998_v18  ;;  %v11824_v18 = vld [vmem:[#allocation86_spill] sm:$0xff]  ;;  %v2968_v33 = vpop.permute.xlu2 %2967  ;;  %v3066_v6 = vsel %vm1319_vm8, %v11812_v12, %v11826_v31 }
 0x46c   : > { %v3030_v28 = vpop.permute.xlu0 %3029  ;;  %2859 = vrot.lane.b32.xlu2 %v8799_v58, %s6648_s17  ;;  %v3064_v27 = vsel %vm1319_vm8, %v8744_v7, %v11824_v18  ;;  %v3594_v38 = vrot.slane %v3592_v53, 7  ;;  %v2869_v60 = vor.u32 %v2868_v45, %v2864_v50  ;;  %v11827_v18 = vld [vmem:[#allocation78_spill] sm:$0xff] }
 0x46d   : > { %v3290_v32 = vsel %vm3266_vm5, %v3257_v25, %v3030_v28  ;;  %v11832_v45 = vld [vmem:[#allocation90_spill] sm:$0xff] }
 0x46e   : > { %6440 = vmatmul.msk.bf16.gmra.mxu1 %vm3339_vm0, %v3290_v32  ;;  %v2874_v1 = vsel %vm679_vm2, %v2869_v60, %v2873_v13  ;;  %v11837_v13 = vld [vmem:[#allocation54_spill] sm:$0xff] }
 0x470   : > { %2826 = vrot.lane.b32.xlu1 %v9335_v48, %s6639_s12  ;;  %v3595_v48 = vshll.u32 %v3563_v57, 16 }
 0x471   : > { %v2823_v36 = vpop.permute.xlu1 %2822  ;;  %2903 = vrot.lane.b32.xlu0 %v8871_v10, %s6650_s21  ;;  %v3402_v62 = vpop.f32.mrf.mxu1 }
 0x472   : > { %v3095_v24 = vsel %vm1451_vm13, %v3064_v27, %v2823_v36  ;;  %v3597_v54 = vor.u32 %v3595_v48, %v3594_v38  ;;  %v3403_v32 = vadd.f32 %v9393_v37, %v3402_v62  ;;  %v3401_v36 = vadd.f32 %v9393_v37, %v3400_v23  ;;  %v11828_v27 = vld [vmem:[#allocation42_spill] sm:$0xff] }
 0x473   : > { %v3128_v10 = vsel %vm3102_vm12, %v3095_v24, %v2856_v3  ;;  %v11841_v23 = vld [vmem:[#allocation110_spill] sm:$0xff] }
 0x474   : > { %v2900_v15 = vpop.permute.xlu0 %2899  ;;  %2971 = vrot.lane.b32.xlu2 %v9507_v51, %s6651_s23  ;;  %v9530_v5 = vsel %vm6754_vm3, 0, %v3597_v54  ;;  %v3472_v48 = vpack.c.bf16 %v3403_v32, %v3403_v32 }
 0x475   : > { %v3161_v4 = vsel %vm3135_vm11, %v3128_v10, %v2900_v15  ;;  %v3780_v40 = vshll.u32 %v9530_v5, 16  ;;  %v3778_v61 = vshrl.u32 %v9530_v5, 16  ;;  %v3999_v12 = vrot.slane %v9530_v5, 1 }
 0x476   : > { %v1778_v15 = vsel %vm11829_vm9, %v11828_v27, %v11827_v18  ;;  %vm11836_vm9 = vcmask 203776  }
 0x477   : > { %v3782_v42 = vrot.slane %v3780_v40, 1 }
 0x478   : > { %2939 = vrot.lane.b32.xlu1 %v9359_v29, %s6649_s18 }
 0x479   : > { %v2936_v7 = vpop.permute.xlu1 %2935  ;;  %3933 = vrot.lane.b32.xlu0 %v9441_v39, %s6632_s10  ;;  %v2825_v39 = vpop.permute.xlu2 %2824  ;;  %v3783_v34 = vor.u32 %v3782_v42, %v3778_v61  ;;  %v11842_v61 = vmov 0  }
 0x47a   : > { %v3193_v22 = vsel %vm2018_vm10, %v3161_v4, %v2936_v7  ;;  %v3097_v55 = vsel %vm1451_vm13, %v3066_v6, %v2825_v39 }
 0x47b   : > { %v3226_v30 = vsel %vm3200_vm7, %v3193_v22, %v2968_v33  ;;  %v3471_v22 = vpack.c.bf16 %v3401_v36, %v3401_v36 }
 0x47c   : > { %v3000_v8 = vpop.permute.xlu0 %2999  ;;  %4038 = vrot.lane.b32.xlu2 %v9434_v56, %s11825_s25  ;;  %v3739_v56 = vsel %vm6754_vm3, %v3594_v38, 0  ;;  %v11830_v38 = vld [vmem:[#allocation83_spill] sm:$0xff] }
 0x47d   : > { %v3259_v49 = vsel %vm3233_vm6, %v3226_v30, %v3000_v8  ;;  %v3785_v47 = vshll.u32 %v3739_v56, 16  ;;  %v4000_v53 = vrot.slane %v3739_v56, 1  ;;  %v1824_v24 = vsel %vm11831_vm14, %v1778_v15, %v11830_v38  ;;  %v11835_v8 = vld [vmem:[#allocation77_spill] sm:$0xff]  ;;  %v3405_v56 = vpop.f32.mrf.mxu1 }
 0x47e   : > { %v1857_v54 = vsel %vm11833_vm1, %v1824_v24, %v11832_v45  ;;  %vm11838_vm14 = vcmask 244736   ;;  %v3536_v30 = vunpack.c.l.b16 %v3472_v48  ;;  %vm11840_vm1 = vcmask 285696   ;;  %v11845_v45 = vld [vmem:[#allocation52_spill] sm:$0xff] }
 0x47f   : > { %v3787_v20 = vrot.slane %v3785_v47, 1  ;;  %v9574_v33 = vsel %vm931_vm4, %v3999_v12, %v4000_v53  ;;  %v1890_v4 = vsel %vm1886_vm15, %v1857_v54, %v11834_v46  ;;  %vm4669_vm15 = vcmask 1047552  }
 0x480   : > { %3003 = vrot.lane.b32.xlu1 %v2874_v1, %s6653_s13  ;;  %v1923_v43 = vsel %vm11836_vm9, %v1890_v4, %v11835_v8  ;;  %v6557_v8 = vld [vmem:[%s11310_s5 + $0x10] sm:$0xff]  ;;  %vm11849_vm9 = vcmask 48128  }
 0x481   : > { %v3032_v2 = vpop.permute.xlu1 %3031  ;;  %3035 = vrot.lane.b32.xlu0 %v2910_v0, %s6652_s24  ;;  %v2938_v11 = vpop.permute.xlu2 %2937  ;;  %v9560_v57 = vsel %vm679_vm2, %v3783_v34, %v3787_v20  ;;  %v1956_v39 = vsel %vm11838_vm14, %v1923_v43, %v11837_v13  ;;  %v11843_v34 = vld [vmem:[#allocation3_spill] sm:$0xff]  ;;  %v6558_v20 = vld [vmem:[%s11310_s5 + $0x18] sm:$0xff]  ;;  %vm11850_vm14 = vcmask 80896  }
 0x482   : > { %v3292_v59 = vsel %vm3266_vm5, %v3259_v49, %v3032_v2  ;;  %v1989_v40 = vsel %vm11840_vm1, %v1956_v39, %v11839_v17  ;;  %v3535_v2 = vunpack.c.l.b16 %v3471_v22  ;;  %v6556_v39 = vld [vmem:[%s11310_s5 + $0x8] sm:$0xff]  ;;  %vm11851_vm1 = vcmask 97280  }
 0x483   : > { %6441 = vmatmul.msk.bf16.gmra.mxu1 %vm3339_vm0, %v3292_v59  ;;  %v2022_v49 = vsel %vm2018_vm10, %v1989_v40, %v11841_v23 }
 0x484   : > { %4115 = vrot.lane.b32.xlu2 %v9489_v35, %s6635_s27  ;;  %v2858_v63 = vpop.permute.xlu0 %2857  ;;  %v3564_v59 = vpack.c.b16 %v3536_v30, %v3535_v2 }
 0x485   : > { %v3130_v25 = vsel %vm3102_vm12, %v3097_v55, %v2858_v63  ;;  %v3407_v47 = vpop.f32.mrf.mxu1 }
 0x486   : > { %v3602_v63 = vshll.u32 %v3564_v59, 16  ;;  %v3408_v6 = vadd.f32 %v9393_v37, %v3407_v47 }
 0x488   : > { %4071 = vrot.lane.b32.xlu1 %v9461_v19, %s6634_s26 }
 0x489   : > { %v2902_v3 = vpop.permute.xlu1 %2901  ;;  %4151 = vrot.lane.b32.xlu0 %v9474_v44, %s6636_s28  ;;  %v3034_v7 = vpop.permute.xlu2 %3033 }
 0x48a   : > { %v3163_v28 = vsel %vm3135_vm11, %v3130_v25, %v2902_v3 }
 0x48b   : > { %v3195_v16 = vsel %vm2018_vm10, %v3163_v28, %v2938_v11  ;;  %v3406_v11 = vadd.f32 %v9393_v37, %v3405_v56  ;;  %v6654_v28 = vmov 65535  }
 0x48c   : > { %4213 = vrot.lane.b32.xlu2 %v9560_v57, %s6638_s30  ;;  %v2970_v41 = vpop.permute.xlu0 %2969  ;;  %v4670_v12 = vsel %vm931_vm4, 4294967295, %v6654_v28 }
 0x48d   : > { %v3228_v52 = vsel %vm3200_vm7, %v3195_v16, %v2970_v41  ;;  %v4671_v16 = vsel %vm4669_vm15, %v4670_v12, 0  ;;  %vm11852_vm15 = vcmask 113664  }
 0x48e   : > { %v4673_v18 = vand.u32 %v6558_v20, %v4671_v16 }
 0x490   : > { %4183 = vrot.lane.b32.xlu1 %v9530_v5, %s6637_s29  ;;  %4679 = vmatpush.bf16.msrb.mxu2 %v4673_v18 }
 0x491   : > { %v3002_v10 = vpop.permute.xlu1 %3001  ;;  %4243 = vrot.lane.b32.xlu0 %v9574_v33, %s6639_s12 }
 0x492   : > { %v3261_v50 = vsel %vm3233_vm6, %v3228_v52, %v3002_v10  ;;  %v11844_v10 = vld [vmem:[#allocation20_spill] sm:$0xff] }
 0x493   : > { %v3294_v60 = vsel %vm3266_vm5, %v3261_v50, %v3034_v7  ;;  %v2024_v54 = vsel %vm2018_vm10, %v11845_v45, %v11844_v10 }
 0x494   : > { %2828 = vrot.lane.b32.xlu2 %v9359_v29, %s6639_s12  ;;  %6442 = vmatmul.msk.bf16.gmra.mxu1 %vm3339_vm0, %v3294_v60  ;;  %v3599_v29 = vshrl.u32 %v3564_v59, 16 }
 0x495   : > { %4680 = vmatpush.bf16.msrb.mxu2 %v6557_v8 }
 0x496   : > { %v3601_v42 = vrot.slane %v3599_v29, 7 }
 0x498   : > { %4538 = vrot.lane.b32.xlu1 %v2022_v49, %s6643_s22  ;;  %v3604_v31 = vor.u32 %v3602_v63, %v3601_v42  ;;  %v6555_v49 = vld [vmem:[%s11310_s5] sm:$0xff] }
 0x499   : > { %2861 = vrot.lane.b32.xlu0 %v9507_v51, %s6648_s17  ;;  %v3474_v51 = vpack.c.bf16 %v3408_v6, %v3408_v6  ;;  %4681 = vmatpush.bf16.msrb.mxu2 %v6556_v39 }
 0x49b   : > { %v3538_v3 = vunpack.c.l.b16 %v3474_v51 }
 0x49c   : > { %2941 = vrot.lane.b32.xlu2 %v2910_v0, %s6649_s18  ;;  %v3473_v0 = vpack.c.bf16 %v3406_v11, %v3406_v11 }
 0x49d   : > { %4682 = vmatpush.bf16.msrb.mxu2 %v6555_v49 }
 0x49e   : > { %v3537_v62 = vunpack.c.l.b16 %v3473_v0 }
 0x4a0   : > { %2905 = vrot.lane.b32.xlu1 %v2874_v1, %s6650_s21  ;;  %v9615_v1 = vsel %vm6754_vm3, 0, %v3604_v31  ;;  %v3565_v32 = vpack.c.b16 %v3538_v3, %v3537_v62  ;;  %v11846_v62 = vld [vmem:[#allocation75_spill] sm:$0xff] }
 0x4a1   : > { %2973 = vrot.lane.b32.xlu0 %v11842_v61, %s6651_s23  ;;  %v3792_v55 = vshll.u32 %v9615_v1, 16  ;;  %v3790_v53 = vshrl.u32 %v9615_v1, 16  ;;  %v4002_v50 = vrot.slane %v9615_v1, 1 }
 0x4a2   : > { %v3606_v15 = vshrl.u32 %v3565_v32, 16  ;;  %v3609_v7 = vshll.u32 %v3565_v32, 16 }
 0x4a3   : > { %v3794_v25 = vrot.slane %v3792_v55, 1 }
 0x4a4   : > { %3005 = vrot.lane.b32.xlu2 %v11843_v34, %s6653_s13  ;;  %v3608_v48 = vrot.slane %v3606_v15, 7  ;;  %s6655_s13 = smov 80  }
 0x4a5   : > { %v3795_v27 = vor.u32 %v3794_v25, %v3790_v53 }
 0x4a6   : > { %v3611_v46 = vor.u32 %v3609_v7, %v3608_v48 }
 0x4a8   : > { %3935 = vrot.lane.b32.xlu1 %v9489_v35, %s6632_s10  ;;  %v3740_v35 = vsel %vm6754_vm3, %v3601_v42, 0  ;;  %v9666_v17 = vsel %vm6754_vm3, 0, %v3611_v46 }
 0x4a9   : > { %4040 = vrot.lane.b32.xlu0 %v9474_v44, %s11825_s25  ;;  %v3410_v44 = vpop.f32.mrf.mxu1  ;;  %v3797_v36 = vshll.u32 %v3740_v35, 16  ;;  %v4003_v22 = vrot.slane %v3740_v35, 1  ;;  %v3804_v23 = vshll.u32 %v9666_v17, 16  ;;  %v3802_v63 = vshrl.u32 %v9666_v17, 16 }
 0x4aa   : > { %v3411_v43 = vadd.f32 %v9393_v37, %v3410_v44  ;;  %v11847_v44 = vld [vmem:[#allocation114_spill] sm:$0xff]  ;;  %v4005_v32 = vrot.slane %v9666_v17, 1 }
 0x4ab   : > { %v3799_v38 = vrot.slane %v3797_v36, 1  ;;  %v9655_v13 = vsel %vm931_vm4, %v4002_v50, %v4003_v22  ;;  %v3806_v42 = vrot.slane %v3804_v23, 1  ;;  %v2026_v25 = vsel %vm2018_vm10, %v11847_v44, %v11846_v62  ;;  %v11848_v36 = vld [vmem:[#allocation118_spill] sm:$0xff]  ;;  %v11856_v62 = vld [vmem:[#allocation89_spill] sm:$0xff] }
 0x4ac   : > { %4073 = vrot.lane.b32.xlu2 %v9530_v5, %s6634_s26  ;;  %v3475_v40 = vpack.c.bf16 %v3411_v43, %v3411_v43 }
 0x4ad   : > { %v9638_v24 = vsel %vm679_vm2, %v3795_v27, %v3799_v38  ;;  %v3807_v11 = vor.u32 %v3806_v42, %v3802_v63 }
 0x4ae   : > { %v9633_v41 = vpop.permute.xlu2 %4149  ;;  %v3539_v59 = vunpack.c.l.b16 %v3475_v40 }
 0x4b0   : > { %3037 = vrot.lane.b32.xlu1 %v11843_v34, %s6652_s24 }
 0x4b1   : > { %4117 = vrot.lane.b32.xlu0 %v9560_v57, %s6635_s27  ;;  %v3412_v52 = vpop.f32.mrf.mxu1 }
 0x4b2   : > { %v3413_v4 = vadd.f32 %v9393_v37, %v3412_v52 }
 0x4b4   : > { %4185 = vrot.lane.b32.xlu2 %v9615_v1, %s6637_s29  ;;  %v3476_v30 = vpack.c.bf16 %v3413_v4, %v3413_v4 }
 0x4b6   : > { %v3540_v2 = vunpack.c.l.b16 %v3476_v30 }
 0x4b8   : > { %4153 = vrot.lane.b32.xlu1 %v9574_v33, %s6636_s28  ;;  %v3566_v47 = vpack.c.b16 %v3540_v2, %v3539_v59 }
 0x4b9   : > { %4215 = vrot.lane.b32.xlu0 %v9638_v24, %s6638_s30  ;;  %v3415_v29 = vpop.f32.mrf.mxu1 }
 0x4ba   : > { %v3613_v51 = vshrl.u32 %v3566_v47, 16  ;;  %v3616_v28 = vshll.u32 %v3566_v47, 16 }
 0x4bc   : > { %4540 = vrot.lane.b32.xlu2 %v2024_v54, %s6643_s22  ;;  %v3615_v3 = vrot.slane %v3613_v51, 7 }
 0x4be   : > { %v9648_v60 = vpop.permute.xlu2 %4241  ;;  %v3618_v16 = vor.u32 %v3616_v28, %v3615_v3  ;;  %v3742_v30 = vsel %vm6754_vm3, %v3615_v3, 0 }
 0x4bf   : > { %v3821_v59 = vshll.u32 %v3742_v30, 16 }
 0x4c0   : > { %4245 = vrot.lane.b32.xlu1 %v9655_v13, %s6639_s12  ;;  %v9717_v54 = vsel %vm6754_vm3, 0, %v3618_v16 }
 0x4c1   : > { %3937 = vrot.lane.b32.xlu0 %v9560_v57, %s6632_s10  ;;  %v3741_v57 = vsel %vm6754_vm3, %v3608_v48, 0  ;;  %v3417_v20 = vpop.f32.mrf.mxu1  ;;  %v3416_v48 = vadd.f32 %v9393_v37, %v3415_v29 }
 0x4c2   : > { %v3809_v31 = vshll.u32 %v3741_v57, 16  ;;  %v3418_v53 = vadd.f32 %v9393_v37, %v3417_v20  ;;  %v4006_v27 = vrot.slane %v3741_v57, 1  ;;  %v3814_v57 = vshrl.u32 %v9717_v54, 16 }
 0x4c3   : > { %v4070_v6 = vpop.permute.xlu0 %4069  ;;  %v3477_v46 = vpack.c.bf16 %v3416_v48, %v3416_v48 }
 0x4c4   : > { %4075 = vrot.lane.b32.xlu2 %v9615_v1, %s6634_s26  ;;  %v3811_v55 = vrot.slane %v3809_v31, 1  ;;  %v4332_v18 = vsel %vm11849_vm9, %v11848_v36, %v4070_v6  ;;  %v9707_v52 = vsel %vm931_vm4, %v4005_v32, %v4006_v27  ;;  %v3478_v10 = vpack.c.bf16 %v3418_v53, %v3418_v53  ;;  %v11854_v6 = vld [vmem:[#allocation76_spill] sm:$0xff] }
 0x4c5   : > { %vm4635_vm9 = vcmask 515072   ;;  %v3541_v40 = vunpack.c.l.b16 %v3477_v46  ;;  %v3823_v31 = vrot.slane %v3821_v59, 1  ;;  %v4009_v53 = vrot.slane %v3742_v30, 1 }
 0x4c6   : > { %v9674_v56 = vpop.permute.xlu2 %2859 }
 0x4c8   : > { %4042 = vrot.lane.b32.xlu1 %v9574_v33, %s11825_s25  ;;  %v9690_v33 = vsel %vm679_vm2, %v3807_v11, %v3811_v55 }
 0x4c9   : > { %4119 = vrot.lane.b32.xlu0 %v9638_v24, %s6635_s27  ;;  %v3420_v23 = vpop.f32.mrf.mxu1 }
 0x4ca   : > { %v4114_v35 = vpop.permute.xlu1 %4113  ;;  %v3421_v27 = vadd.f32 %v9393_v37, %v3420_v23 }
 0x4cb   : > { %v4364_v15 = vsel %vm1319_vm8, %v4332_v18, %v4114_v35  ;;  %v11855_v35 = vld [vmem:[#allocation15_spill] sm:$0xff] }
 0x4cc   : > { %4187 = vrot.lane.b32.xlu2 %v9666_v17, %s6637_s29  ;;  %v4396_v45 = vsel %vm11850_vm14, %v4364_v15, %v9633_v41  ;;  %v3816_v41 = vshll.u32 %v9717_v54, 16  ;;  %vm11853_vm14 = vcmask 146432   ;;  %v2028_v44 = vsel %vm2018_vm10, %v11856_v62, %v11855_v35 }
 0x4ce   : > { %v9685_v0 = vpop.permute.xlu2 %2971 }
 0x4d0   : > { %4155 = vrot.lane.b32.xlu1 %v9655_v13, %s6636_s28 }
 0x4d1   : > { %4217 = vrot.lane.b32.xlu0 %v9690_v33, %s6638_s30  ;;  %v3422_v3 = vpop.f32.mrf.mxu1 }
 0x4d2   : > { %v3423_v16 = vadd.f32 %v9393_v37, %v3422_v3  ;;  %v11861_v3 = vld [vmem:[#allocation82_spill] sm:$0xff] }
 0x4d3   : > { %v4182_v12 = vpop.permute.xlu0 %4181 }
 0x4d4   : > { %4542 = vrot.lane.b32.xlu2 %v2026_v25, %s6643_s22  ;;  %v4428_v7 = vsel %vm11851_vm1, %v4396_v45, %v4182_v12  ;;  %v4008_v12 = vrot.slane %v9717_v54, 1  ;;  %vm11857_vm1 = vcmask 15360  }
 0x4d6   : > { %v9703_v38 = vpop.permute.xlu2 %4038  ;;  %v9766_v48 = vsel %vm931_vm4, %v4008_v12, %v4009_v53 }
 0x4d8   : > { %4247 = vrot.lane.b32.xlu1 %v9707_v52, %s6639_s12 }
 0x4d9   : > { %3939 = vrot.lane.b32.xlu0 %v9638_v24, %s6632_s10  ;;  %v3542_v24 = vunpack.c.l.b16 %v3478_v10 }
 0x4da   : > { %v4212_v50 = vpop.permute.xlu1 %4211 }
 0x4db   : > { %v4459_v4 = vsel %vm11852_vm15, %v4428_v7, %v4212_v50  ;;  %v4537_v22 = vpop.permute.xlu0 %4536  ;;  %v3567_v49 = vpack.c.b16 %v3542_v24, %v3541_v40  ;;  %v3479_v50 = vpack.c.bf16 %v3421_v27, %v3421_v27  ;;  %vm11858_vm15 = vcmask 31744  }
 0x4dc   : > { %v4490_v8 = vsel %vm1451_vm13, %v4459_v4, %v9648_v60  ;;  %4077 = vrot.lane.b32.xlu2 %v9666_v17, %s6634_s26  ;;  %v3818_v60 = vrot.slane %v3816_v41, 1 }
 0x4dd   : > { %v4569_v43 = vsel %vm11853_vm14, %v4490_v8, %v4537_v22  ;;  %v3620_v47 = vshrl.u32 %v3567_v49, 16  ;;  %v3623_v25 = vshll.u32 %v3567_v49, 16  ;;  %vm11859_vm14 = vcmask 48128  }
 0x4de   : > { %v9727_v39 = vpop.permute.xlu2 %4115  ;;  %6461 = vmatmul.msk.bf16.vlgmr.msrb.gmra.mxu2 %vm4635_vm9, %v4569_v43  ;;  %v3819_v42 = vor.u32 %v3818_v60, %v3814_v57  ;;  %v3425_v43 = vpop.f32.mrf.mxu1 }
 0x4df   : > { %v3622_v55 = vrot.slane %v3620_v47, 7 }
 0x4e0   : > { %4044 = vrot.lane.b32.xlu1 %v9655_v13, %s11825_s25  ;;  %v3068_v13 = vsel %vm1319_vm8, %v8760_v14, %v11854_v6  ;;  %v9748_v51 = vsel %vm679_vm2, %v3819_v42, %v3823_v31 }
 0x4e1   : > { %4121 = vrot.lane.b32.xlu0 %v9690_v33, %s6635_s27  ;;  %v3625_v32 = vor.u32 %v3623_v25, %v3622_v55  ;;  %v3743_v24 = vsel %vm6754_vm3, %v3622_v55, 0  ;;  %v11860_v55 = vld [vmem:[#allocation97_spill] sm:$0xff] }
 0x4e2   : > { %v2827_v2 = vpop.permute.xlu1 %2826  ;;  %v4012_v12 = vrot.slane %v3743_v24, 1 }
 0x4e3   : > { %v2904_v29 = vpop.permute.xlu0 %2903  ;;  %v3099_v11 = vsel %vm1451_vm13, %v3068_v13, %v2827_v2  ;;  %v9774_v10 = vsel %vm6754_vm3, 0, %v3625_v32  ;;  %v3833_v2 = vshll.u32 %v3743_v24, 16 }
 0x4e4   : > { %4189 = vrot.lane.b32.xlu2 %v9717_v54, %s6637_s29  ;;  %v3132_v14 = vsel %vm3102_vm12, %v3099_v11, %v9674_v56  ;;  %v3480_v56 = vpack.c.bf16 %v3423_v16, %v3423_v16  ;;  %v3828_v8 = vshll.u32 %v9774_v10, 16  ;;  %v3826_v49 = vshrl.u32 %v9774_v10, 16 }
 0x4e5   : > { %v3165_v36 = vsel %vm3135_vm11, %v3132_v14, %v2904_v29  ;;  %v3426_v16 = vadd.f32 %v9393_v37, %v3425_v43 }
 0x4e6   : > { %v9739_v63 = vpop.permute.xlu2 %4213  ;;  %v3830_v30 = vrot.slane %v3828_v8, 1  ;;  %v3427_v13 = vpop.f32.mrf.mxu1 }
 0x4e8   : > { %4157 = vrot.lane.b32.xlu1 %v9707_v52, %s6636_s28 }
 0x4e9   : > { %4219 = vrot.lane.b32.xlu0 %v9748_v51, %s6638_s30 }
 0x4ea   : > { %v2940_v20 = vpop.permute.xlu1 %2939 }
 0x4eb   : > { %v3934_v28 = vpop.permute.xlu0 %3933  ;;  %v3197_v15 = vsel %vm2018_vm10, %v3165_v36, %v2940_v20  ;;  %v2030_v20 = vsel %vm2018_vm10, %v11861_v3, %v11860_v55 }
 0x4ec   : > { %4544 = vrot.lane.b32.xlu2 %v2028_v44, %s6643_s22  ;;  %v3230_v7 = vsel %vm3200_vm7, %v3197_v15, %v9685_v0  ;;  %v3543_v0 = vunpack.c.l.b16 %v3479_v50  ;;  %v4272_v23 = vsel %vm11857_vm1, %v9424_v9, %v3934_v28  ;;  %v3835_v9 = vrot.slane %v3833_v2, 1  ;;  %v11866_v2 = vld [vmem:[#allocation12_spill] sm:$0xff] }
 0x4ed   : > { %v4302_v59 = vsel %vm11858_vm15, %v4272_v23, %v9703_v38  ;;  %vm11862_vm1 = vcmask 80896   ;;  %v4011_v44 = vrot.slane %v9774_v10, 1  ;;  %vm11863_vm15 = vcmask 97280  }
 0x4ee   : > { %v9761_v18 = vpop.permute.xlu2 %2828  ;;  %v3428_v28 = vadd.f32 %v9393_v37, %v3427_v13  ;;  %v11867_v13 = vld [vmem:[#allocation108_spill] sm:$0xff] }
 0x4ef   : > { %v9825_v36 = vsel %vm931_vm4, %v4011_v44, %v4012_v12 }
 0x4f0   : > { %4249 = vrot.lane.b32.xlu1 %v9766_v48, %s6639_s12  ;;  %v3482_v27 = vpack.c.bf16 %v3428_v28, %v3428_v28 }
 0x4f1   : > { %3941 = vrot.lane.b32.xlu0 %v9690_v33, %s6632_s10  ;;  %v3544_v33 = vunpack.c.l.b16 %v3480_v56 }
 0x4f2   : > { %v3004_v45 = vpop.permute.xlu1 %3003 }
 0x4f3   : > { %v3263_v46 = vsel %vm3233_vm6, %v3230_v7, %v3004_v45  ;;  %v3036_v4 = vpop.permute.xlu0 %3035  ;;  %v3568_v40 = vpack.c.b16 %v3544_v33, %v3543_v0  ;;  %v3481_v7 = vpack.c.bf16 %v3426_v16, %v3426_v16  ;;  %v3430_v33 = vpop.f32.mrf.mxu1 }
 0x4f4   : > { %v3296_v22 = vsel %vm3266_vm5, %v3263_v46, %v3036_v4  ;;  %4079 = vrot.lane.b32.xlu2 %v9717_v54, %s6634_s26  ;;  %v3546_v4 = vunpack.c.l.b16 %v3482_v27 }
 0x4f5   : > { %6443 = vmatmul.msk.bf16.gmra.mxu1 %vm3339_vm0, %v3296_v22  ;;  %v3627_v29 = vshrl.u32 %v3568_v40, 16  ;;  %v3630_v35 = vshll.u32 %v3568_v40, 16  ;;  %v3545_v8 = vunpack.c.l.b16 %v3481_v7 }
 0x4f6   : > { %v9784_v41 = vpop.permute.xlu2 %2941 }
 0x4f7   : > { %v3629_v38 = vrot.slane %v3627_v29, 7  ;;  %v3569_v0 = vpack.c.b16 %v3546_v4, %v3545_v8 }
 0x4f8   : > { %4046 = vrot.lane.b32.xlu1 %v9707_v52, %s11825_s25  ;;  %v3831_v52 = vor.u32 %v3830_v30, %v3826_v49 }
 0x4f9   : > { %4123 = vrot.lane.b32.xlu0 %v9748_v51, %s6635_s27  ;;  %v3632_v14 = vor.u32 %v3630_v35, %v3629_v38  ;;  %v3744_v22 = vsel %vm6754_vm3, %v3629_v38, 0  ;;  %v3634_v49 = vshrl.u32 %v3569_v0, 16  ;;  %v3637_v55 = vshll.u32 %v3569_v0, 16 }
 0x4fa   : > { %v4072_v60 = vpop.permute.xlu1 %4071  ;;  %v9807_v6 = vsel %vm679_vm2, %v3831_v52, %v3835_v9  ;;  %v3845_v40 = vshll.u32 %v3744_v22, 16  ;;  %v4015_v44 = vrot.slane %v3744_v22, 1 }
 0x4fb   : > { %v4152_v57 = vpop.permute.xlu0 %4151  ;;  %v4334_v42 = vsel %vm11859_vm14, %v4302_v59, %v4072_v60  ;;  %vm11864_vm14 = vcmask 113664   ;;  %v9833_v15 = vsel %vm6754_vm3, 0, %v3632_v14  ;;  %v3636_v9 = vrot.slane %v3634_v49, 7 }
 0x4fc   : > { %4191 = vrot.lane.b32.xlu2 %v9774_v10, %s6637_s29  ;;  %v4366_v31 = vsel %vm1319_vm8, %v4334_v42, %v9727_v39  ;;  %v3840_v46 = vshll.u32 %v9833_v15, 16  ;;  %v3838_v30 = vshrl.u32 %v9833_v15, 16  ;;  %v3847_v59 = vrot.slane %v3845_v40, 1 }
 0x4fd   : > { %v4398_v62 = vsel %vm11862_vm1, %v4366_v31, %v4152_v57  ;;  %vm11865_vm1 = vcmask 146432   ;;  %v3070_v57 = vsel %vm1319_vm8, %v8799_v58, %v11866_v2  ;;  %v3432_v58 = vpop.f32.mrf.mxu1  ;;  %v3431_v14 = vadd.f32 %v9393_v37, %v3430_v33 }
 0x4fe   : > { %v9800_v47 = vpop.permute.xlu2 %3005  ;;  %v3842_v24 = vrot.slane %v3840_v46, 1  ;;  %v3101_v52 = vsel %vm1451_vm13, %v3070_v57, %v9761_v18 }
 0x4ff   : > { %v3483_v27 = vpack.c.bf16 %v3431_v14, %v3431_v14 }
 0x500   : > { %4159 = vrot.lane.b32.xlu1 %v9766_v48, %s6636_s28  ;;  %v3843_v60 = vor.u32 %v3842_v24, %v3838_v30 }
 0x501   : > { %4221 = vrot.lane.b32.xlu0 %v9807_v6, %s6638_s30  ;;  %v3547_v46 = vunpack.c.l.b16 %v3483_v27 }
 0x502   : > { %v4184_v11 = vpop.permute.xlu1 %4183  ;;  %v9863_v42 = vsel %vm679_vm2, %v3843_v60, %v3847_v59 }
 0x503   : > { %v4244_v39 = vpop.permute.xlu0 %4243  ;;  %v4430_v25 = vsel %vm11863_vm15, %v4398_v62, %v4184_v11  ;;  %v11868_v11 = vld [vmem:[#allocation93_spill] sm:$0xff]  ;;  %v3639_v62 = vor.u32 %v3637_v55, %v3636_v9  ;;  %vm11872_vm15 = vcmask 80896  }
 0x504   : > { %4546 = vrot.lane.b32.xlu2 %v2030_v20, %s6643_s22  ;;  %v4461_v53 = vsel %vm11864_vm14, %v4430_v25, %v9739_v63  ;;  %v2032_v18 = vsel %vm2018_vm10, %v11868_v11, %v11867_v13  ;;  %v4014_v20 = vrot.slane %v9833_v15, 1  ;;  %vm11873_vm14 = vcmask 97280  }
 0x505   : > { %v4492_v56 = vsel %vm1451_vm13, %v4461_v53, %v4244_v39  ;;  %v3433_v39 = vadd.f32 %v9393_v37, %v3432_v58  ;;  %v3435_v22 = vpop.f32.mrf.mxu1  ;;  %v11876_v58 = vld [vmem:[#allocation117_spill] sm:$0xff] }
 0x506   : > { %v9819_v32 = vpop.permute.xlu2 %4073  ;;  %v9881_v12 = vsel %vm931_vm4, %v4014_v20, %v4015_v44  ;;  %v9939_v20 = vld [vmem:[%s11309_s4] ss:$0 sm:$0xff] }
 0x507   : > { %v3484_v16 = vpack.c.bf16 %v3433_v39, %v3433_v39  ;;  %v3436_v44 = vadd.f32 %v9939_v20, %v3435_v22 }
 0x508   : > { %4251 = vrot.lane.b32.xlu1 %v9825_v36, %s6639_s12 }
 0x509   : > { %3943 = vrot.lane.b32.xlu0 %v9748_v51, %s6632_s10 }
 0x50a   : > { %v4539_v45 = vpop.permute.xlu1 %4538 }
 0x50b   : > { %v2862_v50 = vpop.permute.xlu0 %2861  ;;  %v4571_v63 = vsel %vm11865_vm1, %v4492_v56, %v4539_v45  ;;  %vm11874_vm1 = vcmask 113664  }
 0x50c   : > { %4081 = vrot.lane.b32.xlu2 %v9774_v10, %s6634_s26  ;;  %6462 = vmatmul.msk.bf16.gmra.mxu2 %vm4635_vm9, %v4571_v63  ;;  %v3134_v29 = vsel %vm3102_vm12, %v3101_v52, %v2862_v50  ;;  %vm11869_vm12 = vcmask 15360   ;;  %v3548_v50 = vunpack.c.l.b16 %v3484_v16 }
 0x50d   : > { %v3437_v52 = vpop.f32.mrf.mxu1 }
 0x50e   : > { %v9841_v51 = vpop.permute.xlu2 %4185  ;;  %v3570_v8 = vpack.c.b16 %v3548_v50, %v3547_v46 }
 0x510   : > { %4048 = vrot.lane.b32.xlu1 %v9766_v48, %s11825_s25  ;;  %v3641_v60 = vshrl.u32 %v3570_v8, 16  ;;  %v3644_v13 = vshll.u32 %v3570_v8, 16 }
 0x511   : > { %4125 = vrot.lane.b32.xlu0 %v9807_v6, %s6635_s27 }
 0x512   : > { %v2906_v43 = vpop.permute.xlu1 %2905  ;;  %v3643_v59 = vrot.slane %v3641_v60, 7 }
 0x513   : > { %v2974_v23 = vpop.permute.xlu0 %2973  ;;  %v3167_v31 = vsel %vm3135_vm11, %v3134_v29, %v2906_v43 }
 0x514   : > { %4193 = vrot.lane.b32.xlu2 %v9833_v15, %s6637_s29  ;;  %v3199_v35 = vsel %vm2018_vm10, %v3167_v31, %v9784_v41  ;;  %v9889_v41 = vsel %vm6754_vm3, 0, %v3639_v62  ;;  %v11875_v31 = vld [vmem:[#allocation88_spill] sm:$0xff] }
 0x515   : > { %v3232_v28 = vsel %vm3200_vm7, %v3199_v35, %v2974_v23  ;;  %v3850_v0 = vshrl.u32 %v9889_v41, 16  ;;  %v3438_v35 = vadd.f32 %v9939_v20, %v3437_v52  ;;  %v11885_v52 = vld [vmem:[#allocation38_spill] sm:$0xff] }
 0x516   : > { %v9855_v48 = vpop.permute.xlu2 %4540  ;;  %v3265_v37 = vsel %vm3233_vm6, %v3232_v28, %v9800_v47  ;;  %v3745_v47 = vsel %vm6754_vm3, %v3636_v9, 0  ;;  %vm11870_vm6 = vcmask 31744  }
 0x517   : > { %v3857_v43 = vshll.u32 %v3745_v47, 16  ;;  %v4018_v62 = vrot.slane %v3745_v47, 1  ;;  %v3440_v47 = vpop.f32.mrf.mxu1 }
 0x518   : > { %4161 = vrot.lane.b32.xlu1 %v9825_v36, %s6636_s28 }
 0x519   : > { %4223 = vrot.lane.b32.xlu0 %v9863_v42, %s6638_s30  ;;  %v3859_v2 = vrot.slane %v3857_v43, 1 }
 0x51a   : > { %v3936_v38 = vpop.permute.xlu1 %3935 }
 0x51b   : > { %v4041_v3 = vpop.permute.xlu0 %4040  ;;  %v4274_v7 = vsel %vm11869_vm12, %v9461_v19, %v3936_v38  ;;  %v2034_v38 = vsel %vm2018_vm10, %v11876_v58, %v11875_v31  ;;  %vm11877_vm12 = vcmask 146432  }
 0x51c   : > { %4548 = vrot.lane.b32.xlu2 %v2032_v18, %s6643_s22  ;;  %v4304_v4 = vsel %vm11870_vm6, %v4274_v7, %v4041_v3  ;;  %v4017_v18 = vrot.slane %v9889_v41, 1  ;;  %v3646_v3 = vor.u32 %v3644_v13, %v3643_v59  ;;  %vm11878_vm6 = vcmask 15360  }
 0x51e   : > { %v9876_v25 = vpop.permute.xlu2 %4075  ;;  %v9947_v14 = vsel %vm931_vm4, %v4017_v18, %v4018_v62  ;;  %v9955_v28 = vsel %vm6754_vm3, 0, %v3646_v3 }
 0x51f   : > { %v3442_v60 = vpop.f32.mrf.mxu1  ;;  %v4020_v58 = vrot.slane %v9955_v28, 1 }
 0x520   : > { %4253 = vrot.lane.b32.xlu1 %v9881_v12, %s6639_s12 }
 0x521   : > { %3945 = vrot.lane.b32.xlu0 %v9807_v6, %s6632_s10  ;;  %v3852_v6 = vshll.u32 %v9889_v41, 16 }
 0x522   : > { %v3038_v53 = vpop.permute.xlu1 %3037 }
 0x523   : > { %v3298_v56 = vsel %vm3266_vm5, %v3265_v37, %v3038_v53  ;;  %v4118_v45 = vpop.permute.xlu0 %4117  ;;  %v3854_v19 = vrot.slane %v3852_v6, 1  ;;  %v3485_v53 = vpack.c.bf16 %v3436_v44, %v3436_v44 }
 0x524   : > { %4083 = vrot.lane.b32.xlu2 %v9833_v15, %s6634_s26  ;;  %6444 = vmatmul.msk.bf16.gmra.mxu1 %vm3339_vm0, %v3298_v56  ;;  %vm11871_vm0 = vcmask 48128   ;;  %v3864_v56 = vshll.u32 %v9955_v28, 16 }
 0x525   : > { %v4336_v33 = vsel %vm11871_vm0, %v4304_v4, %v9819_v32  ;;  %vm11879_vm0 = vcmask 31744   ;;  %v3549_v50 = vunpack.c.l.b16 %v3485_v53 }
 0x526   : > { %v9900_v63 = vpop.permute.xlu2 %4187  ;;  %v4368_v30 = vsel %vm1319_vm8, %v4336_v33, %v4118_v45 }
 0x528   : > { %4050 = vrot.lane.b32.xlu1 %v9825_v36, %s11825_s25  ;;  %v3855_v36 = vor.u32 %v3854_v19, %v3850_v0  ;;  %v3862_v19 = vshrl.u32 %v9955_v28, 16 }
 0x529   : > { %4127 = vrot.lane.b32.xlu0 %v9863_v42, %s6635_s27 }
 0x52a   : > { %v4154_v24 = vpop.permute.xlu1 %4153  ;;  %v9923_v57 = vsel %vm679_vm2, %v3855_v36, %v3859_v2 }
 0x52b   : > { %v4216_v40 = vpop.permute.xlu0 %4215  ;;  %v4400_v23 = vsel %vm11872_vm15, %v4368_v30, %v4154_v24  ;;  %vm11880_vm15 = vcmask 48128  }
 0x52c   : > { %4195 = vrot.lane.b32.xlu2 %v9889_v41, %s6637_s29  ;;  %v4432_v32 = vsel %vm11873_vm14, %v4400_v23, %v9841_v51  ;;  %vm11881_vm14 = vcmask 80896  }
 0x52d   : > { %v4463_v29 = vsel %vm11874_vm1, %v4432_v32, %v4216_v40  ;;  %vm11882_vm1 = vcmask 97280  }
 0x52e   : > { %v9916_v49 = vpop.permute.xlu2 %4542 }
 0x530   : > { %4163 = vrot.lane.b32.xlu1 %v9881_v12, %s6636_s28 }
 0x531   : > { %4225 = vrot.lane.b32.xlu0 %v9923_v57, %s6638_s30 }
 0x532   : > { %v4246_v9 = vpop.permute.xlu1 %4245 }
 0x533   : > { %v4494_v51 = vsel %vm1451_vm13, %v4463_v29, %v4246_v9  ;;  %v3938_v11 = vpop.permute.xlu0 %3937 }
 0x534   : > { %4550 = vrot.lane.b32.xlu2 %v2034_v38, %s6643_s22  ;;  %v4573_v55 = vsel %vm11877_vm12, %v4494_v51, %v9855_v48  ;;  %v3486_v48 = vpack.c.bf16 %v3438_v35, %v3438_v35  ;;  %v4276_v27 = vsel %vm11878_vm6, %v9530_v5, %v3938_v11  ;;  %v3866_v5 = vrot.slane %v3864_v56, 1 }
 0x535   : > { %6463 = vmatmul.msk.bf16.gmra.mxu2 %vm4635_vm9, %v4573_v55  ;;  %vm11883_vm12 = vcmask 113664   ;;  %vm11886_vm6 = vcmask 146432   ;;  %v3443_v51 = vadd.f32 %v9939_v20, %v3442_v60  ;;  %v3441_v55 = vadd.f32 %v9939_v20, %v3440_v47  ;;  %v11894_v60 = vld [vmem:[#allocation45_spill] sm:$0xff] }
 0x536   : > { %v9943_v39 = vpop.permute.xlu2 %4077  ;;  %v3550_v45 = vunpack.c.l.b16 %v3486_v48 }
 0x537   : > { %v3488_v35 = vpack.c.bf16 %v3443_v51, %v3443_v51  ;;  %v3487_v44 = vpack.c.bf16 %v3441_v55, %v3441_v55 }
 0x538   : > { %4255 = vrot.lane.b32.xlu1 %v9947_v14, %s6639_s12  ;;  %v3571_v4 = vpack.c.b16 %v3550_v45, %v3549_v50 }
 0x539   : > { %3947 = vrot.lane.b32.xlu0 %v9863_v42, %s6632_s10  ;;  %v3746_v42 = vsel %vm6754_vm3, %v3643_v59, 0  ;;  %v11884_v59 = vld [vmem:[#allocation43_spill] sm:$0xff]  ;;  %v3551_v45 = vunpack.c.l.b16 %v3487_v44 }
 0x53a   : > { %v4043_v16 = vpop.permute.xlu1 %4042  ;;  %v3869_v8 = vshll.u32 %v3746_v42, 16  ;;  %v3648_v43 = vshrl.u32 %v3571_v4, 16  ;;  %v2036_v29 = vsel %vm2018_vm10, %v11885_v52, %v11884_v59  ;;  %v3651_v9 = vshll.u32 %v3571_v4, 16 }
 0x53b   : > { %v4120_v37 = vpop.permute.xlu0 %4119  ;;  %v4306_v7 = vsel %vm11879_vm0, %v4276_v27, %v4043_v16  ;;  %v4021_v11 = vrot.slane %v3746_v42, 1  ;;  %vm11887_vm0 = vcmask 15360  }
 0x53c   : > { %4085 = vrot.lane.b32.xlu2 %v9889_v41, %s6634_s26  ;;  %v4338_v46 = vsel %vm11880_vm15, %v4306_v7, %v9876_v25  ;;  %v3867_v25 = vor.u32 %v3866_v5, %v3862_v19  ;;  %v3871_v30 = vrot.slane %v3869_v8, 1  ;;  %v3650_v36 = vrot.slane %v3648_v43, 7  ;;  %v3445_v7 = vpop.f32.mrf.mxu1 }
 0x53d   : > { %v4370_v33 = vsel %vm1319_vm8, %v4338_v46, %v4120_v37  ;;  %v10004_v3 = vsel %vm931_vm4, %v4020_v58, %v4021_v11  ;;  %v3552_v37 = vunpack.c.l.b16 %v3488_v35  ;;  %vm11888_vm15 = vcmask 31744  }
 0x53e   : > { %v9963_v6 = vpop.permute.xlu2 %4189  ;;  %v9985_v23 = vsel %vm679_vm2, %v3867_v25, %v3871_v30  ;;  %v3653_v13 = vor.u32 %v3651_v9, %v3650_v36 }
 0x53f   : > { %v3572_v50 = vpack.c.b16 %v3552_v37, %v3551_v45 }
 0x540   : > { %4052 = vrot.lane.b32.xlu1 %v9881_v12, %s11825_s25 }
 0x541   : > { %4129 = vrot.lane.b32.xlu0 %v9923_v57, %s6635_s27  ;;  %v3655_v8 = vshrl.u32 %v3572_v50, 16 }
 0x542   : > { %v4156_v22 = vpop.permute.xlu1 %4155 }
 0x543   : > { %v4218_v24 = vpop.permute.xlu0 %4217  ;;  %v4402_v0 = vsel %vm11881_vm14, %v4370_v33, %v4156_v22  ;;  %vm11889_vm14 = vcmask 48128   ;;  %v3657_v25 = vrot.slane %v3655_v8, 7 }
 0x544   : > { %4197 = vrot.lane.b32.xlu2 %v9955_v28, %s6637_s29  ;;  %v4434_v40 = vsel %vm11882_vm1, %v4402_v0, %v9900_v63  ;;  %vm11890_vm1 = vcmask 80896   ;;  %v3447_v43 = vpop.f32.mrf.mxu1 }
 0x545   : > { %v4465_v2 = vsel %vm11883_vm12, %v4434_v40, %v4218_v24  ;;  %vm11891_vm12 = vcmask 97280  }
 0x546   : > { %v9978_v12 = vpop.permute.xlu2 %4544 }
 0x548   : > { %4165 = vrot.lane.b32.xlu1 %v9947_v14, %s6636_s28 }
 0x549   : > { %4227 = vrot.lane.b32.xlu0 %v9985_v23, %s6638_s30 }
 0x54a   : > { %v4248_v32 = vpop.permute.xlu1 %4247 }
 0x54b   : > { %v4496_v63 = vsel %vm1451_vm13, %v4465_v2, %v4248_v32  ;;  %v3940_v31 = vpop.permute.xlu0 %3939  ;;  %v3658_v32 = vshll.u32 %v3572_v50, 16 }
 0x54c   : > { %4552 = vrot.lane.b32.xlu2 %v2036_v29, %s6643_s22  ;;  %v4575_v38 = vsel %vm11886_vm6, %v4496_v63, %v9916_v49  ;;  %v10012_v49 = vsel %vm6754_vm3, 0, %v3653_v13  ;;  %v4278_v16 = vsel %vm11887_vm0, %v9615_v1, %v3940_v31  ;;  %vm11892_vm6 = vcmask 113664  }
 0x54d   : > { %6464 = vmatmul.msk.bf16.gmra.mxu2 %vm4635_vm9, %v4575_v38  ;;  %v3876_v53 = vshll.u32 %v10012_v49, 16  ;;  %v3874_v46 = vshrl.u32 %v10012_v49, 16  ;;  %v4023_v52 = vrot.slane %v10012_v49, 1  ;;  %vm11895_vm0 = vcmask 146432  }
 0x54e   : > { %v10000_v18 = vpop.permute.xlu2 %4079  ;;  %v3660_v9 = vor.u32 %v3658_v32, %v3657_v25  ;;  %v3448_v63 = vadd.f32 %v9939_v20, %v3447_v43  ;;  %v3446_v38 = vadd.f32 %v9939_v20, %v3445_v7  ;;  %v11903_v43 = vld [vmem:[#allocation67_spill] sm:$0xff] }
 0x54f   : > { %v3878_v1 = vrot.slane %v3876_v53, 1 }
 0x550   : > { %4257 = vrot.lane.b32.xlu1 %v10004_v3, %s6639_s12  ;;  %v3490_v51 = vpack.c.bf16 %v3448_v63, %v3448_v63  ;;  %v3489_v55 = vpack.c.bf16 %v3446_v38, %v3446_v38 }
 0x551   : > { %3949 = vrot.lane.b32.xlu0 %v9923_v57, %s6632_s10  ;;  %v3747_v57 = vsel %vm6754_vm3, %v3650_v36, 0  ;;  %v11893_v36 = vld [vmem:[#allocation7_spill] sm:$0xff] }
 0x552   : > { %v4045_v62 = vpop.permute.xlu1 %4044  ;;  %v3881_v5 = vshll.u32 %v3747_v57, 16  ;;  %v2038_v2 = vsel %vm2018_vm10, %v11894_v60, %v11893_v36  ;;  %v4024_v31 = vrot.slane %v3747_v57, 1  ;;  %v3553_v37 = vunpack.c.l.b16 %v3489_v55 }
 0x553   : > { %v4122_v48 = vpop.permute.xlu0 %4121  ;;  %v4308_v27 = vsel %vm11888_vm15, %v4278_v16, %v4045_v62  ;;  %vm11896_vm15 = vcmask 15360  }
 0x554   : > { %4087 = vrot.lane.b32.xlu2 %v9955_v28, %s6634_s26  ;;  %v4340_v42 = vsel %vm11889_vm14, %v4308_v27, %v9943_v39  ;;  %v3879_v39 = vor.u32 %v3878_v1, %v3874_v46  ;;  %v3883_v33 = vrot.slane %v3881_v5, 1  ;;  %v10061_v13 = vsel %vm931_vm4, %v4023_v52, %v4024_v31  ;;  %v3450_v27 = vpop.f32.mrf.mxu1 }
 0x555   : > { %v4372_v4 = vsel %vm1319_vm8, %v4340_v42, %v4122_v48  ;;  %v3554_v48 = vunpack.c.l.b16 %v3490_v51  ;;  %vm11897_vm14 = vcmask 31744  }
 0x556   : > { %v10020_v56 = vpop.permute.xlu2 %4191  ;;  %v10042_v0 = vsel %vm679_vm2, %v3879_v39, %v3883_v33 }
 0x557   : > { %v3573_v45 = vpack.c.b16 %v3554_v48, %v3553_v37 }
 0x558   : > { %4054 = vrot.lane.b32.xlu1 %v9947_v14, %s11825_s25 }
 0x559   : > { %4131 = vrot.lane.b32.xlu0 %v9985_v23, %s6635_s27  ;;  %v3662_v5 = vshrl.u32 %v3573_v45, 16 }
 0x55a   : > { %v4158_v47 = vpop.permute.xlu1 %4157 }
 0x55b   : > { %v4220_v22 = vpop.permute.xlu0 %4219  ;;  %v4404_v19 = vsel %vm11890_vm1, %v4372_v4, %v4158_v47  ;;  %vm11898_vm1 = vcmask 48128   ;;  %v3664_v39 = vrot.slane %v3662_v5, 7 }
 0x55c   : > { %4199 = vrot.lane.b32.xlu2 %v10012_v49, %s6637_s29  ;;  %v4436_v24 = vsel %vm11891_vm12, %v4404_v19, %v9963_v6  ;;  %vm11899_vm12 = vcmask 80896   ;;  %v3452_v8 = vpop.f32.mrf.mxu1 }
 0x55d   : > { %v4467_v30 = vsel %vm11892_vm6, %v4436_v24, %v4220_v22  ;;  %vm11900_vm6 = vcmask 97280  }
 0x55e   : > { %v10035_v14 = vpop.permute.xlu2 %4546 }
 0x560   : > { %4167 = vrot.lane.b32.xlu1 %v10004_v3, %s6636_s28 }
 0x561   : > { %4229 = vrot.lane.b32.xlu0 %v10042_v0, %s6638_s30 }
 0x562   : > { %v4250_v40 = vpop.permute.xlu1 %4249 }
 0x563   : > { %v4498_v6 = vsel %vm1451_vm13, %v4467_v30, %v4250_v40  ;;  %v3942_v59 = vpop.permute.xlu0 %3941  ;;  %v3665_v40 = vshll.u32 %v3573_v45, 16 }
 0x564   : > { %4554 = vrot.lane.b32.xlu2 %v2038_v2, %s6643_s22  ;;  %v4577_v29 = vsel %vm11895_vm0, %v4498_v6, %v9978_v12  ;;  %v10069_v12 = vsel %vm6754_vm3, 0, %v3660_v9  ;;  %v4280_v62 = vsel %vm11896_vm15, %v9666_v17, %v3942_v59  ;;  %vm11901_vm0 = vcmask 113664   ;;  %v10113_v59 = vpop.f32.mrf.mxu2 }
 0x565   : > { %6465 = vmatmul.msk.bf16.gmra.mxu2 %vm4635_vm9, %v4577_v29  ;;  %v3888_v44 = vshll.u32 %v10069_v12, 16  ;;  %v3886_v42 = vshrl.u32 %v10069_v12, 16  ;;  %v4026_v60 = vrot.slane %v10069_v12, 1  ;;  %vm11904_vm15 = vcmask 146432  }
 0x566   : > { %v10057_v58 = vpop.permute.xlu2 %4081  ;;  %v3667_v32 = vor.u32 %v3665_v40, %v3664_v39  ;;  %v3453_v6 = vadd.f32 %v9939_v20, %v3452_v8  ;;  %v3451_v9 = vadd.f32 %v9939_v20, %v3450_v27 }
 0x567   : > { %v3890_v17 = vrot.slane %v3888_v44, 1 }
 0x568   : > { %4259 = vrot.lane.b32.xlu1 %v10061_v13, %s6639_s12  ;;  %v3492_v31 = vpack.c.bf16 %v3453_v6, %v3453_v6  ;;  %v3491_v51 = vpack.c.bf16 %v3451_v9, %v3451_v9 }
 0x569   : > { %3951 = vrot.lane.b32.xlu0 %v9985_v23, %s6632_s10  ;;  %v3748_v23 = vsel %vm6754_vm3, %v3657_v25, 0  ;;  %v11902_v25 = vld [vmem:[#allocation116_spill] sm:$0xff] }
 0x56a   : > { %v4047_v11 = vpop.permute.xlu1 %4046  ;;  %v3893_v1 = vshll.u32 %v3748_v23, 16  ;;  %v2040_v30 = vsel %vm2018_vm10, %v11903_v43, %v11902_v25  ;;  %v4027_v52 = vrot.slane %v3748_v23, 1  ;;  %v11911_v43 = vld [vmem:[#allocation10_spill] sm:$0xff] }
 0x56b   : > { %v4124_v35 = vpop.permute.xlu0 %4123  ;;  %v4310_v16 = vsel %vm11897_vm14, %v4280_v62, %v4047_v11  ;;  %vm11905_vm14 = vcmask 15360   ;;  %v3556_v62 = vunpack.c.l.b16 %v3492_v31 }
 0x56c   : > { %4089 = vrot.lane.b32.xlu2 %v10012_v49, %s6634_s26  ;;  %v4342_v57 = vsel %vm11898_vm1, %v4310_v16, %v10000_v18  ;;  %v3891_v18 = vor.u32 %v3890_v17, %v3886_v42  ;;  %v3895_v4 = vrot.slane %v3893_v1, 1  ;;  %v10120_v63 = vsel %vm931_vm4, %v4026_v60, %v4027_v52  ;;  %v10140_v23 = vpop.f32.mrf.mxu2 }
 0x56d   : > { %v4374_v50 = vsel %vm1319_vm8, %v4342_v57, %v4124_v35  ;;  %vm11906_vm1 = vcmask 31744   ;;  %v3555_v16 = vunpack.c.l.b16 %v3491_v51  ;;  %v6567_v57 = vld [vmem:[%s11312_s7 + $0x40] sm:$0xff] }
 0x56e   : > { %v10077_v53 = vpop.permute.xlu2 %4193  ;;  %v10099_v19 = vsel %vm679_vm2, %v3891_v18, %v3895_v4  ;;  %6043 = vmatpush.bf16.msrb.mxu0 %v6567_v57 }
 0x56f   : > { %v3574_v17 = vpack.c.b16 %v3556_v62, %v3555_v16 }
 0x570   : > { %4056 = vrot.lane.b32.xlu1 %v10004_v3, %s11825_s25 }
 0x571   : > { %4133 = vrot.lane.b32.xlu0 %v10042_v0, %s6635_s27 }
 0x572   : > { %v4160_v7 = vpop.permute.xlu1 %4159  ;;  %v3455_v37 = vpop.f32.mrf.mxu1 }
 0x573   : > { %v4222_v47 = vpop.permute.xlu0 %4221  ;;  %v4406_v46 = vsel %vm11899_vm12, %v4374_v50, %v4160_v7  ;;  %vm11907_vm12 = vcmask 48128   ;;  %v3456_v51 = vadd.f32 %v9939_v20, %v3455_v37 }
 0x574   : > { %4201 = vrot.lane.b32.xlu2 %v10069_v12, %s6637_s29  ;;  %v4438_v22 = vsel %vm11900_vm6, %v4406_v46, %v10020_v56  ;;  %vm11908_vm6 = vcmask 80896  }
 0x575   : > { %v4469_v33 = vsel %vm11901_vm0, %v4438_v22, %v4222_v47  ;;  %v3669_v47 = vshrl.u32 %v3574_v17, 16  ;;  %vm11909_vm0 = vcmask 97280   ;;  %v10163_v22 = vld [vmem:[%s11311_s6] ss:$0 sm:$0xff]  ;;  %v3493_v37 = vpack.c.bf16 %v3456_v51, %v3456_v51 }
 0x576   : > { %v10092_v3 = vpop.permute.xlu2 %4548 }
 0x577   : > { %v3671_v8 = vrot.slane %v3669_v47, 7 }
 0x578   : > { %4169 = vrot.lane.b32.xlu1 %v10061_v13, %s6636_s28 }
 0x579   : > { %4231 = vrot.lane.b32.xlu0 %v10099_v19, %s6638_s30 }
 0x57a   : > { %v4252_v24 = vpop.permute.xlu1 %4251 }
 0x57b   : > { %v4500_v56 = vsel %vm1451_vm13, %v4469_v33, %v4252_v24  ;;  %v3944_v36 = vpop.permute.xlu0 %3943  ;;  %v3457_v33 = vpop.f32.mrf.mxu1 }
 0x57c   : > { %4556 = vrot.lane.b32.xlu2 %v2040_v30, %s6643_s22  ;;  %v4579_v2 = vsel %vm11904_vm15, %v4500_v56, %v10035_v14  ;;  %v10128_v14 = vsel %vm6754_vm3, 0, %v3667_v32  ;;  %v4282_v55 = vsel %vm11905_vm14, %v9717_v54, %v3944_v36  ;;  %vm11910_vm15 = vcmask 113664   ;;  %v11912_v30 = vld [vmem:[#allocation100_spill] sm:$0xff] }
 0x57d   : > { %6466 = vmatmul.msk.bf16.gmra.mxu2 %vm4635_vm9, %v4579_v2  ;;  %v3900_v35 = vshll.u32 %v10128_v14, 16  ;;  %v3898_v7 = vshrl.u32 %v10128_v14, 16  ;;  %v2042_v40 = vsel %vm2018_vm10, %v11912_v30, %v11911_v43  ;;  %v3672_v56 = vshll.u32 %v3574_v17, 16 }
 0x57e   : > { %v10116_v29 = vpop.permute.xlu2 %4083  ;;  %v4029_v2 = vrot.slane %v10128_v14, 1  ;;  %vm11913_vm14 = vcmask 146432   ;;  %v3458_v52 = vadd.f32 %v9939_v20, %v3457_v33 }
 0x57f   : > { %v3902_v27 = vrot.slane %v3900_v35, 1  ;;  %v3674_v6 = vor.u32 %v3672_v56, %v3671_v8  ;;  %v4685_v56 = vadd.f32 %v10163_v22, %v10113_v59 }
 0x580   : > { %4261 = vrot.lane.b32.xlu1 %v10120_v63, %s6639_s12 }
 0x581   : > { %3953 = vrot.lane.b32.xlu0 %v10042_v0, %s6632_s10  ;;  %v3749_v0 = vsel %vm6754_vm3, %v3664_v39, 0  ;;  %v10197_v62 = vsel %vm6754_vm3, 0, %v3674_v6 }
 0x582   : > { %v4049_v38 = vpop.permute.xlu1 %4048  ;;  %v3905_v42 = vshll.u32 %v3749_v0, 16  ;;  %v4030_v9 = vrot.slane %v3749_v0, 1  ;;  %v3912_v17 = vshll.u32 %v10197_v62, 16  ;;  %v3910_v33 = vshrl.u32 %v10197_v62, 16 }
 0x583   : > { %v4126_v11 = vpop.permute.xlu0 %4125  ;;  %v4312_v44 = vsel %vm11906_vm1, %v4282_v55, %v4049_v38  ;;  %vm11914_vm1 = vcmask 15360  }
 0x584   : > { %4091 = vrot.lane.b32.xlu2 %v10069_v12, %s6634_s26  ;;  %v4344_v54 = vsel %vm11907_vm12, %v4312_v44, %v10057_v58  ;;  %v3907_v18 = vrot.slane %v3905_v42, 1  ;;  %v10188_v55 = vsel %vm931_vm4, %v4029_v2, %v4030_v9  ;;  %vm11915_vm12 = vcmask 31744  }
 0x585   : > { %v4376_v1 = vsel %vm1319_vm8, %v4344_v54, %v4126_v11  ;;  %v3914_v47 = vrot.slane %v3912_v17, 1 }
 0x586   : > { %v10136_v48 = vpop.permute.xlu2 %4195 }
 0x587   : > { %v3915_v30 = vor.u32 %v3914_v47, %v3910_v33 }
 0x588   : > { %4058 = vrot.lane.b32.xlu1 %v10061_v13, %s11825_s25  ;;  %v3903_v13 = vor.u32 %v3902_v27, %v3898_v7 }
 0x589   : > { %4135 = vrot.lane.b32.xlu0 %v10099_v19, %s6635_s27 }
 0x58a   : > { %v4162_v45 = vpop.permute.xlu1 %4161  ;;  %v10168_v39 = vsel %vm679_vm2, %v3903_v13, %v3907_v18 }
 0x58b   : > { %v4224_v58 = vpop.permute.xlu0 %4223  ;;  %v4408_v50 = vsel %vm11908_vm6, %v4376_v1, %v4162_v45  ;;  %vm11916_vm6 = vcmask 48128  }
 0x58c   : > { %4203 = vrot.lane.b32.xlu2 %v10128_v14, %s6637_s29  ;;  %v4440_v5 = vsel %vm11909_vm0, %v4408_v50, %v10077_v53  ;;  %v3557_v50 = vunpack.c.l.b16 %v3493_v37  ;;  %vm11917_vm0 = vcmask 80896  }
 0x58d   : > { %v4471_v24 = vsel %vm11910_vm15, %v4440_v5, %v4224_v58  ;;  %v3750_v58 = vsel %vm6754_vm3, %v3671_v8, 0  ;;  %v4687_v8 = vadd.f32 %v10163_v22, %v10140_v23  ;;  %vm11918_vm15 = vcmask 97280  }
 0x58e   : > { %v10156_v46 = vpop.permute.xlu2 %4550 }
 0x58f   : > { %v4689_v4 = vpop.f32.mrf.mxu2  ;;  %v4765_v6 = vmax.f32 %v4687_v8, 0.0 }
 0x590   : > { %4171 = vrot.lane.b32.xlu1 %v10120_v63, %s6636_s28  ;;  %v4690_v53 = vadd.f32 %v10163_v22, %v4689_v4 }
 0x591   : > { %4233 = vrot.lane.b32.xlu0 %v10168_v39, %s6638_s30  ;;  %v4797_v17 = vpack.c.bf16 %v4765_v6, %v4765_v6 }
 0x592   : > { %v4254_v25 = vpop.permute.xlu1 %4253  ;;  %v4766_v31 = vmax.f32 %v4690_v53, 0.0 }
 0x593   : > { %v4502_v36 = vsel %vm1451_vm13, %v4471_v24, %v4254_v25  ;;  %v3946_v60 = vpop.permute.xlu0 %3945  ;;  %v3917_v24 = vshll.u32 %v3750_v58, 16 }
 0x594   : > { %4558 = vrot.lane.b32.xlu2 %v2042_v40, %s6643_s22  ;;  %v4581_v32 = vsel %vm11913_vm14, %v4502_v36, %v10092_v3  ;;  %v3494_v3 = vpack.c.bf16 %v3458_v52, %v3458_v52  ;;  %v4798_v44 = vpack.c.bf16 %v4766_v31, %v4766_v31  ;;  %v4284_v27 = vsel %vm11914_vm1, %v9774_v10, %v3946_v60 }
 0x595   : > { %6467 = vmatmul.msk.bf16.gmra.mxu2 %vm4635_vm9, %v4581_v32  ;;  %v3919_v2 = vrot.slane %v3917_v24, 1  ;;  %vm11921_vm14 = vcmask 113664   ;;  %vm11922_vm1 = vcmask 146432  }
 0x596   : > { %v10184_v38 = vpop.permute.xlu2 %4085  ;;  %v3558_v45 = vunpack.c.l.b16 %v3494_v3  ;;  %v4862_v7 = vunpack.c.l.b16 %v4798_v44  ;;  %v4764_v3 = vmax.f32 %v4685_v56, 0.0 }
 0x597   : > { %v4691_v11 = vpop.f32.mrf.mxu2  ;;  %v10239_v59 = vsel %vm679_vm2, %v3915_v30, %v3919_v2 }
 0x598   : > { %v4692_v35 = vadd.f32 %v10163_v22, %v4691_v11  ;;  %4263 = vrot.lane.b32.xlu1 %v10188_v55, %s6639_s12  ;;  %v3575_v18 = vpack.c.b16 %v3558_v45, %v3557_v50  ;;  %v11920_v11 = vld [vmem:[#allocation84_spill] sm:$0xff] }
 0x599   : > { %3955 = vrot.lane.b32.xlu0 %v10099_v19, %s6632_s10 }
 0x59a   : > { %v4767_v0 = vmax.f32 %v4692_v35, 0.0  ;;  %v4051_v16 = vpop.permute.xlu1 %4050  ;;  %v3676_v40 = vshrl.u32 %v3575_v18, 16 }
 0x59b   : > { %v4128_v54 = vpop.permute.xlu0 %4127  ;;  %v4314_v19 = vsel %vm11915_vm12, %v4284_v27, %v4051_v16  ;;  %v3679_v16 = vshll.u32 %v3575_v18, 16  ;;  %vm11923_vm12 = vcmask 15360  }
 0x59c   : > { %v4799_v57 = vpack.c.bf16 %v4767_v0, %v4767_v0  ;;  %4093 = vrot.lane.b32.xlu2 %v10128_v14, %s6634_s26  ;;  %v4346_v10 = vsel %vm11916_vm6, %v4314_v19, %v10116_v29  ;;  %v3678_v9 = vrot.slane %v3676_v40, 7  ;;  %vm11924_vm6 = vcmask 31744  }
 0x59d   : > { %v4378_v53 = vsel %vm1319_vm8, %v4346_v10, %v4128_v54  ;;  %v4861_v10 = vunpack.c.l.b16 %v4797_v17 }
 0x59e   : > { %v4863_v42 = vunpack.c.l.b16 %v4799_v57  ;;  %v10205_v1 = vpop.permute.xlu2 %4197  ;;  %v4032_v57 = vrot.slane %v10197_v62, 1  ;;  %v3681_v19 = vor.u32 %v3679_v16, %v3678_v9  ;;  %v11928_v16 = vld [vmem:[#allocation69_spill] sm:$0xff] }
 0x5a0   : > { %v4893_v13 = vpack.c.b16 %v4863_v42, %v4862_v7  ;;  %4060 = vrot.lane.b32.xlu1 %v10120_v63, %s11825_s25  ;;  %v4033_v7 = vrot.slane %v3750_v58, 1  ;;  %v4796_v42 = vpack.c.bf16 %v4764_v3, %v4764_v3 }
 0x5a1   : > { %4137 = vrot.lane.b32.xlu0 %v10168_v39, %s6635_s27 }
 0x5a2   : > { %v4916_v5 = vshrl.u32 %v4893_v13, 16  ;;  %v4164_v4 = vpop.permute.xlu1 %4163  ;;  %v4919_v43 = vshll.u32 %v4893_v13, 16  ;;  %v10263_v13 = vsel %vm931_vm4, %v4032_v57, %v4033_v7  ;;  %v4860_v47 = vunpack.c.l.b16 %v4796_v42 }
 0x5a3   : > { %v4226_v25 = vpop.permute.xlu0 %4225  ;;  %v4410_v63 = vsel %vm11917_vm0, %v4378_v53, %v4164_v4  ;;  %v3460_v53 = vpop.f32.mrf.mxu1  ;;  %vm11925_vm0 = vcmask 48128  }
 0x5a4   : > { %v4918_v29 = vrot.slane %v4916_v5, 7  ;;  %4205 = vrot.lane.b32.xlu2 %v10197_v62, %s6637_s29  ;;  %v4442_v32 = vsel %vm11918_vm15, %v4410_v63, %v10136_v48  ;;  %v11919_v48 = vld [vmem:[#allocation6_spill] sm:$0xff]  ;;  %v4892_v5 = vpack.c.b16 %v4861_v10, %v4860_v47  ;;  %vm11926_vm15 = vcmask 80896  }
 0x5a5   : > { %v2044_v35 = vsel %vm2018_vm10, %v11920_v11, %v11919_v48  ;;  %v4473_v44 = vsel %vm11921_vm14, %v4442_v32, %v4226_v25  ;;  %vm11927_vm14 = vcmask 97280  }
 0x5a6   : > { %v4921_v36 = vor.u32 %v4919_v43, %v4918_v29  ;;  %v10224_v60 = vpop.permute.xlu2 %4552  ;;  %v10228_v23 = vsel %vm6754_vm3, %v4918_v29, 0  ;;  %v4909_v25 = vshrl.u32 %v4892_v5, 16  ;;  %v4912_v6 = vshll.u32 %v4892_v5, 16 }
 0x5a7   : > { %v5330_v51 = vrot.slane %v10228_v23, 1 }
 0x5a8   : > { %v10234_v52 = vsel %vm6754_vm3, 0, %v4921_v36  ;;  %4173 = vrot.lane.b32.xlu1 %v10188_v55, %s6636_s28  ;;  %v4911_v32 = vrot.slane %v4909_v25, 7 }
 0x5a9   : > { %4235 = vrot.lane.b32.xlu0 %v10239_v59, %s6638_s30  ;;  %v5329_v31 = vrot.slane %v10234_v52, 1 }
 0x5aa   : > { %v4256_v0 = vpop.permute.xlu1 %4255  ;;  %v4914_v3 = vor.u32 %v4912_v6, %v4911_v32 }
 0x5ab   : > { %v4504_v37 = vsel %vm1451_vm13, %v4473_v44, %v4256_v0  ;;  %v3948_v54 = vpop.permute.xlu0 %3947  ;;  %v10251_v27 = vsel %vm931_vm4, %v5329_v31, %v5330_v51  ;;  %v3462_v44 = vpop.f32.mrf.mxu1 }
 0x5ac   : > { %4560 = vrot.lane.b32.xlu2 %v2044_v35, %s6643_s22  ;;  %6513 = vmatmul.msk.bf16.vlgmr.msrb.gmra.mxu0 %vm1451_vm13, %v10251_v27  ;;  %v4583_v45 = vsel %vm11922_vm1, %v4504_v37, %v10156_v46  ;;  %v10271_v46 = vsel %vm6754_vm3, 0, %v3681_v19  ;;  %v4286_v4 = vsel %vm11923_vm12, %v9833_v15, %v3948_v54  ;;  %v11929_v37 = vld [vmem:[#allocation106_spill] sm:$0xff]  ;;  %vm11930_vm1 = vcmask 113664  }
 0x5ad   : > { %6468 = vmatmul.msk.bf16.gmra.mxu2 %vm4635_vm9, %v4583_v45  ;;  %v3924_v33 = vshll.u32 %v10271_v46, 16  ;;  %v3922_v30 = vshrl.u32 %v10271_v46, 16  ;;  %v2046_v54 = vsel %vm2018_vm10, %v11929_v37, %v11928_v16  ;;  %v4035_v42 = vrot.slane %v10271_v46, 1 }
 0x5ae   : > { %v10260_v50 = vpop.permute.xlu2 %4087  ;;  %v3463_v10 = vadd.f32 %v9939_v20, %v3462_v44  ;;  %vm11931_vm12 = vcmask 146432  }
 0x5af   : > { %v3926_v43 = vrot.slane %v3924_v33, 1 }
 0x5b0   : > { %4265 = vrot.lane.b32.xlu1 %v10263_v13, %s6639_s12 }
 0x5b1   : > { %3957 = vrot.lane.b32.xlu0 %v10168_v39, %s6632_s10  ;;  %v3751_v39 = vsel %vm6754_vm3, %v3678_v9, 0 }
 0x5b2   : > { %v4053_v18 = vpop.permute.xlu1 %4052  ;;  %v3929_v40 = vshll.u32 %v3751_v39, 16  ;;  %v4036_v5 = vrot.slane %v3751_v39, 1 }
 0x5b3   : > { %v4130_v58 = vpop.permute.xlu0 %4129  ;;  %v4316_v24 = vsel %vm11924_vm6, %v4286_v4, %v4053_v18  ;;  %v10319_v18 = vsel %vm6754_vm3, 0, %v4914_v3  ;;  %v3461_v4 = vadd.f32 %v9939_v20, %v3460_v53  ;;  %v10335_v20 = vsel %vm6754_vm3, %v4911_v32, 0 }
 0x5b4   : > { %4095 = vrot.lane.b32.xlu2 %v10197_v62, %s6634_s26  ;;  %v4348_v29 = vsel %vm11925_vm0, %v4316_v24, %v10184_v38  ;;  %v3931_v31 = vrot.slane %v3929_v40, 1  ;;  %vm11932_vm6 = vcmask 15360   ;;  %vm11933_vm0 = vcmask 31744  }
 0x5b5   : > { %v4380_v56 = vsel %vm1319_vm8, %v4348_v29, %v4130_v58  ;;  %v10326_v29 = vsel %vm931_vm4, %v4035_v42, %v4036_v5  ;;  %v3495_v39 = vpack.c.bf16 %v3461_v4, %v3461_v4  ;;  %v5085_v32 = vshrl.u32 %v10319_v18, 16 }
 0x5b6   : > { %v10279_v8 = vpop.permute.xlu2 %4199  ;;  %v5099_v5 = vshll.u32 %v10234_v52, 16 }
 0x5b8   : > { %4062 = vrot.lane.b32.xlu1 %v10188_v55, %s11825_s25  ;;  %v4694_v15 = vpop.f32.mrf.mxu2  ;;  %v3927_v55 = vor.u32 %v3926_v43, %v3922_v30 }
 0x5b9   : > { %4139 = vrot.lane.b32.xlu0 %v10239_v59, %s6635_s27  ;;  %v4695_v36 = vadd.f32 %v10163_v22, %v4694_v15  ;;  %v5087_v15 = vshll.u32 %v10319_v18, 16 }
 0x5ba   : > { %v4166_v63 = vpop.permute.xlu1 %4165  ;;  %v10302_v35 = vsel %vm679_vm2, %v3927_v55, %v3931_v31  ;;  %v3559_v31 = vunpack.c.l.b16 %v3495_v39  ;;  %v5326_v39 = vrot.slane %v10319_v18, 1 }
 0x5bb   : > { %v4228_v2 = vpop.permute.xlu0 %4227  ;;  %v4412_v38 = vsel %vm11926_vm15, %v4380_v56, %v4166_v63  ;;  %v4768_v51 = vmax.f32 %v4695_v36, 0.0  ;;  %v5089_v40 = vrot.slane %v5087_v15, 1  ;;  %vm11934_vm15 = vcmask 48128  }
 0x5bc   : > { %4207 = vrot.lane.b32.xlu2 %v10271_v46, %s6637_s29  ;;  %v4444_v48 = vsel %vm11927_vm14, %v4412_v38, %v10205_v1  ;;  %vm11935_vm14 = vcmask 80896  }
 0x5bd   : > { %v4475_v1 = vsel %vm11930_vm1, %v4444_v48, %v4228_v2  ;;  %v4800_v17 = vpack.c.bf16 %v4768_v51, %v4768_v51  ;;  %v5092_v2 = vshll.u32 %v10335_v20, 16  ;;  %vm11936_vm1 = vcmask 97280  }
 0x5be   : > { %v10295_v9 = vpop.permute.xlu2 %4554 }
 0x5bf   : > { %v4864_v24 = vunpack.c.l.b16 %v4800_v17  ;;  %v5094_v16 = vrot.slane %v5092_v2, 1  ;;  %v5327_v2 = vrot.slane %v10335_v20, 1 }
 0x5c0   : > { %4175 = vrot.lane.b32.xlu1 %v10263_v13, %s6636_s28  ;;  %v4696_v11 = vpop.f32.mrf.mxu2 }
 0x5c1   : > { %v4697_v0 = vadd.f32 %v10163_v22, %v4696_v11  ;;  %4237 = vrot.lane.b32.xlu0 %v10302_v35, %s6638_s30  ;;  %v5090_v11 = vor.u32 %v5089_v40, %v5085_v32  ;;  %v5101_v40 = vrot.slane %v5099_v5, 1 }
 0x5c2   : > { %v4258_v57 = vpop.permute.xlu1 %4257 }
 0x5c3   : > { %v4769_v45 = vmax.f32 %v4697_v0, 0.0  ;;  %v4506_v19 = vsel %vm1451_vm13, %v4475_v1, %v4258_v57  ;;  %v3950_v7 = vpop.permute.xlu0 %3949 }
 0x5c4   : > { %4562 = vrot.lane.b32.xlu2 %v2046_v54, %s6643_s22  ;;  %v4585_v47 = vsel %vm11931_vm12, %v4506_v19, %v10224_v60  ;;  %v3496_v60 = vpack.c.bf16 %v3463_v10, %v3463_v10  ;;  %v4288_v36 = vsel %vm11932_vm6, %v9889_v41, %v3950_v7  ;;  %vm11937_vm12 = vcmask 113664  }
 0x5c5   : > { %v4801_v58 = vpack.c.bf16 %v4769_v45, %v4769_v45  ;;  %6469 = vmatmul.msk.bf16.gmra.mxu2 %vm4635_vm9, %v4585_v47  ;;  %v10365_v45 = vsel %vm679_vm2, %v5090_v11, %v5094_v16  ;;  %vm11938_vm6 = vcmask 146432  }
 0x5c6   : > { %v10323_v33 = vpop.permute.xlu2 %4089  ;;  %v3560_v56 = vunpack.c.l.b16 %v3496_v60 }
 0x5c7   : > { %v4865_v25 = vunpack.c.l.b16 %v4801_v58 }
 0x5c8   : > { %4267 = vrot.lane.b32.xlu1 %v10326_v29, %s6639_s12  ;;  %v3576_v41 = vpack.c.b16 %v3560_v56, %v3559_v31 }
 0x5c9   : > { %v4894_v43 = vpack.c.b16 %v4865_v25, %v4864_v24  ;;  %5264 = vrot.lane.b32.xlu0 %v11843_v34, %s6639_s12 }
 0x5ca   : > { %v4055_v53 = vpop.permute.xlu1 %4054  ;;  %v3683_v19 = vshrl.u32 %v3576_v41, 16  ;;  %v3686_v15 = vshll.u32 %v3576_v41, 16 }
 0x5cb   : > { %v4923_v63 = vshrl.u32 %v4894_v43, 16  ;;  %v4132_v30 = vpop.permute.xlu0 %4131  ;;  %v4926_v55 = vshll.u32 %v4894_v43, 16  ;;  %v4318_v6 = vsel %vm11933_vm0, %v4288_v36, %v4055_v53  ;;  %vm11939_vm0 = vcmask 15360  }
 0x5cc   : > { %3959 = vrot.lane.b32.xlu2 %v10239_v59, %s6632_s10  ;;  %v4350_v59 = vsel %vm11934_vm15, %v4318_v6, %v10260_v50  ;;  %v3685_v4 = vrot.slane %v3683_v19, 7  ;;  %vm11940_vm15 = vcmask 31744  }
 0x5cd   : > { %v4925_v38 = vrot.slane %v4923_v63, 7  ;;  %v4382_v57 = vsel %vm1319_vm8, %v4350_v59, %v4132_v30 }
 0x5ce   : > { %v10344_v51 = vpop.permute.xlu2 %4201  ;;  %v3688_v56 = vor.u32 %v3686_v15, %v3685_v4 }
 0x5cf   : > { %v4928_v48 = vor.u32 %v4926_v55, %v4925_v38  ;;  %v10348_v3 = vsel %vm6754_vm3, %v4925_v38, 0  ;;  %v5097_v38 = vshrl.u32 %v10234_v52, 16  ;;  %v5104_v55 = vshll.u32 %v10228_v23, 16 }
 0x5d0   : > { %5371 = vrot.lane.b32.xlu1 %v11843_v34, %s6650_s21  ;;  %v4699_v44 = vpop.f32.mrf.mxu2  ;;  %v5333_v1 = vrot.slane %v10348_v3, 1 }
 0x5d1   : > { %v10356_v0 = vsel %vm6754_vm3, 0, %v4928_v48  ;;  %5404 = vrot.lane.b32.xlu0 %v10319_v18, %s6651_s23  ;;  %v4700_v50 = vadd.f32 %v10163_v22, %v4699_v44  ;;  %v5328_v48 = vsel %vm931_vm4, %v5326_v39, %v5327_v2  ;;  %v5102_v11 = vor.u32 %v5101_v40, %v5097_v38 }
 0x5d2   : > { %v4168_v37 = vpop.permute.xlu1 %4167  ;;  %v5332_v54 = vrot.slane %v10356_v0, 1  ;;  %v5106_v23 = vrot.slane %v5104_v55, 1 }
 0x5d3   : > { %v4230_v17 = vpop.permute.xlu0 %4229  ;;  %v4414_v7 = vsel %vm11935_vm14, %v4382_v57, %v4168_v37  ;;  %v4770_v47 = vmax.f32 %v4700_v50, 0.0  ;;  %vm11941_vm14 = vcmask 48128  }
 0x5d4   : > { %5448 = vrot.lane.b32.xlu2 %v10365_v45, %s6652_s24  ;;  %v10371_v42 = vsel %vm931_vm4, %v5332_v54, %v5333_v1  ;;  %v4446_v58 = vsel %vm11936_vm1, %v4414_v7, %v10279_v8  ;;  %v10407_v16 = vsel %vm679_vm2, %v5102_v11, %v5106_v23  ;;  %vm11942_vm1 = vcmask 80896   ;;  %v11945_v11 = vld [vmem:[#allocation74_spill] sm:$0xff] }
 0x5d5   : > { %6514 = vmatmul.msk.bf16.gmra.mxu0 %vm1451_vm13, %v10371_v42  ;;  %v4477_v60 = vsel %vm11937_vm12, %v4446_v58, %v4230_v17  ;;  %v4802_v53 = vpack.c.bf16 %v4770_v47, %v4770_v47  ;;  %v3752_v17 = vsel %vm6754_vm3, %v3685_v4, 0  ;;  %vm11943_vm12 = vcmask 97280  }
 0x5d6   : > { %v10375_v10 = vpop.permute.xlu2 %4556 }
 0x5d7   : > { %v4866_v32 = vunpack.c.l.b16 %v4802_v53 }
 0x5d8   : > { %4064 = vrot.lane.b32.xlu1 %v10263_v13, %s11825_s25  ;;  %v4701_v24 = vpop.f32.mrf.mxu2 }
 0x5d9   : > { %v4702_v25 = vadd.f32 %v10163_v22, %v4701_v24  ;;  %4097 = vrot.lane.b32.xlu0 %v10271_v46, %s6634_s26 }
 0x5da   : > { %v4260_v43 = vpop.permute.xlu1 %4259 }
 0x5db   : > { %v4771_v8 = vmax.f32 %v4702_v25, 0.0  ;;  %v4508_v63 = vsel %vm1451_vm13, %v4477_v60, %v4260_v43  ;;  %v3952_v30 = vpop.permute.xlu0 %3951  ;;  %v4147_v25 = vrot.slane %v3752_v17, 1  ;;  %v4109_v60 = vshll.u32 %v3752_v17, 16 }
 0x5dc   : > { %4141 = vrot.lane.b32.xlu2 %v10302_v35, %s6635_s27  ;;  %v4587_v13 = vsel %vm11938_vm6, %v4508_v63, %v10295_v9  ;;  %v10402_v9 = vsel %vm6754_vm3, 0, %v3688_v56  ;;  %v4290_v54 = vsel %vm11939_vm0, %v9955_v28, %v3952_v30  ;;  %vm11946_vm6 = vcmask 113664  }
 0x5dd   : > { %v4803_v36 = vpack.c.bf16 %v4771_v8, %v4771_v8  ;;  %6470 = vmatmul.msk.bf16.gmra.mxu2 %vm4635_vm9, %v4587_v13  ;;  %v4104_v37 = vshll.u32 %v10402_v9, 16  ;;  %v4146_v47 = vrot.slane %v10402_v9, 1  ;;  %v4102_v15 = vshrl.u32 %v10402_v9, 16 }
 0x5de   : > { %v10396_v6 = vpop.permute.xlu2 %4091  ;;  %vm11947_vm0 = vcmask 146432  }
 0x5df   : > { %v4867_v31 = vunpack.c.l.b16 %v4803_v36  ;;  %v4106_v28 = vrot.slane %v4104_v37, 1  ;;  %v10440_v30 = vsel %vm931_vm4, %v4146_v47, %v4147_v25  ;;  %v4111_v36 = vrot.slane %v4109_v60, 1 }
 0x5e0   : > { %5484 = vrot.lane.b32.xlu1 %v5328_v48, %s6655_s13 }
 0x5e1   : > { %v4895_v41 = vpack.c.b16 %v4867_v31, %v4866_v32  ;;  %5516 = vrot.lane.b32.xlu0 %v10234_v52, %s6656_s16  ;;  %v4107_v40 = vor.u32 %v4106_v28, %v4102_v15  ;;  %v11944_v31 = vld [vmem:[#allocation9_spill] sm:$0xff] }
 0x5e2   : > { %v4057_v20 = vpop.permute.xlu1 %4056 }
 0x5e3   : > { %v4930_v59 = vshrl.u32 %v4895_v41, 16  ;;  %v4134_v44 = vpop.permute.xlu0 %4133  ;;  %v4933_v57 = vshll.u32 %v4895_v41, 16  ;;  %v4320_v50 = vsel %vm11940_vm15, %v4290_v54, %v4057_v20  ;;  %v4112_v32 = vsel %vm679_vm2, %v4107_v40, %v4111_v36 }
 0x5e4   : > { %5548 = vrot.lane.b32.xlu2 %v10407_v16, %s6657_s14  ;;  %v4352_v5 = vsel %vm11941_vm14, %v4320_v50, %v10323_v33  ;;  %v2048_v41 = vsel %vm2018_vm10, %v11945_v11, %v11944_v31  ;;  %vm11948_vm15 = vcmask 15360   ;;  %vm11949_vm14 = vcmask 31744  }
 0x5e5   : > { %v4932_v1 = vrot.slane %v4930_v59, 7  ;;  %v4384_v53 = vsel %vm1319_vm8, %v4352_v5, %v4134_v44 }
 0x5e6   : > { %v10417_v19 = vpop.permute.xlu2 %4203 }
 0x5e7   : > { %v4935_v7 = vor.u32 %v4933_v57, %v4932_v1  ;;  %v10422_v58 = vsel %vm6754_vm3, %v4932_v1, 0 }
 0x5e8   : > { %4177 = vrot.lane.b32.xlu1 %v10326_v29, %s6636_s28  ;;  %v4704_v24 = vpop.f32.mrf.mxu2  ;;  %v5336_v33 = vrot.slane %v10422_v58, 1 }
 0x5e9   : > { %v10430_v4 = vsel %vm6754_vm3, 0, %v4935_v7  ;;  %4209 = vrot.lane.b32.xlu0 %v10402_v9, %s6637_s29  ;;  %v4705_v8 = vadd.f32 %v10163_v22, %v4704_v24 }
 0x5ea   : > { %v4170_v43 = vpop.permute.xlu1 %4169  ;;  %v5335_v39 = vrot.slane %v10430_v4, 1 }
 0x5eb   : > { %v4232_v63 = vpop.permute.xlu0 %4231  ;;  %v4416_v56 = vsel %vm11942_vm1, %v4384_v53, %v4170_v43  ;;  %v4772_v38 = vmax.f32 %v4705_v8, 0.0  ;;  %vm11950_vm1 = vcmask 48128  }
 0x5ec   : > { %4269 = vrot.lane.b32.xlu2 %v10440_v30, %s6639_s12  ;;  %v10446_v13 = vsel %vm931_vm4, %v5335_v39, %v5336_v33  ;;  %v4448_v55 = vsel %vm11943_vm12, %v4416_v56, %v10344_v51  ;;  %vm11951_vm12 = vcmask 80896  }
 0x5ed   : > { %6515 = vmatmul.msk.bf16.gmra.mxu0 %vm1451_vm13, %v10446_v13  ;;  %v4479_v59 = vsel %vm11946_vm6, %v4448_v55, %v4232_v63  ;;  %v4804_v37 = vpack.c.bf16 %v4772_v38, %v4772_v38  ;;  %v5111_v38 = vshll.u32 %v10356_v0, 16  ;;  %vm11952_vm6 = vcmask 97280  }
 0x5ee   : > { %v10450_v2 = vpop.permute.xlu2 %4558 }
 0x5ef   : > { %v4868_v7 = vunpack.c.l.b16 %v4804_v37 }
 0x5f0   : > { %4239 = vrot.lane.b32.xlu1 %v4112_v32, %s6638_s30  ;;  %v4706_v23 = vpop.f32.mrf.mxu2 }
 0x5f1   : > { %v4707_v20 = vadd.f32 %v10163_v22, %v4706_v23  ;;  %4564 = vrot.lane.b32.xlu0 %v2048_v41, %s6643_s22  ;;  %v5113_v23 = vrot.slane %v5111_v38, 1 }
 0x5f2   : > { %v4262_v44 = vpop.permute.xlu1 %4261 }
 0x5f3   : > { %v4773_v54 = vmax.f32 %v4707_v20, 0.0  ;;  %v4510_v51 = vsel %vm1451_vm13, %v4479_v59, %v4262_v44  ;;  %v3954_v1 = vpop.permute.xlu0 %3953  ;;  %v5116_v59 = vshll.u32 %v10348_v3, 16 }
 0x5f4   : > { %5373 = vrot.lane.b32.xlu2 %v5328_v48, %s6650_s21  ;;  %v4589_v57 = vsel %vm11947_vm0, %v4510_v51, %v10375_v10  ;;  %v4292_v10 = vsel %vm11948_vm15, %v10012_v49, %v3954_v1  ;;  %vm11953_vm0 = vcmask 113664   ;;  %vm11954_vm15 = vcmask 146432  }
 0x5f5   : > { %v4805_v50 = vpack.c.bf16 %v4773_v54, %v4773_v54  ;;  %6471 = vmatmul.msk.bf16.gmra.mxu2 %vm4635_vm9, %v4589_v57  ;;  %v5109_v54 = vshrl.u32 %v10356_v0, 16 }
 0x5f6   : > { %v10467_v17 = vpop.permute.xlu2 %4093 }
 0x5f7   : > { %v4869_v47 = vunpack.c.l.b16 %v4805_v50  ;;  %v5114_v50 = vor.u32 %v5113_v23, %v5109_v54 }
 0x5f8   : > { %5266 = vrot.lane.b32.xlu1 %v10365_v45, %s6639_s12 }
 0x5f9   : > { %v4896_v28 = vpack.c.b16 %v4869_v47, %v4868_v7  ;;  %3961 = vrot.lane.b32.xlu0 %v10302_v35, %s6632_s10  ;;  %v5118_v7 = vrot.slane %v5116_v59, 1 }
 0x5fa   : > { %v4059_v5 = vpop.permute.xlu1 %4058 }
 0x5fb   : > { %v4937_v24 = vshrl.u32 %v4896_v28, 16  ;;  %v4136_v48 = vpop.permute.xlu0 %4135  ;;  %v4940_v15 = vshll.u32 %v4896_v28, 16  ;;  %v4322_v60 = vsel %vm11949_vm14, %v4292_v10, %v4059_v5  ;;  %v5119_v5 = vsel %vm679_vm2, %v5114_v50, %v5118_v7 }
 0x5fc   : > { %4066 = vrot.lane.b32.xlu2 %v10326_v29, %s11825_s25  ;;  %v4354_v35 = vsel %vm11950_vm1, %v4322_v60, %v10396_v6  ;;  %vm11955_vm14 = vcmask 15360   ;;  %vm11956_vm1 = vcmask 31744  }
 0x5fd   : > { %v4939_v25 = vrot.slane %v4937_v24, 7  ;;  %v4386_v63 = vsel %vm1319_vm8, %v4354_v35, %v4136_v48  ;;  %v11957_v35 = vld [vmem:[#allocation22_spill] sm:$0xff] }
 0x5fe   : > { %v10478_v43 = vpop.permute.xlu2 %4205 }
 0x5ff   : > { %v4942_v45 = vor.u32 %v4940_v15, %v4939_v25  ;;  %v10482_v39 = vsel %vm6754_vm3, %v4939_v25, 0 }
 0x600   : > { %5406 = vrot.lane.b32.xlu1 %v10234_v52, %s6651_s23  ;;  %v4709_v49 = vpop.f32.mrf.mxu2  ;;  %v5339_v8 = vrot.slane %v10482_v39, 1 }
 0x601   : > { %v10490_v29 = vsel %vm6754_vm3, 0, %v4942_v45  ;;  %5450 = vrot.lane.b32.xlu0 %v10407_v16, %s6652_s24  ;;  %v4710_v6 = vadd.f32 %v10163_v22, %v4709_v49  ;;  %v11958_v49 = vld [vmem:[#allocation115_spill] sm:$0xff] }
 0x602   : > { %v4172_v33 = vpop.permute.xlu1 %4171  ;;  %v5338_v53 = vrot.slane %v10490_v29, 1 }
 0x603   : > { %v4234_v40 = vpop.permute.xlu0 %4233  ;;  %v4418_v56 = vsel %vm11951_vm12, %v4386_v63, %v4172_v33  ;;  %v4774_v31 = vmax.f32 %v4710_v6, 0.0  ;;  %v2050_v33 = vsel %vm2018_vm10, %v11958_v49, %v11957_v35  ;;  %vm11959_vm12 = vcmask 48128   ;;  %v6564_v49 = vld [vmem:[%s11312_s7 + $0x28] sm:$0xff] }
 0x604   : > { %5486 = vrot.lane.b32.xlu2 %v10251_v27, %s6655_s13  ;;  %v10502_v36 = vsel %vm931_vm4, %v5338_v53, %v5339_v8  ;;  %v4450_v11 = vsel %vm11952_vm6, %v4418_v56, %v10417_v19  ;;  %vm11960_vm10 = vcmask 80896  }
 0x605   : > { %6516 = vmatmul.msk.bf16.gmra.mxu0 %vm1451_vm13, %v10502_v36  ;;  %v4481_v44 = vsel %vm11953_vm0, %v4450_v11, %v4234_v40  ;;  %v4806_v51 = vpack.c.bf16 %v4774_v31, %v4774_v31 }
 0x606   : > { %v10507_v55 = vpop.permute.xlu2 %4560 }
 0x607   : > { %v4870_v47 = vunpack.c.l.b16 %v4806_v51 }
 0x608   : > { %4099 = vrot.lane.b32.xlu1 %v10402_v9, %s6634_s26  ;;  %v4711_v41 = vpop.f32.mrf.mxu2 }
 0x609   : > { %v4712_v20 = vadd.f32 %v10163_v22, %v4711_v41  ;;  %4143 = vrot.lane.b32.xlu0 %v4112_v32, %s6635_s27 }
 0x60a   : > { %v4264_v37 = vpop.permute.xlu1 %4263 }
 0x60b   : > { %v4775_v1 = vmax.f32 %v4712_v20, 0.0  ;;  %v4512_v19 = vsel %vm1451_vm13, %v4481_v44, %v4264_v37  ;;  %v3956_v57 = vpop.permute.xlu0 %3955  ;;  %v5121_v44 = vshrl.u32 %v10430_v4, 16 }
 0x60c   : > { %4179 = vrot.lane.b32.xlu2 %v10440_v30, %s6636_s28  ;;  %v4591_v9 = vsel %vm11954_vm15, %v4512_v19, %v10450_v2  ;;  %v4294_v10 = vsel %vm11955_vm14, %v10069_v12, %v3956_v57  ;;  %v5123_v12 = vshll.u32 %v10430_v4, 16 }
 0x60d   : > { %v4807_v32 = vpack.c.bf16 %v4775_v1, %v4775_v1  ;;  %6472 = vmatmul.msk.bf16.gmra.mxu2 %vm4635_vm9, %v4591_v9 }
 0x60e   : > { %v10524_v3 = vpop.permute.xlu2 %4095  ;;  %v5125_v23 = vrot.slane %v5123_v12, 1 }
 0x60f   : > { %v4871_v28 = vunpack.c.l.b16 %v4807_v32 }
 0x610   : > { %5518 = vrot.lane.b32.xlu1 %v10356_v0, %s6656_s16  ;;  %v5126_v1 = vor.u32 %v5125_v23, %v5121_v44 }
 0x611   : > { %v4897_v24 = vpack.c.b16 %v4871_v28, %v4870_v47  ;;  %5550 = vrot.lane.b32.xlu0 %v5119_v5, %s6657_s14 }
 0x612   : > { %v4061_v30 = vpop.permute.xlu1 %4060 }
 0x613   : > { %v4944_v48 = vshrl.u32 %v4897_v24, 16  ;;  %v4138_v2 = vpop.permute.xlu0 %4137  ;;  %v4947_v15 = vshll.u32 %v4897_v24, 16  ;;  %v4324_v60 = vsel %vm11956_vm1, %v4294_v10, %v4061_v30 }
 0x614   : > { %5268 = vrot.lane.b32.xlu2 %v10407_v16, %s6639_s12  ;;  %v6566_v16 = vld [vmem:[%s11312_s7 + $0x38] sm:$0xff]  ;;  %v4356_v63 = vsel %vm11959_vm12, %v4324_v60, %v10467_v17 }
 0x615   : > { %v4946_v25 = vrot.slane %v4944_v48, 7  ;;  %5947 = vmatpush.bf16.msrb.mxu3 %v6566_v16  ;;  %v4388_v11 = vsel %vm1319_vm8, %v4356_v63, %v4138_v2 }
 0x616   : > { %v10535_v45 = vpop.permute.xlu2 %4207 }
 0x617   : > { %v4949_v53 = vor.u32 %v4947_v15, %v4946_v25  ;;  %v10542_v8 = vsel %vm6754_vm3, %v4946_v25, 0  ;;  %v6565_v15 = vld [vmem:[%s11312_s7 + $0x30] sm:$0xff] }
 0x618   : > { %4566 = vrot.lane.b32.xlu1 %v2050_v33, %s6643_s22  ;;  %v4714_v6 = vpop.f32.mrf.mxu2  ;;  %v5342_v31 = vrot.slane %v10542_v8, 1 }
 0x619   : > { %v10553_v40 = vsel %vm6754_vm3, 0, %v4949_v53  ;;  %5375 = vrot.lane.b32.xlu0 %v10251_v27, %s6650_s21  ;;  %v4715_v17 = vadd.f32 %v10163_v22, %v4714_v6  ;;  %v5128_v27 = vshll.u32 %v10422_v58, 16  ;;  %5948 = vmatpush.bf16.msrb.mxu3 %v6565_v15  ;;  %v6560_v15 = vld [vmem:[%s11312_s7 + $0x8] sm:$0xff] }
 0x61a   : > { %v4174_v56 = vpop.permute.xlu1 %4173  ;;  %v5341_v38 = vrot.slane %v10553_v40, 1 }
 0x61b   : > { %v4236_v41 = vpop.permute.xlu0 %4235  ;;  %v4420_v20 = vsel %vm11960_vm10, %v4388_v11, %v4174_v56  ;;  %v4776_v54 = vmax.f32 %v4715_v17, 0.0  ;;  %v5130_v58 = vrot.slane %v5128_v27, 1 }
 0x61c   : > { %5452 = vrot.lane.b32.xlu2 %v5119_v5, %s6652_s24  ;;  %v10564_v59 = vsel %vm931_vm4, %v5341_v38, %v5342_v31  ;;  %v4452_v51 = vsel %vm11952_vm6, %v4420_v20, %v10478_v43 }
 0x61d   : > { %6517 = vmatmul.msk.bf16.gmra.mxu0 %vm1451_vm13, %v10564_v59  ;;  %v4483_v9 = vsel %vm11953_vm0, %v4452_v51, %v4236_v41  ;;  %v4808_v32 = vpack.c.bf16 %v4776_v54, %v4776_v54  ;;  %v10582_v43 = vsel %vm679_vm2, %v5126_v1, %v5130_v58  ;;  %5949 = vmatpush.bf16.msrb.mxu3 %v6564_v49  ;;  %v5140_v41 = vshll.u32 %v10482_v39, 16  ;;  %v6562_v51 = vld [vmem:[%s11312_s7 + $0x18] sm:$0xff] }
 0x61e   : > { %v10570_v37 = vpop.permute.xlu2 %4562 }
 0x61f   : > { %v4872_v2 = vunpack.c.l.b16 %v4808_v32  ;;  %v5142_v58 = vrot.slane %v5140_v41, 1  ;;  %v6561_v32 = vld [vmem:[%s11312_s7 + $0x10] sm:$0xff] }
 0x620   : > { %5408 = vrot.lane.b32.xlu1 %v10356_v0, %s6651_s23  ;;  %v4716_v19 = vpop.f32.mrf.mxu2 }
 0x621   : > { %v4717_v57 = vadd.f32 %v10163_v22, %v4716_v19  ;;  %5488 = vrot.lane.b32.xlu0 %v10371_v42, %s6655_s13 }
 0x622   : > { %v4266_v50 = vpop.permute.xlu1 %4265 }
 0x623   : > { %v4777_v7 = vmax.f32 %v4717_v57, 0.0  ;;  %v4514_v47 = vsel %vm1451_vm13, %v4483_v9, %v4266_v50  ;;  %v3958_v28 = vpop.permute.xlu0 %3957 }
 0x624   : > { %5552 = vrot.lane.b32.xlu2 %v10582_v43, %s6657_s14  ;;  %v4593_v24 = vsel %vm11954_vm15, %v4514_v47, %v10507_v55  ;;  %v4296_v33 = vsel %vm11955_vm14, %v10128_v14, %v3958_v28  ;;  %v6563_v14 = vld [vmem:[%s11312_s7 + $0x20] sm:$0xff]  ;;  %vm5708_vm14 = vcmask 654336  }
 0x625   : > { %v4809_v30 = vpack.c.bf16 %v4777_v7, %v4777_v7  ;;  %6473 = vmatmul.msk.bf16.gmra.mxu2 %vm4635_vm9, %v4593_v24  ;;  %5950 = vmatpush.bf16.msrb.mxu3 %v6563_v14 }
 0x626   : > { %v10589_v48 = vpop.permute.xlu2 %3959 }
 0x627   : > { %v4873_v10 = vunpack.c.l.b16 %v4809_v30 }
 0x628   : > { %5520 = vrot.lane.b32.xlu1 %v10430_v4, %s6656_s16 }
 0x629   : > { %v4898_v25 = vpack.c.b16 %v4873_v10, %v4872_v2  ;;  %5270 = vrot.lane.b32.xlu0 %v5119_v5, %s6639_s12  ;;  %v5135_v5 = vshll.u32 %v10490_v29, 16  ;;  %5951 = vmatpush.bf16.msrb.mxu3 %v6562_v51 }
 0x62a   : > { %v4063_v60 = vpop.permute.xlu1 %4062 }
 0x62b   : > { %v4951_v35 = vshrl.u32 %v4898_v25, 16  ;;  %v4140_v55 = vpop.permute.xlu0 %4139  ;;  %v4954_v12 = vshll.u32 %v4898_v25, 16  ;;  %v4326_v16 = vsel %vm11956_vm1, %v4296_v33, %v4063_v60  ;;  %v5137_v11 = vrot.slane %v5135_v5, 1 }
 0x62c   : > { %5410 = vrot.lane.b32.xlu2 %v10430_v4, %s6651_s23  ;;  %v4358_v38 = vsel %vm11959_vm12, %v4326_v16, %v10524_v3  ;;  %v5133_v3 = vshrl.u32 %v10490_v29, 16  ;;  %v5147_v16 = vshll.u32 %v10553_v40, 16  ;;  %vm5741_vm1 = vcmask 785408  }
 0x62d   : > { %v4953_v53 = vrot.slane %v4951_v35, 7  ;;  %5952 = vmatpush.bf16.msrb.mxu3 %v6561_v32  ;;  %vm5774_vm12 = vcmask 916480  }
 0x62e   : > { %v10606_v63 = vpop.permute.xlu2 %5448  ;;  %v5138_v19 = vor.u32 %v5137_v11, %v5133_v3  ;;  %v5149_v11 = vrot.slane %v5147_v16, 1  ;;  %v5145_v3 = vshrl.u32 %v10553_v40, 16 }
 0x62f   : > { %v4956_v6 = vor.u32 %v4954_v12, %v4953_v53  ;;  %v10610_v56 = vsel %vm6754_vm3, %v4953_v53, 0 }
 0x630   : > { %5377 = vrot.lane.b32.xlu1 %v10371_v42, %s6650_s21  ;;  %v4719_v31 = vpop.f32.mrf.mxu2  ;;  %v5345_v27 = vrot.slane %v10610_v56, 1  ;;  %v4390_v42 = vsel %vm1319_vm8, %v4358_v38, %v4140_v55  ;;  %v5143_v47 = vsel %vm679_vm2, %v5138_v19, %v5142_v58 }
 0x631   : > { %v10621_v17 = vsel %vm6754_vm3, 0, %v4956_v6  ;;  %5454 = vrot.lane.b32.xlu0 %v10582_v43, %s6652_s24  ;;  %v4720_v44 = vadd.f32 %v10163_v22, %v4719_v31  ;;  %5953 = vmatpush.bf16.msrb.mxu3 %v6560_v15 }
 0x632   : > { %v4176_v23 = vpop.permute.xlu1 %4175  ;;  %v5344_v20 = vrot.slane %v10621_v17, 1 }
 0x633   : > { %v4238_v54 = vpop.permute.xlu0 %4237  ;;  %v4422_v1 = vsel %vm11960_vm10, %v4390_v42, %v4176_v23  ;;  %v4778_v9 = vmax.f32 %v4720_v44, 0.0  ;;  %v5152_v23 = vshll.u32 %v10542_v8, 16  ;;  %v5150_v8 = vor.u32 %v5149_v11, %v5145_v3 }
 0x634   : > { %5522 = vrot.lane.b32.xlu2 %v10490_v29, %s6656_s16  ;;  %v10638_v39 = vsel %vm931_vm4, %v5344_v20, %v5345_v27  ;;  %v4454_v50 = vsel %vm11952_vm6, %v4422_v1, %v10535_v45  ;;  %vm11961_vm10 = vcmask 15360   ;;  %vm11962_vm6 = vcmask 31744  }
 0x635   : > { %6518 = vmatmul.msk.bf16.gmra.mxu0 %vm1451_vm13, %v10638_v39  ;;  %v4485_v24 = vsel %vm11953_vm0, %v4454_v50, %v4238_v54  ;;  %v4810_v2 = vpack.c.bf16 %v4778_v9, %v4778_v9  ;;  %v5154_v9 = vrot.slane %v5152_v23, 1  ;;  %vm11963_vm0 = vcmask 48128  }
 0x636   : > { %v10642_v57 = vpop.permute.xlu2 %4141 }
 0x637   : > { %v4874_v49 = vunpack.c.l.b16 %v4810_v2 }
 0x638   : > { %5490 = vrot.lane.b32.xlu1 %v10446_v13, %s6655_s13  ;;  %v4721_v7 = vpop.f32.mrf.mxu2 }
 0x639   : > { %v4722_v28 = vadd.f32 %v10163_v22, %v4721_v7  ;;  %5554 = vrot.lane.b32.xlu0 %v5143_v47, %s6657_s14 }
 0x63a   : > { %v4268_v30 = vpop.permute.xlu1 %4267 }
 0x63b   : > { %v4779_v45 = vmax.f32 %v4722_v28, 0.0  ;;  %v4516_v10 = vsel %vm1451_vm13, %v4485_v24, %v4268_v30  ;;  %v5265_v25 = vpop.permute.xlu0 %5264  ;;  %v5159_v28 = vshll.u32 %v10621_v17, 16 }
 0x63c   : > { %5379 = vrot.lane.b32.xlu2 %v10446_v13, %s6650_s21  ;;  %v4595_v60 = vsel %vm11954_vm15, %v4516_v10, %v10570_v37  ;;  %v6559_v13 = vld [vmem:[%s11312_s7] sm:$0xff]  ;;  %v5581_v27 = vsel %vm1451_vm13, 0, %v5265_v25  ;;  %vm11964_vm15 = vcmask 80896  }
 0x63d   : > { %v4811_v35 = vpack.c.bf16 %v4779_v45, %v4779_v45  ;;  %6474 = vmatmul.msk.bf16.gmra.mxu2 %vm4635_vm9, %v4595_v60  ;;  %5954 = vmatpush.bf16.msrb.mxu3 %v6559_v13  ;;  %v5157_v13 = vshrl.u32 %v10621_v17, 16 }
 0x63e   : > { %v10664_v55 = vpop.permute.xlu2 %5548 }
 0x63f   : > { %v4875_v33 = vunpack.c.l.b16 %v4811_v35  ;;  %v5161_v35 = vrot.slane %v5159_v28, 1 }
 0x640   : > { %5272 = vrot.lane.b32.xlu1 %v10582_v43, %s6639_s12 }
 0x641   : > { %v4899_v5 = vpack.c.b16 %v4875_v33, %v4874_v49  ;;  %5412 = vrot.lane.b32.xlu0 %v10490_v29, %s6651_s23  ;;  %v5164_v33 = vshll.u32 %v10610_v56, 16  ;;  %v5162_v16 = vor.u32 %v5161_v35, %v5157_v13 }
 0x642   : > { %v5372_v37 = vpop.permute.xlu1 %5371 }
 0x643   : > { %v4958_v53 = vshrl.u32 %v4899_v5, 16  ;;  %v5405_v12 = vpop.permute.xlu0 %5404  ;;  %v4961_v14 = vshll.u32 %v4899_v5, 16  ;;  %v5613_v19 = vsel %vm3135_vm11, %v5581_v27, %v5372_v37  ;;  %v4298_v37 = vsel %vm11961_vm10, %v10197_v62, %v10589_v48 }
 0x644   : > { %5492 = vrot.lane.b32.xlu2 %v10502_v36, %s6655_s13  ;;  %v5645_v32 = vsel %vm3200_vm7, %v5613_v19, %v5405_v12  ;;  %vm11965_vm10 = vcmask 97280  }
 0x645   : > { %v4960_v6 = vrot.slane %v4958_v53, 7  ;;  %v5677_v45 = vsel %vm3266_vm5, %v5645_v32, %v10606_v63 }
 0x646   : > { %v10676_v43 = vpop.permute.xlu2 %4269 }
 0x647   : > { %v4963_v38 = vor.u32 %v4961_v14, %v4960_v6  ;;  %v10680_v31 = vsel %vm6754_vm3, %v4960_v6, 0 }
 0x648   : > { %5456 = vrot.lane.b32.xlu1 %v5143_v47, %s6652_s24  ;;  %v4724_v41 = vpop.f32.mrf.mxu2  ;;  %v5348_v54 = vrot.slane %v10680_v31, 1 }
 0x649   : > { %v10686_v20 = vsel %vm6754_vm3, 0, %v4963_v38  ;;  %5524 = vrot.lane.b32.xlu0 %v10553_v40, %s6656_s16  ;;  %v4725_v51 = vadd.f32 %v10163_v22, %v4724_v41  ;;  %v5155_v22 = vsel %vm679_vm2, %v5150_v8, %v5154_v9 }
 0x64a   : > { %v4065_v42 = vpop.permute.xlu1 %4064  ;;  %v5347_v44 = vrot.slane %v10686_v20, 1 }
 0x64b   : > { %v4098_v1 = vpop.permute.xlu0 %4097  ;;  %v4780_v7 = vmax.f32 %v4725_v51, 0.0  ;;  %v4328_v6 = vsel %vm11962_vm6, %v4298_v37, %v4065_v42  ;;  %vm11966_vm6 = vcmask 113664  }
 0x64c   : > { %5274 = vrot.lane.b32.xlu2 %v5143_v47, %s6639_s12  ;;  %v10698_v58 = vsel %vm931_vm4, %v5347_v44, %v5348_v54  ;;  %v10711_v47 = vld [vmem:[%s11311_s6] ss:$0 sm:$0xff]  ;;  %v4360_v38 = vsel %vm11963_vm0, %v4328_v6, %v4098_v1  ;;  %vm11967_vm0 = vcmask 146432  }
 0x64d   : > { %6519 = vmatmul.msk.bf16.gmra.mxu0 %vm1451_vm13, %v10698_v58  ;;  %v4812_v10 = vpack.c.bf16 %v4780_v7, %v4780_v7  ;;  %v4392_v27 = vsel %vm1319_vm8, %v4360_v38, %v10642_v57 }
 0x64e   : > { %v10702_v50 = vpop.permute.xlu2 %5373 }
 0x64f   : > { %v4876_v53 = vunpack.c.l.b16 %v4812_v10 }
 0x650   : > { %5556 = vrot.lane.b32.xlu1 %v5155_v22, %s6657_s14  ;;  %v4726_v24 = vpop.f32.mrf.mxu2 }
 0x651   : > { %v4727_v30 = vadd.f32 %v10711_v47, %v4726_v24  ;;  %5381 = vrot.lane.b32.xlu0 %v10502_v36, %s6650_s21 }
 0x652   : > { %v5485_v2 = vpop.permute.xlu1 %5484 }
 0x653   : > { %v4781_v25 = vmax.f32 %v4727_v30, 0.0  ;;  %v5710_v15 = vsel %vm5708_vm14, %v5677_v45, %v5485_v2  ;;  %v5517_v60 = vpop.permute.xlu0 %5516  ;;  %v5171_v30 = vshll.u32 %v10686_v20, 16 }
 0x654   : > { %v5743_v49 = vsel %vm5741_vm1, %v5710_v15, %v5517_v60  ;;  %5458 = vrot.lane.b32.xlu2 %v5155_v22, %s6652_s24  ;;  %v5176_v60 = vshll.u32 %v10680_v31, 16 }
 0x655   : > { %v4813_v5 = vpack.c.bf16 %v4781_v25, %v4781_v25  ;;  %v5776_v36 = vsel %vm5774_vm12, %v5743_v49, %v10664_v55  ;;  %v5166_v55 = vrot.slane %v5164_v33, 1  ;;  %v5173_v25 = vrot.slane %v5171_v30, 1 }
 0x656   : > { %v10725_v63 = vpop.permute.xlu2 %4066  ;;  %5955 = vmatmul.bf16.vlgmr.msrb.gmra.mxu3 %v5776_v36  ;;  %v5169_v49 = vshrl.u32 %v10686_v20, 16 }
 0x657   : > { %v4877_v12 = vunpack.c.l.b16 %v4813_v5  ;;  %v10737_v62 = vsel %vm679_vm2, %v5162_v16, %v5166_v55 }
 0x658   : > { %5414 = vrot.lane.b32.xlu1 %v10553_v40, %s6651_s23  ;;  %v5174_v13 = vor.u32 %v5173_v25, %v5169_v49 }
 0x659   : > { %v4900_v56 = vpack.c.b16 %v4877_v12, %v4876_v53  ;;  %5494 = vrot.lane.b32.xlu0 %v10564_v59, %s6655_s13  ;;  %v5178_v53 = vrot.slane %v5176_v60, 1 }
 0x65a   : > { %v4178_v14 = vpop.permute.xlu1 %4177 }
 0x65b   : > { %v4965_v11 = vshrl.u32 %v4900_v56, 16  ;;  %v4210_v41 = vpop.permute.xlu0 %4209  ;;  %v4968_v23 = vshll.u32 %v4900_v56, 16  ;;  %v4424_v54 = vsel %vm11964_vm15, %v4392_v27, %v4178_v14  ;;  %v5179_v31 = vsel %vm679_vm2, %v5174_v13, %v5178_v53  ;;  %v11972_v53 = vld [vmem:[#allocation111_spill] sm:$0xff] }
 0x65c   : > { %5558 = vrot.lane.b32.xlu2 %v10737_v62, %s6657_s14  ;;  %v4456_v57 = vsel %vm11965_vm10, %v4424_v54, %v4210_v41  ;;  %vm11968_vm15 = vcmask 15360   ;;  %vm11969_vm10 = vcmask 31744  }
 0x65d   : > { %v4967_v48 = vrot.slane %v4965_v11, 7 }
 0x65e   : > { %v10743_v3 = vpop.permute.xlu2 %5486 }
 0x65f   : > { %v4970_v42 = vor.u32 %v4968_v23, %v4967_v48  ;;  %v10747_v44 = vsel %vm6754_vm3, %v4967_v48, 0 }
 0x660   : > { %5526 = vrot.lane.b32.xlu1 %v10621_v17, %s6656_s16  ;;  %v4729_v51 = vpop.f32.mrf.mxu2  ;;  %v5351_v9 = vrot.slane %v10747_v44, 1  ;;  %v5188_v25 = vshll.u32 %v10747_v44, 16 }
 0x661   : > { %v10754_v1 = vsel %vm6754_vm3, 0, %v4970_v42  ;;  %5276 = vrot.lane.b32.xlu0 %v5155_v22, %s6639_s12  ;;  %v4730_v32 = vadd.f32 %v10711_v47, %v4729_v51 }
 0x662   : > { %v4240_v8 = vpop.permute.xlu1 %4239  ;;  %v5350_v19 = vrot.slane %v10754_v1, 1 }
 0x663   : > { %v4487_v7 = vsel %vm11966_vm6, %v4456_v57, %v4240_v8  ;;  %v4565_v28 = vpop.permute.xlu0 %4564  ;;  %v4782_v10 = vmax.f32 %v4730_v32, 0.0  ;;  %vm11970_vm6 = vcmask 48128  }
 0x664   : > { %v4518_v24 = vsel %vm1451_vm13, %v4487_v7, %v10676_v43  ;;  %5416 = vrot.lane.b32.xlu2 %v10621_v17, %s6651_s23  ;;  %v10767_v22 = vsel %vm931_vm4, %v5350_v19, %v5351_v9 }
 0x665   : > { %v4597_v2 = vsel %vm11967_vm0, %v4518_v24, %v4565_v28  ;;  %6520 = vmatmul.msk.bf16.gmra.mxu0 %vm1451_vm13, %v10767_v22  ;;  %v4814_v33 = vpack.c.bf16 %v4782_v10, %v4782_v10  ;;  %vm11971_vm0 = vcmask 80896  }
 0x666   : > { %v10773_v45 = vpop.permute.xlu2 %4179  ;;  %6475 = vmatmul.msk.bf16.gmra.mxu2 %vm4635_vm9, %v4597_v2 }
 0x667   : > { %v4878_v12 = vunpack.c.l.b16 %v4814_v33 }
 0x668   : > { %5383 = vrot.lane.b32.xlu1 %v10564_v59, %s6650_s21  ;;  %v4731_v43 = vpop.f32.mrf.mxu2 }
 0x669   : > { %v4732_v15 = vadd.f32 %v10711_v47, %v4731_v43  ;;  %5460 = vrot.lane.b32.xlu0 %v10737_v62, %s6652_s24  ;;  %v5181_v43 = vshrl.u32 %v10754_v1, 16 }
 0x66a   : > { %v5267_v35 = vpop.permute.xlu1 %5266 }
 0x66b   : > { %v4783_v5 = vmax.f32 %v4732_v15, 0.0  ;;  %v3962_v36 = vpop.permute.xlu0 %3961  ;;  %v5583_v42 = vsel %vm1451_vm13, %v10319_v18, %v5267_v35  ;;  %v5183_v18 = vshll.u32 %v10754_v1, 16 }
 0x66c   : > { %5528 = vrot.lane.b32.xlu2 %v10686_v20, %s6656_s16  ;;  %v4300_v27 = vsel %vm11968_vm15, %v10271_v46, %v3962_v36  ;;  %vm11975_vm15 = vcmask 113664  }
 0x66d   : > { %v4815_v59 = vpack.c.bf16 %v4783_v5, %v4783_v5  ;;  %v4330_v57 = vsel %vm11969_vm10, %v4300_v27, %v10725_v63  ;;  %vm11976_vm10 = vcmask 146432  }
 0x66e   : > { %v10785_v37 = vpop.permute.xlu2 %5268 }
 0x66f   : > { %v4879_v16 = vunpack.c.l.b16 %v4815_v59 }
 0x670   : > { %5496 = vrot.lane.b32.xlu1 %v10638_v39, %s6655_s13 }
 0x671   : > { %v4901_v6 = vpack.c.b16 %v4879_v16, %v4878_v12  ;;  %5560 = vrot.lane.b32.xlu0 %v5179_v31, %s6657_s14  ;;  %v5190_v12 = vrot.slane %v5188_v25, 1 }
 0x672   : > { %v5407_v56 = vpop.permute.xlu1 %5406 }
 0x673   : > { %v4972_v55 = vshrl.u32 %v4901_v6, 16  ;;  %v5451_v14 = vpop.permute.xlu0 %5450  ;;  %v4975_v11 = vshll.u32 %v4901_v6, 16 }
 0x674   : > { %5385 = vrot.lane.b32.xlu2 %v10638_v39, %s6650_s21 }
 0x675   : > { %v4974_v38 = vrot.slane %v4972_v55, 7 }
 0x676   : > { %v10793_v41 = vpop.permute.xlu2 %5452 }
 0x677   : > { %v4977_v48 = vor.u32 %v4975_v11, %v4974_v38  ;;  %v10797_v23 = vsel %vm6754_vm3, %v4974_v38, 0 }
 0x678   : > { %5278 = vrot.lane.b32.xlu1 %v10737_v62, %s6639_s12  ;;  %v4734_v54 = vpop.f32.mrf.mxu2  ;;  %v5354_v8 = vrot.slane %v10797_v23, 1  ;;  %v5615_v62 = vsel %vm3135_vm11, %v5583_v42, %v10702_v50  ;;  %v5185_v50 = vrot.slane %v5183_v18, 1 }
 0x679   : > { %v10807_v39 = vsel %vm6754_vm3, 0, %v4977_v48  ;;  %5418 = vrot.lane.b32.xlu0 %v10686_v20, %s6651_s23  ;;  %v4735_v19 = vadd.f32 %v10711_v47, %v4734_v54  ;;  %v5647_v7 = vsel %vm3200_vm7, %v5615_v62, %v5407_v56  ;;  %v5200_v62 = vshll.u32 %v10797_v23, 16 }
 0x67a   : > { %v4100_v51 = vpop.permute.xlu1 %4099  ;;  %v5353_v46 = vrot.slane %v10807_v39, 1  ;;  %v5679_v30 = vsel %vm3266_vm5, %v5647_v7, %v5451_v14  ;;  %v5186_v33 = vor.u32 %v5185_v50, %v5181_v43  ;;  %v11974_v14 = vld [vmem:[#allocation119_spill] sm:$0xff]  ;;  %v5195_v11 = vshll.u32 %v10807_v39, 16 }
 0x67b   : > { %v4362_v9 = vsel %vm11970_vm6, %v4330_v57, %v4100_v51  ;;  %v4144_v32 = vpop.permute.xlu0 %4143  ;;  %v4784_v2 = vmax.f32 %v4735_v19, 0.0  ;;  %v5712_v49 = vsel %vm5708_vm14, %v5679_v30, %v10743_v3  ;;  %v5193_v18 = vshrl.u32 %v10807_v39, 16 }
 0x67c   : > { %5498 = vrot.lane.b32.xlu2 %v10698_v58, %s6655_s13  ;;  %v10824_v63 = vsel %vm931_vm4, %v5353_v46, %v5354_v8  ;;  %v4394_v28 = vsel %vm1319_vm8, %v4362_v9, %v4144_v32  ;;  %vm11973_vm8 = vcmask 97280   ;;  %v5191_v3 = vsel %vm679_vm2, %v5186_v33, %v5190_v12 }
 0x67d   : > { %6521 = vmatmul.msk.bf16.gmra.mxu0 %vm1451_vm13, %v10824_v63  ;;  %v4426_v15 = vsel %vm11971_vm0, %v4394_v28, %v10773_v45  ;;  %v4816_v5 = vpack.c.bf16 %v4784_v2, %v4784_v2  ;;  %v5197_v57 = vrot.slane %v5195_v11, 1  ;;  %v5202_v28 = vrot.slane %v5200_v62, 1 }
 0x67e   : > { %v10829_v24 = vpop.permute.xlu2 %5552  ;;  %v4457_v44 = vsel %vm11973_vm8, %v4426_v15, %v11972_v53  ;;  %v5585_v23 = vsel %vm1451_vm13, %v10234_v52, %v10785_v37 }
 0x67f   : > { %v4880_v56 = vunpack.c.l.b16 %v4816_v5  ;;  %v4488_v38 = vsel %vm11975_vm15, %v4457_v44, %v11974_v14  ;;  %v5198_v9 = vor.u32 %v5197_v57, %v5193_v18 }
 0x680   : > { %5462 = vrot.lane.b32.xlu1 %v5179_v31, %s6652_s24  ;;  %v4736_v10 = vpop.f32.mrf.mxu2  ;;  %v4519_v27 = vsel %vm1451_vm13, %v4488_v38, %v11810_v26 }
 0x681   : > { %v4737_v60 = vadd.f32 %v10711_v47, %v4736_v10  ;;  %5530 = vrot.lane.b32.xlu0 %v10754_v1, %s6656_s16  ;;  %v10882_v15 = vsel %vm679_vm2, %v5198_v9, %v5202_v28 }
 0x682   : > { %v5519_v35 = vpop.permute.xlu1 %5518 }
 0x683   : > { %v4785_v36 = vmax.f32 %v4737_v60, 0.0  ;;  %v5745_v13 = vsel %vm5741_vm1, %v5712_v49, %v5519_v35  ;;  %v5551_v59 = vpop.permute.xlu0 %5550 }
 0x684   : > { %5280 = vrot.lane.b32.xlu2 %v5179_v31, %s6639_s12  ;;  %v5779_v45 = vsel %vm5774_vm12, %v5745_v13, %v5551_v59 }
 0x685   : > { %v4817_v16 = vpack.c.bf16 %v4785_v36, %v4785_v36  ;;  %5960 = vmatmul.bf16.gmra.mxu3 %v5779_v45 }
 0x686   : > { %v10847_v6 = vpop.permute.xlu2 %5410 }
 0x687   : > { %v4881_v55 = vunpack.c.l.b16 %v4817_v16 }
 0x688   : > { %5562 = vrot.lane.b32.xlu1 %v5191_v3, %s6657_s14 }
 0x689   : > { %v4902_v48 = vpack.c.b16 %v4881_v55, %v4880_v56  ;;  %5387 = vrot.lane.b32.xlu0 %v10698_v58, %s6650_s21 }
 0x68a   : > { %v4567_v31 = vpop.permute.xlu1 %4566 }
 0x68b   : > { %v4979_v42 = vshrl.u32 %v4902_v48, 16  ;;  %v4599_v54 = vsel %vm11976_vm10, %v4519_v27, %v4567_v31  ;;  %v5376_v51 = vpop.permute.xlu0 %5375  ;;  %v4982_v8 = vshll.u32 %v4902_v48, 16 }
 0x68c   : > { %5464 = vrot.lane.b32.xlu2 %v5191_v3, %s6652_s24  ;;  %6476 = vmatmul.msk.bf16.gmra.mxu2 %vm4635_vm9, %v4599_v54  ;;  %v5617_v10 = vsel %vm3135_vm11, %v5585_v23, %v5376_v51 }
 0x68d   : > { %v4981_v46 = vrot.slane %v4979_v42, 7 }
 0x68e   : > { %v10863_v58 = vpop.permute.xlu2 %5522 }
 0x68f   : > { %v4984_v19 = vor.u32 %v4982_v8, %v4981_v46  ;;  %v5078_v26 = vsel %vm6754_vm3, %v4981_v46, 0 }
 0x690   : > { %5420 = vrot.lane.b32.xlu1 %v10754_v1, %s6651_s23  ;;  %v4739_v32 = vpop.f32.mrf.mxu2  ;;  %v5357_v2 = vrot.slane %v5078_v26, 1 }
 0x691   : > { %v10871_v7 = vsel %vm6754_vm3, 0, %v4984_v19  ;;  %5500 = vrot.lane.b32.xlu0 %v10767_v22, %s6655_s13  ;;  %v4740_v43 = vadd.f32 %v10711_v47, %v4739_v32 }
 0x692   : > { %v5409_v50 = vpop.permute.xlu1 %5408  ;;  %v5356_v30 = vrot.slane %v10871_v7, 1  ;;  %v5207_v12 = vshll.u32 %v10871_v7, 16  ;;  %v5205_v48 = vshrl.u32 %v10871_v7, 16 }
 0x693   : > { %v5489_v25 = vpop.permute.xlu0 %5488  ;;  %v5649_v60 = vsel %vm3200_vm7, %v5617_v10, %v5409_v50  ;;  %v4786_v37 = vmax.f32 %v4740_v43, 0.0 }
 0x694   : > { %5564 = vrot.lane.b32.xlu2 %v10882_v15, %s6657_s14  ;;  %v10888_v35 = vsel %vm931_vm4, %v5356_v30, %v5357_v2  ;;  %v5681_v49 = vsel %vm3266_vm5, %v5649_v60, %v10793_v41  ;;  %v5209_v14 = vrot.slane %v5207_v12, 1 }
 0x695   : > { %6522 = vmatmul.msk.bf16.gmra.mxu0 %vm1451_vm13, %v10888_v35  ;;  %v5714_v36 = vsel %vm5708_vm14, %v5681_v49, %v5489_v25  ;;  %v4818_v59 = vpack.c.bf16 %v4786_v37, %v4786_v37 }
 0x696   : > { %v10892_v52 = vpop.permute.xlu2 %5379 }
 0x698   : > { %5532 = vrot.lane.b32.xlu1 %v10807_v39, %s6656_s16  ;;  %v4741_v33 = vpop.f32.mrf.mxu2 }
 0x699   : > { %v4742_v5 = vadd.f32 %v10711_v47, %v4741_v33  ;;  %5282 = vrot.lane.b32.xlu0 %v5191_v3, %s6639_s12  ;;  %v4882_v3 = vunpack.c.l.b16 %v4818_v59 }
 0x69a   : > { %v5521_v13 = vpop.permute.xlu1 %5520 }
 0x69b   : > { %v4787_v53 = vmax.f32 %v4742_v5, 0.0  ;;  %v5747_v44 = vsel %vm5741_vm1, %v5714_v36, %v5521_v13  ;;  %v5271_v45 = vpop.permute.xlu0 %5270 }
 0x69c   : > { %5422 = vrot.lane.b32.xlu2 %v10807_v39, %s6651_s23  ;;  %v5782_v41 = vsel %vm5774_vm12, %v5747_v44, %v10829_v24  ;;  %v5212_v24 = vshll.u32 %v5078_v26, 16  ;;  %v5587_v27 = vsel %vm1451_vm13, %v10356_v0, %v5271_v45 }
 0x69d   : > { %v4819_v16 = vpack.c.bf16 %v4787_v53, %v4787_v53  ;;  %5965 = vmatmul.bf16.gmra.mxu3 %v5782_v41 }
 0x69e   : > { %v10907_v56 = vpop.permute.xlu2 %5492  ;;  %v5214_v8 = vrot.slane %v5212_v24, 1 }
 0x69f   : > { %v4883_v55 = vunpack.c.l.b16 %v4819_v16 }
 0x6a0   : > { %5389 = vrot.lane.b32.xlu1 %v10767_v22, %s6650_s21  ;;  %v5210_v22 = vor.u32 %v5209_v14, %v5205_v48 }
 0x6a1   : > { %v4903_v38 = vpack.c.b16 %v4883_v55, %v4882_v3  ;;  %5466 = vrot.lane.b32.xlu0 %v10882_v15, %s6652_s24 }
 0x6a2   : > { %v5378_v11 = vpop.permute.xlu1 %5377  ;;  %v5215_v26 = vsel %vm679_vm2, %v5210_v22, %v5214_v8 }
 0x6a3   : > { %v4986_v31 = vshrl.u32 %v4903_v38, 16  ;;  %v5455_v42 = vpop.permute.xlu0 %5454  ;;  %v5619_v54 = vsel %vm3135_vm11, %v5587_v27, %v5378_v11  ;;  %v4989_v57 = vshll.u32 %v4903_v38, 16 }
 0x6a4   : > { %5534 = vrot.lane.b32.xlu2 %v10871_v7, %s6656_s16  ;;  %v5651_v19 = vsel %vm3200_vm7, %v5619_v54, %v10847_v6 }
 0x6a5   : > { %v4988_v51 = vrot.slane %v4986_v31, 7  ;;  %v5683_v32 = vsel %vm3266_vm5, %v5651_v19, %v5455_v42 }
 0x6a6   : > { %v10919_v46 = vpop.permute.xlu2 %5274 }
 0x6a7   : > { %v4991_v18 = vor.u32 %v4989_v57, %v4988_v51  ;;  %v5079_v62 = vsel %vm6754_vm3, %v4988_v51, 0 }
 0x6a8   : > { %5502 = vrot.lane.b32.xlu1 %v10824_v63, %s6655_s13  ;;  %v4744_v0 = vpop.f32.mrf.mxu2  ;;  %v5360_v50 = vrot.slane %v5079_v62, 1  ;;  %v5224_v55 = vshll.u32 %v5079_v62, 16 }
 0x6a9   : > { %v10930_v9 = vsel %vm6754_vm3, 0, %v4991_v18  ;;  %5566 = vrot.lane.b32.xlu0 %v5215_v26, %s6657_s14  ;;  %v4745_v6 = vadd.f32 %v10711_v47, %v4744_v0 }
 0x6aa   : > { %v5491_v28 = vpop.permute.xlu1 %5490  ;;  %v5359_v23 = vrot.slane %v10930_v9, 1  ;;  %v5219_v13 = vshll.u32 %v10930_v9, 16  ;;  %v5217_v3 = vshrl.u32 %v10930_v9, 16  ;;  %v5226_v27 = vrot.slane %v5224_v55, 1 }
 0x6ab   : > { %v5716_v30 = vsel %vm5708_vm14, %v5683_v32, %v5491_v28  ;;  %v5555_v2 = vpop.permute.xlu0 %5554  ;;  %v4788_v37 = vmax.f32 %v4745_v6, 0.0 }
 0x6ac   : > { %5391 = vrot.lane.b32.xlu2 %v10824_v63, %s6650_s21  ;;  %v10940_v10 = vsel %vm931_vm4, %v5359_v23, %v5360_v50  ;;  %v5749_v43 = vsel %vm5741_vm1, %v5716_v30, %v10863_v58  ;;  %v5221_v41 = vrot.slane %v5219_v13, 1 }
 0x6ad   : > { %6523 = vmatmul.msk.bf16.gmra.mxu0 %vm1451_vm13, %v10940_v10  ;;  %v5785_v25 = vsel %vm5774_vm12, %v5749_v43, %v5555_v2  ;;  %v4820_v58 = vpack.c.bf16 %v4788_v37, %v4788_v37 }
 0x6ae   : > { %v10947_v60 = vpop.permute.xlu2 %5458  ;;  %5970 = vmatmul.bf16.gmra.mxu3 %v5785_v25  ;;  %v5222_v48 = vor.u32 %v5221_v41, %v5217_v3 }
 0x6af   : > { %v4884_v44 = vunpack.c.l.b16 %v4820_v58 }
 0x6b0   : > { %5284 = vrot.lane.b32.xlu1 %v10882_v15, %s6639_s12  ;;  %v4746_v49 = vpop.f32.mrf.mxu2  ;;  %v5227_v57 = vsel %vm679_vm2, %v5222_v48, %v5226_v27 }
 0x6b1   : > { %v4747_v63 = vadd.f32 %v10711_v47, %v4746_v49  ;;  %5424 = vrot.lane.b32.xlu0 %v10871_v7, %s6651_s23 }
 0x6b2   : > { %v5273_v33 = vpop.permute.xlu1 %5272 }
 0x6b3   : > { %v4789_v5 = vmax.f32 %v4747_v63, 0.0  ;;  %v5413_v36 = vpop.permute.xlu0 %5412  ;;  %v5589_v53 = vsel %vm1451_vm13, %v10430_v4, %v5273_v33  ;;  %v5591_v33 = vsel %vm1451_vm13, %v10490_v29, %v10919_v46 }
 0x6b4   : > { %5504 = vrot.lane.b32.xlu2 %v10888_v35, %s6655_s13  ;;  %v5621_v12 = vsel %vm3135_vm11, %v5589_v53, %v10892_v52 }
 0x6b5   : > { %v4821_v59 = vpack.c.bf16 %v4789_v5, %v4789_v5  ;;  %v5653_v4 = vsel %vm3200_vm7, %v5621_v12, %v5413_v36 }
 0x6b6   : > { %v10959_v15 = vpop.permute.xlu2 %5558 }
 0x6b7   : > { %v4885_v45 = vunpack.c.l.b16 %v4821_v59 }
 0x6b8   : > { %5468 = vrot.lane.b32.xlu1 %v5215_v26, %s6652_s24 }
 0x6b9   : > { %v4904_v16 = vpack.c.b16 %v4885_v45, %v4884_v44  ;;  %5536 = vrot.lane.b32.xlu0 %v10930_v9, %s6656_s16 }
 0x6ba   : > { %v5457_v14 = vpop.permute.xlu1 %5456 }
 0x6bb   : > { %v4993_v38 = vshrl.u32 %v4904_v16, 16  ;;  %v5525_v11 = vpop.permute.xlu0 %5524  ;;  %v5685_v24 = vsel %vm3266_vm5, %v5653_v4, %v5457_v14  ;;  %v4996_v31 = vshll.u32 %v4904_v16, 16  ;;  %v11016_v14 = vpop.f32.mrf.mxu0 }
 0x6bc   : > { %5286 = vrot.lane.b32.xlu2 %v5215_v26, %s6639_s12  ;;  %v5718_v51 = vsel %vm5708_vm14, %v5685_v24, %v10907_v56 }
 0x6bd   : > { %v4995_v52 = vrot.slane %v4993_v38, 7  ;;  %v5751_v62 = vsel %vm5741_vm1, %v5718_v51, %v5525_v11 }
 0x6be   : > { %v10970_v42 = vpop.permute.xlu2 %5416 }
 0x6bf   : > { %v4998_v54 = vor.u32 %v4996_v31, %v4995_v52  ;;  %v5080_v22 = vsel %vm6754_vm3, %v4995_v52, 0 }
 0x6c0   : > { %5568 = vrot.lane.b32.xlu1 %v5227_v57, %s6657_s14  ;;  %v4749_v8 = vpop.f32.mrf.mxu2  ;;  %v5363_v26 = vrot.slane %v5080_v22, 1  ;;  %v5236_v30 = vshll.u32 %v5080_v22, 16 }
 0x6c1   : > { %v10980_v18 = vsel %vm6754_vm3, 0, %v4998_v54  ;;  %5393 = vrot.lane.b32.xlu0 %v10888_v35, %s6650_s21  ;;  %v4750_v32 = vadd.f32 %v10711_v47, %v4749_v8 }
 0x6c2   : > { %v5557_v19 = vpop.permute.xlu1 %5556  ;;  %v5362_v0 = vrot.slane %v10980_v18, 1  ;;  %v5231_v56 = vshll.u32 %v10980_v18, 16  ;;  %v5229_v6 = vshrl.u32 %v10980_v18, 16  ;;  %v5238_v63 = vrot.slane %v5236_v30, 1 }
 0x6c3   : > { %v5382_v28 = vpop.permute.xlu0 %5381  ;;  %v5788_v23 = vsel %vm5774_vm12, %v5751_v62, %v5557_v19  ;;  %v4790_v43 = vmax.f32 %v4750_v32, 0.0  ;;  %v11043_v32 = vpop.f32.mrf.mxu0 }
 0x6c4   : > { %5470 = vrot.lane.b32.xlu2 %v5227_v57, %s6652_s24  ;;  %5975 = vmatmul.bf16.gmra.mxu3 %v5788_v23  ;;  %v10991_v50 = vsel %vm931_vm4, %v5362_v0, %v5363_v26  ;;  %v5233_v35 = vrot.slane %v5231_v56, 1  ;;  %v5623_v36 = vsel %vm3135_vm11, %v5591_v33, %v5382_v28 }
 0x6c5   : > { %6524 = vmatmul.msk.bf16.gmra.mxu0 %vm1451_vm13, %v10991_v50  ;;  %v4822_v5 = vpack.c.bf16 %v4790_v43, %v4790_v43 }
 0x6c6   : > { %v10996_v2 = vpop.permute.xlu2 %5528  ;;  %v5234_v25 = vor.u32 %v5233_v35, %v5229_v6 }
 0x6c7   : > { %v4886_v41 = vunpack.c.l.b16 %v4822_v5 }
 0x6c8   : > { %5426 = vrot.lane.b32.xlu1 %v10930_v9, %s6651_s23  ;;  %v4751_v37 = vpop.f32.mrf.mxu2  ;;  %v5239_v53 = vsel %vm679_vm2, %v5234_v25, %v5238_v63 }
 0x6c9   : > { %v4752_v49 = vadd.f32 %v10711_v47, %v4751_v37  ;;  %5506 = vrot.lane.b32.xlu0 %v10940_v10, %s6655_s13 }
 0x6ca   : > { %v5415_v58 = vpop.permute.xlu1 %5414 }
 0x6cb   : > { %v4791_v13 = vmax.f32 %v4752_v49, 0.0  ;;  %v5495_v59 = vpop.permute.xlu0 %5494  ;;  %v5655_v44 = vsel %vm3200_vm7, %v5623_v36, %v5415_v58 }
 0x6cc   : > { %5570 = vrot.lane.b32.xlu2 %v5239_v53, %s6657_s14  ;;  %v5687_v16 = vsel %vm3266_vm5, %v5655_v44, %v10947_v60 }
 0x6cd   : > { %v4823_v45 = vpack.c.bf16 %v4791_v13, %v4791_v13  ;;  %v5720_v46 = vsel %vm5708_vm14, %v5687_v16, %v5495_v59 }
 0x6ce   : > { %v5386_v3 = vpop.permute.xlu2 %5385 }
 0x6cf   : > { %v4887_v12 = vunpack.c.l.b16 %v4823_v45 }
 0x6d0   : > { %5538 = vrot.lane.b32.xlu1 %v10980_v18, %s6656_s16 }
 0x6d1   : > { %v4905_v29 = vpack.c.b16 %v4887_v12, %v4886_v41  ;;  %5288 = vrot.lane.b32.xlu0 %v5227_v57, %s6639_s12 }
 0x6d2   : > { %v5527_v55 = vpop.permute.xlu1 %5526 }
 0x6d3   : > { %v5000_v38 = vshrl.u32 %v4905_v29, 16  ;;  %v5753_v4 = vsel %vm5741_vm1, %v5720_v46, %v5527_v55  ;;  %v5277_v11 = vpop.permute.xlu0 %5276  ;;  %v5003_v24 = vshll.u32 %v4905_v29, 16 }
 0x6d4   : > { %5428 = vrot.lane.b32.xlu2 %v10980_v18, %s6651_s23  ;;  %v5791_v60 = vsel %vm5774_vm12, %v5753_v4, %v10959_v15  ;;  %v5593_v62 = vsel %vm1451_vm13, %v10553_v40, %v5277_v11 }
 0x6d5   : > { %v5002_v48 = vrot.slane %v5000_v38, 7  ;;  %5980 = vmatmul.bf16.gmra.mxu3 %v5791_v60 }
 0x6d6   : > { %v5499_v54 = vpop.permute.xlu2 %5498 }
 0x6d7   : > { %v5005_v52 = vor.u32 %v5003_v24, %v5002_v48  ;;  %v5081_v31 = vsel %vm6754_vm3, %v5002_v48, 0 }
 0x6d8   : > { %5395 = vrot.lane.b32.xlu1 %v10940_v10, %s6650_s21  ;;  %v5366_v51 = vrot.slane %v5081_v31, 1  ;;  %v5248_v8 = vshll.u32 %v5081_v31, 16 }
 0x6d9   : > { %5472 = vrot.lane.b32.xlu0 %v5239_v53, %s6652_s24  ;;  %v11030_v27 = vsel %vm6754_vm3, 0, %v5005_v52  ;;  %v11077_v52 = vpop.f32.mrf.mxu0 }
 0x6da   : > { %v5384_v22 = vpop.permute.xlu1 %5383  ;;  %v5365_v15 = vrot.slane %v11030_v27, 1  ;;  %v5243_v57 = vshll.u32 %v11030_v27, 16  ;;  %v5241_v26 = vshrl.u32 %v11030_v27, 16  ;;  %v5250_v23 = vrot.slane %v5248_v8, 1 }
 0x6db   : > { %v5461_v19 = vpop.permute.xlu0 %5460  ;;  %v5625_v10 = vsel %vm3135_vm11, %v5593_v62, %v5384_v22  ;;  %v11079_v22 = vpop.f32.mrf.mxu3 }
 0x6dc   : > { %5540 = vrot.lane.b32.xlu2 %v11030_v27, %s6656_s16  ;;  %v11040_v0 = vsel %vm931_vm4, %v5365_v15, %v5366_v51  ;;  %v5245_v56 = vrot.slane %v5243_v57, 1  ;;  %v5657_v40 = vsel %vm3200_vm7, %v5625_v10, %v10970_v42 }
 0x6dd   : > { %6525 = vmatmul.msk.bf16.gmra.mxu0 %vm1451_vm13, %v11040_v0  ;;  %v5689_v6 = vsel %vm3266_vm5, %v5657_v40, %v5461_v19 }
 0x6de   : > { %v5246_v28 = vor.u32 %v5245_v56, %v5241_v26  ;;  %v5281_v37 = vpop.permute.xlu2 %5280 }
 0x6df   : > { %v5597_v8 = vsel %vm1451_vm13, %v10686_v20, %v5281_v37 }
 0x6e0   : > { %5508 = vrot.lane.b32.xlu1 %v10991_v50, %s6655_s13  ;;  %v5251_v35 = vsel %vm679_vm2, %v5246_v28, %v5250_v23 }
 0x6e1   : > { %5572 = vrot.lane.b32.xlu0 %v5251_v35, %s6657_s14 }
 0x6e2   : > { %v5497_v30 = vpop.permute.xlu1 %5496 }
 0x6e3   : > { %v5722_v43 = vsel %vm5708_vm14, %v5689_v6, %v5497_v30  ;;  %v5561_v25 = vpop.permute.xlu0 %5560  ;;  %v11103_v37 = vpop.f32.mrf.mxu3 }
 0x6e4   : > { %5397 = vrot.lane.b32.xlu2 %v10991_v50, %s6650_s21  ;;  %v5755_v42 = vsel %vm5741_vm1, %v5722_v43, %v10996_v2 }
 0x6e5   : > { %v5794_v49 = vsel %vm5774_vm12, %v5755_v42, %v5561_v25  ;;  %v11099_v25 = vpop.f32.mrf.mxu0 }
 0x6e6   : > { %5985 = vmatmul.bf16.gmra.mxu3 %v5794_v49  ;;  %v5465_v2 = vpop.permute.xlu2 %5464 }
 0x6e8   : > { %5290 = vrot.lane.b32.xlu1 %v5239_v53, %s6639_s12 }
 0x6e9   : > { %5430 = vrot.lane.b32.xlu0 %v11030_v27, %s6651_s23  ;;  %v4754_v63 = vpop.f32.mrf.mxu2 }
 0x6ea   : > { %v5279_v33 = vpop.permute.xlu1 %5278  ;;  %v4755_v5 = vadd.f32 %v10711_v47, %v4754_v63 }
 0x6eb   : > { %v5419_v58 = vpop.permute.xlu0 %5418  ;;  %v5595_v50 = vsel %vm1451_vm13, %v10621_v17, %v5279_v33 }
 0x6ec   : > { %5510 = vrot.lane.b32.xlu2 %v11040_v0, %s6655_s13  ;;  %v4792_v36 = vmax.f32 %v4755_v5, 0.0  ;;  %v5627_v13 = vsel %vm3135_vm11, %v5595_v50, %v5386_v3 }
 0x6ed   : > { %v5659_v45 = vsel %vm3200_vm7, %v5627_v13, %v5419_v58 }
 0x6ee   : > { %v4824_v12 = vpack.c.bf16 %v4792_v36, %v4792_v36  ;;  %v5565_v3 = vpop.permute.xlu2 %5564 }
 0x6f0   : > { %5474 = vrot.lane.b32.xlu1 %v5251_v35, %s6652_s24  ;;  %v4888_v55 = vunpack.c.l.b16 %v4824_v12 }
 0x6f1   : > { %v4756_v59 = vpop.f32.mrf.mxu2 }
 0x6f2   : > { %v4757_v53 = vadd.f32 %v10711_v47, %v4756_v59  ;;  %v5463_v44 = vpop.permute.xlu1 %5462 }
 0x6f3   : > { %v5531_v41 = vpop.permute.xlu0 %5530  ;;  %v5691_v29 = vsel %vm3266_vm5, %v5659_v45, %v5463_v44 }
 0x6f4   : > { %v4793_v16 = vmax.f32 %v4757_v53, 0.0  ;;  %5292 = vrot.lane.b32.xlu2 %v5251_v35, %s6639_s12  ;;  %v5724_v46 = vsel %vm5708_vm14, %v5691_v29, %v5499_v54 }
 0x6f5   : > { %v5757_v11 = vsel %vm5741_vm1, %v5724_v46, %v5531_v41 }
 0x6f6   : > { %v4825_v17 = vpack.c.bf16 %v4793_v16, %v4793_v16  ;;  %v5423_v62 = vpop.permute.xlu2 %5422 }
 0x6f8   : > { %v4889_v38 = vunpack.c.l.b16 %v4825_v17 }
 0x6fa   : > { %v4906_v4 = vpack.c.b16 %v4889_v38, %v4888_v55  ;;  %v5563_v60 = vpop.permute.xlu1 %5562 }
 0x6fb   : > { %v5388_v48 = vpop.permute.xlu0 %5387  ;;  %v5797_v24 = vsel %vm5774_vm12, %v5757_v11, %v5563_v60 }
 0x6fc   : > { %v5007_v31 = vshrl.u32 %v4906_v4, 16  ;;  %5990 = vmatmul.bf16.gmra.mxu3 %v5797_v24  ;;  %v5010_v51 = vshll.u32 %v4906_v4, 16  ;;  %v5629_v19 = vsel %vm3135_vm11, %v5597_v8, %v5388_v48 }
 0x6fe   : > { %v5009_v15 = vrot.slane %v5007_v31, 7  ;;  %v5535_v13 = vpop.permute.xlu2 %5534 }
 0x700   : > { %v5012_v57 = vor.u32 %v5010_v51, %v5009_v15  ;;  %v5082_v54 = vsel %vm6754_vm3, %v5009_v15, 0 }
 0x701   : > { %v5369_v23 = vrot.slane %v5082_v54, 1  ;;  %v5260_v35 = vshll.u32 %v5082_v54, 16 }
 0x702   : > { %v5421_v10 = vpop.permute.xlu1 %5420  ;;  %v11088_v26 = vsel %vm6754_vm3, 0, %v5012_v57 }
 0x703   : > { %5542 = vrot.lane.b32.xlu0 %v11088_v26, %s6656_s16  ;;  %v5501_v56 = vpop.permute.xlu0 %5500  ;;  %v5368_v28 = vrot.slane %v11088_v26, 1  ;;  %v5255_v40 = vshll.u32 %v11088_v26, 16  ;;  %v5661_v20 = vsel %vm3200_vm7, %v5629_v19, %v5421_v10  ;;  %v5253_v30 = vshrl.u32 %v11088_v26, 16 }
 0x704   : > { %v5693_v42 = vsel %vm3266_vm5, %v5661_v20, %v5465_v2  ;;  %v5262_v63 = vrot.slane %v5260_v35, 1 }
 0x705   : > { %v11096_v6 = vsel %vm931_vm4, %v5368_v28, %v5369_v23  ;;  %v5257_v43 = vrot.slane %v5255_v40, 1  ;;  %v5726_v58 = vsel %vm5708_vm14, %v5693_v42, %v5501_v56 }
 0x706   : > { %6526 = vmatmul.msk.bf16.gmra.mxu0 %vm1451_vm13, %v11096_v6  ;;  %v5392_v16 = vpop.permute.xlu2 %5391 }
 0x707   : > { %v5258_v49 = vor.u32 %v5257_v43, %v5253_v30 }
 0x708   : > { %v11114_v59 = vpop.f32.mrf.mxu3 }
 0x709   : > { %v5263_v33 = vsel %vm679_vm2, %v5258_v49, %v5262_v63 }
 0x70a   : > { %v5533_v5 = vpop.permute.xlu1 %5532  ;;  %5476 = vrot.lane.b32.xlu2 %v5263_v33, %s6652_s24  ;;  %5574 = vrot.lane.b32.xlu1 %v5263_v33, %s6657_s14 }
 0x70b   : > { %v5759_v50 = vsel %vm5741_vm1, %v5726_v58, %v5533_v5  ;;  %5399 = vrot.lane.b32.xlu0 %v11040_v0, %s6650_s21  ;;  %v5283_v36 = vpop.permute.xlu0 %5282 }
 0x70c   : > { %v5800_v2 = vsel %vm5774_vm12, %v5759_v50, %v5565_v3  ;;  %v5599_v41 = vsel %vm1451_vm13, %v10754_v1, %v5283_v36 }
 0x70d   : > { %5995 = vmatmul.bf16.gmra.mxu3 %v5800_v2 }
 0x70e   : > { %v5505_v54 = vpop.permute.xlu2 %5504 }
 0x70f   : > { %v4759_v53 = vpop.f32.mrf.mxu2 }
 0x710   : > { %v4760_v44 = vadd.f32 %v10711_v47, %v4759_v53  ;;  %v11126_v3 = vpop.f32.mrf.mxu3 }
 0x712   : > { %v5390_v45 = vpop.permute.xlu1 %5389  ;;  %5432 = vrot.lane.b32.xlu1 %v11088_v26, %s6651_s23  ;;  %v4794_v29 = vmax.f32 %v4760_v44, 0.0 }
 0x713   : > { %5512 = vrot.lane.b32.xlu0 %v11096_v6, %s6655_s13  ;;  %v5467_v0 = vpop.permute.xlu0 %5466  ;;  %v5631_v12 = vsel %vm3135_vm11, %v5599_v41, %v5390_v45 }
 0x714   : > { %v5663_v17 = vsel %vm3200_vm7, %v5631_v12, %v5423_v62  ;;  %v4826_v38 = vpack.c.bf16 %v4794_v29, %v4794_v29 }
 0x715   : > { %v5695_v4 = vsel %vm3266_vm5, %v5663_v17, %v5467_v0 }
 0x716   : > { %v4890_v51 = vunpack.c.l.b16 %v4826_v38  ;;  %v5287_v5 = vpop.permute.xlu2 %5286 }
 0x717   : > { %v4761_v46 = vpop.f32.mrf.mxu2 }
 0x718   : > { %v4762_v55 = vadd.f32 %v10711_v47, %v4761_v46  ;;  %v11133_v47 = vpop.f32.mrf.mxu0 }
 0x71a   : > { %v4795_v11 = vmax.f32 %v4762_v55, 0.0  ;;  %v5503_v1 = vpop.permute.xlu1 %5502 }
 0x71b   : > { %v5728_v60 = vsel %vm5708_vm14, %v5695_v4, %v5503_v1  ;;  %5294 = vrot.lane.b32.xlu0 %v5263_v33, %s6639_s12  ;;  %v5567_v48 = vpop.permute.xlu0 %5566 }
 0x71c   : > { %v4827_v24 = vpack.c.bf16 %v4795_v11, %v4795_v11  ;;  %v5761_v31 = vsel %vm5741_vm1, %v5728_v60, %v5535_v13 }
 0x71d   : > { %v5803_v15 = vsel %vm5774_vm12, %v5761_v31, %v5567_v48 }
 0x71e   : > { %v4891_v57 = vunpack.c.l.b16 %v4827_v24  ;;  %6000 = vmatmul.bf16.gmra.mxu3 %v5803_v15  ;;  %v5471_v38 = vpop.permute.xlu2 %5470 }
 0x720   : > { %v4907_v8 = vpack.c.b16 %v4891_v57, %v4890_v51  ;;  %v11135_v62 = vpop.f32.mrf.mxu3  ;;  %v11144_v42 = vpop.f32.mrf.mxu0 }
 0x722   : > { %v5014_v19 = vshrl.u32 %v4907_v8, 16  ;;  %v5285_v10 = vpop.permute.xlu1 %5284  ;;  %v5017_v23 = vshll.u32 %v4907_v8, 16 }
 0x723   : > { %v5425_v56 = vpop.permute.xlu0 %5424  ;;  %v5601_v40 = vsel %vm1451_vm13, %v10807_v39, %v5285_v10 }
 0x724   : > { %v5016_v28 = vrot.slane %v5014_v19, 7  ;;  %v5633_v30 = vsel %vm3135_vm11, %v5601_v40, %v5392_v16 }
 0x725   : > { %v5665_v39 = vsel %vm3200_vm7, %v5633_v30, %v5425_v56 }
 0x726   : > { %v5083_v35 = vsel %vm6754_vm3, %v5016_v28, 0  ;;  %v5019_v20 = vor.u32 %v5017_v23, %v5016_v28  ;;  %v5571_v31 = vpop.permute.xlu2 %5570 }
 0x727   : > { %v5482_v63 = vrot.slane %v5083_v35, 1  ;;  %v5444_v58 = vshll.u32 %v5083_v35, 16 }
 0x728   : > { %v5067_v43 = vsel %vm6754_vm3, 0, %v5019_v20  ;;  %v11148_v36 = vpop.f32.mrf.mxu3  ;;  %v11159_v16 = vpop.f32.mrf.mxu0  ;;  %vm11977_vm3 = vcmask 1040384  }
 0x729   : > { %5544 = vrot.lane.b32.xlu1 %v5067_v43, %s6656_s16  ;;  %v5481_v49 = vrot.slane %v5067_v43, 1  ;;  %v5439_v33 = vshll.u32 %v5067_v43, 16  ;;  %v5437_v53 = vshrl.u32 %v5067_v43, 16  ;;  %v5446_v41 = vrot.slane %v5444_v58, 1 }
 0x72a   : > { %v5469_v50 = vpop.permute.xlu1 %5468 }
 0x72b   : > { %v5537_v13 = vpop.permute.xlu0 %5536  ;;  %v5483_v2 = vsel %vm931_vm4, %v5481_v49, %v5482_v63  ;;  %v5441_v21 = vrot.slane %v5439_v33, 1  ;;  %v5697_v44 = vsel %vm3266_vm5, %v5665_v39, %v5469_v50 }
 0x72c   : > { %6527 = vmatmul.msk.bf16.gmra.mxu0 %vm1451_vm13, %v5483_v2  ;;  %v5730_v0 = vsel %vm5708_vm14, %v5697_v44, %v5505_v54 }
 0x72d   : > { %v5442_v45 = vor.u32 %v5441_v21, %v5437_v53  ;;  %v5763_v29 = vsel %vm5741_vm1, %v5730_v0, %v5537_v13 }
 0x72f   : > { %v5447_v12 = vsel %vm679_vm2, %v5442_v45, %v5446_v41 }
 0x730   : > { %5478 = vrot.lane.b32.xlu0 %v5447_v12, %s6652_s24  ;;  %5576 = vrot.lane.b32.xlu2 %v5447_v12, %s6657_s14  ;;  %v11172_v48 = vpop.f32.mrf.mxu0 }
 0x731   : > { %5401 = vrot.lane.b32.xlu1 %v11096_v6, %s6650_s21  ;;  %v11163_v4 = vpop.f32.mrf.mxu3  ;;  %v5603_v6 = vsel %vm1451_vm13, %v10871_v7, %v5287_v5 }
 0x732   : > { %v5569_v17 = vpop.permute.xlu1 %5568 }
 0x733   : > { %v5394_v46 = vpop.permute.xlu0 %5393  ;;  %v5806_v55 = vsel %vm5774_vm12, %v5763_v29, %v5569_v17 }
 0x734   : > { %6005 = vmatmul.bf16.gmra.mxu3 %v5806_v55  ;;  %v5635_v1 = vsel %vm3135_vm11, %v5603_v6, %v5394_v46 }
 0x738   : > { %5434 = vrot.lane.b32.xlu2 %v5067_v43, %s6651_s23  ;;  %5578 = vrot.lane.b32.xlu0 %v11843_v34, %s6657_s14  ;;  %v6065_v56 = vpop.f32.mrf.mxu0 }
 0x739   : > { %5514 = vrot.lane.b32.xlu1 %v5483_v2, %s6655_s13  ;;  %v11177_v15 = vpop.f32.mrf.mxu3  ;;  %s6328_s13 = sshll.u32 %s11979_s20, 1 }
 0x73a   : > { %v5427_v11 = vpop.permute.xlu1 %5426  ;;  %s386_s25 = scalar_lea.vmem %s11316_s11, %s6328_s13 }
 0x73b   : > { %v5507_v60 = vpop.permute.xlu0 %5506  ;;  %v5667_v24 = vsel %vm3200_vm7, %v5635_v1, %v5427_v11 }
 0x73c   : > { %6528 = vmatmul.msk.bf16.gmra.mxu0 %vm1451_vm13, %v11843_v34  ;;  %v5699_v51 = vsel %vm3266_vm5, %v5667_v24, %v5471_v38  ;;  %v5429_v34 = vpop.permute.xlu2 %5428 }
 0x73d   : > { %v5732_v7 = vsel %vm5708_vm14, %v5699_v51, %v5507_v60 }
 0x740   : > { %5546 = vrot.lane.b32.xlu2 %v11842_v61, %s6656_s16  ;;  %v6067_v30 = vpop.f32.mrf.mxu0 }
 0x742   : > { %v5539_v57 = vpop.permute.xlu1 %5538 }
 0x743   : > { %v5765_v54 = vsel %vm5741_vm1, %v5732_v7, %v5539_v57  ;;  %v5289_v8 = vpop.permute.xlu0 %5288  ;;  %v11204_v7 = vld [vmem:[%s11313_s8] ss:$0 sm:$0xff] }
 0x744   : > { %v5809_v19 = vsel %vm5774_vm12, %v5765_v54, %v5571_v31  ;;  %v5605_v23 = vsel %vm1451_vm13, %v10930_v9, %v5289_v8  ;;  %v5541_v63 = vpop.permute.xlu2 %5540 }
 0x745   : > { %6010 = vmatmul.bf16.gmra.mxu3 %v5809_v19 }
 0x747   : > { %v5976_v10 = vpop.f32.mrf.mxu3 }
 0x748   : > { %v6070_v39 = vpop.f32.mrf.mxu0  ;;  %v5977_v54 = vadd.f32 %v11204_v7, %v5976_v10 }
 0x74a   : > { %v5396_v28 = vpop.permute.xlu1 %5395 }
 0x74b   : > { %v5473_v40 = vpop.permute.xlu0 %5472  ;;  %v5637_v35 = vsel %vm3135_vm11, %v5605_v23, %v5396_v28  ;;  %v6066_v23 = vadd.f32 %v6065_v56, %v5977_v54 }
 0x74c   : > { %v5669_v61 = vsel %vm3200_vm7, %v5637_v35, %v5429_v34  ;;  %v5398_v45 = vpop.permute.xlu2 %5397 }
 0x74d   : > { %v5701_v43 = vsel %vm3266_vm5, %v5669_v61, %v5473_v40 }
 0x74f   : > { %v5978_v20 = vpop.f32.mrf.mxu3 }
 0x750   : > { %v6072_v2 = vpop.f32.mrf.mxu0  ;;  %v5979_v57 = vadd.f32 %v11204_v7, %v5978_v20  ;;  %v6133_v20 = vmax.f32 %v6066_v23, 0.0 }
 0x752   : > { %v5509_v49 = vpop.permute.xlu1 %5508  ;;  %v6068_v19 = vadd.f32 %v6067_v30, %v5979_v57 }
 0x753   : > { %v5734_v33 = vsel %vm5708_vm14, %v5701_v43, %v5509_v49  ;;  %v5573_v58 = vpop.permute.xlu0 %5572 }
 0x754   : > { %v5767_v5 = vsel %vm5741_vm1, %v5734_v33, %v5541_v63  ;;  %v5511_v11 = vpop.permute.xlu2 %5510  ;;  %v6134_v63 = vmax.f32 %v6068_v19, 0.0  ;;  %v5972_v19 = vadd.f32 %v11204_v7, %v11163_v4 }
 0x755   : > { %v5812_v50 = vsel %vm5774_vm12, %v5767_v5, %v5573_v58 }
 0x756   : > { %6015 = vmatmul.bf16.gmra.mxu3 %v5812_v50 }
 0x758   : > { %v5981_v9 = vpop.f32.mrf.mxu3  ;;  %v6075_v21 = vpop.f32.mrf.mxu0 }
 0x75a   : > { %v5291_v53 = vpop.permute.xlu1 %5290 }
 0x75b   : > { %v5607_v41 = vsel %vm1451_vm13, %v10980_v18, %v5291_v53  ;;  %v5431_v0 = vpop.permute.xlu0 %5430 }
 0x75c   : > { %v5639_v12 = vsel %vm3135_vm11, %v5607_v41, %v5398_v45  ;;  %v5293_v40 = vpop.permute.xlu2 %5292  ;;  %v6162_v45 = vpack.c.bf16 %v6134_v63, %v6133_v20 }
 0x75d   : > { %v5671_v46 = vsel %vm3200_vm7, %v5639_v12, %v5431_v0 }
 0x75e   : > { %v6197_v4 = vsel %vm1451_vm13, %v6162_v45, 0 }
 0x760   : > { %v5983_v13 = vpop.f32.mrf.mxu3  ;;  %v6077_v17 = vpop.f32.mrf.mxu0 }
 0x761   : > { %v5984_v56 = vadd.f32 %v11204_v7, %v5983_v13 }
 0x762   : > { %v5475_v29 = vpop.permute.xlu1 %5474 }
 0x763   : > { %v5703_v38 = vsel %vm3266_vm5, %v5671_v46, %v5475_v29  ;;  %v5982_v46 = vadd.f32 %v11204_v7, %v5981_v9 }
 0x764   : > { %v5736_v1 = vsel %vm5708_vm14, %v5703_v38, %v5511_v11  ;;  %v5477_v41 = vpop.permute.xlu2 %5476  ;;  %v6073_v38 = vadd.f32 %v6072_v2, %v5984_v56 }
 0x765   : > { %v6071_v13 = vadd.f32 %v6070_v39, %v5982_v46  ;;  %v5974_v39 = vadd.f32 %v11204_v7, %v11177_v15  ;;  %v5969_v15 = vadd.f32 %v11204_v7, %v11148_v36 }
 0x767   : > { %v6135_v9 = vmax.f32 %v6071_v13, 0.0 }
 0x768   : > { %v6080_v18 = vpop.f32.mrf.mxu0 }
 0x769   : > { %v5986_v44 = vpop.f32.mrf.mxu3 }
 0x76a   : > { %v5987_v33 = vadd.f32 %v11204_v7, %v5986_v44 }
 0x76c   : > { %v6076_v53 = vadd.f32 %v6075_v21, %v5987_v33  ;;  %v5967_v33 = vadd.f32 %v11204_v7, %v11135_v62  ;;  %v5964_v62 = vadd.f32 %v11204_v7, %v11126_v3 }
 0x770   : > { %v6082_v49 = vpop.f32.mrf.mxu0 }
 0x771   : > { %v5988_v55 = vpop.f32.mrf.mxu3 }
 0x772   : > { %v5989_v35 = vadd.f32 %v11204_v7, %v5988_v55  ;;  %v6137_v55 = vmax.f32 %v6076_v53, 0.0  ;;  %v6056_v53 = vadd.f32 %v11133_v47, %v5967_v33 }
 0x774   : > { %v6078_v5 = vadd.f32 %v6077_v17, %v5989_v35  ;;  %v5609_v17 = vsel %vm1451_vm13, %v11030_v27, %v5293_v40  ;;  %v6063_v40 = vadd.f32 %v11172_v48, %v5974_v39 }
 0x775   : > { %v5543_v6 = vpop.permute.xlu0 %5542 }
 0x776   : > { %v5769_v60 = vsel %vm5741_vm1, %v5736_v1, %v5543_v6  ;;  %v6138_v0 = vmax.f32 %v6078_v5, 0.0  ;;  %v6136_v1 = vmax.f32 %v6073_v38, 0.0  ;;  %v5957_v38 = vadd.f32 %v11204_v7, %v11079_v22 }
 0x778   : > { %v6164_v6 = vpack.c.bf16 %v6138_v0, %v6137_v55  ;;  %v6163_v2 = vpack.c.bf16 %v6136_v1, %v6135_v9  ;;  %v6129_v0 = vmax.f32 %v6056_v53, 0.0  ;;  %v5959_v55 = vadd.f32 %v11204_v7, %v11103_v37 }
 0x77c   : > { %v5575_v24 = vpop.permute.xlu1 %5574 }
 0x77d   : > { %v5815_v31 = vsel %vm5774_vm12, %v5769_v60, %v5575_v24  ;;  %v5400_v34 = vpop.permute.xlu0 %5399 }
 0x77e   : > { %6020 = vmatmul.bf16.gmra.mxu3 %v5815_v31  ;;  %v5641_v21 = vsel %vm3135_vm11, %v5609_v17, %v5400_v34  ;;  %v6203_v31 = vsel %vm1451_vm13, %v6164_v6, 0 }
 0x77f   : > { %v5991_v51 = vpop.f32.mrf.mxu3 }
 0x780   : > { %v5992_v8 = vadd.f32 %v11204_v7, %v5991_v51 }
 0x782   : > { %v6081_v61 = vadd.f32 %v6080_v18, %v5992_v8  ;;  %v6200_v8 = vsel %vm1451_vm13, %v6163_v2, 0 }
 0x784   : > { %v6139_v10 = vmax.f32 %v6081_v61, 0.0  ;;  %v5433_v44 = vpop.permute.xlu1 %5432 }
 0x785   : > { %v5513_v29 = vpop.permute.xlu0 %5512  ;;  %v5673_v11 = vsel %vm3200_vm7, %v5641_v21, %v5433_v44 }
 0x786   : > { %v5705_v60 = vsel %vm3266_vm5, %v5673_v11, %v5477_v41 }
 0x787   : > { %v5993_v28 = vpop.f32.mrf.mxu3  ;;  %v5738_v18 = vsel %vm5708_vm14, %v5705_v60, %v5513_v29  ;;  %v6053_v29 = vadd.f32 %v11099_v25, %v5964_v62  ;;  %v6046_v25 = vadd.f32 %v11016_v14, %v5957_v38 }
 0x788   : > { %v5994_v43 = vadd.f32 %v11204_v7, %v5993_v28 }
 0x789   : > { %v6128_v44 = vmax.f32 %v6053_v29, 0.0  ;;  %v6125_v37 = vmax.f32 %v6046_v25, 0.0 }
 0x78a   : > { %v6083_v58 = vadd.f32 %v6082_v49, %v5994_v43  ;;  %v5577_v24 = vpop.permute.xlu2 %5576  ;;  %v6061_v43 = vadd.f32 %v11159_v16, %v5972_v19  ;;  %v6132_v49 = vmax.f32 %v6063_v40, 0.0  ;;  %v6058_v16 = vadd.f32 %v11144_v42, %v5969_v15 }
 0x78b   : > { %v5962_v42 = vadd.f32 %v11204_v7, %v11114_v59  ;;  %v6048_v59 = vadd.f32 %v11043_v32, %v5959_v55 }
 0x78c   : > { %v6140_v50 = vmax.f32 %v6083_v58, 0.0  ;;  %v6131_v48 = vmax.f32 %v6061_v43, 0.0  ;;  %v6130_v56 = vmax.f32 %v6058_v16, 0.0 }
 0x78d   : > { %v5295_v51 = vpop.permute.xlu0 %5294  ;;  %v6051_v47 = vadd.f32 %v11077_v52, %v5962_v42  ;;  %v6126_v13 = vmax.f32 %v6048_v59, 0.0 }
 0x78e   : > { %v6165_v30 = vpack.c.bf16 %v6140_v50, %v6139_v10  ;;  %v5611_v35 = vsel %vm1451_vm13, %v11088_v26, %v5295_v51  ;;  %v6161_v36 = vpack.c.bf16 %v6132_v49, %v6131_v48  ;;  %v6160_v46 = vpack.c.bf16 %v6130_v56, %v6129_v0 }
 0x78f   : > { %v6127_v21 = vmax.f32 %v6051_v47, 0.0  ;;  %v6158_v60 = vpack.c.bf16 %v6126_v13, %v6125_v37 }
 0x790   : > { %v6206_v12 = vsel %vm1451_vm13, %v6165_v30, 0  ;;  %v5996_v45 = vpop.f32.mrf.mxu3  ;;  %v6194_v41 = vsel %vm1451_vm13, %v6161_v36, 0  ;;  %v6191_v3 = vsel %vm1451_vm13, %v6160_v46, 0 }
 0x791   : > { %6232 = vmatpush.bf16.xpose.msra.mxu2 %v6206_v12  ;;  %v6085_v12 = vpop.f32.mrf.mxu0  ;;  %v6159_v6 = vpack.c.bf16 %v6128_v44, %v6127_v21  ;;  %v5997_v14 = vadd.f32 %v11204_v7, %v5996_v45 }
 0x792   : > { %v5435_v34 = vpop.permute.xlu2 %5434 }
 0x793   : > { %v6188_v52 = vsel %vm1451_vm13, %v6159_v6, 0  ;;  %v6086_v2 = vadd.f32 %v6085_v12, %v5997_v14 }
 0x798   : > { %v5998_v17 = vpop.f32.mrf.mxu3 }
 0x799   : > { %6233 = vmatpush.bf16.xpose.msra.mxu2 %v6203_v31  ;;  %v6087_v11 = vpop.f32.mrf.mxu0  ;;  %v6185_v31 = vsel %vm1451_vm13, %v6158_v60, 0  ;;  %v5999_v32 = vadd.f32 %v11204_v7, %v5998_v17 }
 0x79a   : > { %v5547_v58 = vpop.permute.xlu2 %5546 }
 0x79b   : > { %v5545_v57 = vpop.permute.xlu1 %5544 }
 0x79c   : > { %v5771_v27 = vsel %vm5741_vm1, %v5738_v18, %v5545_v57  ;;  %v6088_v57 = vadd.f32 %v6087_v11, %v5999_v32 }
 0x79d   : > { %v5818_v54 = vsel %vm5774_vm12, %v5771_v27, %v5577_v24 }
 0x79e   : > { %6025 = vmatmul.bf16.gmra.mxu3 %v5818_v54  ;;  %v6142_v39 = vmax.f32 %v6088_v57, 0.0 }
 0x7a1   : > { %6234 = vmatpush.bf16.xpose.msra.mxu2 %v6200_v8  ;;  %v6001_v1 = vpop.f32.mrf.mxu3  ;;  %v6090_v24 = vpop.f32.mrf.mxu0  ;;  %v6141_v8 = vmax.f32 %v6086_v2, 0.0 }
 0x7a2   : > { %v5479_v28 = vpop.permute.xlu0 %5478  ;;  %v6002_v40 = vadd.f32 %v11204_v7, %v6001_v1 }
 0x7a3   : > { %v5402_v23 = vpop.permute.xlu1 %5401  ;;  %v11264_v19 = vpack.c.bf16 %v6142_v39, %v6141_v8 }
 0x7a4   : > { %v5643_v61 = vsel %vm3135_vm11, %v5611_v35, %v5402_v23 }
 0x7a5   : > { %v5675_v63 = vsel %vm3200_vm7, %v5643_v61, %v5435_v34  ;;  %v6091_v61 = vadd.f32 %v6090_v24, %v6002_v40 }
 0x7a6   : > { %v5707_v26 = vsel %vm3266_vm5, %v5675_v63, %v5479_v28 }
 0x7a7   : > { %v6143_v63 = vmax.f32 %v6091_v61, 0.0 }
 0x7a9   : > { %6235 = vmatpush.bf16.xpose.msra.mxu2 %v6197_v4  ;;  %v6003_v9 = vpop.f32.mrf.mxu3  ;;  %v6092_v22 = vpop.f32.mrf.mxu0 }
 0x7aa   : > { %v5579_v5 = vpop.permute.xlu0 %5578  ;;  %v6004_v23 = vadd.f32 %v11204_v7, %v6003_v9 }
 0x7ab   : > { %v5515_v20 = vpop.permute.xlu1 %5514 }
 0x7ac   : > { %v5740_v10 = vsel %vm5708_vm14, %v5707_v26, %v5515_v20  ;;  %v6093_v35 = vadd.f32 %v6092_v22, %v6004_v23 }
 0x7ad   : > { %v5773_v50 = vsel %vm5741_vm1, %v5740_v10, %v5547_v58 }
 0x7ae   : > { %v5821_v30 = vsel %vm5774_vm12, %v5773_v50, %v5579_v5  ;;  %v6144_v43 = vmax.f32 %v6093_v35, 0.0 }
 0x7af   : > { %6030 = vmatmul.bf16.gmra.mxu3 %v5821_v30 }
 0x7b0   : > { %v11268_v4 = vpack.c.bf16 %v6144_v43, %v6143_v63 }
 0x7b1   : > { %6236 = vmatpush.bf16.xpose.msra.mxu2 %v6194_v41  ;;  %v6095_v51 = vpop.f32.mrf.mxu0 }
 0x7b7   : > { %v6006_v18 = vpop.f32.mrf.mxu3 }
 0x7b8   : > { %v6007_v20 = vadd.f32 %v11204_v7, %v6006_v18 }
 0x7b9   : > { %6237 = vmatpush.bf16.xpose.msra.mxu2 %v6191_v3  ;;  %v6097_v54 = vpop.f32.mrf.mxu0 }
 0x7ba   : > { %v6096_v16 = vadd.f32 %v6095_v51, %v6007_v20 }
 0x7bc   : > { %v6145_v50 = vmax.f32 %v6096_v16, 0.0 }
 0x7bf   : > { %v6008_v27 = vpop.f32.mrf.mxu3 }
 0x7c0   : > { %v6009_v58 = vadd.f32 %v11204_v7, %v6008_v27 }
 0x7c1   : > { %6238 = vmatpush.bf16.xpose.msra.mxu2 %v6188_v52  ;;  %v6100_v28 = vpop.f32.mrf.mxu0 }
 0x7c2   : > { %v6098_v26 = vadd.f32 %v6097_v54, %v6009_v58  ;;  %v6174_v58 = vld [vmem:[#allocation2] sm:$0x1] }
 0x7c3   : > { %6177 = vperm.xlu1 %6614, %v6174_v58  }
 0x7c4   : > { %v6146_v36 = vmax.f32 %v6098_v26, 0.0  ;;  %v6212_v26 = vsel %vm1451_vm13, %v11268_v4, 0 }
 0x7c6   : > { %v6168_v53 = vpack.c.bf16 %v6146_v36, %v6145_v50 }
 0x7c8   : > { %v6011_v34 = vpop.f32.mrf.mxu3  ;;  %v6215_v20 = vsel %vm1451_vm13, %v6168_v53, 0 }
 0x7c9   : > { %6239 = vmatpush.bf16.xpose.msra.mxu2 %v6185_v31  ;;  %v6102_v49 = vpop.f32.mrf.mxu0  ;;  %v6012_v56 = vadd.f32 %v11204_v7, %v6011_v34 }
 0x7cb   : > { %v6101_v0 = vadd.f32 %v6100_v28, %v6012_v56 }
 0x7cd   : > { %v6147_v46 = vmax.f32 %v6101_v0, 0.0 }
 0x7d0   : > { %v6013_v15 = vpop.f32.mrf.mxu3 }
 0x7d1   : > { %v6105_v33 = vpop.f32.mrf.mxu0  ;;  %v6014_v62 = vadd.f32 %v11204_v7, %v6013_v15 }
 0x7d3   : > { %v6103_v41 = vadd.f32 %v6102_v49, %v6014_v62 }
 0x7d5   : > { %v6148_v29 = vmax.f32 %v6103_v41, 0.0 }
 0x7d7   : > { %v6169_v47 = vpack.c.bf16 %v6148_v29, %v6147_v46 }
 0x7d9   : > { %v6016_v48 = vpop.f32.mrf.mxu3  ;;  %v6107_v5 = vpop.f32.mrf.mxu0 }
 0x7da   : > { %v6017_v17 = vadd.f32 %v11204_v7, %v6016_v48  ;;  %v6218_v48 = vsel %vm1451_vm13, %v6169_v47, 0 }
 0x7dc   : > { %v6106_v21 = vadd.f32 %v6105_v33, %v6017_v17 }
 0x7de   : > { %v6149_v11 = vmax.f32 %v6106_v21, 0.0 }
 0x7e1   : > { %v6018_v10 = vpop.f32.mrf.mxu3  ;;  %v6110_v30 = vpop.f32.mrf.mxu0 }
 0x7e2   : > { %v6019_v3 = vadd.f32 %v11204_v7, %v6018_v10 }
 0x7e4   : > { %v6108_v38 = vadd.f32 %v6107_v5, %v6019_v3  ;;  %v6209_v5 = vsel %vm1451_vm13, %v11264_v19, 0 }
 0x7e6   : > { %v6150_v25 = vmax.f32 %v6108_v38, 0.0 }
 0x7e8   : > { %v6170_v13 = vpack.c.bf16 %v6150_v25, %v6149_v11 }
 0x7e9   : > { %v6112_v42 = vpop.f32.mrf.mxu0 }
 0x7ea   : > { %v6221_v33 = vsel %vm1451_vm13, %v6170_v13, 0 }
 0x7f1   : > { %v6115_v55 = vpop.f32.mrf.mxu0 }
 0x7f9   : > { %v6117_v6 = vpop.f32.mrf.mxu0 }
 0x801   : > { %v6021_v45 = vpop.f32.mrf.mxu3  ;;  %v6120_v52 = vpop.f32.mrf.mxu0 }
 0x802   : > { %v6022_v34 = vadd.f32 %v11204_v7, %v6021_v45 }
 0x804   : > { %v6111_v35 = vadd.f32 %v6110_v30, %v6022_v34  ;;  %v6263_v30 = vlaneseq }
 0x806   : > { %v6151_v15 = vmax.f32 %v6111_v35, 0.0  ;;  %vm6265_vm2 = vcmp.lt.s32.totalorder %v6263_v30, 256 }
 0x809   : > { %v6023_v12 = vpop.f32.mrf.mxu3  ;;  %v6122_v22 = vpop.f32.mrf.mxu0 }
 0x80a   : > { %v6024_v54 = vadd.f32 %v11204_v7, %v6023_v12 }
 0x80c   : > { %v6113_v23 = vadd.f32 %v6112_v42, %v6024_v54 }
 0x80e   : > { %v6152_v61 = vmax.f32 %v6113_v23, 0.0 }
 0x810   : > { %v6171_v49 = vpack.c.bf16 %v6152_v61, %v6151_v15 }
 0x812   : > { %v6224_v63 = vsel %vm1451_vm13, %v6171_v49, 0 }
 0x821   : > { %v6026_v44 = vpop.f32.mrf.mxu3 }
 0x822   : > { %v6027_v18 = vadd.f32 %v11204_v7, %v6026_v44 }
 0x824   : > { %v6116_v27 = vadd.f32 %v6115_v55, %v6027_v18 }
 0x826   : > { %v6153_v28 = vmax.f32 %v6116_v27, 0.0 }
 0x829   : > { %v6028_v59 = vpop.f32.mrf.mxu3 }
 0x82a   : > { %v6029_v24 = vadd.f32 %v11204_v7, %v6028_v59 }
 0x82c   : > { %v6118_v32 = vadd.f32 %v6117_v6, %v6029_v24 }
 0x82e   : > { %v6154_v39 = vmax.f32 %v6118_v32, 0.0 }
 0x830   : > { %v6172_v40 = vpack.c.bf16 %v6154_v39, %v6153_v28 }
 0x832   : > { %v6031_v37 = vpop.f32.mrf.mxu3  ;;  %v6227_v43 = vsel %vm1451_vm13, %v6172_v40, 0 }
 0x833   : > { %v6032_v1 = vadd.f32 %v11204_v7, %v6031_v37 }
 0x835   : > { %v6121_v31 = vadd.f32 %v6120_v52, %v6032_v1  ;;  %v6178_v36 = vpop.permute.xlu1 %6177 }
 0x836   : > { %v6180_v50 = vperm.slane %v6178_v36, 0 }
 0x837   : > { %v6155_v14 = vmax.f32 %v6121_v31, 0.0 }
 0x83a   : > { %v6033_v60 = vpop.f32.mrf.mxu3 }
 0x83b   : > { %v6034_v9 = vadd.f32 %v11204_v7, %v6033_v60  ;;  %v6157_v7 = vld [vmem:[%s11314_s9] sm:$0x1] }
 0x83c   : > { %6529 = vmatmul.msk.bf16.vlgmr.msra.gmra.mxu2 %vm1451_vm13, %v6157_v7 }
 0x83d   : > { %v6123_v51 = vadd.f32 %v6122_v22, %v6034_v9 }
 0x83f   : > { %v6156_v57 = vmax.f32 %v6123_v51, 0.0 }
 0x841   : > { %v6173_v2 = vpack.c.bf16 %v6156_v57, %v6155_v14 }
 0x843   : > { %v6230_v8 = vsel %vm1451_vm13, %v6173_v2, 0 }
 0x844   : > { %6245 = vmatpush.bf16.xpose.msra.mxu1 %v6230_v8 }
 0x84c   : > { %6246 = vmatpush.bf16.xpose.msra.mxu1 %v6227_v43 }
 0x854   : > { %6247 = vmatpush.bf16.xpose.msra.mxu1 %v6224_v63 }
 0x85c   : > { %6248 = vmatpush.bf16.xpose.msra.mxu1 %v6221_v33 }
 0x864   : > { %6249 = vmatpush.bf16.xpose.msra.mxu1 %v6218_v48 }
 0x86c   : > { %6250 = vmatpush.bf16.xpose.msra.mxu1 %v6215_v20 }
 0x874   : > { %6251 = vmatpush.bf16.xpose.msra.mxu1 %v6212_v26 }
 0x87c   : > { %6252 = vmatpush.bf16.xpose.msra.mxu1 %v6209_v5 }
 0x883   : > { %6530 = vmatmul.msk.bf16.vlgmr.msra.gmra.mxu1 %vm1451_vm13, %v6157_v7 }
 0x8bf   : > { %v6241_v16 = vpop.f32.mrf.mxu2 }
 0x8c0   : > { %v6242_v4 = vadd.f32 %v6241_v16, %v6180_v50 }
 0x8c7   : > { %v6243_v10 = vpop.f32.mrf.mxu2 }
 0x900   : > { %v6254_v45 = vpop.f32.mrf.mxu1 }
 0x901   : > { %v6255_v62 = vadd.f32 %v6254_v45, %v6180_v50 }
 0x903   : > { %v6260_v53 = vrot.slane %v6255_v62, 7 }
 0x905   : > { %v6261_v19 = vsel %vm11977_vm3, %v6242_v4, %v6260_v53 }
 0x906   : > { %6267 = vst.msk [vmem:[%s386_s25] sm:$0x3] %vm6265_vm2, %v6261_v19 }
 0x908   : > { %v6256_v56 = vpop.f32.mrf.mxu1 }
 0x909 PF: > { %s23_s19 = sadd.s32 1, %s6629_s19  }
 0x90a   : > { %p20_p4 = scmp.ge.s32.totalorder %s23_s19, 4  }
 0x90c   :  { %22 = sbr.rel (!%p20_p4) target bundleno = 3 (0x3), region = 94 }

</bundles_post_ra>
